<compile_context>
chip_gen: v7x
topology: tpu7x:2x2x1
jax: 0.10.0
libtpu: 0.0.40
codegen_flags: <defaults>
</compile_context>

<pallas_src>
import functools

import jax
import jax.numpy as jnp
import numpy as np
from jax import lax
from jax.experimental import pallas as pl
from jax.experimental.pallas import tpu as pltpu

BN_EPS = 1e-5
NEG_SLOPE = 0.1
LANE = 128
SUBLANE = 8


def _round_up(x, m):
    return (x + m - 1) // m * m


def _conv_rows(x_ref, w_ref, tap_offsets, row0, rows):
    """Tap-accumulated conv for `rows` output rows at static offset `row0`.

    Accumulates the KH*KW matmuls in a value (vregs / MXU result path) instead
    of read-modify-write on a ref; caller stores the result exactly once.
    """
    acc = None
    for idx, off in enumerate(tap_offsets):
        lo = row0 + off
        contrib = jnp.dot(x_ref[lo:lo + rows, :], w_ref[idx],
                          preferred_element_type=jnp.float32)
        acc = contrib if acc is None else acc + contrib
    return acc


# --------------------------------------------------------------------------- #
# Pass 1: conv (local accumulation) -> masked per-tile partial BN statistics   #
# --------------------------------------------------------------------------- #
def _stats_kernel(x_ref, w_ref, mask_ref, psum_ref, psumsq_ref,
                  *, tap_offsets, tile_m, sub_m):
    tn = psum_ref.shape[-1]
    s = jnp.zeros((1, tn), jnp.float32)
    ss = jnp.zeros((1, tn), jnp.float32)
    for r0 in range(0, tile_m, sub_m):                       # unrolled, static
        y = _conv_rows(x_ref, w_ref, tap_offsets, r0, sub_m)  # [sub_m, TN]
        m = mask_ref[r0:r0 + sub_m, :]                        # [sub_m, 1] 0/1
        ym = y * m
        s = s + jnp.sum(ym, axis=0, keepdims=True)
        ss = ss + jnp.sum(ym * y, axis=0, keepdims=True)
    # Disjoint (8, TN) partial block per (m, oc) tile -> fully parallel grid.
    row0_sel = lax.broadcasted_iota(jnp.int32, psum_ref.shape, 0) == 0
    psum_ref[...] = jnp.where(row0_sel, s, 0.0)
    psumsq_ref[...] = jnp.where(row0_sel, ss, 0.0)


# --------------------------------------------------------------------------- #
# Pass 2: conv recompute -> folded BN scale/shift -> LeakyReLU -> single store #
# --------------------------------------------------------------------------- #
def _conv_bn_act_kernel(x_ref, w_ref, scale_ref, shift_ref, o_ref,
                        *, tap_offsets, tile_m, sub_m):
    scale = scale_ref[...]                                    # [1, TN]
    shift = shift_ref[...]                                    # [1, TN]
    for r0 in range(0, tile_m, sub_m):                        # unrolled, static
        y = _conv_rows(x_ref, w_ref, tap_offsets, r0, sub_m)  # [sub_m, TN]
        y = y * scale + shift
        o_ref[r0:r0 + sub_m, :] = jnp.where(y >= 0, y, NEG_SLOPE * y)


def cnn_forward(x, weight, gamma, beta, *, stride=1, padding=1):
    """x: [N, C, H, W] (NCHW), weight: [OC, C, KH, KW] (PyTorch layouts)."""
    N, C, H, W = x.shape
    OC, _, KH, KW = weight.shape
    HP, WP = H + 2 * padding, W + 2 * padding
    OH = (H + 2 * padding - KH) // stride + 1
    OW = (W + 2 * padding - KW) // stride + 1
    OCp = _round_up(OC, LANE)
    f32 = jnp.float32

    # ---- tile selection (lane-dense TN, vreg-sized sub-blocks, VMEM budget) ----
    TN = min(OCp, 2 * LANE)                                   # 128 or 256 lanes
    SUB_M = max(SUBLANE, ((64 * 1024) // (TN * 4)) // SUBLANE * SUBLANE)
    SUB_M = min(SUB_M, 512)                                   # tap-acc <= ~64 KiB
    budget = 16 * 1024 * 1024                                 # resident-set budget
    w_bytes = 2 * KH * KW * C * TN * 4                        # weights (worst: 2x)
    per_row = 2 * 4 * (C + TN + 1)                            # dbl-buffered x/out/mask
    TM = min(512, max(SUB_M, ((budget - w_bytes) // per_row) // SUB_M * SUB_M))

    Mp = N * HP * WP
    Mp_pad = _round_up(Mp, TM)
    num_m = Mp_pad // TM
    num_n = OCp // TN
    tail = (KH - 1) * WP + (KW - 1)                           # max tap row shift
    TMH = _round_up(TM + tail, SUBLANE)                       # halo-extended tile
    Xrows = (num_m - 1) * TM + TMH
    count = N * OH * OW

    # ---- glue: NCHW -> zero-padded channels-last rows + per-tile halo view ----
    xp = jnp.pad(x.astype(f32),
                 ((0, 0), (0, 0), (padding, padding), (padding, padding)))
    xrows = xp.transpose(0, 2, 3, 1).reshape(Mp, C)
    xrows = jnp.pad(xrows, ((0, Xrows - Mp), (0, 0)))
    row_idx = (jnp.arange(num_m) * TM)[:, None] + jnp.arange(TMH)[None, :]
    xtiles = xrows[row_idx]                                   # [num_m, TMH, C]

    # weights [OC, C, KH, KW] -> per-tap [KH*KW, C, OCp] (lane-padded to 128)
    w_t = weight.astype(f32).transpose(2, 3, 1, 0).reshape(KH * KW, C, OC)
    w_t = jnp.pad(w_t, ((0, 0), (0, 0), (0, OCp - OC)))

    # Validity mask over padded-grid rows (real conv output positions); only
    # needed by the statistics pass.
    r = jnp.arange(Mp_pad)
    q = r % (HP * WP)
    i, j = q // WP, q % WP
    valid = ((r < Mp) & (i % stride == 0) & (j % stride == 0)
             & (i // stride < OH) & (j // stride < OW))
    mask = valid.astype(f32).reshape(Mp_pad, 1)

    tap_offsets = tuple(kh * WP + kw for kh in range(KH) for kw in range(KW))

    est = (2 * TMH * C + 4 * TM * TN + 2 * KH * KW * C * TN + 4 * TM) * 4
    vmem_limit = int(min(64 * 1024 * 1024, max(32 * 1024 * 1024, 2 * est)))
    cparams = pltpu.CompilerParams(
        dimension_semantics=("parallel", "parallel"),
        vmem_limit_bytes=vmem_limit)

    # ---- pass 1: conv + per-tile partial batch statistics (fully parallel) ----
    psum, psumsq = pl.pallas_call(
        functools.partial(_stats_kernel, tap_offsets=tap_offsets,
                          tile_m=TM, sub_m=SUB_M),
        grid=(num_n, num_m),
        in_specs=[
            pl.BlockSpec((None, TMH, C), lambda n, m: (m, 0, 0)),    # halo x tile
            pl.BlockSpec((KH * KW, C, TN), lambda n, m: (0, 0, n)),  # weights
            pl.BlockSpec((TM, 1), lambda n, m: (m, 0)),              # validity mask
        ],
        out_specs=(
            pl.BlockSpec((SUBLANE, TN), lambda n, m: (m, n)),        # partial sum
            pl.BlockSpec((SUBLANE, TN), lambda n, m: (m, n)),        # partial sumsq
        ),
        out_shape=(
            jax.ShapeDtypeStruct((num_m * SUBLANE, OCp), f32),
            jax.ShapeDtypeStruct((num_m * SUBLANE, OCp), f32),
        ),
        compiler_params=cparams,
    )(xtiles, w_t, mask)

    # ---- glue: reduce partials, fold BN into one scale/shift (f32) ----
    ysum = jnp.sum(psum, axis=0)                              # [OCp]
    ysumsq = jnp.sum(psumsq, axis=0)                          # [OCp]
    mean = ysum / count
    var = jnp.maximum(ysumsq / count - mean * mean, 0.0)      # clamp cancellation
    inv_std = lax.rsqrt(var + BN_EPS)
    gamma_p = jnp.pad(gamma.astype(f32), (0, OCp - OC), constant_values=1.0)
    beta_p = jnp.pad(beta.astype(f32), (0, OCp - OC))
    scale1 = gamma_p * inv_std
    shift1 = beta_p - mean * scale1
    scale = scale1.reshape(1, OCp)
    shift = shift1.reshape(1, OCp)

    # ---- pass 2: conv recompute + folded BN + LeakyReLU (no y_pad round trip) ----
    out_pad = pl.pallas_call(
        functools.partial(_conv_bn_act_kernel, tap_offsets=tap_offsets,
                          tile_m=TM, sub_m=SUB_M),
        grid=(num_n, num_m),
        in_specs=[
            pl.BlockSpec((None, TMH, C), lambda n, m: (m, 0, 0)),
            pl.BlockSpec((KH * KW, C, TN), lambda n, m: (0, 0, n)),
            pl.BlockSpec((1, TN), lambda n, m: (0, n)),              # scale
            pl.BlockSpec((1, TN), lambda n, m: (0, n)),              # shift
        ],
        out_specs=pl.BlockSpec((TM, TN), lambda n, m: (m, n)),
        out_shape=jax.ShapeDtypeStruct((Mp_pad, OCp), f32),
        compiler_params=cparams,
    )(xtiles, w_t, scale, shift)

    # ---- glue: gather valid rows/channels, return NCHW ----
    y = out_pad[:Mp].reshape(N, HP, WP, OCp)
    y = y[:, ::stride, ::stride, :][:, :OH, :OW, :OC]
    return jnp.transpose(y, (0, 3, 1, 2))


def cnn_reference(x, weight, gamma, beta, *, stride=1, padding=1):
    """Pure-JAX reference matching the PyTorch forward (BN in training mode)."""
    y = lax.conv_general_dilated(
        x.astype(jnp.float32), weight.astype(jnp.float32),
        window_strides=(stride, stride),
        padding=[(padding, padding), (padding, padding)],
        dimension_numbers=("NCHW", "OIHW", "NCHW"))
    mean = jnp.mean(y, axis=(0, 2, 3), keepdims=True)
    var = jnp.mean((y - mean) ** 2, axis=(0, 2, 3), keepdims=True)  # biased
    y = (y - mean) * lax.rsqrt(var + BN_EPS)
    y = y * gamma.reshape(1, -1, 1, 1) + beta.reshape(1, -1, 1, 1)
    return jnp.where(y >= 0, y, NEG_SLOPE * y)


if __name__ == "__main__":
    # CNN(in_channels=4, out_channels=8, kernel_size=3, stride=1, padding=1)
    # applied to x of shape [2, 4, 16, 16].
    key = jax.random.PRNGKey(0)
    k_x, k_w, k_g, k_b = jax.random.split(key, 4)

    N, C, H, W = 2, 4, 16, 16
    OC, KH, KW = 8, 3, 3

    x = jax.random.normal(k_x, (N, C, H, W), dtype=jnp.float32)
    weight = jax.random.normal(k_w, (OC, C, KH, KW), dtype=jnp.float32) * 0.1
    gamma = 1.0 + 0.1 * jax.random.normal(k_g, (OC,), dtype=jnp.float32)
    beta = 0.1 * jax.random.normal(k_b, (OC,), dtype=jnp.float32)

    fwd = jax.jit(functools.partial(cnn_forward, stride=1, padding=1))
    out = jax.block_until_ready(fwd(x, weight, gamma, beta))

    ref = cnn_reference(x, weight, gamma, beta, stride=1, padding=1)
    np.testing.assert_allclose(np.asarray(out), np.asarray(ref), atol=1e-3, rtol=1e-3)

    print("KERNEL_OK")
</pallas_src>

<mosaic_0001>
module attributes {stable_mosaic.version = 11 : i64} {
  func.func private @main(%arg0: i32) attributes {dimension_semantics = [#tpu.dimension_semantics<core_parallel>], iteration_bounds = array<i64: 2>, tpu.core_type = #tpu.core_type<sc_scalar_subcore>, window_params = []} {
    return
  }
}

module attributes {stable_mosaic.version = 11 : i64} {
  func.func private @main(%arg0: i32) attributes {dimension_semantics = [#tpu.dimension_semantics<core_parallel>], iteration_bounds = array<i64: 2>, tpu.core_type = #tpu.core_type<sc_scalar_subcore>, window_params = []} {
    return
  }
}

module attributes {stable_mosaic.version = 11 : i64} {
  func.func @_stats_kernel(%arg0: i32, %arg1: i32, %arg2: memref<1x552x4xf32, #tpu.memory_space<vmem>>, %arg3: memref<9x4x128xf32, #tpu.memory_space<vmem>>, %arg4: memref<512x1xf32, #tpu.memory_space<vmem>>, %arg5: memref<8x128xf32, #tpu.memory_space<vmem>>, %arg6: memref<8x128xf32, #tpu.memory_space<vmem>>) attributes {dimension_semantics = [#tpu.dimension_semantics<parallel>, #tpu.dimension_semantics<parallel>], iteration_bounds = array<i64: 1, 2>, scalar_prefetch = 0 : i64, scratch_operands = 0 : i64, tpu.core_type = #tpu.core_type<tc>, window_params = [{transform_indices = @transform_0, window_bounds = array<i64: 1, 552, 4>}, {transform_indices = @transform_1, window_bounds = array<i64: 9, 4, 128>}, {transform_indices = @transform_2, window_bounds = array<i64: 512, 1>}, {transform_indices = @transform_3, window_bounds = array<i64: 8, 128>}, {transform_indices = @transform_4, window_bounds = array<i64: 8, 128>}]} {
    %cst = arith.constant 0.000000e+00 : f32
    %0 = vector.broadcast %cst : f32 to vector<1x128xf32>
    %cst_0 = arith.constant 0.000000e+00 : f32
    %1 = vector.broadcast %cst_0 : f32 to vector<1x128xf32>
    %c0 = arith.constant 0 : index
    %c0_1 = arith.constant 0 : index
    %c0_2 = arith.constant 0 : index
    %2 = vector.load %arg2[%c0, %c0_1, %c0_2] : memref<1x552x4xf32, #tpu.memory_space<vmem>>, vector<1x128x4xf32>
    %3 = vector.shape_cast %2 : vector<1x128x4xf32> to vector<128x4xf32>
    %c0_3 = arith.constant 0 : index
    %c0_4 = arith.constant 0 : index
    %c0_5 = arith.constant 0 : index
    %4 = vector.load %arg3[%c0_3, %c0_4, %c0_5] : memref<9x4x128xf32, #tpu.memory_space<vmem>>, vector<1x4x128xf32>
    %5 = vector.shape_cast %4 : vector<1x4x128xf32> to vector<4x128xf32>
    %cst_6 = arith.constant dense<0.000000e+00> : vector<128x128xf32>
    %6 = tpu.matmul %3, %5, %cst_6 {dimension_numbers = #tpu.dot_dimension_numbers<[1], [0], [0], [1], [0, 0, 1, 1], [], []>} : vector<128x4xf32>, vector<4x128xf32>, vector<128x128xf32> -> vector<128x128xf32>
    %c0_7 = arith.constant 0 : index
    %c1 = arith.constant 1 : index
    %c0_8 = arith.constant 0 : index
    %7 = vector.load %arg2[%c0_7, %c1, %c0_8] : memref<1x552x4xf32, #tpu.memory_space<vmem>>, vector<1x128x4xf32>
    %8 = vector.shape_cast %7 : vector<1x128x4xf32> to vector<128x4xf32>
    %c1_9 = arith.constant 1 : index
    %c0_10 = arith.constant 0 : index
    %c0_11 = arith.constant 0 : index
    %9 = vector.load %arg3[%c1_9, %c0_10, %c0_11] : memref<9x4x128xf32, #tpu.memory_space<vmem>>, vector<1x4x128xf32>
    %10 = vector.shape_cast %9 : vector<1x4x128xf32> to vector<4x128xf32>
    %cst_12 = arith.constant dense<0.000000e+00> : vector<128x128xf32>
    %11 = tpu.matmul %8, %10, %cst_12 {dimension_numbers = #tpu.dot_dimension_numbers<[1], [0], [0], [1], [0, 0, 1, 1], [], []>} : vector<128x4xf32>, vector<4x128xf32>, vector<128x128xf32> -> vector<128x128xf32>
    %12 = arith.addf %6, %11 : vector<128x128xf32>
    %c0_13 = arith.constant 0 : index
    %c2 = arith.constant 2 : index
    %c0_14 = arith.constant 0 : index
    %13 = vector.load %arg2[%c0_13, %c2, %c0_14] : memref<1x552x4xf32, #tpu.memory_space<vmem>>, vector<1x128x4xf32>
    %14 = vector.shape_cast %13 : vector<1x128x4xf32> to vector<128x4xf32>
    %c2_15 = arith.constant 2 : index
    %c0_16 = arith.constant 0 : index
    %c0_17 = arith.constant 0 : index
    %15 = vector.load %arg3[%c2_15, %c0_16, %c0_17] : memref<9x4x128xf32, #tpu.memory_space<vmem>>, vector<1x4x128xf32>
    %16 = vector.shape_cast %15 : vector<1x4x128xf32> to vector<4x128xf32>
    %cst_18 = arith.constant dense<0.000000e+00> : vector<128x128xf32>
    %17 = tpu.matmul %14, %16, %cst_18 {dimension_numbers = #tpu.dot_dimension_numbers<[1], [0], [0], [1], [0, 0, 1, 1], [], []>} : vector<128x4xf32>, vector<4x128xf32>, vector<128x128xf32> -> vector<128x128xf32>
    %18 = arith.addf %12, %17 : vector<128x128xf32>
    %c0_19 = arith.constant 0 : index
    %c18 = arith.constant 18 : index
    %c0_20 = arith.constant 0 : index
    %19 = vector.load %arg2[%c0_19, %c18, %c0_20] : memref<1x552x4xf32, #tpu.memory_space<vmem>>, vector<1x128x4xf32>
    %20 = vector.shape_cast %19 : vector<1x128x4xf32> to vector<128x4xf32>
    %c3 = arith.constant 3 : index
    %c0_21 = arith.constant 0 : index
    %c0_22 = arith.constant 0 : index
    %21 = vector.load %arg3[%c3, %c0_21, %c0_22] : memref<9x4x128xf32, #tpu.memory_space<vmem>>, vector<1x4x128xf32>
    %22 = vector.shape_cast %21 : vector<1x4x128xf32> to vector<4x128xf32>
    %cst_23 = arith.constant dense<0.000000e+00> : vector<128x128xf32>
    %23 = tpu.matmul %20, %22, %cst_23 {dimension_numbers = #tpu.dot_dimension_numbers<[1], [0], [0], [1], [0, 0, 1, 1], [], []>} : vector<128x4xf32>, vector<4x128xf32>, vector<128x128xf32> -> vector<128x128xf32>
    %24 = arith.addf %18, %23 : vector<128x128xf32>
    %c0_24 = arith.constant 0 : index
    %c19 = arith.constant 19 : index
    %c0_25 = arith.constant 0 : index
    %25 = vector.load %arg2[%c0_24, %c19, %c0_25] : memref<1x552x4xf32, #tpu.memory_space<vmem>>, vector<1x128x4xf32>
    %26 = vector.shape_cast %25 : vector<1x128x4xf32> to vector<128x4xf32>
    %c4 = arith.constant 4 : index
    %c0_26 = arith.constant 0 : index
    %c0_27 = arith.constant 0 : index
    %27 = vector.load %arg3[%c4, %c0_26, %c0_27] : memref<9x4x128xf32, #tpu.memory_space<vmem>>, vector<1x4x128xf32>
    %28 = vector.shape_cast %27 : vector<1x4x128xf32> to vector<4x128xf32>
    %cst_28 = arith.constant dense<0.000000e+00> : vector<128x128xf32>
    %29 = tpu.matmul %26, %28, %cst_28 {dimension_numbers = #tpu.dot_dimension_numbers<[1], [0], [0], [1], [0, 0, 1, 1], [], []>} : vector<128x4xf32>, vector<4x128xf32>, vector<128x128xf32> -> vector<128x128xf32>
    %30 = arith.addf %24, %29 : vector<128x128xf32>
    %c0_29 = arith.constant 0 : index
    %c20 = arith.constant 20 : index
    %c0_30 = arith.constant 0 : index
    %31 = vector.load %arg2[%c0_29, %c20, %c0_30] : memref<1x552x4xf32, #tpu.memory_space<vmem>>, vector<1x128x4xf32>
    %32 = vector.shape_cast %31 : vector<1x128x4xf32> to vector<128x4xf32>
    %c5 = arith.constant 5 : index
    %c0_31 = arith.constant 0 : index
    %c0_32 = arith.constant 0 : index
    %33 = vector.load %arg3[%c5, %c0_31, %c0_32] : memref<9x4x128xf32, #tpu.memory_space<vmem>>, vector<1x4x128xf32>
    %34 = vector.shape_cast %33 : vector<1x4x128xf32> to vector<4x128xf32>
    %cst_33 = arith.constant dense<0.000000e+00> : vector<128x128xf32>
    %35 = tpu.matmul %32, %34, %cst_33 {dimension_numbers = #tpu.dot_dimension_numbers<[1], [0], [0], [1], [0, 0, 1, 1], [], []>} : vector<128x4xf32>, vector<4x128xf32>, vector<128x128xf32> -> vector<128x128xf32>
    %36 = arith.addf %30, %35 : vector<128x128xf32>
    %c0_34 = arith.constant 0 : index
    %c36 = arith.constant 36 : index
    %c0_35 = arith.constant 0 : index
    %37 = vector.load %arg2[%c0_34, %c36, %c0_35] : memref<1x552x4xf32, #tpu.memory_space<vmem>>, vector<1x128x4xf32>
    %38 = vector.shape_cast %37 : vector<1x128x4xf32> to vector<128x4xf32>
    %c6 = arith.constant 6 : index
    %c0_36 = arith.constant 0 : index
    %c0_37 = arith.constant 0 : index
    %39 = vector.load %arg3[%c6, %c0_36, %c0_37] : memref<9x4x128xf32, #tpu.memory_space<vmem>>, vector<1x4x128xf32>
    %40 = vector.shape_cast %39 : vector<1x4x128xf32> to vector<4x128xf32>
    %cst_38 = arith.constant dense<0.000000e+00> : vector<128x128xf32>
    %41 = tpu.matmul %38, %40, %cst_38 {dimension_numbers = #tpu.dot_dimension_numbers<[1], [0], [0], [1], [0, 0, 1, 1], [], []>} : vector<128x4xf32>, vector<4x128xf32>, vector<128x128xf32> -> vector<128x128xf32>
    %42 = arith.addf %36, %41 : vector<128x128xf32>
    %c0_39 = arith.constant 0 : index
    %c37 = arith.constant 37 : index
    %c0_40 = arith.constant 0 : index
    %43 = vector.load %arg2[%c0_39, %c37, %c0_40] : memref<1x552x4xf32, #tpu.memory_space<vmem>>, vector<1x128x4xf32>
    %44 = vector.shape_cast %43 : vector<1x128x4xf32> to vector<128x4xf32>
    %c7 = arith.constant 7 : index
    %c0_41 = arith.constant 0 : index
    %c0_42 = arith.constant 0 : index
    %45 = vector.load %arg3[%c7, %c0_41, %c0_42] : memref<9x4x128xf32, #tpu.memory_space<vmem>>, vector<1x4x128xf32>
    %46 = vector.shape_cast %45 : vector<1x4x128xf32> to vector<4x128xf32>
    %cst_43 = arith.constant dense<0.000000e+00> : vector<128x128xf32>
    %47 = tpu.matmul %44, %46, %cst_43 {dimension_numbers = #tpu.dot_dimension_numbers<[1], [0], [0], [1], [0, 0, 1, 1], [], []>} : vector<128x4xf32>, vector<4x128xf32>, vector<128x128xf32> -> vector<128x128xf32>
    %48 = arith.addf %42, %47 : vector<128x128xf32>
    %c0_44 = arith.constant 0 : index
    %c38 = arith.constant 38 : index
    %c0_45 = arith.constant 0 : index
    %49 = vector.load %arg2[%c0_44, %c38, %c0_45] : memref<1x552x4xf32, #tpu.memory_space<vmem>>, vector<1x128x4xf32>
    %50 = vector.shape_cast %49 : vector<1x128x4xf32> to vector<128x4xf32>
    %c8 = arith.constant 8 : index
    %c0_46 = arith.constant 0 : index
    %c0_47 = arith.constant 0 : index
    %51 = vector.load %arg3[%c8, %c0_46, %c0_47] : memref<9x4x128xf32, #tpu.memory_space<vmem>>, vector<1x4x128xf32>
    %52 = vector.shape_cast %51 : vector<1x4x128xf32> to vector<4x128xf32>
    %cst_48 = arith.constant dense<0.000000e+00> : vector<128x128xf32>
    %53 = tpu.matmul %50, %52, %cst_48 {dimension_numbers = #tpu.dot_dimension_numbers<[1], [0], [0], [1], [0, 0, 1, 1], [], []>} : vector<128x4xf32>, vector<4x128xf32>, vector<128x128xf32> -> vector<128x128xf32>
    %54 = arith.addf %48, %53 : vector<128x128xf32>
    %c0_49 = arith.constant 0 : index
    %c0_50 = arith.constant 0 : index
    %55 = vector.load %arg4[%c0_49, %c0_50] : memref<512x1xf32, #tpu.memory_space<vmem>>, vector<128x1xf32>
    %56 = vector.broadcast %55 : vector<128x1xf32> to vector<128x128xf32>
    %57 = arith.mulf %54, %56 : vector<128x128xf32>
    %cst_51 = arith.constant dense<0.000000e+00> : vector<128xf32>
    %58 = vector.multi_reduction <add>, %57, %cst_51 [0] : vector<128x128xf32> to vector<128xf32>
    %59 = vector.shape_cast %58 : vector<128xf32> to vector<1x128xf32>
    %60 = arith.addf %0, %59 : vector<1x128xf32>
    %61 = arith.mulf %57, %54 : vector<128x128xf32>
    %cst_52 = arith.constant dense<0.000000e+00> : vector<128xf32>
    %62 = vector.multi_reduction <add>, %61, %cst_52 [0] : vector<128x128xf32> to vector<128xf32>
    %63 = vector.shape_cast %62 : vector<128xf32> to vector<1x128xf32>
    %64 = arith.addf %1, %63 : vector<1x128xf32>
    %c0_53 = arith.constant 0 : index
    %c128 = arith.constant 128 : index
    %c0_54 = arith.constant 0 : index
    %65 = vector.load %arg2[%c0_53, %c128, %c0_54] : memref<1x552x4xf32, #tpu.memory_space<vmem>>, vector<1x128x4xf32>
    %66 = vector.shape_cast %65 : vector<1x128x4xf32> to vector<128x4xf32>
    %c0_55 = arith.constant 0 : index
    %c0_56 = arith.constant 0 : index
    %c0_57 = arith.constant 0 : index
    %67 = vector.load %arg3[%c0_55, %c0_56, %c0_57] : memref<9x4x128xf32, #tpu.memory_space<vmem>>, vector<1x4x128xf32>
    %68 = vector.shape_cast %67 : vector<1x4x128xf32> to vector<4x128xf32>
    %cst_58 = arith.constant dense<0.000000e+00> : vector<128x128xf32>
    %69 = tpu.matmul %66, %68, %cst_58 {dimension_numbers = #tpu.dot_dimension_numbers<[1], [0], [0], [1], [0, 0, 1, 1], [], []>} : vector<128x4xf32>, vector<4x128xf32>, vector<128x128xf32> -> vector<128x128xf32>
    %c0_59 = arith.constant 0 : index
    %c129 = arith.constant 129 : index
    %c0_60 = arith.constant 0 : index
    %70 = vector.load %arg2[%c0_59, %c129, %c0_60] : memref<1x552x4xf32, #tpu.memory_space<vmem>>, vector<1x128x4xf32>
    %71 = vector.shape_cast %70 : vector<1x128x4xf32> to vector<128x4xf32>
    %c1_61 = arith.constant 1 : index
    %c0_62 = arith.constant 0 : index
    %c0_63 = arith.constant 0 : index
    %72 = vector.load %arg3[%c1_61, %c0_62, %c0_63] : memref<9x4x128xf32, #tpu.memory_space<vmem>>, vector<1x4x128xf32>
    %73 = vector.shape_cast %72 : vector<1x4x128xf32> to vector<4x128xf32>
    %cst_64 = arith.constant dense<0.000000e+00> : vector<128x128xf32>
    %74 = tpu.matmul %71, %73, %cst_64 {dimension_numbers = #tpu.dot_dimension_numbers<[1], [0], [0], [1], [0, 0, 1, 1], [], []>} : vector<128x4xf32>, vector<4x128xf32>, vector<128x128xf32> -> vector<128x128xf32>
    %75 = arith.addf %69, %74 : vector<128x128xf32>
    %c0_65 = arith.constant 0 : index
    %c130 = arith.constant 130 : index
    %c0_66 = arith.constant 0 : index
    %76 = vector.load %arg2[%c0_65, %c130, %c0_66] : memref<1x552x4xf32, #tpu.memory_space<vmem>>, vector<1x128x4xf32>
    %77 = vector.shape_cast %76 : vector<1x128x4xf32> to vector<128x4xf32>
    %c2_67 = arith.constant 2 : index
    %c0_68 = arith.constant 0 : index
    %c0_69 = arith.constant 0 : index
    %78 = vector.load %arg3[%c2_67, %c0_68, %c0_69] : memref<9x4x128xf32, #tpu.memory_space<vmem>>, vector<1x4x128xf32>
    %79 = vector.shape_cast %78 : vector<1x4x128xf32> to vector<4x128xf32>
    %cst_70 = arith.constant dense<0.000000e+00> : vector<128x128xf32>
    %80 = tpu.matmul %77, %79, %cst_70 {dimension_numbers = #tpu.dot_dimension_numbers<[1], [0], [0], [1], [0, 0, 1, 1], [], []>} : vector<128x4xf32>, vector<4x128xf32>, vector<128x128xf32> -> vector<128x128xf32>
    %81 = arith.addf %75, %80 : vector<128x128xf32>
    %c0_71 = arith.constant 0 : index
    %c146 = arith.constant 146 : index
    %c0_72 = arith.constant 0 : index
    %82 = vector.load %arg2[%c0_71, %c146, %c0_72] : memref<1x552x4xf32, #tpu.memory_space<vmem>>, vector<1x128x4xf32>
    %83 = vector.shape_cast %82 : vector<1x128x4xf32> to vector<128x4xf32>
    %c3_73 = arith.constant 3 : index
    %c0_74 = arith.constant 0 : index
    %c0_75 = arith.constant 0 : index
    %84 = vector.load %arg3[%c3_73, %c0_74, %c0_75] : memref<9x4x128xf32, #tpu.memory_space<vmem>>, vector<1x4x128xf32>
    %85 = vector.shape_cast %84 : vector<1x4x128xf32> to vector<4x128xf32>
    %cst_76 = arith.constant dense<0.000000e+00> : vector<128x128xf32>
    %86 = tpu.matmul %83, %85, %cst_76 {dimension_numbers = #tpu.dot_dimension_numbers<[1], [0], [0], [1], [0, 0, 1, 1], [], []>} : vector<128x4xf32>, vector<4x128xf32>, vector<128x128xf32> -> vector<128x128xf32>
    %87 = arith.addf %81, %86 : vector<128x128xf32>
    %c0_77 = arith.constant 0 : index
    %c147 = arith.constant 147 : index
    %c0_78 = arith.constant 0 : index
    %88 = vector.load %arg2[%c0_77, %c147, %c0_78] : memref<1x552x4xf32, #tpu.memory_space<vmem>>, vector<1x128x4xf32>
    %89 = vector.shape_cast %88 : vector<1x128x4xf32> to vector<128x4xf32>
    %c4_79 = arith.constant 4 : index
    %c0_80 = arith.constant 0 : index
    %c0_81 = arith.constant 0 : index
    %90 = vector.load %arg3[%c4_79, %c0_80, %c0_81] : memref<9x4x128xf32, #tpu.memory_space<vmem>>, vector<1x4x128xf32>
    %91 = vector.shape_cast %90 : vector<1x4x128xf32> to vector<4x128xf32>
    %cst_82 = arith.constant dense<0.000000e+00> : vector<128x128xf32>
    %92 = tpu.matmul %89, %91, %cst_82 {dimension_numbers = #tpu.dot_dimension_numbers<[1], [0], [0], [1], [0, 0, 1, 1], [], []>} : vector<128x4xf32>, vector<4x128xf32>, vector<128x128xf32> -> vector<128x128xf32>
    %93 = arith.addf %87, %92 : vector<128x128xf32>
    %c0_83 = arith.constant 0 : index
    %c148 = arith.constant 148 : index
    %c0_84 = arith.constant 0 : index
    %94 = vector.load %arg2[%c0_83, %c148, %c0_84] : memref<1x552x4xf32, #tpu.memory_space<vmem>>, vector<1x128x4xf32>
    %95 = vector.shape_cast %94 : vector<1x128x4xf32> to vector<128x4xf32>
    %c5_85 = arith.constant 5 : index
    %c0_86 = arith.constant 0 : index
    %c0_87 = arith.constant 0 : index
    %96 = vector.load %arg3[%c5_85, %c0_86, %c0_87] : memref<9x4x128xf32, #tpu.memory_space<vmem>>, vector<1x4x128xf32>
    %97 = vector.shape_cast %96 : vector<1x4x128xf32> to vector<4x128xf32>
    %cst_88 = arith.constant dense<0.000000e+00> : vector<128x128xf32>
    %98 = tpu.matmul %95, %97, %cst_88 {dimension_numbers = #tpu.dot_dimension_numbers<[1], [0], [0], [1], [0, 0, 1, 1], [], []>} : vector<128x4xf32>, vector<4x128xf32>, vector<128x128xf32> -> vector<128x128xf32>
    %99 = arith.addf %93, %98 : vector<128x128xf32>
    %c0_89 = arith.constant 0 : index
    %c164 = arith.constant 164 : index
    %c0_90 = arith.constant 0 : index
    %100 = vector.load %arg2[%c0_89, %c164, %c0_90] : memref<1x552x4xf32, #tpu.memory_space<vmem>>, vector<1x128x4xf32>
    %101 = vector.shape_cast %100 : vector<1x128x4xf32> to vector<128x4xf32>
    %c6_91 = arith.constant 6 : index
    %c0_92 = arith.constant 0 : index
    %c0_93 = arith.constant 0 : index
    %102 = vector.load %arg3[%c6_91, %c0_92, %c0_93] : memref<9x4x128xf32, #tpu.memory_space<vmem>>, vector<1x4x128xf32>
    %103 = vector.shape_cast %102 : vector<1x4x128xf32> to vector<4x128xf32>
    %cst_94 = arith.constant dense<0.000000e+00> : vector<128x128xf32>
    %104 = tpu.matmul %101, %103, %cst_94 {dimension_numbers = #tpu.dot_dimension_numbers<[1], [0], [0], [1], [0, 0, 1, 1], [], []>} : vector<128x4xf32>, vector<4x128xf32>, vector<128x128xf32> -> vector<128x128xf32>
    %105 = arith.addf %99, %104 : vector<128x128xf32>
    %c0_95 = arith.constant 0 : index
    %c165 = arith.constant 165 : index
    %c0_96 = arith.constant 0 : index
    %106 = vector.load %arg2[%c0_95, %c165, %c0_96] : memref<1x552x4xf32, #tpu.memory_space<vmem>>, vector<1x128x4xf32>
    %107 = vector.shape_cast %106 : vector<1x128x4xf32> to vector<128x4xf32>
    %c7_97 = arith.constant 7 : index
    %c0_98 = arith.constant 0 : index
    %c0_99 = arith.constant 0 : index
    %108 = vector.load %arg3[%c7_97, %c0_98, %c0_99] : memref<9x4x128xf32, #tpu.memory_space<vmem>>, vector<1x4x128xf32>
    %109 = vector.shape_cast %108 : vector<1x4x128xf32> to vector<4x128xf32>
    %cst_100 = arith.constant dense<0.000000e+00> : vector<128x128xf32>
    %110 = tpu.matmul %107, %109, %cst_100 {dimension_numbers = #tpu.dot_dimension_numbers<[1], [0], [0], [1], [0, 0, 1, 1], [], []>} : vector<128x4xf32>, vector<4x128xf32>, vector<128x128xf32> -> vector<128x128xf32>
    %111 = arith.addf %105, %110 : vector<128x128xf32>
    %c0_101 = arith.constant 0 : index
    %c166 = arith.constant 166 : index
    %c0_102 = arith.constant 0 : index
    %112 = vector.load %arg2[%c0_101, %c166, %c0_102] : memref<1x552x4xf32, #tpu.memory_space<vmem>>, vector<1x128x4xf32>
    %113 = vector.shape_cast %112 : vector<1x128x4xf32> to vector<128x4xf32>
    %c8_103 = arith.constant 8 : index
    %c0_104 = arith.constant 0 : index
    %c0_105 = arith.constant 0 : index
    %114 = vector.load %arg3[%c8_103, %c0_104, %c0_105] : memref<9x4x128xf32, #tpu.memory_space<vmem>>, vector<1x4x128xf32>
    %115 = vector.shape_cast %114 : vector<1x4x128xf32> to vector<4x128xf32>
    %cst_106 = arith.constant dense<0.000000e+00> : vector<128x128xf32>
    %116 = tpu.matmul %113, %115, %cst_106 {dimension_numbers = #tpu.dot_dimension_numbers<[1], [0], [0], [1], [0, 0, 1, 1], [], []>} : vector<128x4xf32>, vector<4x128xf32>, vector<128x128xf32> -> vector<128x128xf32>
    %117 = arith.addf %111, %116 : vector<128x128xf32>
    %c128_107 = arith.constant 128 : index
    %c0_108 = arith.constant 0 : index
    %118 = vector.load %arg4[%c128_107, %c0_108] : memref<512x1xf32, #tpu.memory_space<vmem>>, vector<128x1xf32>
    %119 = vector.broadcast %118 : vector<128x1xf32> to vector<128x128xf32>
    %120 = arith.mulf %117, %119 : vector<128x128xf32>
    %cst_109 = arith.constant dense<0.000000e+00> : vector<128xf32>
    %121 = vector.multi_reduction <add>, %120, %cst_109 [0] : vector<128x128xf32> to vector<128xf32>
    %122 = vector.shape_cast %121 : vector<128xf32> to vector<1x128xf32>
    %123 = arith.addf %60, %122 : vector<1x128xf32>
    %124 = arith.mulf %120, %117 : vector<128x128xf32>
    %cst_110 = arith.constant dense<0.000000e+00> : vector<128xf32>
    %125 = vector.multi_reduction <add>, %124, %cst_110 [0] : vector<128x128xf32> to vector<128xf32>
    %126 = vector.shape_cast %125 : vector<128xf32> to vector<1x128xf32>
    %127 = arith.addf %64, %126 : vector<1x128xf32>
    %c0_111 = arith.constant 0 : index
    %c256 = arith.constant 256 : index
    %c0_112 = arith.constant 0 : index
    %128 = vector.load %arg2[%c0_111, %c256, %c0_112] : memref<1x552x4xf32, #tpu.memory_space<vmem>>, vector<1x128x4xf32>
    %129 = vector.shape_cast %128 : vector<1x128x4xf32> to vector<128x4xf32>
    %c0_113 = arith.constant 0 : index
    %c0_114 = arith.constant 0 : index
    %c0_115 = arith.constant 0 : index
    %130 = vector.load %arg3[%c0_113, %c0_114, %c0_115] : memref<9x4x128xf32, #tpu.memory_space<vmem>>, vector<1x4x128xf32>
    %131 = vector.shape_cast %130 : vector<1x4x128xf32> to vector<4x128xf32>
    %cst_116 = arith.constant dense<0.000000e+00> : vector<128x128xf32>
    %132 = tpu.matmul %129, %131, %cst_116 {dimension_numbers = #tpu.dot_dimension_numbers<[1], [0], [0], [1], [0, 0, 1, 1], [], []>} : vector<128x4xf32>, vector<4x128xf32>, vector<128x128xf32> -> vector<128x128xf32>
    %c0_117 = arith.constant 0 : index
    %c257 = arith.constant 257 : index
    %c0_118 = arith.constant 0 : index
    %133 = vector.load %arg2[%c0_117, %c257, %c0_118] : memref<1x552x4xf32, #tpu.memory_space<vmem>>, vector<1x128x4xf32>
    %134 = vector.shape_cast %133 : vector<1x128x4xf32> to vector<128x4xf32>
    %c1_119 = arith.constant 1 : index
    %c0_120 = arith.constant 0 : index
    %c0_121 = arith.constant 0 : index
    %135 = vector.load %arg3[%c1_119, %c0_120, %c0_121] : memref<9x4x128xf32, #tpu.memory_space<vmem>>, vector<1x4x128xf32>
    %136 = vector.shape_cast %135 : vector<1x4x128xf32> to vector<4x128xf32>
    %cst_122 = arith.constant dense<0.000000e+00> : vector<128x128xf32>
    %137 = tpu.matmul %134, %136, %cst_122 {dimension_numbers = #tpu.dot_dimension_numbers<[1], [0], [0], [1], [0, 0, 1, 1], [], []>} : vector<128x4xf32>, vector<4x128xf32>, vector<128x128xf32> -> vector<128x128xf32>
    %138 = arith.addf %132, %137 : vector<128x128xf32>
    %c0_123 = arith.constant 0 : index
    %c258 = arith.constant 258 : index
    %c0_124 = arith.constant 0 : index
    %139 = vector.load %arg2[%c0_123, %c258, %c0_124] : memref<1x552x4xf32, #tpu.memory_space<vmem>>, vector<1x128x4xf32>
    %140 = vector.shape_cast %139 : vector<1x128x4xf32> to vector<128x4xf32>
    %c2_125 = arith.constant 2 : index
    %c0_126 = arith.constant 0 : index
    %c0_127 = arith.constant 0 : index
    %141 = vector.load %arg3[%c2_125, %c0_126, %c0_127] : memref<9x4x128xf32, #tpu.memory_space<vmem>>, vector<1x4x128xf32>
    %142 = vector.shape_cast %141 : vector<1x4x128xf32> to vector<4x128xf32>
    %cst_128 = arith.constant dense<0.000000e+00> : vector<128x128xf32>
    %143 = tpu.matmul %140, %142, %cst_128 {dimension_numbers = #tpu.dot_dimension_numbers<[1], [0], [0], [1], [0, 0, 1, 1], [], []>} : vector<128x4xf32>, vector<4x128xf32>, vector<128x128xf32> -> vector<128x128xf32>
    %144 = arith.addf %138, %143 : vector<128x128xf32>
    %c0_129 = arith.constant 0 : index
    %c274 = arith.constant 274 : index
    %c0_130 = arith.constant 0 : index
    %145 = vector.load %arg2[%c0_129, %c274, %c0_130] : memref<1x552x4xf32, #tpu.memory_space<vmem>>, vector<1x128x4xf32>
    %146 = vector.shape_cast %145 : vector<1x128x4xf32> to vector<128x4xf32>
    %c3_131 = arith.constant 3 : index
    %c0_132 = arith.constant 0 : index
    %c0_133 = arith.constant 0 : index
    %147 = vector.load %arg3[%c3_131, %c0_132, %c0_133] : memref<9x4x128xf32, #tpu.memory_space<vmem>>, vector<1x4x128xf32>
    %148 = vector.shape_cast %147 : vector<1x4x128xf32> to vector<4x128xf32>
    %cst_134 = arith.constant dense<0.000000e+00> : vector<128x128xf32>
    %149 = tpu.matmul %146, %148, %cst_134 {dimension_numbers = #tpu.dot_dimension_numbers<[1], [0], [0], [1], [0, 0, 1, 1], [], []>} : vector<128x4xf32>, vector<4x128xf32>, vector<128x128xf32> -> vector<128x128xf32>
    %150 = arith.addf %144, %149 : vector<128x128xf32>
    %c0_135 = arith.constant 0 : index
    %c275 = arith.constant 275 : index
    %c0_136 = arith.constant 0 : index
    %151 = vector.load %arg2[%c0_135, %c275, %c0_136] : memref<1x552x4xf32, #tpu.memory_space<vmem>>, vector<1x128x4xf32>
    %152 = vector.shape_cast %151 : vector<1x128x4xf32> to vector<128x4xf32>
    %c4_137 = arith.constant 4 : index
    %c0_138 = arith.constant 0 : index
    %c0_139 = arith.constant 0 : index
    %153 = vector.load %arg3[%c4_137, %c0_138, %c0_139] : memref<9x4x128xf32, #tpu.memory_space<vmem>>, vector<1x4x128xf32>
    %154 = vector.shape_cast %153 : vector<1x4x128xf32> to vector<4x128xf32>
    %cst_140 = arith.constant dense<0.000000e+00> : vector<128x128xf32>
    %155 = tpu.matmul %152, %154, %cst_140 {dimension_numbers = #tpu.dot_dimension_numbers<[1], [0], [0], [1], [0, 0, 1, 1], [], []>} : vector<128x4xf32>, vector<4x128xf32>, vector<128x128xf32> -> vector<128x128xf32>
    %156 = arith.addf %150, %155 : vector<128x128xf32>
    %c0_141 = arith.constant 0 : index
    %c276 = arith.constant 276 : index
    %c0_142 = arith.constant 0 : index
    %157 = vector.load %arg2[%c0_141, %c276, %c0_142] : memref<1x552x4xf32, #tpu.memory_space<vmem>>, vector<1x128x4xf32>
    %158 = vector.shape_cast %157 : vector<1x128x4xf32> to vector<128x4xf32>
    %c5_143 = arith.constant 5 : index
    %c0_144 = arith.constant 0 : index
    %c0_145 = arith.constant 0 : index
    %159 = vector.load %arg3[%c5_143, %c0_144, %c0_145] : memref<9x4x128xf32, #tpu.memory_space<vmem>>, vector<1x4x128xf32>
    %160 = vector.shape_cast %159 : vector<1x4x128xf32> to vector<4x128xf32>
    %cst_146 = arith.constant dense<0.000000e+00> : vector<128x128xf32>
    %161 = tpu.matmul %158, %160, %cst_146 {dimension_numbers = #tpu.dot_dimension_numbers<[1], [0], [0], [1], [0, 0, 1, 1], [], []>} : vector<128x4xf32>, vector<4x128xf32>, vector<128x128xf32> -> vector<128x128xf32>
    %162 = arith.addf %156, %161 : vector<128x128xf32>
    %c0_147 = arith.constant 0 : index
    %c292 = arith.constant 292 : index
    %c0_148 = arith.constant 0 : index
    %163 = vector.load %arg2[%c0_147, %c292, %c0_148] : memref<1x552x4xf32, #tpu.memory_space<vmem>>, vector<1x128x4xf32>
    %164 = vector.shape_cast %163 : vector<1x128x4xf32> to vector<128x4xf32>
    %c6_149 = arith.constant 6 : index
    %c0_150 = arith.constant 0 : index
    %c0_151 = arith.constant 0 : index
    %165 = vector.load %arg3[%c6_149, %c0_150, %c0_151] : memref<9x4x128xf32, #tpu.memory_space<vmem>>, vector<1x4x128xf32>
    %166 = vector.shape_cast %165 : vector<1x4x128xf32> to vector<4x128xf32>
    %cst_152 = arith.constant dense<0.000000e+00> : vector<128x128xf32>
    %167 = tpu.matmul %164, %166, %cst_152 {dimension_numbers = #tpu.dot_dimension_numbers<[1], [0], [0], [1], [0, 0, 1, 1], [], []>} : vector<128x4xf32>, vector<4x128xf32>, vector<128x128xf32> -> vector<128x128xf32>
    %168 = arith.addf %162, %167 : vector<128x128xf32>
    %c0_153 = arith.constant 0 : index
    %c293 = arith.constant 293 : index
    %c0_154 = arith.constant 0 : index
    %169 = vector.load %arg2[%c0_153, %c293, %c0_154] : memref<1x552x4xf32, #tpu.memory_space<vmem>>, vector<1x128x4xf32>
    %170 = vector.shape_cast %169 : vector<1x128x4xf32> to vector<128x4xf32>
    %c7_155 = arith.constant 7 : index
    %c0_156 = arith.constant 0 : index
    %c0_157 = arith.constant 0 : index
    %171 = vector.load %arg3[%c7_155, %c0_156, %c0_157] : memref<9x4x128xf32, #tpu.memory_space<vmem>>, vector<1x4x128xf32>
    %172 = vector.shape_cast %171 : vector<1x4x128xf32> to vector<4x128xf32>
    %cst_158 = arith.constant dense<0.000000e+00> : vector<128x128xf32>
    %173 = tpu.matmul %170, %172, %cst_158 {dimension_numbers = #tpu.dot_dimension_numbers<[1], [0], [0], [1], [0, 0, 1, 1], [], []>} : vector<128x4xf32>, vector<4x128xf32>, vector<128x128xf32> -> vector<128x128xf32>
    %174 = arith.addf %168, %173 : vector<128x128xf32>
    %c0_159 = arith.constant 0 : index
    %c294 = arith.constant 294 : index
    %c0_160 = arith.constant 0 : index
    %175 = vector.load %arg2[%c0_159, %c294, %c0_160] : memref<1x552x4xf32, #tpu.memory_space<vmem>>, vector<1x128x4xf32>
    %176 = vector.shape_cast %175 : vector<1x128x4xf32> to vector<128x4xf32>
    %c8_161 = arith.constant 8 : index
    %c0_162 = arith.constant 0 : index
    %c0_163 = arith.constant 0 : index
    %177 = vector.load %arg3[%c8_161, %c0_162, %c0_163] : memref<9x4x128xf32, #tpu.memory_space<vmem>>, vector<1x4x128xf32>
    %178 = vector.shape_cast %177 : vector<1x4x128xf32> to vector<4x128xf32>
    %cst_164 = arith.constant dense<0.000000e+00> : vector<128x128xf32>
    %179 = tpu.matmul %176, %178, %cst_164 {dimension_numbers = #tpu.dot_dimension_numbers<[1], [0], [0], [1], [0, 0, 1, 1], [], []>} : vector<128x4xf32>, vector<4x128xf32>, vector<128x128xf32> -> vector<128x128xf32>
    %180 = arith.addf %174, %179 : vector<128x128xf32>
    %c256_165 = arith.constant 256 : index
    %c0_166 = arith.constant 0 : index
    %181 = vector.load %arg4[%c256_165, %c0_166] : memref<512x1xf32, #tpu.memory_space<vmem>>, vector<128x1xf32>
    %182 = vector.broadcast %181 : vector<128x1xf32> to vector<128x128xf32>
    %183 = arith.mulf %180, %182 : vector<128x128xf32>
    %cst_167 = arith.constant dense<0.000000e+00> : vector<128xf32>
    %184 = vector.multi_reduction <add>, %183, %cst_167 [0] : vector<128x128xf32> to vector<128xf32>
    %185 = vector.shape_cast %184 : vector<128xf32> to vector<1x128xf32>
    %186 = arith.addf %123, %185 : vector<1x128xf32>
    %187 = arith.mulf %183, %180 : vector<128x128xf32>
    %cst_168 = arith.constant dense<0.000000e+00> : vector<128xf32>
    %188 = vector.multi_reduction <add>, %187, %cst_168 [0] : vector<128x128xf32> to vector<128xf32>
    %189 = vector.shape_cast %188 : vector<128xf32> to vector<1x128xf32>
    %190 = arith.addf %127, %189 : vector<1x128xf32>
    %c0_169 = arith.constant 0 : index
    %c384 = arith.constant 384 : index
    %c0_170 = arith.constant 0 : index
    %191 = vector.load %arg2[%c0_169, %c384, %c0_170] : memref<1x552x4xf32, #tpu.memory_space<vmem>>, vector<1x128x4xf32>
    %192 = vector.shape_cast %191 : vector<1x128x4xf32> to vector<128x4xf32>
    %c0_171 = arith.constant 0 : index
    %c0_172 = arith.constant 0 : index
    %c0_173 = arith.constant 0 : index
    %193 = vector.load %arg3[%c0_171, %c0_172, %c0_173] : memref<9x4x128xf32, #tpu.memory_space<vmem>>, vector<1x4x128xf32>
    %194 = vector.shape_cast %193 : vector<1x4x128xf32> to vector<4x128xf32>
    %cst_174 = arith.constant dense<0.000000e+00> : vector<128x128xf32>
    %195 = tpu.matmul %192, %194, %cst_174 {dimension_numbers = #tpu.dot_dimension_numbers<[1], [0], [0], [1], [0, 0, 1, 1], [], []>} : vector<128x4xf32>, vector<4x128xf32>, vector<128x128xf32> -> vector<128x128xf32>
    %c0_175 = arith.constant 0 : index
    %c385 = arith.constant 385 : index
    %c0_176 = arith.constant 0 : index
    %196 = vector.load %arg2[%c0_175, %c385, %c0_176] : memref<1x552x4xf32, #tpu.memory_space<vmem>>, vector<1x128x4xf32>
    %197 = vector.shape_cast %196 : vector<1x128x4xf32> to vector<128x4xf32>
    %c1_177 = arith.constant 1 : index
    %c0_178 = arith.constant 0 : index
    %c0_179 = arith.constant 0 : index
    %198 = vector.load %arg3[%c1_177, %c0_178, %c0_179] : memref<9x4x128xf32, #tpu.memory_space<vmem>>, vector<1x4x128xf32>
    %199 = vector.shape_cast %198 : vector<1x4x128xf32> to vector<4x128xf32>
    %cst_180 = arith.constant dense<0.000000e+00> : vector<128x128xf32>
    %200 = tpu.matmul %197, %199, %cst_180 {dimension_numbers = #tpu.dot_dimension_numbers<[1], [0], [0], [1], [0, 0, 1, 1], [], []>} : vector<128x4xf32>, vector<4x128xf32>, vector<128x128xf32> -> vector<128x128xf32>
    %201 = arith.addf %195, %200 : vector<128x128xf32>
    %c0_181 = arith.constant 0 : index
    %c386 = arith.constant 386 : index
    %c0_182 = arith.constant 0 : index
    %202 = vector.load %arg2[%c0_181, %c386, %c0_182] : memref<1x552x4xf32, #tpu.memory_space<vmem>>, vector<1x128x4xf32>
    %203 = vector.shape_cast %202 : vector<1x128x4xf32> to vector<128x4xf32>
    %c2_183 = arith.constant 2 : index
    %c0_184 = arith.constant 0 : index
    %c0_185 = arith.constant 0 : index
    %204 = vector.load %arg3[%c2_183, %c0_184, %c0_185] : memref<9x4x128xf32, #tpu.memory_space<vmem>>, vector<1x4x128xf32>
    %205 = vector.shape_cast %204 : vector<1x4x128xf32> to vector<4x128xf32>
    %cst_186 = arith.constant dense<0.000000e+00> : vector<128x128xf32>
    %206 = tpu.matmul %203, %205, %cst_186 {dimension_numbers = #tpu.dot_dimension_numbers<[1], [0], [0], [1], [0, 0, 1, 1], [], []>} : vector<128x4xf32>, vector<4x128xf32>, vector<128x128xf32> -> vector<128x128xf32>
    %207 = arith.addf %201, %206 : vector<128x128xf32>
    %c0_187 = arith.constant 0 : index
    %c402 = arith.constant 402 : index
    %c0_188 = arith.constant 0 : index
    %208 = vector.load %arg2[%c0_187, %c402, %c0_188] : memref<1x552x4xf32, #tpu.memory_space<vmem>>, vector<1x128x4xf32>
    %209 = vector.shape_cast %208 : vector<1x128x4xf32> to vector<128x4xf32>
    %c3_189 = arith.constant 3 : index
    %c0_190 = arith.constant 0 : index
    %c0_191 = arith.constant 0 : index
    %210 = vector.load %arg3[%c3_189, %c0_190, %c0_191] : memref<9x4x128xf32, #tpu.memory_space<vmem>>, vector<1x4x128xf32>
    %211 = vector.shape_cast %210 : vector<1x4x128xf32> to vector<4x128xf32>
    %cst_192 = arith.constant dense<0.000000e+00> : vector<128x128xf32>
    %212 = tpu.matmul %209, %211, %cst_192 {dimension_numbers = #tpu.dot_dimension_numbers<[1], [0], [0], [1], [0, 0, 1, 1], [], []>} : vector<128x4xf32>, vector<4x128xf32>, vector<128x128xf32> -> vector<128x128xf32>
    %213 = arith.addf %207, %212 : vector<128x128xf32>
    %c0_193 = arith.constant 0 : index
    %c403 = arith.constant 403 : index
    %c0_194 = arith.constant 0 : index
    %214 = vector.load %arg2[%c0_193, %c403, %c0_194] : memref<1x552x4xf32, #tpu.memory_space<vmem>>, vector<1x128x4xf32>
    %215 = vector.shape_cast %214 : vector<1x128x4xf32> to vector<128x4xf32>
    %c4_195 = arith.constant 4 : index
    %c0_196 = arith.constant 0 : index
    %c0_197 = arith.constant 0 : index
    %216 = vector.load %arg3[%c4_195, %c0_196, %c0_197] : memref<9x4x128xf32, #tpu.memory_space<vmem>>, vector<1x4x128xf32>
    %217 = vector.shape_cast %216 : vector<1x4x128xf32> to vector<4x128xf32>
    %cst_198 = arith.constant dense<0.000000e+00> : vector<128x128xf32>
    %218 = tpu.matmul %215, %217, %cst_198 {dimension_numbers = #tpu.dot_dimension_numbers<[1], [0], [0], [1], [0, 0, 1, 1], [], []>} : vector<128x4xf32>, vector<4x128xf32>, vector<128x128xf32> -> vector<128x128xf32>
    %219 = arith.addf %213, %218 : vector<128x128xf32>
    %c0_199 = arith.constant 0 : index
    %c404 = arith.constant 404 : index
    %c0_200 = arith.constant 0 : index
    %220 = vector.load %arg2[%c0_199, %c404, %c0_200] : memref<1x552x4xf32, #tpu.memory_space<vmem>>, vector<1x128x4xf32>
    %221 = vector.shape_cast %220 : vector<1x128x4xf32> to vector<128x4xf32>
    %c5_201 = arith.constant 5 : index
    %c0_202 = arith.constant 0 : index
    %c0_203 = arith.constant 0 : index
    %222 = vector.load %arg3[%c5_201, %c0_202, %c0_203] : memref<9x4x128xf32, #tpu.memory_space<vmem>>, vector<1x4x128xf32>
    %223 = vector.shape_cast %222 : vector<1x4x128xf32> to vector<4x128xf32>
    %cst_204 = arith.constant dense<0.000000e+00> : vector<128x128xf32>
    %224 = tpu.matmul %221, %223, %cst_204 {dimension_numbers = #tpu.dot_dimension_numbers<[1], [0], [0], [1], [0, 0, 1, 1], [], []>} : vector<128x4xf32>, vector<4x128xf32>, vector<128x128xf32> -> vector<128x128xf32>
    %225 = arith.addf %219, %224 : vector<128x128xf32>
    %c0_205 = arith.constant 0 : index
    %c420 = arith.constant 420 : index
    %c0_206 = arith.constant 0 : index
    %226 = vector.load %arg2[%c0_205, %c420, %c0_206] : memref<1x552x4xf32, #tpu.memory_space<vmem>>, vector<1x128x4xf32>
    %227 = vector.shape_cast %226 : vector<1x128x4xf32> to vector<128x4xf32>
    %c6_207 = arith.constant 6 : index
    %c0_208 = arith.constant 0 : index
    %c0_209 = arith.constant 0 : index
    %228 = vector.load %arg3[%c6_207, %c0_208, %c0_209] : memref<9x4x128xf32, #tpu.memory_space<vmem>>, vector<1x4x128xf32>
    %229 = vector.shape_cast %228 : vector<1x4x128xf32> to vector<4x128xf32>
    %cst_210 = arith.constant dense<0.000000e+00> : vector<128x128xf32>
    %230 = tpu.matmul %227, %229, %cst_210 {dimension_numbers = #tpu.dot_dimension_numbers<[1], [0], [0], [1], [0, 0, 1, 1], [], []>} : vector<128x4xf32>, vector<4x128xf32>, vector<128x128xf32> -> vector<128x128xf32>
    %231 = arith.addf %225, %230 : vector<128x128xf32>
    %c0_211 = arith.constant 0 : index
    %c421 = arith.constant 421 : index
    %c0_212 = arith.constant 0 : index
    %232 = vector.load %arg2[%c0_211, %c421, %c0_212] : memref<1x552x4xf32, #tpu.memory_space<vmem>>, vector<1x128x4xf32>
    %233 = vector.shape_cast %232 : vector<1x128x4xf32> to vector<128x4xf32>
    %c7_213 = arith.constant 7 : index
    %c0_214 = arith.constant 0 : index
    %c0_215 = arith.constant 0 : index
    %234 = vector.load %arg3[%c7_213, %c0_214, %c0_215] : memref<9x4x128xf32, #tpu.memory_space<vmem>>, vector<1x4x128xf32>
    %235 = vector.shape_cast %234 : vector<1x4x128xf32> to vector<4x128xf32>
    %cst_216 = arith.constant dense<0.000000e+00> : vector<128x128xf32>
    %236 = tpu.matmul %233, %235, %cst_216 {dimension_numbers = #tpu.dot_dimension_numbers<[1], [0], [0], [1], [0, 0, 1, 1], [], []>} : vector<128x4xf32>, vector<4x128xf32>, vector<128x128xf32> -> vector<128x128xf32>
    %237 = arith.addf %231, %236 : vector<128x128xf32>
    %c0_217 = arith.constant 0 : index
    %c422 = arith.constant 422 : index
    %c0_218 = arith.constant 0 : index
    %238 = vector.load %arg2[%c0_217, %c422, %c0_218] : memref<1x552x4xf32, #tpu.memory_space<vmem>>, vector<1x128x4xf32>
    %239 = vector.shape_cast %238 : vector<1x128x4xf32> to vector<128x4xf32>
    %c8_219 = arith.constant 8 : index
    %c0_220 = arith.constant 0 : index
    %c0_221 = arith.constant 0 : index
    %240 = vector.load %arg3[%c8_219, %c0_220, %c0_221] : memref<9x4x128xf32, #tpu.memory_space<vmem>>, vector<1x4x128xf32>
    %241 = vector.shape_cast %240 : vector<1x4x128xf32> to vector<4x128xf32>
    %cst_222 = arith.constant dense<0.000000e+00> : vector<128x128xf32>
    %242 = tpu.matmul %239, %241, %cst_222 {dimension_numbers = #tpu.dot_dimension_numbers<[1], [0], [0], [1], [0, 0, 1, 1], [], []>} : vector<128x4xf32>, vector<4x128xf32>, vector<128x128xf32> -> vector<128x128xf32>
    %243 = arith.addf %237, %242 : vector<128x128xf32>
    %c384_223 = arith.constant 384 : index
    %c0_224 = arith.constant 0 : index
    %244 = vector.load %arg4[%c384_223, %c0_224] : memref<512x1xf32, #tpu.memory_space<vmem>>, vector<128x1xf32>
    %245 = vector.broadcast %244 : vector<128x1xf32> to vector<128x128xf32>
    %246 = arith.mulf %243, %245 : vector<128x128xf32>
    %cst_225 = arith.constant dense<0.000000e+00> : vector<128xf32>
    %247 = vector.multi_reduction <add>, %246, %cst_225 [0] : vector<128x128xf32> to vector<128xf32>
    %248 = vector.shape_cast %247 : vector<128xf32> to vector<1x128xf32>
    %249 = arith.addf %186, %248 : vector<1x128xf32>
    %250 = arith.mulf %246, %243 : vector<128x128xf32>
    %cst_226 = arith.constant dense<0.000000e+00> : vector<128xf32>
    %251 = vector.multi_reduction <add>, %250, %cst_226 [0] : vector<128x128xf32> to vector<128xf32>
    %252 = vector.shape_cast %251 : vector<128xf32> to vector<1x128xf32>
    %253 = arith.addf %190, %252 : vector<1x128xf32>
    %254 = tpu.iota {dimensions = array<i32: 0>} : vector<8x128xi32>
    %c0_i32 = arith.constant 0 : i32
    %255 = vector.broadcast %c0_i32 : i32 to vector<8x128xi32>
    %256 = arith.cmpi eq, %254, %255 : vector<8x128xi32>
    %cst_227 = arith.constant 0.000000e+00 : f32
    %257 = vector.shape_cast %249 : vector<1x128xf32> to vector<1x128xf32>
    %258 = vector.broadcast %257 : vector<1x128xf32> to vector<8x128xf32>
    %259 = vector.broadcast %cst_227 : f32 to vector<8x128xf32>
    %260 = arith.select %256, %258, %259 : vector<8x128xi1>, vector<8x128xf32>
    %c0_228 = arith.constant 0 : index
    %c0_229 = arith.constant 0 : index
    %261 = vector.load %arg5[%c0_228, %c0_229] : memref<8x128xf32, #tpu.memory_space<vmem>>, vector<8x128xf32>
    tpu.vector_store %arg5[%c0_228, %c0_229], %260 {strides = array<i32>} : memref<8x128xf32, #tpu.memory_space<vmem>>, vector<8x128xf32>,
    %cst_230 = arith.constant 0.000000e+00 : f32
    %262 = vector.shape_cast %253 : vector<1x128xf32> to vector<1x128xf32>
    %263 = vector.broadcast %262 : vector<1x128xf32> to vector<8x128xf32>
    %264 = vector.broadcast %cst_230 : f32 to vector<8x128xf32>
    %265 = arith.select %256, %263, %264 : vector<8x128xi1>, vector<8x128xf32>
    %c0_231 = arith.constant 0 : index
    %c0_232 = arith.constant 0 : index
    %266 = vector.load %arg6[%c0_231, %c0_232] : memref<8x128xf32, #tpu.memory_space<vmem>>, vector<8x128xf32>
    tpu.vector_store %arg6[%c0_231, %c0_232], %265 {strides = array<i32>} : memref<8x128xf32, #tpu.memory_space<vmem>>, vector<8x128xf32>,
    return
  }
  func.func @transform_0(%arg0: i32, %arg1: i32) -> (i32, i32, i32) {
    %c0_i32 = arith.constant 0 : i32
    %c0_i32_0 = arith.constant 0 : i32
    %c0_i32_1 = arith.constant 0 : i32
    return %arg1, %c0_i32, %c0_i32_0 : i32, i32, i32
  }
  func.func @transform_1(%arg0: i32, %arg1: i32) -> (i32, i32, i32) {
    %c0_i32 = arith.constant 0 : i32
    %c0_i32_0 = arith.constant 0 : i32
    %c0_i32_1 = arith.constant 0 : i32
    return %c0_i32, %c0_i32_0, %arg0 : i32, i32, i32
  }
  func.func @transform_2(%arg0: i32, %arg1: i32) -> (i32, i32) {
    %c0_i32 = arith.constant 0 : i32
    %c0_i32_0 = arith.constant 0 : i32
    return %arg1, %c0_i32 : i32, i32
  }
  func.func @transform_3(%arg0: i32, %arg1: i32) -> (i32, i32) {
    %c0_i32 = arith.constant 0 : i32
    return %arg1, %arg0 : i32, i32
  }
  func.func @transform_4(%arg0: i32, %arg1: i32) -> (i32, i32) {
    %c0_i32 = arith.constant 0 : i32
    return %arg1, %arg0 : i32, i32
  }
}

module attributes {stable_mosaic.version = 11 : i64} {
  func.func @_conv_bn_act_kernel(%arg0: i32, %arg1: i32, %arg2: memref<1x552x4xf32, #tpu.memory_space<vmem>>, %arg3: memref<9x4x128xf32, #tpu.memory_space<vmem>>, %arg4: memref<1x128xf32, #tpu.memory_space<vmem>>, %arg5: memref<1x128xf32, #tpu.memory_space<vmem>>, %arg6: memref<512x128xf32, #tpu.memory_space<vmem>>) attributes {dimension_semantics = [#tpu.dimension_semantics<parallel>, #tpu.dimension_semantics<parallel>], iteration_bounds = array<i64: 1, 2>, scalar_prefetch = 0 : i64, scratch_operands = 0 : i64, tpu.core_type = #tpu.core_type<tc>, window_params = [{transform_indices = @transform_0, window_bounds = array<i64: 1, 552, 4>}, {transform_indices = @transform_1, window_bounds = array<i64: 9, 4, 128>}, {transform_indices = @transform_2, window_bounds = array<i64: 1, 128>}, {transform_indices = @transform_3, window_bounds = array<i64: 1, 128>}, {transform_indices = @transform_4, window_bounds = array<i64: 512, 128>}]} {
    %c0 = arith.constant 0 : index
    %c0_0 = arith.constant 0 : index
    %0 = vector.load %arg4[%c0, %c0_0] : memref<1x128xf32, #tpu.memory_space<vmem>>, vector<1x128xf32>
    %c0_1 = arith.constant 0 : index
    %c0_2 = arith.constant 0 : index
    %1 = vector.load %arg5[%c0_1, %c0_2] : memref<1x128xf32, #tpu.memory_space<vmem>>, vector<1x128xf32>
    %c0_3 = arith.constant 0 : index
    %c0_4 = arith.constant 0 : index
    %c0_5 = arith.constant 0 : index
    %2 = vector.load %arg2[%c0_3, %c0_4, %c0_5] : memref<1x552x4xf32, #tpu.memory_space<vmem>>, vector<1x128x4xf32>
    %3 = vector.shape_cast %2 : vector<1x128x4xf32> to vector<128x4xf32>
    %c0_6 = arith.constant 0 : index
    %c0_7 = arith.constant 0 : index
    %c0_8 = arith.constant 0 : index
    %4 = vector.load %arg3[%c0_6, %c0_7, %c0_8] : memref<9x4x128xf32, #tpu.memory_space<vmem>>, vector<1x4x128xf32>
    %5 = vector.shape_cast %4 : vector<1x4x128xf32> to vector<4x128xf32>
    %cst = arith.constant dense<0.000000e+00> : vector<128x128xf32>
    %6 = tpu.matmul %3, %5, %cst {dimension_numbers = #tpu.dot_dimension_numbers<[1], [0], [0], [1], [0, 0, 1, 1], [], []>} : vector<128x4xf32>, vector<4x128xf32>, vector<128x128xf32> -> vector<128x128xf32>
    %c0_9 = arith.constant 0 : index
    %c1 = arith.constant 1 : index
    %c0_10 = arith.constant 0 : index
    %7 = vector.load %arg2[%c0_9, %c1, %c0_10] : memref<1x552x4xf32, #tpu.memory_space<vmem>>, vector<1x128x4xf32>
    %8 = vector.shape_cast %7 : vector<1x128x4xf32> to vector<128x4xf32>
    %c1_11 = arith.constant 1 : index
    %c0_12 = arith.constant 0 : index
    %c0_13 = arith.constant 0 : index
    %9 = vector.load %arg3[%c1_11, %c0_12, %c0_13] : memref<9x4x128xf32, #tpu.memory_space<vmem>>, vector<1x4x128xf32>
    %10 = vector.shape_cast %9 : vector<1x4x128xf32> to vector<4x128xf32>
    %cst_14 = arith.constant dense<0.000000e+00> : vector<128x128xf32>
    %11 = tpu.matmul %8, %10, %cst_14 {dimension_numbers = #tpu.dot_dimension_numbers<[1], [0], [0], [1], [0, 0, 1, 1], [], []>} : vector<128x4xf32>, vector<4x128xf32>, vector<128x128xf32> -> vector<128x128xf32>
    %12 = arith.addf %6, %11 : vector<128x128xf32>
    %c0_15 = arith.constant 0 : index
    %c2 = arith.constant 2 : index
    %c0_16 = arith.constant 0 : index
    %13 = vector.load %arg2[%c0_15, %c2, %c0_16] : memref<1x552x4xf32, #tpu.memory_space<vmem>>, vector<1x128x4xf32>
    %14 = vector.shape_cast %13 : vector<1x128x4xf32> to vector<128x4xf32>
    %c2_17 = arith.constant 2 : index
    %c0_18 = arith.constant 0 : index
    %c0_19 = arith.constant 0 : index
    %15 = vector.load %arg3[%c2_17, %c0_18, %c0_19] : memref<9x4x128xf32, #tpu.memory_space<vmem>>, vector<1x4x128xf32>
    %16 = vector.shape_cast %15 : vector<1x4x128xf32> to vector<4x128xf32>
    %cst_20 = arith.constant dense<0.000000e+00> : vector<128x128xf32>
    %17 = tpu.matmul %14, %16, %cst_20 {dimension_numbers = #tpu.dot_dimension_numbers<[1], [0], [0], [1], [0, 0, 1, 1], [], []>} : vector<128x4xf32>, vector<4x128xf32>, vector<128x128xf32> -> vector<128x128xf32>
    %18 = arith.addf %12, %17 : vector<128x128xf32>
    %c0_21 = arith.constant 0 : index
    %c18 = arith.constant 18 : index
    %c0_22 = arith.constant 0 : index
    %19 = vector.load %arg2[%c0_21, %c18, %c0_22] : memref<1x552x4xf32, #tpu.memory_space<vmem>>, vector<1x128x4xf32>
    %20 = vector.shape_cast %19 : vector<1x128x4xf32> to vector<128x4xf32>
    %c3 = arith.constant 3 : index
    %c0_23 = arith.constant 0 : index
    %c0_24 = arith.constant 0 : index
    %21 = vector.load %arg3[%c3, %c0_23, %c0_24] : memref<9x4x128xf32, #tpu.memory_space<vmem>>, vector<1x4x128xf32>
    %22 = vector.shape_cast %21 : vector<1x4x128xf32> to vector<4x128xf32>
    %cst_25 = arith.constant dense<0.000000e+00> : vector<128x128xf32>
    %23 = tpu.matmul %20, %22, %cst_25 {dimension_numbers = #tpu.dot_dimension_numbers<[1], [0], [0], [1], [0, 0, 1, 1], [], []>} : vector<128x4xf32>, vector<4x128xf32>, vector<128x128xf32> -> vector<128x128xf32>
    %24 = arith.addf %18, %23 : vector<128x128xf32>
    %c0_26 = arith.constant 0 : index
    %c19 = arith.constant 19 : index
    %c0_27 = arith.constant 0 : index
    %25 = vector.load %arg2[%c0_26, %c19, %c0_27] : memref<1x552x4xf32, #tpu.memory_space<vmem>>, vector<1x128x4xf32>
    %26 = vector.shape_cast %25 : vector<1x128x4xf32> to vector<128x4xf32>
    %c4 = arith.constant 4 : index
    %c0_28 = arith.constant 0 : index
    %c0_29 = arith.constant 0 : index
    %27 = vector.load %arg3[%c4, %c0_28, %c0_29] : memref<9x4x128xf32, #tpu.memory_space<vmem>>, vector<1x4x128xf32>
    %28 = vector.shape_cast %27 : vector<1x4x128xf32> to vector<4x128xf32>
    %cst_30 = arith.constant dense<0.000000e+00> : vector<128x128xf32>
    %29 = tpu.matmul %26, %28, %cst_30 {dimension_numbers = #tpu.dot_dimension_numbers<[1], [0], [0], [1], [0, 0, 1, 1], [], []>} : vector<128x4xf32>, vector<4x128xf32>, vector<128x128xf32> -> vector<128x128xf32>
    %30 = arith.addf %24, %29 : vector<128x128xf32>
    %c0_31 = arith.constant 0 : index
    %c20 = arith.constant 20 : index
    %c0_32 = arith.constant 0 : index
    %31 = vector.load %arg2[%c0_31, %c20, %c0_32] : memref<1x552x4xf32, #tpu.memory_space<vmem>>, vector<1x128x4xf32>
    %32 = vector.shape_cast %31 : vector<1x128x4xf32> to vector<128x4xf32>
    %c5 = arith.constant 5 : index
    %c0_33 = arith.constant 0 : index
    %c0_34 = arith.constant 0 : index
    %33 = vector.load %arg3[%c5, %c0_33, %c0_34] : memref<9x4x128xf32, #tpu.memory_space<vmem>>, vector<1x4x128xf32>
    %34 = vector.shape_cast %33 : vector<1x4x128xf32> to vector<4x128xf32>
    %cst_35 = arith.constant dense<0.000000e+00> : vector<128x128xf32>
    %35 = tpu.matmul %32, %34, %cst_35 {dimension_numbers = #tpu.dot_dimension_numbers<[1], [0], [0], [1], [0, 0, 1, 1], [], []>} : vector<128x4xf32>, vector<4x128xf32>, vector<128x128xf32> -> vector<128x128xf32>
    %36 = arith.addf %30, %35 : vector<128x128xf32>
    %c0_36 = arith.constant 0 : index
    %c36 = arith.constant 36 : index
    %c0_37 = arith.constant 0 : index
    %37 = vector.load %arg2[%c0_36, %c36, %c0_37] : memref<1x552x4xf32, #tpu.memory_space<vmem>>, vector<1x128x4xf32>
    %38 = vector.shape_cast %37 : vector<1x128x4xf32> to vector<128x4xf32>
    %c6 = arith.constant 6 : index
    %c0_38 = arith.constant 0 : index
    %c0_39 = arith.constant 0 : index
    %39 = vector.load %arg3[%c6, %c0_38, %c0_39] : memref<9x4x128xf32, #tpu.memory_space<vmem>>, vector<1x4x128xf32>
    %40 = vector.shape_cast %39 : vector<1x4x128xf32> to vector<4x128xf32>
    %cst_40 = arith.constant dense<0.000000e+00> : vector<128x128xf32>
    %41 = tpu.matmul %38, %40, %cst_40 {dimension_numbers = #tpu.dot_dimension_numbers<[1], [0], [0], [1], [0, 0, 1, 1], [], []>} : vector<128x4xf32>, vector<4x128xf32>, vector<128x128xf32> -> vector<128x128xf32>
    %42 = arith.addf %36, %41 : vector<128x128xf32>
    %c0_41 = arith.constant 0 : index
    %c37 = arith.constant 37 : index
    %c0_42 = arith.constant 0 : index
    %43 = vector.load %arg2[%c0_41, %c37, %c0_42] : memref<1x552x4xf32, #tpu.memory_space<vmem>>, vector<1x128x4xf32>
    %44 = vector.shape_cast %43 : vector<1x128x4xf32> to vector<128x4xf32>
    %c7 = arith.constant 7 : index
    %c0_43 = arith.constant 0 : index
    %c0_44 = arith.constant 0 : index
    %45 = vector.load %arg3[%c7, %c0_43, %c0_44] : memref<9x4x128xf32, #tpu.memory_space<vmem>>, vector<1x4x128xf32>
    %46 = vector.shape_cast %45 : vector<1x4x128xf32> to vector<4x128xf32>
    %cst_45 = arith.constant dense<0.000000e+00> : vector<128x128xf32>
    %47 = tpu.matmul %44, %46, %cst_45 {dimension_numbers = #tpu.dot_dimension_numbers<[1], [0], [0], [1], [0, 0, 1, 1], [], []>} : vector<128x4xf32>, vector<4x128xf32>, vector<128x128xf32> -> vector<128x128xf32>
    %48 = arith.addf %42, %47 : vector<128x128xf32>
    %c0_46 = arith.constant 0 : index
    %c38 = arith.constant 38 : index
    %c0_47 = arith.constant 0 : index
    %49 = vector.load %arg2[%c0_46, %c38, %c0_47] : memref<1x552x4xf32, #tpu.memory_space<vmem>>, vector<1x128x4xf32>
    %50 = vector.shape_cast %49 : vector<1x128x4xf32> to vector<128x4xf32>
    %c8 = arith.constant 8 : index
    %c0_48 = arith.constant 0 : index
    %c0_49 = arith.constant 0 : index
    %51 = vector.load %arg3[%c8, %c0_48, %c0_49] : memref<9x4x128xf32, #tpu.memory_space<vmem>>, vector<1x4x128xf32>
    %52 = vector.shape_cast %51 : vector<1x4x128xf32> to vector<4x128xf32>
    %cst_50 = arith.constant dense<0.000000e+00> : vector<128x128xf32>
    %53 = tpu.matmul %50, %52, %cst_50 {dimension_numbers = #tpu.dot_dimension_numbers<[1], [0], [0], [1], [0, 0, 1, 1], [], []>} : vector<128x4xf32>, vector<4x128xf32>, vector<128x128xf32> -> vector<128x128xf32>
    %54 = arith.addf %48, %53 : vector<128x128xf32>
    %55 = vector.broadcast %0 : vector<1x128xf32> to vector<128x128xf32>
    %56 = arith.mulf %54, %55 : vector<128x128xf32>
    %57 = vector.broadcast %1 : vector<1x128xf32> to vector<128x128xf32>
    %58 = arith.addf %56, %57 : vector<128x128xf32>
    %cst_51 = arith.constant 0.000000e+00 : f32
    %59 = vector.broadcast %cst_51 : f32 to vector<128x128xf32>
    %60 = arith.cmpf oge, %58, %59 : vector<128x128xf32>
    %cst_52 = arith.constant 1.000000e-01 : f32
    %61 = vector.broadcast %cst_52 : f32 to vector<128x128xf32>
    %62 = arith.mulf %61, %58 : vector<128x128xf32>
    %63 = arith.select %60, %58, %62 : vector<128x128xi1>, vector<128x128xf32>
    %c0_53 = arith.constant 0 : index
    %c0_54 = arith.constant 0 : index
    %64 = vector.load %arg6[%c0_53, %c0_54] : memref<512x128xf32, #tpu.memory_space<vmem>>, vector<128x128xf32>
    tpu.vector_store %arg6[%c0_53, %c0_54], %63 {strides = array<i32>} : memref<512x128xf32, #tpu.memory_space<vmem>>, vector<128x128xf32>,
    %c0_55 = arith.constant 0 : index
    %c128 = arith.constant 128 : index
    %c0_56 = arith.constant 0 : index
    %65 = vector.load %arg2[%c0_55, %c128, %c0_56] : memref<1x552x4xf32, #tpu.memory_space<vmem>>, vector<1x128x4xf32>
    %66 = vector.shape_cast %65 : vector<1x128x4xf32> to vector<128x4xf32>
    %c0_57 = arith.constant 0 : index
    %c0_58 = arith.constant 0 : index
    %c0_59 = arith.constant 0 : index
    %67 = vector.load %arg3[%c0_57, %c0_58, %c0_59] : memref<9x4x128xf32, #tpu.memory_space<vmem>>, vector<1x4x128xf32>
    %68 = vector.shape_cast %67 : vector<1x4x128xf32> to vector<4x128xf32>
    %cst_60 = arith.constant dense<0.000000e+00> : vector<128x128xf32>
    %69 = tpu.matmul %66, %68, %cst_60 {dimension_numbers = #tpu.dot_dimension_numbers<[1], [0], [0], [1], [0, 0, 1, 1], [], []>} : vector<128x4xf32>, vector<4x128xf32>, vector<128x128xf32> -> vector<128x128xf32>
    %c0_61 = arith.constant 0 : index
    %c129 = arith.constant 129 : index
    %c0_62 = arith.constant 0 : index
    %70 = vector.load %arg2[%c0_61, %c129, %c0_62] : memref<1x552x4xf32, #tpu.memory_space<vmem>>, vector<1x128x4xf32>
    %71 = vector.shape_cast %70 : vector<1x128x4xf32> to vector<128x4xf32>
    %c1_63 = arith.constant 1 : index
    %c0_64 = arith.constant 0 : index
    %c0_65 = arith.constant 0 : index
    %72 = vector.load %arg3[%c1_63, %c0_64, %c0_65] : memref<9x4x128xf32, #tpu.memory_space<vmem>>, vector<1x4x128xf32>
    %73 = vector.shape_cast %72 : vector<1x4x128xf32> to vector<4x128xf32>
    %cst_66 = arith.constant dense<0.000000e+00> : vector<128x128xf32>
    %74 = tpu.matmul %71, %73, %cst_66 {dimension_numbers = #tpu.dot_dimension_numbers<[1], [0], [0], [1], [0, 0, 1, 1], [], []>} : vector<128x4xf32>, vector<4x128xf32>, vector<128x128xf32> -> vector<128x128xf32>
    %75 = arith.addf %69, %74 : vector<128x128xf32>
    %c0_67 = arith.constant 0 : index
    %c130 = arith.constant 130 : index
    %c0_68 = arith.constant 0 : index
    %76 = vector.load %arg2[%c0_67, %c130, %c0_68] : memref<1x552x4xf32, #tpu.memory_space<vmem>>, vector<1x128x4xf32>
    %77 = vector.shape_cast %76 : vector<1x128x4xf32> to vector<128x4xf32>
    %c2_69 = arith.constant 2 : index
    %c0_70 = arith.constant 0 : index
    %c0_71 = arith.constant 0 : index
    %78 = vector.load %arg3[%c2_69, %c0_70, %c0_71] : memref<9x4x128xf32, #tpu.memory_space<vmem>>, vector<1x4x128xf32>
    %79 = vector.shape_cast %78 : vector<1x4x128xf32> to vector<4x128xf32>
    %cst_72 = arith.constant dense<0.000000e+00> : vector<128x128xf32>
    %80 = tpu.matmul %77, %79, %cst_72 {dimension_numbers = #tpu.dot_dimension_numbers<[1], [0], [0], [1], [0, 0, 1, 1], [], []>} : vector<128x4xf32>, vector<4x128xf32>, vector<128x128xf32> -> vector<128x128xf32>
    %81 = arith.addf %75, %80 : vector<128x128xf32>
    %c0_73 = arith.constant 0 : index
    %c146 = arith.constant 146 : index
    %c0_74 = arith.constant 0 : index
    %82 = vector.load %arg2[%c0_73, %c146, %c0_74] : memref<1x552x4xf32, #tpu.memory_space<vmem>>, vector<1x128x4xf32>
    %83 = vector.shape_cast %82 : vector<1x128x4xf32> to vector<128x4xf32>
    %c3_75 = arith.constant 3 : index
    %c0_76 = arith.constant 0 : index
    %c0_77 = arith.constant 0 : index
    %84 = vector.load %arg3[%c3_75, %c0_76, %c0_77] : memref<9x4x128xf32, #tpu.memory_space<vmem>>, vector<1x4x128xf32>
    %85 = vector.shape_cast %84 : vector<1x4x128xf32> to vector<4x128xf32>
    %cst_78 = arith.constant dense<0.000000e+00> : vector<128x128xf32>
    %86 = tpu.matmul %83, %85, %cst_78 {dimension_numbers = #tpu.dot_dimension_numbers<[1], [0], [0], [1], [0, 0, 1, 1], [], []>} : vector<128x4xf32>, vector<4x128xf32>, vector<128x128xf32> -> vector<128x128xf32>
    %87 = arith.addf %81, %86 : vector<128x128xf32>
    %c0_79 = arith.constant 0 : index
    %c147 = arith.constant 147 : index
    %c0_80 = arith.constant 0 : index
    %88 = vector.load %arg2[%c0_79, %c147, %c0_80] : memref<1x552x4xf32, #tpu.memory_space<vmem>>, vector<1x128x4xf32>
    %89 = vector.shape_cast %88 : vector<1x128x4xf32> to vector<128x4xf32>
    %c4_81 = arith.constant 4 : index
    %c0_82 = arith.constant 0 : index
    %c0_83 = arith.constant 0 : index
    %90 = vector.load %arg3[%c4_81, %c0_82, %c0_83] : memref<9x4x128xf32, #tpu.memory_space<vmem>>, vector<1x4x128xf32>
    %91 = vector.shape_cast %90 : vector<1x4x128xf32> to vector<4x128xf32>
    %cst_84 = arith.constant dense<0.000000e+00> : vector<128x128xf32>
    %92 = tpu.matmul %89, %91, %cst_84 {dimension_numbers = #tpu.dot_dimension_numbers<[1], [0], [0], [1], [0, 0, 1, 1], [], []>} : vector<128x4xf32>, vector<4x128xf32>, vector<128x128xf32> -> vector<128x128xf32>
    %93 = arith.addf %87, %92 : vector<128x128xf32>
    %c0_85 = arith.constant 0 : index
    %c148 = arith.constant 148 : index
    %c0_86 = arith.constant 0 : index
    %94 = vector.load %arg2[%c0_85, %c148, %c0_86] : memref<1x552x4xf32, #tpu.memory_space<vmem>>, vector<1x128x4xf32>
    %95 = vector.shape_cast %94 : vector<1x128x4xf32> to vector<128x4xf32>
    %c5_87 = arith.constant 5 : index
    %c0_88 = arith.constant 0 : index
    %c0_89 = arith.constant 0 : index
    %96 = vector.load %arg3[%c5_87, %c0_88, %c0_89] : memref<9x4x128xf32, #tpu.memory_space<vmem>>, vector<1x4x128xf32>
    %97 = vector.shape_cast %96 : vector<1x4x128xf32> to vector<4x128xf32>
    %cst_90 = arith.constant dense<0.000000e+00> : vector<128x128xf32>
    %98 = tpu.matmul %95, %97, %cst_90 {dimension_numbers = #tpu.dot_dimension_numbers<[1], [0], [0], [1], [0, 0, 1, 1], [], []>} : vector<128x4xf32>, vector<4x128xf32>, vector<128x128xf32> -> vector<128x128xf32>
    %99 = arith.addf %93, %98 : vector<128x128xf32>
    %c0_91 = arith.constant 0 : index
    %c164 = arith.constant 164 : index
    %c0_92 = arith.constant 0 : index
    %100 = vector.load %arg2[%c0_91, %c164, %c0_92] : memref<1x552x4xf32, #tpu.memory_space<vmem>>, vector<1x128x4xf32>
    %101 = vector.shape_cast %100 : vector<1x128x4xf32> to vector<128x4xf32>
    %c6_93 = arith.constant 6 : index
    %c0_94 = arith.constant 0 : index
    %c0_95 = arith.constant 0 : index
    %102 = vector.load %arg3[%c6_93, %c0_94, %c0_95] : memref<9x4x128xf32, #tpu.memory_space<vmem>>, vector<1x4x128xf32>
    %103 = vector.shape_cast %102 : vector<1x4x128xf32> to vector<4x128xf32>
    %cst_96 = arith.constant dense<0.000000e+00> : vector<128x128xf32>
    %104 = tpu.matmul %101, %103, %cst_96 {dimension_numbers = #tpu.dot_dimension_numbers<[1], [0], [0], [1], [0, 0, 1, 1], [], []>} : vector<128x4xf32>, vector<4x128xf32>, vector<128x128xf32> -> vector<128x128xf32>
    %105 = arith.addf %99, %104 : vector<128x128xf32>
    %c0_97 = arith.constant 0 : index
    %c165 = arith.constant 165 : index
    %c0_98 = arith.constant 0 : index
    %106 = vector.load %arg2[%c0_97, %c165, %c0_98] : memref<1x552x4xf32, #tpu.memory_space<vmem>>, vector<1x128x4xf32>
    %107 = vector.shape_cast %106 : vector<1x128x4xf32> to vector<128x4xf32>
    %c7_99 = arith.constant 7 : index
    %c0_100 = arith.constant 0 : index
    %c0_101 = arith.constant 0 : index
    %108 = vector.load %arg3[%c7_99, %c0_100, %c0_101] : memref<9x4x128xf32, #tpu.memory_space<vmem>>, vector<1x4x128xf32>
    %109 = vector.shape_cast %108 : vector<1x4x128xf32> to vector<4x128xf32>
    %cst_102 = arith.constant dense<0.000000e+00> : vector<128x128xf32>
    %110 = tpu.matmul %107, %109, %cst_102 {dimension_numbers = #tpu.dot_dimension_numbers<[1], [0], [0], [1], [0, 0, 1, 1], [], []>} : vector<128x4xf32>, vector<4x128xf32>, vector<128x128xf32> -> vector<128x128xf32>
    %111 = arith.addf %105, %110 : vector<128x128xf32>
    %c0_103 = arith.constant 0 : index
    %c166 = arith.constant 166 : index
    %c0_104 = arith.constant 0 : index
    %112 = vector.load %arg2[%c0_103, %c166, %c0_104] : memref<1x552x4xf32, #tpu.memory_space<vmem>>, vector<1x128x4xf32>
    %113 = vector.shape_cast %112 : vector<1x128x4xf32> to vector<128x4xf32>
    %c8_105 = arith.constant 8 : index
    %c0_106 = arith.constant 0 : index
    %c0_107 = arith.constant 0 : index
    %114 = vector.load %arg3[%c8_105, %c0_106, %c0_107] : memref<9x4x128xf32, #tpu.memory_space<vmem>>, vector<1x4x128xf32>
    %115 = vector.shape_cast %114 : vector<1x4x128xf32> to vector<4x128xf32>
    %cst_108 = arith.constant dense<0.000000e+00> : vector<128x128xf32>
    %116 = tpu.matmul %113, %115, %cst_108 {dimension_numbers = #tpu.dot_dimension_numbers<[1], [0], [0], [1], [0, 0, 1, 1], [], []>} : vector<128x4xf32>, vector<4x128xf32>, vector<128x128xf32> -> vector<128x128xf32>
    %117 = arith.addf %111, %116 : vector<128x128xf32>
    %118 = vector.broadcast %0 : vector<1x128xf32> to vector<128x128xf32>
    %119 = arith.mulf %117, %118 : vector<128x128xf32>
    %120 = vector.broadcast %1 : vector<1x128xf32> to vector<128x128xf32>
    %121 = arith.addf %119, %120 : vector<128x128xf32>
    %cst_109 = arith.constant 0.000000e+00 : f32
    %122 = vector.broadcast %cst_109 : f32 to vector<128x128xf32>
    %123 = arith.cmpf oge, %121, %122 : vector<128x128xf32>
    %cst_110 = arith.constant 1.000000e-01 : f32
    %124 = vector.broadcast %cst_110 : f32 to vector<128x128xf32>
    %125 = arith.mulf %124, %121 : vector<128x128xf32>
    %126 = arith.select %123, %121, %125 : vector<128x128xi1>, vector<128x128xf32>
    %c128_111 = arith.constant 128 : index
    %c0_112 = arith.constant 0 : index
    %127 = vector.load %arg6[%c128_111, %c0_112] : memref<512x128xf32, #tpu.memory_space<vmem>>, vector<128x128xf32>
    tpu.vector_store %arg6[%c128_111, %c0_112], %126 {strides = array<i32>} : memref<512x128xf32, #tpu.memory_space<vmem>>, vector<128x128xf32>,
    %c0_113 = arith.constant 0 : index
    %c256 = arith.constant 256 : index
    %c0_114 = arith.constant 0 : index
    %128 = vector.load %arg2[%c0_113, %c256, %c0_114] : memref<1x552x4xf32, #tpu.memory_space<vmem>>, vector<1x128x4xf32>
    %129 = vector.shape_cast %128 : vector<1x128x4xf32> to vector<128x4xf32>
    %c0_115 = arith.constant 0 : index
    %c0_116 = arith.constant 0 : index
    %c0_117 = arith.constant 0 : index
    %130 = vector.load %arg3[%c0_115, %c0_116, %c0_117] : memref<9x4x128xf32, #tpu.memory_space<vmem>>, vector<1x4x128xf32>
    %131 = vector.shape_cast %130 : vector<1x4x128xf32> to vector<4x128xf32>
    %cst_118 = arith.constant dense<0.000000e+00> : vector<128x128xf32>
    %132 = tpu.matmul %129, %131, %cst_118 {dimension_numbers = #tpu.dot_dimension_numbers<[1], [0], [0], [1], [0, 0, 1, 1], [], []>} : vector<128x4xf32>, vector<4x128xf32>, vector<128x128xf32> -> vector<128x128xf32>
    %c0_119 = arith.constant 0 : index
    %c257 = arith.constant 257 : index
    %c0_120 = arith.constant 0 : index
    %133 = vector.load %arg2[%c0_119, %c257, %c0_120] : memref<1x552x4xf32, #tpu.memory_space<vmem>>, vector<1x128x4xf32>
    %134 = vector.shape_cast %133 : vector<1x128x4xf32> to vector<128x4xf32>
    %c1_121 = arith.constant 1 : index
    %c0_122 = arith.constant 0 : index
    %c0_123 = arith.constant 0 : index
    %135 = vector.load %arg3[%c1_121, %c0_122, %c0_123] : memref<9x4x128xf32, #tpu.memory_space<vmem>>, vector<1x4x128xf32>
    %136 = vector.shape_cast %135 : vector<1x4x128xf32> to vector<4x128xf32>
    %cst_124 = arith.constant dense<0.000000e+00> : vector<128x128xf32>
    %137 = tpu.matmul %134, %136, %cst_124 {dimension_numbers = #tpu.dot_dimension_numbers<[1], [0], [0], [1], [0, 0, 1, 1], [], []>} : vector<128x4xf32>, vector<4x128xf32>, vector<128x128xf32> -> vector<128x128xf32>
    %138 = arith.addf %132, %137 : vector<128x128xf32>
    %c0_125 = arith.constant 0 : index
    %c258 = arith.constant 258 : index
    %c0_126 = arith.constant 0 : index
    %139 = vector.load %arg2[%c0_125, %c258, %c0_126] : memref<1x552x4xf32, #tpu.memory_space<vmem>>, vector<1x128x4xf32>
    %140 = vector.shape_cast %139 : vector<1x128x4xf32> to vector<128x4xf32>
    %c2_127 = arith.constant 2 : index
    %c0_128 = arith.constant 0 : index
    %c0_129 = arith.constant 0 : index
    %141 = vector.load %arg3[%c2_127, %c0_128, %c0_129] : memref<9x4x128xf32, #tpu.memory_space<vmem>>, vector<1x4x128xf32>
    %142 = vector.shape_cast %141 : vector<1x4x128xf32> to vector<4x128xf32>
    %cst_130 = arith.constant dense<0.000000e+00> : vector<128x128xf32>
    %143 = tpu.matmul %140, %142, %cst_130 {dimension_numbers = #tpu.dot_dimension_numbers<[1], [0], [0], [1], [0, 0, 1, 1], [], []>} : vector<128x4xf32>, vector<4x128xf32>, vector<128x128xf32> -> vector<128x128xf32>
    %144 = arith.addf %138, %143 : vector<128x128xf32>
    %c0_131 = arith.constant 0 : index
    %c274 = arith.constant 274 : index
    %c0_132 = arith.constant 0 : index
    %145 = vector.load %arg2[%c0_131, %c274, %c0_132] : memref<1x552x4xf32, #tpu.memory_space<vmem>>, vector<1x128x4xf32>
    %146 = vector.shape_cast %145 : vector<1x128x4xf32> to vector<128x4xf32>
    %c3_133 = arith.constant 3 : index
    %c0_134 = arith.constant 0 : index
    %c0_135 = arith.constant 0 : index
    %147 = vector.load %arg3[%c3_133, %c0_134, %c0_135] : memref<9x4x128xf32, #tpu.memory_space<vmem>>, vector<1x4x128xf32>
    %148 = vector.shape_cast %147 : vector<1x4x128xf32> to vector<4x128xf32>
    %cst_136 = arith.constant dense<0.000000e+00> : vector<128x128xf32>
    %149 = tpu.matmul %146, %148, %cst_136 {dimension_numbers = #tpu.dot_dimension_numbers<[1], [0], [0], [1], [0, 0, 1, 1], [], []>} : vector<128x4xf32>, vector<4x128xf32>, vector<128x128xf32> -> vector<128x128xf32>
    %150 = arith.addf %144, %149 : vector<128x128xf32>
    %c0_137 = arith.constant 0 : index
    %c275 = arith.constant 275 : index
    %c0_138 = arith.constant 0 : index
    %151 = vector.load %arg2[%c0_137, %c275, %c0_138] : memref<1x552x4xf32, #tpu.memory_space<vmem>>, vector<1x128x4xf32>
    %152 = vector.shape_cast %151 : vector<1x128x4xf32> to vector<128x4xf32>
    %c4_139 = arith.constant 4 : index
    %c0_140 = arith.constant 0 : index
    %c0_141 = arith.constant 0 : index
    %153 = vector.load %arg3[%c4_139, %c0_140, %c0_141] : memref<9x4x128xf32, #tpu.memory_space<vmem>>, vector<1x4x128xf32>
    %154 = vector.shape_cast %153 : vector<1x4x128xf32> to vector<4x128xf32>
    %cst_142 = arith.constant dense<0.000000e+00> : vector<128x128xf32>
    %155 = tpu.matmul %152, %154, %cst_142 {dimension_numbers = #tpu.dot_dimension_numbers<[1], [0], [0], [1], [0, 0, 1, 1], [], []>} : vector<128x4xf32>, vector<4x128xf32>, vector<128x128xf32> -> vector<128x128xf32>
    %156 = arith.addf %150, %155 : vector<128x128xf32>
    %c0_143 = arith.constant 0 : index
    %c276 = arith.constant 276 : index
    %c0_144 = arith.constant 0 : index
    %157 = vector.load %arg2[%c0_143, %c276, %c0_144] : memref<1x552x4xf32, #tpu.memory_space<vmem>>, vector<1x128x4xf32>
    %158 = vector.shape_cast %157 : vector<1x128x4xf32> to vector<128x4xf32>
    %c5_145 = arith.constant 5 : index
    %c0_146 = arith.constant 0 : index
    %c0_147 = arith.constant 0 : index
    %159 = vector.load %arg3[%c5_145, %c0_146, %c0_147] : memref<9x4x128xf32, #tpu.memory_space<vmem>>, vector<1x4x128xf32>
    %160 = vector.shape_cast %159 : vector<1x4x128xf32> to vector<4x128xf32>
    %cst_148 = arith.constant dense<0.000000e+00> : vector<128x128xf32>
    %161 = tpu.matmul %158, %160, %cst_148 {dimension_numbers = #tpu.dot_dimension_numbers<[1], [0], [0], [1], [0, 0, 1, 1], [], []>} : vector<128x4xf32>, vector<4x128xf32>, vector<128x128xf32> -> vector<128x128xf32>
    %162 = arith.addf %156, %161 : vector<128x128xf32>
    %c0_149 = arith.constant 0 : index
    %c292 = arith.constant 292 : index
    %c0_150 = arith.constant 0 : index
    %163 = vector.load %arg2[%c0_149, %c292, %c0_150] : memref<1x552x4xf32, #tpu.memory_space<vmem>>, vector<1x128x4xf32>
    %164 = vector.shape_cast %163 : vector<1x128x4xf32> to vector<128x4xf32>
    %c6_151 = arith.constant 6 : index
    %c0_152 = arith.constant 0 : index
    %c0_153 = arith.constant 0 : index
    %165 = vector.load %arg3[%c6_151, %c0_152, %c0_153] : memref<9x4x128xf32, #tpu.memory_space<vmem>>, vector<1x4x128xf32>
    %166 = vector.shape_cast %165 : vector<1x4x128xf32> to vector<4x128xf32>
    %cst_154 = arith.constant dense<0.000000e+00> : vector<128x128xf32>
    %167 = tpu.matmul %164, %166, %cst_154 {dimension_numbers = #tpu.dot_dimension_numbers<[1], [0], [0], [1], [0, 0, 1, 1], [], []>} : vector<128x4xf32>, vector<4x128xf32>, vector<128x128xf32> -> vector<128x128xf32>
    %168 = arith.addf %162, %167 : vector<128x128xf32>
    %c0_155 = arith.constant 0 : index
    %c293 = arith.constant 293 : index
    %c0_156 = arith.constant 0 : index
    %169 = vector.load %arg2[%c0_155, %c293, %c0_156] : memref<1x552x4xf32, #tpu.memory_space<vmem>>, vector<1x128x4xf32>
    %170 = vector.shape_cast %169 : vector<1x128x4xf32> to vector<128x4xf32>
    %c7_157 = arith.constant 7 : index
    %c0_158 = arith.constant 0 : index
    %c0_159 = arith.constant 0 : index
    %171 = vector.load %arg3[%c7_157, %c0_158, %c0_159] : memref<9x4x128xf32, #tpu.memory_space<vmem>>, vector<1x4x128xf32>
    %172 = vector.shape_cast %171 : vector<1x4x128xf32> to vector<4x128xf32>
    %cst_160 = arith.constant dense<0.000000e+00> : vector<128x128xf32>
    %173 = tpu.matmul %170, %172, %cst_160 {dimension_numbers = #tpu.dot_dimension_numbers<[1], [0], [0], [1], [0, 0, 1, 1], [], []>} : vector<128x4xf32>, vector<4x128xf32>, vector<128x128xf32> -> vector<128x128xf32>
    %174 = arith.addf %168, %173 : vector<128x128xf32>
    %c0_161 = arith.constant 0 : index
    %c294 = arith.constant 294 : index
    %c0_162 = arith.constant 0 : index
    %175 = vector.load %arg2[%c0_161, %c294, %c0_162] : memref<1x552x4xf32, #tpu.memory_space<vmem>>, vector<1x128x4xf32>
    %176 = vector.shape_cast %175 : vector<1x128x4xf32> to vector<128x4xf32>
    %c8_163 = arith.constant 8 : index
    %c0_164 = arith.constant 0 : index
    %c0_165 = arith.constant 0 : index
    %177 = vector.load %arg3[%c8_163, %c0_164, %c0_165] : memref<9x4x128xf32, #tpu.memory_space<vmem>>, vector<1x4x128xf32>
    %178 = vector.shape_cast %177 : vector<1x4x128xf32> to vector<4x128xf32>
    %cst_166 = arith.constant dense<0.000000e+00> : vector<128x128xf32>
    %179 = tpu.matmul %176, %178, %cst_166 {dimension_numbers = #tpu.dot_dimension_numbers<[1], [0], [0], [1], [0, 0, 1, 1], [], []>} : vector<128x4xf32>, vector<4x128xf32>, vector<128x128xf32> -> vector<128x128xf32>
    %180 = arith.addf %174, %179 : vector<128x128xf32>
    %181 = vector.broadcast %0 : vector<1x128xf32> to vector<128x128xf32>
    %182 = arith.mulf %180, %181 : vector<128x128xf32>
    %183 = vector.broadcast %1 : vector<1x128xf32> to vector<128x128xf32>
    %184 = arith.addf %182, %183 : vector<128x128xf32>
    %cst_167 = arith.constant 0.000000e+00 : f32
    %185 = vector.broadcast %cst_167 : f32 to vector<128x128xf32>
    %186 = arith.cmpf oge, %184, %185 : vector<128x128xf32>
    %cst_168 = arith.constant 1.000000e-01 : f32
    %187 = vector.broadcast %cst_168 : f32 to vector<128x128xf32>
    %188 = arith.mulf %187, %184 : vector<128x128xf32>
    %189 = arith.select %186, %184, %188 : vector<128x128xi1>, vector<128x128xf32>
    %c256_169 = arith.constant 256 : index
    %c0_170 = arith.constant 0 : index
    %190 = vector.load %arg6[%c256_169, %c0_170] : memref<512x128xf32, #tpu.memory_space<vmem>>, vector<128x128xf32>
    tpu.vector_store %arg6[%c256_169, %c0_170], %189 {strides = array<i32>} : memref<512x128xf32, #tpu.memory_space<vmem>>, vector<128x128xf32>,
    %c0_171 = arith.constant 0 : index
    %c384 = arith.constant 384 : index
    %c0_172 = arith.constant 0 : index
    %191 = vector.load %arg2[%c0_171, %c384, %c0_172] : memref<1x552x4xf32, #tpu.memory_space<vmem>>, vector<1x128x4xf32>
    %192 = vector.shape_cast %191 : vector<1x128x4xf32> to vector<128x4xf32>
    %c0_173 = arith.constant 0 : index
    %c0_174 = arith.constant 0 : index
    %c0_175 = arith.constant 0 : index
    %193 = vector.load %arg3[%c0_173, %c0_174, %c0_175] : memref<9x4x128xf32, #tpu.memory_space<vmem>>, vector<1x4x128xf32>
    %194 = vector.shape_cast %193 : vector<1x4x128xf32> to vector<4x128xf32>
    %cst_176 = arith.constant dense<0.000000e+00> : vector<128x128xf32>
    %195 = tpu.matmul %192, %194, %cst_176 {dimension_numbers = #tpu.dot_dimension_numbers<[1], [0], [0], [1], [0, 0, 1, 1], [], []>} : vector<128x4xf32>, vector<4x128xf32>, vector<128x128xf32> -> vector<128x128xf32>
    %c0_177 = arith.constant 0 : index
    %c385 = arith.constant 385 : index
    %c0_178 = arith.constant 0 : index
    %196 = vector.load %arg2[%c0_177, %c385, %c0_178] : memref<1x552x4xf32, #tpu.memory_space<vmem>>, vector<1x128x4xf32>
    %197 = vector.shape_cast %196 : vector<1x128x4xf32> to vector<128x4xf32>
    %c1_179 = arith.constant 1 : index
    %c0_180 = arith.constant 0 : index
    %c0_181 = arith.constant 0 : index
    %198 = vector.load %arg3[%c1_179, %c0_180, %c0_181] : memref<9x4x128xf32, #tpu.memory_space<vmem>>, vector<1x4x128xf32>
    %199 = vector.shape_cast %198 : vector<1x4x128xf32> to vector<4x128xf32>
    %cst_182 = arith.constant dense<0.000000e+00> : vector<128x128xf32>
    %200 = tpu.matmul %197, %199, %cst_182 {dimension_numbers = #tpu.dot_dimension_numbers<[1], [0], [0], [1], [0, 0, 1, 1], [], []>} : vector<128x4xf32>, vector<4x128xf32>, vector<128x128xf32> -> vector<128x128xf32>
    %201 = arith.addf %195, %200 : vector<128x128xf32>
    %c0_183 = arith.constant 0 : index
    %c386 = arith.constant 386 : index
    %c0_184 = arith.constant 0 : index
    %202 = vector.load %arg2[%c0_183, %c386, %c0_184] : memref<1x552x4xf32, #tpu.memory_space<vmem>>, vector<1x128x4xf32>
    %203 = vector.shape_cast %202 : vector<1x128x4xf32> to vector<128x4xf32>
    %c2_185 = arith.constant 2 : index
    %c0_186 = arith.constant 0 : index
    %c0_187 = arith.constant 0 : index
    %204 = vector.load %arg3[%c2_185, %c0_186, %c0_187] : memref<9x4x128xf32, #tpu.memory_space<vmem>>, vector<1x4x128xf32>
    %205 = vector.shape_cast %204 : vector<1x4x128xf32> to vector<4x128xf32>
    %cst_188 = arith.constant dense<0.000000e+00> : vector<128x128xf32>
    %206 = tpu.matmul %203, %205, %cst_188 {dimension_numbers = #tpu.dot_dimension_numbers<[1], [0], [0], [1], [0, 0, 1, 1], [], []>} : vector<128x4xf32>, vector<4x128xf32>, vector<128x128xf32> -> vector<128x128xf32>
    %207 = arith.addf %201, %206 : vector<128x128xf32>
    %c0_189 = arith.constant 0 : index
    %c402 = arith.constant 402 : index
    %c0_190 = arith.constant 0 : index
    %208 = vector.load %arg2[%c0_189, %c402, %c0_190] : memref<1x552x4xf32, #tpu.memory_space<vmem>>, vector<1x128x4xf32>
    %209 = vector.shape_cast %208 : vector<1x128x4xf32> to vector<128x4xf32>
    %c3_191 = arith.constant 3 : index
    %c0_192 = arith.constant 0 : index
    %c0_193 = arith.constant 0 : index
    %210 = vector.load %arg3[%c3_191, %c0_192, %c0_193] : memref<9x4x128xf32, #tpu.memory_space<vmem>>, vector<1x4x128xf32>
    %211 = vector.shape_cast %210 : vector<1x4x128xf32> to vector<4x128xf32>
    %cst_194 = arith.constant dense<0.000000e+00> : vector<128x128xf32>
    %212 = tpu.matmul %209, %211, %cst_194 {dimension_numbers = #tpu.dot_dimension_numbers<[1], [0], [0], [1], [0, 0, 1, 1], [], []>} : vector<128x4xf32>, vector<4x128xf32>, vector<128x128xf32> -> vector<128x128xf32>
    %213 = arith.addf %207, %212 : vector<128x128xf32>
    %c0_195 = arith.constant 0 : index
    %c403 = arith.constant 403 : index
    %c0_196 = arith.constant 0 : index
    %214 = vector.load %arg2[%c0_195, %c403, %c0_196] : memref<1x552x4xf32, #tpu.memory_space<vmem>>, vector<1x128x4xf32>
    %215 = vector.shape_cast %214 : vector<1x128x4xf32> to vector<128x4xf32>
    %c4_197 = arith.constant 4 : index
    %c0_198 = arith.constant 0 : index
    %c0_199 = arith.constant 0 : index
    %216 = vector.load %arg3[%c4_197, %c0_198, %c0_199] : memref<9x4x128xf32, #tpu.memory_space<vmem>>, vector<1x4x128xf32>
    %217 = vector.shape_cast %216 : vector<1x4x128xf32> to vector<4x128xf32>
    %cst_200 = arith.constant dense<0.000000e+00> : vector<128x128xf32>
    %218 = tpu.matmul %215, %217, %cst_200 {dimension_numbers = #tpu.dot_dimension_numbers<[1], [0], [0], [1], [0, 0, 1, 1], [], []>} : vector<128x4xf32>, vector<4x128xf32>, vector<128x128xf32> -> vector<128x128xf32>
    %219 = arith.addf %213, %218 : vector<128x128xf32>
    %c0_201 = arith.constant 0 : index
    %c404 = arith.constant 404 : index
    %c0_202 = arith.constant 0 : index
    %220 = vector.load %arg2[%c0_201, %c404, %c0_202] : memref<1x552x4xf32, #tpu.memory_space<vmem>>, vector<1x128x4xf32>
    %221 = vector.shape_cast %220 : vector<1x128x4xf32> to vector<128x4xf32>
    %c5_203 = arith.constant 5 : index
    %c0_204 = arith.constant 0 : index
    %c0_205 = arith.constant 0 : index
    %222 = vector.load %arg3[%c5_203, %c0_204, %c0_205] : memref<9x4x128xf32, #tpu.memory_space<vmem>>, vector<1x4x128xf32>
    %223 = vector.shape_cast %222 : vector<1x4x128xf32> to vector<4x128xf32>
    %cst_206 = arith.constant dense<0.000000e+00> : vector<128x128xf32>
    %224 = tpu.matmul %221, %223, %cst_206 {dimension_numbers = #tpu.dot_dimension_numbers<[1], [0], [0], [1], [0, 0, 1, 1], [], []>} : vector<128x4xf32>, vector<4x128xf32>, vector<128x128xf32> -> vector<128x128xf32>
    %225 = arith.addf %219, %224 : vector<128x128xf32>
    %c0_207 = arith.constant 0 : index
    %c420 = arith.constant 420 : index
    %c0_208 = arith.constant 0 : index
    %226 = vector.load %arg2[%c0_207, %c420, %c0_208] : memref<1x552x4xf32, #tpu.memory_space<vmem>>, vector<1x128x4xf32>
    %227 = vector.shape_cast %226 : vector<1x128x4xf32> to vector<128x4xf32>
    %c6_209 = arith.constant 6 : index
    %c0_210 = arith.constant 0 : index
    %c0_211 = arith.constant 0 : index
    %228 = vector.load %arg3[%c6_209, %c0_210, %c0_211] : memref<9x4x128xf32, #tpu.memory_space<vmem>>, vector<1x4x128xf32>
    %229 = vector.shape_cast %228 : vector<1x4x128xf32> to vector<4x128xf32>
    %cst_212 = arith.constant dense<0.000000e+00> : vector<128x128xf32>
    %230 = tpu.matmul %227, %229, %cst_212 {dimension_numbers = #tpu.dot_dimension_numbers<[1], [0], [0], [1], [0, 0, 1, 1], [], []>} : vector<128x4xf32>, vector<4x128xf32>, vector<128x128xf32> -> vector<128x128xf32>
    %231 = arith.addf %225, %230 : vector<128x128xf32>
    %c0_213 = arith.constant 0 : index
    %c421 = arith.constant 421 : index
    %c0_214 = arith.constant 0 : index
    %232 = vector.load %arg2[%c0_213, %c421, %c0_214] : memref<1x552x4xf32, #tpu.memory_space<vmem>>, vector<1x128x4xf32>
    %233 = vector.shape_cast %232 : vector<1x128x4xf32> to vector<128x4xf32>
    %c7_215 = arith.constant 7 : index
    %c0_216 = arith.constant 0 : index
    %c0_217 = arith.constant 0 : index
    %234 = vector.load %arg3[%c7_215, %c0_216, %c0_217] : memref<9x4x128xf32, #tpu.memory_space<vmem>>, vector<1x4x128xf32>
    %235 = vector.shape_cast %234 : vector<1x4x128xf32> to vector<4x128xf32>
    %cst_218 = arith.constant dense<0.000000e+00> : vector<128x128xf32>
    %236 = tpu.matmul %233, %235, %cst_218 {dimension_numbers = #tpu.dot_dimension_numbers<[1], [0], [0], [1], [0, 0, 1, 1], [], []>} : vector<128x4xf32>, vector<4x128xf32>, vector<128x128xf32> -> vector<128x128xf32>
    %237 = arith.addf %231, %236 : vector<128x128xf32>
    %c0_219 = arith.constant 0 : index
    %c422 = arith.constant 422 : index
    %c0_220 = arith.constant 0 : index
    %238 = vector.load %arg2[%c0_219, %c422, %c0_220] : memref<1x552x4xf32, #tpu.memory_space<vmem>>, vector<1x128x4xf32>
    %239 = vector.shape_cast %238 : vector<1x128x4xf32> to vector<128x4xf32>
    %c8_221 = arith.constant 8 : index
    %c0_222 = arith.constant 0 : index
    %c0_223 = arith.constant 0 : index
    %240 = vector.load %arg3[%c8_221, %c0_222, %c0_223] : memref<9x4x128xf32, #tpu.memory_space<vmem>>, vector<1x4x128xf32>
    %241 = vector.shape_cast %240 : vector<1x4x128xf32> to vector<4x128xf32>
    %cst_224 = arith.constant dense<0.000000e+00> : vector<128x128xf32>
    %242 = tpu.matmul %239, %241, %cst_224 {dimension_numbers = #tpu.dot_dimension_numbers<[1], [0], [0], [1], [0, 0, 1, 1], [], []>} : vector<128x4xf32>, vector<4x128xf32>, vector<128x128xf32> -> vector<128x128xf32>
    %243 = arith.addf %237, %242 : vector<128x128xf32>
    %244 = vector.broadcast %0 : vector<1x128xf32> to vector<128x128xf32>
    %245 = arith.mulf %243, %244 : vector<128x128xf32>
    %246 = vector.broadcast %1 : vector<1x128xf32> to vector<128x128xf32>
    %247 = arith.addf %245, %246 : vector<128x128xf32>
    %cst_225 = arith.constant 0.000000e+00 : f32
    %248 = vector.broadcast %cst_225 : f32 to vector<128x128xf32>
    %249 = arith.cmpf oge, %247, %248 : vector<128x128xf32>
    %cst_226 = arith.constant 1.000000e-01 : f32
    %250 = vector.broadcast %cst_226 : f32 to vector<128x128xf32>
    %251 = arith.mulf %250, %247 : vector<128x128xf32>
    %252 = arith.select %249, %247, %251 : vector<128x128xi1>, vector<128x128xf32>
    %c384_227 = arith.constant 384 : index
    %c0_228 = arith.constant 0 : index
    %253 = vector.load %arg6[%c384_227, %c0_228] : memref<512x128xf32, #tpu.memory_space<vmem>>, vector<128x128xf32>
    tpu.vector_store %arg6[%c384_227, %c0_228], %252 {strides = array<i32>} : memref<512x128xf32, #tpu.memory_space<vmem>>, vector<128x128xf32>,
    return
  }
  func.func @transform_0(%arg0: i32, %arg1: i32) -> (i32, i32, i32) {
    %c0_i32 = arith.constant 0 : i32
    %c0_i32_0 = arith.constant 0 : i32
    %c0_i32_1 = arith.constant 0 : i32
    return %arg1, %c0_i32, %c0_i32_0 : i32, i32, i32
  }
  func.func @transform_1(%arg0: i32, %arg1: i32) -> (i32, i32, i32) {
    %c0_i32 = arith.constant 0 : i32
    %c0_i32_0 = arith.constant 0 : i32
    %c0_i32_1 = arith.constant 0 : i32
    return %c0_i32, %c0_i32_0, %arg0 : i32, i32, i32
  }
  func.func @transform_2(%arg0: i32, %arg1: i32) -> (i32, i32) {
    %c0_i32 = arith.constant 0 : i32
    %c0_i32_0 = arith.constant 0 : i32
    return %c0_i32, %arg0 : i32, i32
  }
  func.func @transform_3(%arg0: i32, %arg1: i32) -> (i32, i32) {
    %c0_i32 = arith.constant 0 : i32
    %c0_i32_0 = arith.constant 0 : i32
    return %c0_i32, %arg0 : i32, i32
  }
  func.func @transform_4(%arg0: i32, %arg1: i32) -> (i32, i32) {
    %c0_i32 = arith.constant 0 : i32
    return %arg1, %arg0 : i32, i32
  }
}

</mosaic_0001>

<bundles_post_ra>
// kernel: cnn_forward.3
= control target key start
LH: loop header
LB: loop body
LE: loop exit
PB: predicated region body
PF: predicated region fallthrough
CT: control target
= control target key end

     0   :  { %s11697_s15 = smov 0   ;;  %s11699_s16 = smov 0   ;;  %s13450_s0 = inlined_call_operand.vmem [shape: f32[2,552,4], index: 0, kind: input, shape index: {}]   ;;  %s13451_s1 = inlined_call_operand.vmem [shape: f32[9,4,128], index: 1, kind: input, shape index: {}]   ;;  %s13452_s2 = inlined_call_operand.vmem [shape: f32[1,128], index: 2, kind: input, shape index: {}]   ;;  %s13453_s3 = inlined_call_operand.vmem [shape: f32[1,128], index: 3, kind: input, shape index: {}]   ;;  %s13454_s4 = inlined_call_operand.vmem [shape: f32[1024,128], index: 4, kind: output, shape index: {}]  }
   0x1   :  { %s11701_s17 = smov 0  }
   0x2 LB: > { %s23_s18 = sadd.s32 1, %s11666_s16  ;;  %p8909_p0 = scmp.ge.s32.totalorder %s11670_s17, 1  ;;  %s11670_s17 = sphi %s11701_s17, %s14_s17   ;;  %s11666_s16 = sphi %s11699_s16, %s13456_s16   ;;  %s11662_s15 = sphi %s11697_s15, %s13455_s15  }
   0x3   : > { %p24_p1 = scmp.ge.s32.totalorder %s23_s18, 2  ;;  %p201_p2 = scmp.lt.s32.totalorder %s11670_s17, 3 }
   0x5   : > { %s13458_s18 = smov (%p24_p1, %s23_s18), 0  ;;  %p202_p3 = pnand %p8909_p0, %p201_p2 }
   0x6   : > { %v8913_v0 = vld [vmem:[%s13451_s1 + $0x4] sm:$0xf] (!%p202_p3)  ;;  %vm350_vm0 = vcmask (!%p202_p3), 1043456   ;;  %p240_p4 = scmp.lt.s32.totalorder (!%p202_p3), %s11662_s15, 1  ;;  %v282_v2 = vld [vmem:[%s13451_s1] sm:$0xf] (!%p202_p3) }
   0x7   : > { %205 = sbr.rel (%p202_p3) target bundleno = 825 (0x339), region = 36  ;;  %v9076_v1 = vld [vmem:[%s13451_s1 + $0x4] sm:$0xf] (!%p202_p3)  ;;  %10173 = vmatprep.subr.msk.mxu0 (!%p202_p3), %vm350_vm0, %v8913_v0  ;;  %v2429_v3 = vld [vmem:[%s13451_s1] sm:$0xf] (!%p202_p3)  ;;  %vm301_vm1 = vcmask (!%p202_p3), 31744  }
   0x8   : > { %10407 = vmatprep.subr.msk.mxu1 (!%p202_p3), %vm350_vm0, %v9076_v1  ;;  %10174 = vmatpush3.msk.msra.mxu0 (!%p202_p3), %vm350_vm0, %v8913_v0  ;;  %v11755_v10 = vld [vmem:[%s13451_s1 + $0x8] sm:$0xf] (!%p202_p3)  ;;  %v11835_v44 = vld [vmem:[%s13451_s1 + $0xc] sm:$0xf] (!%p202_p3) }
   0x9   : > { %10408 = vmatpush3.msk.msra.mxu1 (!%p202_p3), %vm350_vm0, %v9076_v1  ;;  %10199 = vmatprep.subr.msk.mxu0 (!%p202_p3), %vm350_vm0, %v282_v2  ;;  %v11760_v11 = vld [vmem:[%s13451_s1 + $0x8] sm:$0xf] (!%p202_p3)  ;;  %v11840_v45 = vld [vmem:[%s13451_s1 + $0xc] sm:$0xf] (!%p202_p3) }
   0xa   : > { %10433 = vmatprep.subr.msk.mxu1 (!%p202_p3), %vm350_vm0, %v2429_v3 }
   0xe   : > { %s241_s27 = scalar_select %p240_p4, %s11662_s15, 1 }
  0x10   : > { %s11621_s28 = smul.u32 552, %s241_s27 }
  0x12   : > { %s11740_s5 = scalar_lea.vmem %s13450_s0, %s11621_s28  ;;  %s8911_s28 = sshll.u32 %s11662_s15, 6 }
  0x13   : > { %v283_v4 = vld [vmem:[%s11740_s5 + $0x1] sm:$0xff]  ;;  %v284_v6 = vld [vmem:[%s11740_s5 + $0x9] sm:$0xff]  ;;  %v285_v8 = vld [vmem:[%s11740_s5 + $0x11] sm:$0xff]  ;;  %p256_p5 = scmp.lt.s32.totalorder %s8911_s28, 127 }
  0x14   : > { %v2430_v5 = vld [vmem:[%s11740_s5 + $0x81] sm:$0xff]  ;;  %10175 = vmatprep.mubr.msk.f32.mxu0 %vm301_vm1, %v283_v4  ;;  %v2431_v7 = vld [vmem:[%s11740_s5 + $0x89] sm:$0xff]  ;;  %v2432_v9 = vld [vmem:[%s11740_s5 + $0x91] sm:$0xff] }
  0x15   : > { %10409 = vmatprep.mubr.msk.f32.mxu1 %vm301_vm1, %v2430_v5  ;;  %10176 = vmatmul.mubr.msk.f32.vlgmr.msra.gmra.mrb[0].mxu0 %vm301_vm1, %v284_v6  ;;  %v286_v12 = vld [vmem:[%s11740_s5 + $0x19] sm:$0xff]  ;;  %v287_v14 = vld [vmem:[%s11740_s5 + $0x21] sm:$0xff]  ;;  %v288_v16 = vld [vmem:[%s11740_s5 + $0x29] sm:$0xff]  ;;  %s13460_s28 = smov (!%p256_p5, %s8911_s28), 127 }
  0x16   : > { %10410 = vmatmul.mubr.msk.f32.vlgmr.msra.gmra.mrb[0].mxu1 %vm301_vm1, %v2431_v7  ;;  %10200 = vmatpush3.msk.msra.mxu0 %vm350_vm0, %v282_v2  ;;  %v2433_v13 = vld [vmem:[%s11740_s5 + $0x99] sm:$0xff]  ;;  %v2434_v15 = vld [vmem:[%s11740_s5 + $0xa1] sm:$0xff]  ;;  %v2435_v17 = vld [vmem:[%s11740_s5 + $0xa9] sm:$0xff]  ;;  %s8912_s7 = sshll.u32 %s13460_s28, 3 }
  0x17   : > { %10434 = vmatpush3.msk.msra.mxu1 %vm350_vm0, %v2429_v3  ;;  %10178 = vmatprep.mubr.msk.f32.mxu0 %vm301_vm1, %v285_v8  ;;  %v289_v18 = vld [vmem:[%s11740_s5 + $0x31] sm:$0xff]  ;;  %v290_v20 = vld [vmem:[%s11740_s5 + $0x39] sm:$0xff]  ;;  %v291_v22 = vld [vmem:[%s11740_s5 + $0x41] sm:$0xff]  ;;  %s13016_s10 = scalar_lea.vmem %s13454_s4, %s8912_s7 }
  0x18   : > { %10412 = vmatprep.mubr.msk.f32.mxu1 %vm301_vm1, %v2432_v9  ;;  %10225 = vmatprep.subr.msk.mxu0 %vm350_vm0, %v11755_v10  ;;  %v2436_v19 = vld [vmem:[%s11740_s5 + $0xb1] sm:$0xff]  ;;  %v2437_v21 = vld [vmem:[%s11740_s5 + $0xb9] sm:$0xff]  ;;  %v2438_v23 = vld [vmem:[%s11740_s5 + $0xc1] sm:$0xff] }
  0x19   : > { %10459 = vmatprep.subr.msk.mxu1 %vm350_vm0, %v11760_v11  ;;  %10179 = vmatmul.mubr.msk.f32.gmra.mrb[2].mxu0 %vm301_vm1, %v286_v12  ;;  %v292_v24 = vld [vmem:[%s11740_s5 + $0x49] sm:$0xff]  ;;  %v293_v26 = vld [vmem:[%s11740_s5 + $0x51] sm:$0xff]  ;;  %v294_v28 = vld [vmem:[%s11740_s5 + $0x59] sm:$0xff] }
  0x1a   : > { %10413 = vmatmul.mubr.msk.f32.gmra.mrb[2].mxu1 %vm301_vm1, %v2433_v13  ;;  %10181 = vmatprep.mubr.msk.f32.mxu0 %vm301_vm1, %v287_v14  ;;  %v2439_v25 = vld [vmem:[%s11740_s5 + $0xc9] sm:$0xff]  ;;  %v2440_v27 = vld [vmem:[%s11740_s5 + $0xd1] sm:$0xff]  ;;  %v2441_v29 = vld [vmem:[%s11740_s5 + $0xd9] sm:$0xff] }
  0x1b   : > { %10415 = vmatprep.mubr.msk.f32.mxu1 %vm301_vm1, %v2434_v15  ;;  %v295_v30 = vld [vmem:[%s11740_s5 + $0x61] sm:$0xff]  ;;  %v296_v32 = vld [vmem:[%s11740_s5 + $0x69] sm:$0xff]  ;;  %v297_v34 = vld [vmem:[%s11740_s5 + $0x71] sm:$0xff] }
  0x1c   : > { %v2442_v31 = vld [vmem:[%s11740_s5 + $0xe1] sm:$0xff]  ;;  %v2443_v33 = vld [vmem:[%s11740_s5 + $0xe9] sm:$0xff]  ;;  %v2444_v35 = vld [vmem:[%s11740_s5 + $0xf1] sm:$0xff] }
  0x1d   : > { %10182 = vmatmul.mubr.msk.f32.gmra.mrb[4].mxu0 %vm301_vm1, %v288_v16  ;;  %v298_v36 = vld [vmem:[%s11740_s5 + $0x79] sm:$0xff]  ;;  %v267_v40 = vld [vmem:[%s11740_s5 + $0x8] sm:$0xff]  ;;  %v268_v42 = vld [vmem:[%s11740_s5 + $0x10] sm:$0xff] }
  0x1e   : > { %10416 = vmatmul.mubr.msk.f32.gmra.mrb[4].mxu1 %vm301_vm1, %v2435_v17  ;;  %10184 = vmatprep.mubr.msk.f32.mxu0 %vm301_vm1, %v289_v18  ;;  %v2445_v37 = vld [vmem:[%s11740_s5 + $0xf9] sm:$0xff]  ;;  %v2414_v41 = vld [vmem:[%s11740_s5 + $0x88] sm:$0xff]  ;;  %v2415_v43 = vld [vmem:[%s11740_s5 + $0x90] sm:$0xff] }
  0x1f   : > { %10418 = vmatprep.mubr.msk.f32.mxu1 %vm301_vm1, %v2436_v19  ;;  %v266_v38 = vld [vmem:[%s11740_s5] sm:$0xff]  ;;  %v269_v46 = vld [vmem:[%s11740_s5 + $0x18] sm:$0xff]  ;;  %v271_v50 = vld [vmem:[%s11740_s5 + $0x28] sm:$0xff] }
  0x20   : > { %v2413_v39 = vld [vmem:[%s11740_s5 + $0x80] sm:$0xff]  ;;  %v2416_v47 = vld [vmem:[%s11740_s5 + $0x98] sm:$0xff]  ;;  %v2418_v51 = vld [vmem:[%s11740_s5 + $0xa8] sm:$0xff] }
  0x21   : > { %10185 = vmatmul.mubr.msk.f32.gmra.mrb[6].mxu0 %vm301_vm1, %v290_v20  ;;  %v270_v48 = vld [vmem:[%s11740_s5 + $0x20] sm:$0xff]  ;;  %v272_v52 = vld [vmem:[%s11740_s5 + $0x30] sm:$0xff]  ;;  %v273_v54 = vld [vmem:[%s11740_s5 + $0x38] sm:$0xff] }
  0x22   : > { %10419 = vmatmul.mubr.msk.f32.gmra.mrb[6].mxu1 %vm301_vm1, %v2437_v21  ;;  %10187 = vmatprep.mubr.msk.f32.mxu0 %vm301_vm1, %v291_v22  ;;  %v2417_v49 = vld [vmem:[%s11740_s5 + $0xa0] sm:$0xff]  ;;  %v2419_v53 = vld [vmem:[%s11740_s5 + $0xb0] sm:$0xff]  ;;  %v2420_v55 = vld [vmem:[%s11740_s5 + $0xb8] sm:$0xff] }
  0x23   : > { %10421 = vmatprep.mubr.msk.f32.mxu1 %vm301_vm1, %v2438_v23  ;;  %v274_v56 = vld [vmem:[%s11740_s5 + $0x40] sm:$0xff]  ;;  %v275_v58 = vld [vmem:[%s11740_s5 + $0x48] sm:$0xff]  ;;  %v276_v60 = vld [vmem:[%s11740_s5 + $0x50] sm:$0xff] }
  0x24   : > { %v2421_v57 = vld [vmem:[%s11740_s5 + $0xc0] sm:$0xff]  ;;  %v2422_v59 = vld [vmem:[%s11740_s5 + $0xc8] sm:$0xff]  ;;  %v2423_v61 = vld [vmem:[%s11740_s5 + $0xd0] sm:$0xff] }
  0x25   : > { %10188 = vmatmul.mubr.msk.f32.gmra.mrb[8].mxu0 %vm301_vm1, %v292_v24  ;;  %v277_v62 = vld [vmem:[%s11740_s5 + $0x58] sm:$0xff]  ;;  %v278_v0 = vld [vmem:[%s11740_s5 + $0x60] sm:$0xff]  ;;  %v279_v2 = vld [vmem:[%s11740_s5 + $0x68] sm:$0xff] }
  0x26   : > { %10422 = vmatmul.mubr.msk.f32.gmra.mrb[8].mxu1 %vm301_vm1, %v2439_v25  ;;  %10190 = vmatprep.mubr.msk.f32.mxu0 %vm301_vm1, %v293_v26  ;;  %v2424_v63 = vld [vmem:[%s11740_s5 + $0xd8] sm:$0xff]  ;;  %v2425_v1 = vld [vmem:[%s11740_s5 + $0xe0] sm:$0xff]  ;;  %v2426_v3 = vld [vmem:[%s11740_s5 + $0xe8] sm:$0xff] }
  0x27   : > { %10424 = vmatprep.mubr.msk.f32.mxu1 %vm301_vm1, %v2440_v27  ;;  %v280_v4 = vld [vmem:[%s11740_s5 + $0x70] sm:$0xff]  ;;  %v281_v6 = vld [vmem:[%s11740_s5 + $0x78] sm:$0xff]  ;;  %v695_v8 = vld [vmem:[%s11740_s5 + $0x2] sm:$0xff] }
  0x28   : > { %v2427_v5 = vld [vmem:[%s11740_s5 + $0xf0] sm:$0xff]  ;;  %v2428_v7 = vld [vmem:[%s11740_s5 + $0xf8] sm:$0xff]  ;;  %v11904_v9 = vld [vmem:[%s11740_s5 + $0x82] sm:$0xff] }
  0x29   : > { %10191 = vmatmul.mubr.msk.f32.gmra.mrb[10].mxu0 %vm301_vm1, %v294_v28  ;;  %v11916_v12 = vld [vmem:[%s11740_s5 + $0x12] sm:$0xff]  ;;  %v698_v16 = vld [vmem:[%s11740_s5 + $0x1a] sm:$0xff]  ;;  %v699_v18 = vld [vmem:[%s11740_s5 + $0x22] sm:$0xff] }
  0x2a   : > { %10425 = vmatmul.mubr.msk.f32.gmra.mrb[10].mxu1 %vm301_vm1, %v2441_v29  ;;  %10193 = vmatprep.mubr.msk.f32.mxu0 %vm301_vm1, %v295_v30  ;;  %v11919_v13 = vld [vmem:[%s11740_s5 + $0x92] sm:$0xff]  ;;  %v2842_v17 = vld [vmem:[%s11740_s5 + $0x9a] sm:$0xff]  ;;  %v2843_v19 = vld [vmem:[%s11740_s5 + $0xa2] sm:$0xff] }
  0x2b   : > { %10427 = vmatprep.mubr.msk.f32.mxu1 %vm301_vm1, %v2442_v31  ;;  %v11927_v14 = vld [vmem:[%s13451_s1 + $0x10] sm:$0xf]  ;;  %v702_v24 = vld [vmem:[%s11740_s5 + $0x3a] sm:$0xff]  ;;  %v703_v26 = vld [vmem:[%s11740_s5 + $0x42] sm:$0xff] }
  0x2c   : > { %v11932_v15 = vld [vmem:[%s13451_s1 + $0x10] sm:$0xf]  ;;  %v2846_v25 = vld [vmem:[%s11740_s5 + $0xba] sm:$0xff]  ;;  %v2847_v27 = vld [vmem:[%s11740_s5 + $0xc2] sm:$0xff] }
  0x2d   : > { %10194 = vmatmul.mubr.msk.f32.gmra.mrb[12].mxu0 %vm301_vm1, %v296_v32  ;;  %v700_v20 = vld [vmem:[%s11740_s5 + $0x2a] sm:$0xff]  ;;  %v701_v22 = vld [vmem:[%s11740_s5 + $0x32] sm:$0xff]  ;;  %v706_v32 = vld [vmem:[%s11740_s5 + $0x5a] sm:$0xff] }
  0x2e   : > { %10428 = vmatmul.mubr.msk.f32.gmra.mrb[12].mxu1 %vm301_vm1, %v2443_v33  ;;  %10196 = vmatprep.mubr.msk.f32.mxu0 %vm301_vm1, %v297_v34  ;;  %v2844_v21 = vld [vmem:[%s11740_s5 + $0xaa] sm:$0xff]  ;;  %v2845_v23 = vld [vmem:[%s11740_s5 + $0xb2] sm:$0xff]  ;;  %v2850_v33 = vld [vmem:[%s11740_s5 + $0xda] sm:$0xff] }
  0x2f   : > { %10430 = vmatprep.mubr.msk.f32.mxu1 %vm301_vm1, %v2444_v35  ;;  %v704_v28 = vld [vmem:[%s11740_s5 + $0x4a] sm:$0xff]  ;;  %v705_v30 = vld [vmem:[%s11740_s5 + $0x52] sm:$0xff]  ;;  %v707_v34 = vld [vmem:[%s11740_s5 + $0x62] sm:$0xff] }
  0x30   : > { %v2848_v29 = vld [vmem:[%s11740_s5 + $0xca] sm:$0xff]  ;;  %v2849_v31 = vld [vmem:[%s11740_s5 + $0xd2] sm:$0xff]  ;;  %v2851_v35 = vld [vmem:[%s11740_s5 + $0xe2] sm:$0xff] }
  0x31   : > { %10197 = vmatmul.mubr.msk.f32.gmra.mrb[14].mxu0 %vm301_vm1, %v298_v36  ;;  %v708_v36 = vld [vmem:[%s11740_s5 + $0x6a] sm:$0xff] }
  0x32   : > { %10431 = vmatmul.mubr.msk.f32.gmra.mrb[14].mxu1 %vm301_vm1, %v2445_v37  ;;  %10201 = vmatprep.mubr.msk.f32.mxu0 %vm301_vm1, %v266_v38  ;;  %v2852_v37 = vld [vmem:[%s11740_s5 + $0xea] sm:$0xff]  ;;  %v709_v38 = vld [vmem:[%s11740_s5 + $0x72] sm:$0xff] }
  0x33   : > { %10435 = vmatprep.mubr.msk.f32.mxu1 %vm301_vm1, %v2413_v39  ;;  %v2853_v39 = vld [vmem:[%s11740_s5 + $0xf2] sm:$0xff] }
  0x35   : > { %10202 = vmatmul.mubr.msk.f32.vlgmr.msra.gmra.mrb[0].mxu0 %vm301_vm1, %v267_v40  ;;  %v710_v40 = vld [vmem:[%s11740_s5 + $0x7a] sm:$0xff] }
  0x36   : > { %10436 = vmatmul.mubr.msk.f32.vlgmr.msra.gmra.mrb[0].mxu1 %vm301_vm1, %v2414_v41  ;;  %10226 = vmatpush3.msk.msra.mxu0 %vm350_vm0, %v11755_v10  ;;  %v696_v10 = vld [vmem:[%s11740_s5 + $0xa] sm:$0xff]  ;;  %v2854_v41 = vld [vmem:[%s11740_s5 + $0xfa] sm:$0xff] }
  0x37   : > { %10460 = vmatpush3.msk.msra.mxu1 %vm350_vm0, %v11760_v11  ;;  %10204 = vmatprep.mubr.msk.f32.mxu0 %vm301_vm1, %v268_v42  ;;  %v11913_v11 = vld [vmem:[%s11740_s5 + $0x8a] sm:$0xff]  ;;  %v9002_v42 = vld [vmem:[%s13451_s1 + $0x14] sm:$0xf] }
  0x38   : > { %10438 = vmatprep.mubr.msk.f32.mxu1 %vm301_vm1, %v2415_v43  ;;  %10251 = vmatprep.subr.msk.mxu0 %vm350_vm0, %v11835_v44  ;;  %v9165_v43 = vld [vmem:[%s13451_s1 + $0x14] sm:$0xf] }
  0x39   : > { %10485 = vmatprep.subr.msk.mxu1 %vm350_vm0, %v11840_v45  ;;  %10205 = vmatmul.mubr.msk.f32.gmra.mrb[2].mxu0 %vm301_vm1, %v269_v46  ;;  %v1155_v46 = vld [vmem:[%s11740_s5 + $0x13] sm:$0xff] }
  0x3a   : > { %10439 = vmatmul.mubr.msk.f32.gmra.mrb[2].mxu1 %vm301_vm1, %v2416_v47  ;;  %10207 = vmatprep.mubr.msk.f32.mxu0 %vm301_vm1, %v270_v48  ;;  %v3297_v47 = vld [vmem:[%s11740_s5 + $0x93] sm:$0xff]  ;;  %v1156_v48 = vld [vmem:[%s11740_s5 + $0x1b] sm:$0xff] }
  0x3b   : > { %10441 = vmatprep.mubr.msk.f32.mxu1 %vm301_vm1, %v2417_v49  ;;  %v3298_v49 = vld [vmem:[%s11740_s5 + $0x9b] sm:$0xff] }
  0x3d   : > { %10208 = vmatmul.mubr.msk.f32.gmra.mrb[4].mxu0 %vm301_vm1, %v271_v50  ;;  %v1157_v50 = vld [vmem:[%s11740_s5 + $0x23] sm:$0xff] }
  0x3e   : > { %10442 = vmatmul.mubr.msk.f32.gmra.mrb[4].mxu1 %vm301_vm1, %v2418_v51  ;;  %10210 = vmatprep.mubr.msk.f32.mxu0 %vm301_vm1, %v272_v52  ;;  %v3299_v51 = vld [vmem:[%s11740_s5 + $0xa3] sm:$0xff]  ;;  %v12067_v52 = vld [vmem:[%s13451_s1 + $0x18] sm:$0xf] }
  0x3f   : > { %10444 = vmatprep.mubr.msk.f32.mxu1 %vm301_vm1, %v2419_v53  ;;  %v12072_v53 = vld [vmem:[%s13451_s1 + $0x18] sm:$0xf] }
  0x41   : > { %10211 = vmatmul.mubr.msk.f32.gmra.mrb[6].mxu0 %vm301_vm1, %v273_v54  ;;  %v1158_v54 = vld [vmem:[%s11740_s5 + $0x2b] sm:$0xff] }
  0x42   : > { %10445 = vmatmul.mubr.msk.f32.gmra.mrb[6].mxu1 %vm301_vm1, %v2420_v55  ;;  %10213 = vmatprep.mubr.msk.f32.mxu0 %vm301_vm1, %v274_v56  ;;  %v3300_v55 = vld [vmem:[%s11740_s5 + $0xab] sm:$0xff]  ;;  %v1159_v56 = vld [vmem:[%s11740_s5 + $0x33] sm:$0xff] }
  0x43   : > { %10447 = vmatprep.mubr.msk.f32.mxu1 %vm301_vm1, %v2421_v57  ;;  %v3301_v57 = vld [vmem:[%s11740_s5 + $0xb3] sm:$0xff] }
  0x45   : > { %10214 = vmatmul.mubr.msk.f32.gmra.mrb[8].mxu0 %vm301_vm1, %v275_v58  ;;  %v1160_v58 = vld [vmem:[%s11740_s5 + $0x3b] sm:$0xff] }
  0x46   : > { %10448 = vmatmul.mubr.msk.f32.gmra.mrb[8].mxu1 %vm301_vm1, %v2422_v59  ;;  %10216 = vmatprep.mubr.msk.f32.mxu0 %vm301_vm1, %v276_v60  ;;  %v3302_v59 = vld [vmem:[%s11740_s5 + $0xbb] sm:$0xff]  ;;  %v1161_v60 = vld [vmem:[%s11740_s5 + $0x43] sm:$0xff] }
  0x47   : > { %10450 = vmatprep.mubr.msk.f32.mxu1 %vm301_vm1, %v2423_v61  ;;  %v3303_v61 = vld [vmem:[%s11740_s5 + $0xc3] sm:$0xff] }
  0x49   : > { %10217 = vmatmul.mubr.msk.f32.gmra.mrb[10].mxu0 %vm301_vm1, %v277_v62  ;;  %v1162_v62 = vld [vmem:[%s11740_s5 + $0x4b] sm:$0xff] }
  0x4a   : > { %10451 = vmatmul.mubr.msk.f32.gmra.mrb[10].mxu1 %vm301_vm1, %v2424_v63  ;;  %10219 = vmatprep.mubr.msk.f32.mxu0 %vm301_vm1, %v278_v0  ;;  %v3304_v63 = vld [vmem:[%s11740_s5 + $0xcb] sm:$0xff]  ;;  %v1163_v0 = vld [vmem:[%s11740_s5 + $0x53] sm:$0xff] }
  0x4b   : > { %10453 = vmatprep.mubr.msk.f32.mxu1 %vm301_vm1, %v2425_v1  ;;  %v3305_v1 = vld [vmem:[%s11740_s5 + $0xd3] sm:$0xff] }
  0x4d   : > { %10220 = vmatmul.mubr.msk.f32.gmra.mrb[12].mxu0 %vm301_vm1, %v279_v2  ;;  %v1164_v2 = vld [vmem:[%s11740_s5 + $0x5b] sm:$0xff] }
  0x4e   : > { %10454 = vmatmul.mubr.msk.f32.gmra.mrb[12].mxu1 %vm301_vm1, %v2426_v3  ;;  %10222 = vmatprep.mubr.msk.f32.mxu0 %vm301_vm1, %v280_v4  ;;  %v3306_v3 = vld [vmem:[%s11740_s5 + $0xdb] sm:$0xff]  ;;  %v1165_v4 = vld [vmem:[%s11740_s5 + $0x63] sm:$0xff] }
  0x4f   : > { %10456 = vmatprep.mubr.msk.f32.mxu1 %vm301_vm1, %v2427_v5  ;;  %v3307_v5 = vld [vmem:[%s11740_s5 + $0xe3] sm:$0xff] }
  0x51   : > { %10223 = vmatmul.mubr.msk.f32.gmra.mrb[14].mxu0 %vm301_vm1, %v281_v6  ;;  %v1166_v6 = vld [vmem:[%s11740_s5 + $0x6b] sm:$0xff] }
  0x52   : > { %10457 = vmatmul.mubr.msk.f32.gmra.mrb[14].mxu1 %vm301_vm1, %v2428_v7  ;;  %10227 = vmatprep.mubr.msk.f32.mxu0 %vm301_vm1, %v695_v8  ;;  %v3308_v7 = vld [vmem:[%s11740_s5 + $0xeb] sm:$0xff]  ;;  %v1167_v8 = vld [vmem:[%s11740_s5 + $0x73] sm:$0xff] }
  0x53   : > { %10461 = vmatprep.mubr.msk.f32.mxu1 %vm301_vm1, %v11904_v9 }
  0x55   : > { %10228 = vmatmul.mubr.msk.f32.vlgmr.msra.gmra.mrb[0].mxu0 %vm301_vm1, %v696_v10  ;;  %v1168_v10 = vld [vmem:[%s11740_s5 + $0x7b] sm:$0xff] }
  0x56   : > { %10462 = vmatmul.mubr.msk.f32.vlgmr.msra.gmra.mrb[0].mxu1 %vm301_vm1, %v11913_v11  ;;  %10252 = vmatpush3.msk.msra.mxu0 %vm350_vm0, %v11835_v44  ;;  %v12039_v44 = vld [vmem:[%s11740_s5 + $0x102] sm:$0xff] }
  0x57   : > { %10486 = vmatpush3.msk.msra.mxu1 %vm350_vm0, %v11840_v45  ;;  %10230 = vmatprep.mubr.msk.f32.mxu0 %vm301_vm1, %v11916_v12  ;;  %v12048_v45 = vld [vmem:[%s11740_s5 + $0x10a] sm:$0xff] }
  0x58   : > { %10464 = vmatprep.mubr.msk.f32.mxu1 %vm301_vm1, %v11919_v13  ;;  %10277 = vmatprep.subr.msk.mxu0 %vm350_vm0, %v11927_v14 }
  0x59   : > { %10511 = vmatprep.subr.msk.mxu1 %vm350_vm0, %v11932_v15  ;;  %10231 = vmatmul.mubr.msk.f32.gmra.mrb[2].mxu0 %vm301_vm1, %v698_v16 }
  0x5a   : > { %10465 = vmatmul.mubr.msk.f32.gmra.mrb[2].mxu1 %vm301_vm1, %v2842_v17  ;;  %10233 = vmatprep.mubr.msk.f32.mxu0 %vm301_vm1, %v699_v18 }
  0x5b   : > { %10467 = vmatprep.mubr.msk.f32.mxu1 %vm301_vm1, %v2843_v19 }
  0x5d   : > { %10234 = vmatmul.mubr.msk.f32.gmra.mrb[4].mxu0 %vm301_vm1, %v700_v20 }
  0x5e   : > { %10468 = vmatmul.mubr.msk.f32.gmra.mrb[4].mxu1 %vm301_vm1, %v2844_v21  ;;  %10236 = vmatprep.mubr.msk.f32.mxu0 %vm301_vm1, %v701_v22 }
  0x5f   : > { %10470 = vmatprep.mubr.msk.f32.mxu1 %vm301_vm1, %v2845_v23 }
  0x61   : > { %10237 = vmatmul.mubr.msk.f32.gmra.mrb[6].mxu0 %vm301_vm1, %v702_v24 }
  0x62   : > { %10471 = vmatmul.mubr.msk.f32.gmra.mrb[6].mxu1 %vm301_vm1, %v2846_v25  ;;  %10239 = vmatprep.mubr.msk.f32.mxu0 %vm301_vm1, %v703_v26 }
  0x63   : > { %10473 = vmatprep.mubr.msk.f32.mxu1 %vm301_vm1, %v2847_v27 }
  0x65   : > { %10240 = vmatmul.mubr.msk.f32.gmra.mrb[8].mxu0 %vm301_vm1, %v704_v28 }
  0x66   : > { %10474 = vmatmul.mubr.msk.f32.gmra.mrb[8].mxu1 %vm301_vm1, %v2848_v29  ;;  %10242 = vmatprep.mubr.msk.f32.mxu0 %vm301_vm1, %v705_v30 }
  0x67   : > { %10476 = vmatprep.mubr.msk.f32.mxu1 %vm301_vm1, %v2849_v31 }
  0x69   : > { %10243 = vmatmul.mubr.msk.f32.gmra.mrb[10].mxu0 %vm301_vm1, %v706_v32 }
  0x6a   : > { %10477 = vmatmul.mubr.msk.f32.gmra.mrb[10].mxu1 %vm301_vm1, %v2850_v33  ;;  %10245 = vmatprep.mubr.msk.f32.mxu0 %vm301_vm1, %v707_v34 }
  0x6b   : > { %10479 = vmatprep.mubr.msk.f32.mxu1 %vm301_vm1, %v2851_v35 }
  0x6d   : > { %10246 = vmatmul.mubr.msk.f32.gmra.mrb[12].mxu0 %vm301_vm1, %v708_v36 }
  0x6e   : > { %10480 = vmatmul.mubr.msk.f32.gmra.mrb[12].mxu1 %vm301_vm1, %v2852_v37  ;;  %10248 = vmatprep.mubr.msk.f32.mxu0 %vm301_vm1, %v709_v38 }
  0x6f   : > { %10482 = vmatprep.mubr.msk.f32.mxu1 %vm301_vm1, %v2853_v39 }
  0x71   : > { %10249 = vmatmul.mubr.msk.f32.gmra.mrb[14].mxu0 %vm301_vm1, %v710_v40 }
  0x72   : > { %10483 = vmatmul.mubr.msk.f32.gmra.mrb[14].mxu1 %vm301_vm1, %v2854_v41  ;;  %10253 = vmatprep.mubr.msk.f32.mxu0 %vm301_vm1, %v11916_v12  ;;  %v1169_v12 = vld [vmem:[%s11740_s5 + $0x83] sm:$0xff] }
  0x73   : > { %10487 = vmatprep.mubr.msk.f32.mxu1 %vm301_vm1, %v11919_v13  ;;  %v3311_v13 = vld [vmem:[%s11740_s5 + $0x103] sm:$0xff] }
  0x75   : > { %10254 = vmatmul.mubr.msk.f32.vlgmr.msra.gmra.mrb[0].mxu0 %vm301_vm1, %v698_v16  ;;  %v1385_v16 = vld [vmem:[%s11740_s5 + $0x14] sm:$0xff] }
  0x76   : > { %10488 = vmatmul.mubr.msk.f32.vlgmr.msra.gmra.mrb[0].mxu1 %vm301_vm1, %v2842_v17  ;;  %10278 = vmatpush3.msk.msra.mxu0 %vm350_vm0, %v11927_v14  ;;  %v1170_v14 = vld [vmem:[%s11740_s5 + $0x8b] sm:$0xff]  ;;  %v12134_v17 = vld [vmem:[%s11740_s5 + $0x94] sm:$0xff] }
  0x77   : > { %10512 = vmatpush3.msk.msra.mxu1 %vm350_vm0, %v11932_v15  ;;  %10256 = vmatprep.mubr.msk.f32.mxu0 %vm301_vm1, %v699_v18  ;;  %v3312_v15 = vld [vmem:[%s11740_s5 + $0x10b] sm:$0xff]  ;;  %v1386_v18 = vld [vmem:[%s11740_s5 + $0x1c] sm:$0xff] }
  0x78   : > { %10490 = vmatprep.mubr.msk.f32.mxu1 %vm301_vm1, %v2843_v19  ;;  %10303 = vmatprep.subr.msk.mxu0 %vm350_vm0, %v9002_v42  ;;  %v12143_v19 = vld [vmem:[%s11740_s5 + $0x9c] sm:$0xff] }
  0x79   : > { %10537 = vmatprep.subr.msk.mxu1 %vm350_vm0, %v9165_v43  ;;  %10257 = vmatmul.mubr.msk.f32.gmra.mrb[2].mxu0 %vm301_vm1, %v700_v20  ;;  %v12146_v20 = vld [vmem:[%s11740_s5 + $0x24] sm:$0xff] }
  0x7a   : > { %10491 = vmatmul.mubr.msk.f32.gmra.mrb[2].mxu1 %vm301_vm1, %v2844_v21  ;;  %10259 = vmatprep.mubr.msk.f32.mxu0 %vm301_vm1, %v701_v22  ;;  %v12149_v21 = vld [vmem:[%s11740_s5 + $0xa4] sm:$0xff]  ;;  %v12157_v22 = vld [vmem:[%s13451_s1 + $0x1c] sm:$0xf] }
  0x7b   : > { %10493 = vmatprep.mubr.msk.f32.mxu1 %vm301_vm1, %v2845_v23  ;;  %v12162_v23 = vld [vmem:[%s13451_s1 + $0x1c] sm:$0xf] }
  0x7d   : > { %10260 = vmatmul.mubr.msk.f32.gmra.mrb[4].mxu0 %vm301_vm1, %v702_v24  ;;  %v1388_v24 = vld [vmem:[%s11740_s5 + $0x2c] sm:$0xff] }
  0x7e   : > { %10494 = vmatmul.mubr.msk.f32.gmra.mrb[4].mxu1 %vm301_vm1, %v2846_v25  ;;  %10262 = vmatprep.mubr.msk.f32.mxu0 %vm301_vm1, %v703_v26  ;;  %v3529_v25 = vld [vmem:[%s11740_s5 + $0xac] sm:$0xff]  ;;  %v1389_v26 = vld [vmem:[%s11740_s5 + $0x34] sm:$0xff] }
  0x7f   : > { %10496 = vmatprep.mubr.msk.f32.mxu1 %vm301_vm1, %v2847_v27  ;;  %v3530_v27 = vld [vmem:[%s11740_s5 + $0xb4] sm:$0xff] }
  0x81   : > { %10263 = vmatmul.mubr.msk.f32.gmra.mrb[6].mxu0 %vm301_vm1, %v704_v28  ;;  %v1390_v28 = vld [vmem:[%s11740_s5 + $0x3c] sm:$0xff] }
  0x82   : > { %10497 = vmatmul.mubr.msk.f32.gmra.mrb[6].mxu1 %vm301_vm1, %v2848_v29  ;;  %10265 = vmatprep.mubr.msk.f32.mxu0 %vm301_vm1, %v705_v30  ;;  %v3531_v29 = vld [vmem:[%s11740_s5 + $0xbc] sm:$0xff]  ;;  %v1391_v30 = vld [vmem:[%s11740_s5 + $0x44] sm:$0xff] }
  0x83   : > { %10499 = vmatprep.mubr.msk.f32.mxu1 %vm301_vm1, %v2849_v31  ;;  %v3532_v31 = vld [vmem:[%s11740_s5 + $0xc4] sm:$0xff] }
  0x85   : > { %10266 = vmatmul.mubr.msk.f32.gmra.mrb[8].mxu0 %vm301_vm1, %v706_v32  ;;  %v1392_v32 = vld [vmem:[%s11740_s5 + $0x4c] sm:$0xff] }
  0x86   : > { %10500 = vmatmul.mubr.msk.f32.gmra.mrb[8].mxu1 %vm301_vm1, %v2850_v33  ;;  %10268 = vmatprep.mubr.msk.f32.mxu0 %vm301_vm1, %v707_v34  ;;  %v3533_v33 = vld [vmem:[%s11740_s5 + $0xcc] sm:$0xff]  ;;  %v1393_v34 = vld [vmem:[%s11740_s5 + $0x54] sm:$0xff] }
  0x87   : > { %10502 = vmatprep.mubr.msk.f32.mxu1 %vm301_vm1, %v2851_v35  ;;  %v3534_v35 = vld [vmem:[%s11740_s5 + $0xd4] sm:$0xff] }
  0x89   : > { %10269 = vmatmul.mubr.msk.f32.gmra.mrb[10].mxu0 %vm301_vm1, %v708_v36  ;;  %v1394_v36 = vld [vmem:[%s11740_s5 + $0x5c] sm:$0xff] }
  0x8a   : > { %10503 = vmatmul.mubr.msk.f32.gmra.mrb[10].mxu1 %vm301_vm1, %v2852_v37  ;;  %10271 = vmatprep.mubr.msk.f32.mxu0 %vm301_vm1, %v709_v38  ;;  %v3535_v37 = vld [vmem:[%s11740_s5 + $0xdc] sm:$0xff]  ;;  %v1395_v38 = vld [vmem:[%s11740_s5 + $0x64] sm:$0xff] }
  0x8b   : > { %10505 = vmatprep.mubr.msk.f32.mxu1 %vm301_vm1, %v2853_v39  ;;  %v3536_v39 = vld [vmem:[%s11740_s5 + $0xe4] sm:$0xff] }
  0x8d   : > { %10272 = vmatmul.mubr.msk.f32.gmra.mrb[12].mxu0 %vm301_vm1, %v710_v40  ;;  %v1396_v40 = vld [vmem:[%s11740_s5 + $0x6c] sm:$0xff] }
  0x8e   : > { %10506 = vmatmul.mubr.msk.f32.gmra.mrb[12].mxu1 %vm301_vm1, %v2854_v41  ;;  %10274 = vmatprep.mubr.msk.f32.mxu0 %vm301_vm1, %v11904_v9  ;;  %v3309_v9 = vld [vmem:[%s11740_s5 + $0xf3] sm:$0xff] }
  0x8f   : > { %10508 = vmatprep.mubr.msk.f32.mxu1 %vm301_vm1, %v12039_v44  ;;  %v3537_v41 = vld [vmem:[%s11740_s5 + $0xec] sm:$0xff] }
  0x91   : > { %10275 = vmatmul.mubr.msk.f32.gmra.mrb[14].mxu0 %vm301_vm1, %v11913_v11  ;;  %v3310_v11 = vld [vmem:[%s11740_s5 + $0xfb] sm:$0xff] }
  0x92   : > { %10509 = vmatmul.mubr.msk.f32.gmra.mrb[14].mxu1 %vm301_vm1, %v12048_v45  ;;  %10279 = vmatprep.mubr.msk.f32.mxu0 %vm301_vm1, %v1155_v46  ;;  %v1398_v46 = vld [vmem:[%s11740_s5 + $0x7c] sm:$0xff] }
  0x93   : > { %10513 = vmatprep.mubr.msk.f32.mxu1 %vm301_vm1, %v3297_v47  ;;  %v3539_v47 = vld [vmem:[%s11740_s5 + $0xfc] sm:$0xff] }
  0x95   : > { %10280 = vmatmul.mubr.msk.f32.vlgmr.msra.gmra.mrb[0].mxu0 %vm301_vm1, %v1156_v48  ;;  %v1399_v48 = vld [vmem:[%s11740_s5 + $0x84] sm:$0xff] }
  0x96   : > { %10514 = vmatmul.mubr.msk.f32.vlgmr.msra.gmra.mrb[0].mxu1 %vm301_vm1, %v3298_v49  ;;  %10304 = vmatpush3.msk.msra.mxu0 %vm350_vm0, %v9002_v42  ;;  %v1397_v42 = vld [vmem:[%s11740_s5 + $0x74] sm:$0xff]  ;;  %v3540_v49 = vld [vmem:[%s11740_s5 + $0x104] sm:$0xff] }
  0x97   : > { %10538 = vmatpush3.msk.msra.mxu1 %vm350_vm0, %v9165_v43  ;;  %10282 = vmatprep.mubr.msk.f32.mxu0 %vm301_vm1, %v1157_v50  ;;  %v3538_v43 = vld [vmem:[%s11740_s5 + $0xf4] sm:$0xff]  ;;  %v1400_v50 = vld [vmem:[%s11740_s5 + $0x8c] sm:$0xff] }
  0x98   : > { %10516 = vmatprep.mubr.msk.f32.mxu1 %vm301_vm1, %v3299_v51  ;;  %10329 = vmatprep.subr.msk.mxu0 %vm350_vm0, %v12067_v52  ;;  %v3541_v51 = vld [vmem:[%s11740_s5 + $0x10c] sm:$0xff] }
  0x99   : > { %10563 = vmatprep.subr.msk.mxu1 %vm350_vm0, %v12072_v53  ;;  %10283 = vmatmul.mubr.msk.f32.gmra.mrb[2].mxu0 %vm301_vm1, %v1158_v54  ;;  %v12269_v54 = vld [vmem:[%s11740_s5 + $0x114] sm:$0xff] }
  0x9a   : > { %10517 = vmatmul.mubr.msk.f32.gmra.mrb[2].mxu1 %vm301_vm1, %v3300_v55  ;;  %10285 = vmatprep.mubr.msk.f32.mxu0 %vm301_vm1, %v1159_v56  ;;  %v12278_v55 = vld [vmem:[%s11740_s5 + $0x11c] sm:$0xff]  ;;  %v1845_v56 = vld [vmem:[%s11740_s5 + $0x25] sm:$0xff] }
  0x9b   : > { %10519 = vmatprep.mubr.msk.f32.mxu1 %vm301_vm1, %v3301_v57  ;;  %v3984_v57 = vld [vmem:[%s11740_s5 + $0xa5] sm:$0xff] }
  0x9d   : > { %10286 = vmatmul.mubr.msk.f32.gmra.mrb[4].mxu0 %vm301_vm1, %v1160_v58  ;;  %v1846_v58 = vld [vmem:[%s11740_s5 + $0x2d] sm:$0xff] }
  0x9e   : > { %10520 = vmatmul.mubr.msk.f32.gmra.mrb[4].mxu1 %vm301_vm1, %v3302_v59  ;;  %10288 = vmatprep.mubr.msk.f32.mxu0 %vm301_vm1, %v1161_v60  ;;  %v3985_v59 = vld [vmem:[%s11740_s5 + $0xad] sm:$0xff]  ;;  %v1847_v60 = vld [vmem:[%s11740_s5 + $0x35] sm:$0xff] }
  0x9f   : > { %10522 = vmatprep.mubr.msk.f32.mxu1 %vm301_vm1, %v3303_v61  ;;  %v3986_v61 = vld [vmem:[%s11740_s5 + $0xb5] sm:$0xff] }
  0xa1   : > { %10289 = vmatmul.mubr.msk.f32.gmra.mrb[6].mxu0 %vm301_vm1, %v1162_v62  ;;  %v12297_v62 = vld [vmem:[%s13451_s1 + $0x4] sm:$0xf] }
  0xa2   : > { %10523 = vmatmul.mubr.msk.f32.gmra.mrb[6].mxu1 %vm301_vm1, %v3304_v63  ;;  %10291 = vmatprep.mubr.msk.f32.mxu0 %vm301_vm1, %v1163_v0  ;;  %v12302_v63 = vld [vmem:[%s13451_s1 + $0x4] sm:$0xf] }
  0xa3   : > { %10525 = vmatprep.mubr.msk.f32.mxu1 %vm301_vm1, %v3305_v1  ;;  %v1848_v0 = vld [vmem:[%s11740_s5 + $0x3d] sm:$0xff] }
  0xa4   : > { %v3987_v1 = vld [vmem:[%s11740_s5 + $0xbd] sm:$0xff] }
  0xa5   : > { %10292 = vmatmul.mubr.msk.f32.gmra.mrb[8].mxu0 %vm301_vm1, %v1164_v2  ;;  %v1849_v2 = vld [vmem:[%s11740_s5 + $0x45] sm:$0xff] }
  0xa6   : > { %10526 = vmatmul.mubr.msk.f32.gmra.mrb[8].mxu1 %vm301_vm1, %v3306_v3  ;;  %10294 = vmatprep.mubr.msk.f32.mxu0 %vm301_vm1, %v1165_v4  ;;  %v3988_v3 = vld [vmem:[%s11740_s5 + $0xc5] sm:$0xff]  ;;  %v1850_v4 = vld [vmem:[%s11740_s5 + $0x4d] sm:$0xff] }
  0xa7   : > { %10528 = vmatprep.mubr.msk.f32.mxu1 %vm301_vm1, %v3307_v5  ;;  %v3989_v5 = vld [vmem:[%s11740_s5 + $0xcd] sm:$0xff] }
  0xa9   : > { %10295 = vmatmul.mubr.msk.f32.gmra.mrb[10].mxu0 %vm301_vm1, %v1166_v6  ;;  %v1851_v6 = vld [vmem:[%s11740_s5 + $0x55] sm:$0xff] }
  0xaa   : > { %10529 = vmatmul.mubr.msk.f32.gmra.mrb[10].mxu1 %vm301_vm1, %v3308_v7  ;;  %10297 = vmatprep.mubr.msk.f32.mxu0 %vm301_vm1, %v1167_v8  ;;  %v3990_v7 = vld [vmem:[%s11740_s5 + $0xd5] sm:$0xff]  ;;  %v1852_v8 = vld [vmem:[%s11740_s5 + $0x5d] sm:$0xff] }
  0xab   : > { %10531 = vmatprep.mubr.msk.f32.mxu1 %vm301_vm1, %v3309_v9  ;;  %v3991_v9 = vld [vmem:[%s11740_s5 + $0xdd] sm:$0xff] }
  0xad   : > { %10298 = vmatmul.mubr.msk.f32.gmra.mrb[12].mxu0 %vm301_vm1, %v1168_v10  ;;  %v1853_v10 = vld [vmem:[%s11740_s5 + $0x65] sm:$0xff] }
  0xae   : > { %10532 = vmatmul.mubr.msk.f32.gmra.mrb[12].mxu1 %vm301_vm1, %v3310_v11  ;;  %10300 = vmatprep.mubr.msk.f32.mxu0 %vm301_vm1, %v1169_v12  ;;  %v3992_v11 = vld [vmem:[%s11740_s5 + $0xe5] sm:$0xff]  ;;  %v1854_v12 = vld [vmem:[%s11740_s5 + $0x6d] sm:$0xff] }
  0xaf   : > { %10534 = vmatprep.mubr.msk.f32.mxu1 %vm301_vm1, %v3311_v13  ;;  %v3993_v13 = vld [vmem:[%s11740_s5 + $0xed] sm:$0xff] }
  0xb1   : > { %10301 = vmatmul.mubr.msk.f32.gmra.mrb[14].mxu0 %vm301_vm1, %v1170_v14  ;;  %v1855_v14 = vld [vmem:[%s11740_s5 + $0x75] sm:$0xff] }
  0xb2   : > { %10535 = vmatmul.mubr.msk.f32.gmra.mrb[14].mxu1 %vm301_vm1, %v3312_v15  ;;  %10305 = vmatprep.mubr.msk.f32.mxu0 %vm301_vm1, %v1385_v16  ;;  %v3994_v15 = vld [vmem:[%s11740_s5 + $0xf5] sm:$0xff]  ;;  %v1856_v16 = vld [vmem:[%s11740_s5 + $0x7d] sm:$0xff] }
  0xb3   : > { %10539 = vmatprep.mubr.msk.f32.mxu1 %vm301_vm1, %v12134_v17 }
  0xb5   : > { %10306 = vmatmul.mubr.msk.f32.vlgmr.msra.gmra.mrb[0].mxu0 %vm301_vm1, %v1386_v18  ;;  %v1857_v18 = vld [vmem:[%s11740_s5 + $0x85] sm:$0xff] }
  0xb6   : > { %10540 = vmatmul.mubr.msk.f32.vlgmr.msra.gmra.mrb[0].mxu1 %vm301_vm1, %v12143_v19  ;;  %10330 = vmatpush3.msk.msra.mxu0 %vm350_vm0, %v12067_v52  ;;  %v9056_v52 = vld [vmem:[%s13451_s1 + $0x20] sm:$0xf] }
  0xb7   : > { %10564 = vmatpush3.msk.msra.mxu1 %vm350_vm0, %v12072_v53  ;;  %10308 = vmatprep.mubr.msk.f32.mxu0 %vm301_vm1, %v12146_v20  ;;  %v9219_v53 = vld [vmem:[%s13451_s1 + $0x20] sm:$0xf] }
  0xb8   : > { %10542 = vmatprep.mubr.msk.f32.mxu1 %vm301_vm1, %v12149_v21  ;;  %10355 = vmatprep.subr.msk.mxu0 %vm350_vm0, %v12157_v22 }
  0xb9   : > { %10589 = vmatprep.subr.msk.mxu1 %vm350_vm0, %v12162_v23  ;;  %10309 = vmatmul.mubr.msk.f32.gmra.mrb[2].mxu0 %vm301_vm1, %v1388_v24 }
  0xba   : > { %10543 = vmatmul.mubr.msk.f32.gmra.mrb[2].mxu1 %vm301_vm1, %v3529_v25  ;;  %10311 = vmatprep.mubr.msk.f32.mxu0 %vm301_vm1, %v1389_v26 }
  0xbb   : > { %10545 = vmatprep.mubr.msk.f32.mxu1 %vm301_vm1, %v3530_v27 }
  0xbd   : > { %10312 = vmatmul.mubr.msk.f32.gmra.mrb[4].mxu0 %vm301_vm1, %v1390_v28 }
  0xbe   : > { %10546 = vmatmul.mubr.msk.f32.gmra.mrb[4].mxu1 %vm301_vm1, %v3531_v29  ;;  %10314 = vmatprep.mubr.msk.f32.mxu0 %vm301_vm1, %v1391_v30 }
  0xbf   : > { %10548 = vmatprep.mubr.msk.f32.mxu1 %vm301_vm1, %v3532_v31 }
  0xc1   : > { %10315 = vmatmul.mubr.msk.f32.gmra.mrb[6].mxu0 %vm301_vm1, %v1392_v32 }
  0xc2   : > { %10549 = vmatmul.mubr.msk.f32.gmra.mrb[6].mxu1 %vm301_vm1, %v3533_v33  ;;  %10317 = vmatprep.mubr.msk.f32.mxu0 %vm301_vm1, %v1393_v34 }
  0xc3   : > { %10551 = vmatprep.mubr.msk.f32.mxu1 %vm301_vm1, %v3534_v35 }
  0xc5   : > { %10318 = vmatmul.mubr.msk.f32.gmra.mrb[8].mxu0 %vm301_vm1, %v1394_v36 }
  0xc6   : > { %10552 = vmatmul.mubr.msk.f32.gmra.mrb[8].mxu1 %vm301_vm1, %v3535_v37  ;;  %10320 = vmatprep.mubr.msk.f32.mxu0 %vm301_vm1, %v1395_v38 }
  0xc7   : > { %10554 = vmatprep.mubr.msk.f32.mxu1 %vm301_vm1, %v3536_v39 }
  0xc9   : > { %10321 = vmatmul.mubr.msk.f32.gmra.mrb[10].mxu0 %vm301_vm1, %v1396_v40 }
  0xca   : > { %10555 = vmatmul.mubr.msk.f32.gmra.mrb[10].mxu1 %vm301_vm1, %v3537_v41  ;;  %10323 = vmatprep.mubr.msk.f32.mxu0 %vm301_vm1, %v1397_v42 }
  0xcb   : > { %10557 = vmatprep.mubr.msk.f32.mxu1 %vm301_vm1, %v3538_v43 }
  0xcd   : > { %10324 = vmatmul.mubr.msk.f32.gmra.mrb[12].mxu0 %vm301_vm1, %v1398_v46 }
  0xce   : > { %10558 = vmatmul.mubr.msk.f32.gmra.mrb[12].mxu1 %vm301_vm1, %v3539_v47  ;;  %10326 = vmatprep.mubr.msk.f32.mxu0 %vm301_vm1, %v1399_v48 }
  0xcf   : > { %10560 = vmatprep.mubr.msk.f32.mxu1 %vm301_vm1, %v3540_v49 }
  0xd1   : > { %10327 = vmatmul.mubr.msk.f32.gmra.mrb[14].mxu0 %vm301_vm1, %v1400_v50 }
  0xd2   : > { %10561 = vmatmul.mubr.msk.f32.gmra.mrb[14].mxu1 %vm301_vm1, %v3541_v51  ;;  %10331 = vmatprep.mubr.msk.f32.mxu0 %vm301_vm1, %v12146_v20  ;;  %v1858_v20 = vld [vmem:[%s11740_s5 + $0x8d] sm:$0xff] }
  0xd3   : > { %10565 = vmatprep.mubr.msk.f32.mxu1 %vm301_vm1, %v12149_v21  ;;  %v3997_v21 = vld [vmem:[%s11740_s5 + $0x10d] sm:$0xff] }
  0xd5   : > { %10332 = vmatmul.mubr.msk.f32.vlgmr.msra.gmra.mrb[0].mxu0 %vm301_vm1, %v1388_v24  ;;  %v1860_v24 = vld [vmem:[%s11740_s5 + $0x9d] sm:$0xff] }
  0xd6   : > { %10566 = vmatmul.mubr.msk.f32.vlgmr.msra.gmra.mrb[0].mxu1 %vm301_vm1, %v3529_v25  ;;  %10356 = vmatpush3.msk.msra.mxu0 %vm350_vm0, %v12157_v22  ;;  %v1859_v22 = vld [vmem:[%s11740_s5 + $0x95] sm:$0xff]  ;;  %v3999_v25 = vld [vmem:[%s11740_s5 + $0x11d] sm:$0xff] }
  0xd7   : > { %10590 = vmatpush3.msk.msra.mxu1 %vm350_vm0, %v12162_v23  ;;  %10334 = vmatprep.mubr.msk.f32.mxu0 %vm301_vm1, %v1389_v26  ;;  %v3998_v23 = vld [vmem:[%s11740_s5 + $0x115] sm:$0xff]  ;;  %v2075_v26 = vld [vmem:[%s11740_s5 + $0x26] sm:$0xff] }
  0xd8   : > { %10568 = vmatprep.mubr.msk.f32.mxu1 %vm301_vm1, %v3530_v27  ;;  %10381 = vmatprep.subr.msk.mxu0 %vm350_vm0, %v9056_v52  ;;  %v4213_v27 = vld [vmem:[%s11740_s5 + $0xa6] sm:$0xff] }
  0xd9   : > { %10615 = vmatprep.subr.msk.mxu1 %vm350_vm0, %v9219_v53  ;;  %10335 = vmatmul.mubr.msk.f32.gmra.mrb[2].mxu0 %vm301_vm1, %v1390_v28  ;;  %v2076_v28 = vld [vmem:[%s11740_s5 + $0x2e] sm:$0xff] }
  0xda   : > { %10569 = vmatmul.mubr.msk.f32.gmra.mrb[2].mxu1 %vm301_vm1, %v3531_v29  ;;  %10337 = vmatprep.mubr.msk.f32.mxu0 %vm301_vm1, %v1391_v30  ;;  %v4214_v29 = vld [vmem:[%s11740_s5 + $0xae] sm:$0xff]  ;;  %v2077_v30 = vld [vmem:[%s11740_s5 + $0x36] sm:$0xff] }
  0xdb   : > { %10571 = vmatprep.mubr.msk.f32.mxu1 %vm301_vm1, %v3532_v31  ;;  %v4215_v31 = vld [vmem:[%s11740_s5 + $0xb6] sm:$0xff] }
  0xdd   : > { %10338 = vmatmul.mubr.msk.f32.gmra.mrb[4].mxu0 %vm301_vm1, %v1392_v32  ;;  %v12377_v32 = vld [vmem:[%s13451_s1] sm:$0xf] }
  0xde   : > { %10572 = vmatmul.mubr.msk.f32.gmra.mrb[4].mxu1 %vm301_vm1, %v3533_v33  ;;  %10340 = vmatprep.mubr.msk.f32.mxu0 %vm301_vm1, %v1393_v34  ;;  %v12382_v33 = vld [vmem:[%s13451_s1] sm:$0xf] }
  0xdf   : > { %10574 = vmatprep.mubr.msk.f32.mxu1 %vm301_vm1, %v3534_v35  ;;  %v2078_v34 = vld [vmem:[%s11740_s5 + $0x3e] sm:$0xff] }
  0xe0   : > { %v4216_v35 = vld [vmem:[%s11740_s5 + $0xbe] sm:$0xff] }
  0xe1   : > { %10341 = vmatmul.mubr.msk.f32.gmra.mrb[6].mxu0 %vm301_vm1, %v1394_v36  ;;  %v2079_v36 = vld [vmem:[%s11740_s5 + $0x46] sm:$0xff] }
  0xe2   : > { %10575 = vmatmul.mubr.msk.f32.gmra.mrb[6].mxu1 %vm301_vm1, %v3535_v37  ;;  %10343 = vmatprep.mubr.msk.f32.mxu0 %vm301_vm1, %v1395_v38  ;;  %v4217_v37 = vld [vmem:[%s11740_s5 + $0xc6] sm:$0xff]  ;;  %v2080_v38 = vld [vmem:[%s11740_s5 + $0x4e] sm:$0xff] }
  0xe3   : > { %10577 = vmatprep.mubr.msk.f32.mxu1 %vm301_vm1, %v3536_v39  ;;  %v4218_v39 = vld [vmem:[%s11740_s5 + $0xce] sm:$0xff] }
  0xe5   : > { %10344 = vmatmul.mubr.msk.f32.gmra.mrb[8].mxu0 %vm301_vm1, %v1396_v40  ;;  %v2081_v40 = vld [vmem:[%s11740_s5 + $0x56] sm:$0xff] }
  0xe6   : > { %10578 = vmatmul.mubr.msk.f32.gmra.mrb[8].mxu1 %vm301_vm1, %v3537_v41  ;;  %10346 = vmatprep.mubr.msk.f32.mxu0 %vm301_vm1, %v1397_v42  ;;  %v4219_v41 = vld [vmem:[%s11740_s5 + $0xd6] sm:$0xff]  ;;  %v2082_v42 = vld [vmem:[%s11740_s5 + $0x5e] sm:$0xff] }
  0xe7   : > { %10580 = vmatprep.mubr.msk.f32.mxu1 %vm301_vm1, %v3538_v43  ;;  %v4220_v43 = vld [vmem:[%s11740_s5 + $0xde] sm:$0xff] }
  0xe9   : > { %10347 = vmatmul.mubr.msk.f32.gmra.mrb[10].mxu0 %vm301_vm1, %v1398_v46  ;;  %v2083_v46 = vld [vmem:[%s11740_s5 + $0x66] sm:$0xff] }
  0xea   : > { %10581 = vmatmul.mubr.msk.f32.gmra.mrb[10].mxu1 %vm301_vm1, %v3539_v47  ;;  %10349 = vmatprep.mubr.msk.f32.mxu0 %vm301_vm1, %v1399_v48  ;;  %v4221_v47 = vld [vmem:[%s11740_s5 + $0xe6] sm:$0xff]  ;;  %v2084_v48 = vld [vmem:[%s11740_s5 + $0x6e] sm:$0xff] }
  0xeb   : > { %10583 = vmatprep.mubr.msk.f32.mxu1 %vm301_vm1, %v3540_v49  ;;  %v4222_v49 = vld [vmem:[%s11740_s5 + $0xee] sm:$0xff] }
  0xed   : > { %10350 = vmatmul.mubr.msk.f32.gmra.mrb[12].mxu0 %vm301_vm1, %v1400_v50  ;;  %v2085_v50 = vld [vmem:[%s11740_s5 + $0x76] sm:$0xff] }
  0xee   : > { %10584 = vmatmul.mubr.msk.f32.gmra.mrb[12].mxu1 %vm301_vm1, %v3541_v51  ;;  %10352 = vmatprep.mubr.msk.f32.mxu0 %vm301_vm1, %v12134_v17  ;;  %v3995_v17 = vld [vmem:[%s11740_s5 + $0xfd] sm:$0xff] }
  0xef   : > { %10586 = vmatprep.mubr.msk.f32.mxu1 %vm301_vm1, %v12269_v54  ;;  %v4223_v51 = vld [vmem:[%s11740_s5 + $0xf6] sm:$0xff] }
  0xf1   : > { %10353 = vmatmul.mubr.msk.f32.gmra.mrb[14].mxu0 %vm301_vm1, %v12143_v19  ;;  %v3996_v19 = vld [vmem:[%s11740_s5 + $0x105] sm:$0xff] }
  0xf2   : > { %10587 = vmatmul.mubr.msk.f32.gmra.mrb[14].mxu1 %vm301_vm1, %v12278_v55  ;;  %10357 = vmatprep.mubr.msk.f32.mxu0 %vm301_vm1, %v1845_v56  ;;  %v2087_v56 = vld [vmem:[%s11740_s5 + $0x86] sm:$0xff] }
  0xf3   : > { %10591 = vmatprep.mubr.msk.f32.mxu1 %vm301_vm1, %v3984_v57  ;;  %v4225_v57 = vld [vmem:[%s11740_s5 + $0x106] sm:$0xff] }
  0xf5   : > { %10358 = vmatmul.mubr.msk.f32.vlgmr.msra.gmra.mrb[0].mxu0 %vm301_vm1, %v1846_v58  ;;  %v2088_v58 = vld [vmem:[%s11740_s5 + $0x8e] sm:$0xff] }
  0xf6   : > { %10592 = vmatmul.mubr.msk.f32.vlgmr.msra.gmra.mrb[0].mxu1 %vm301_vm1, %v3985_v59  ;;  %10382 = vmatpush3.msk.msra.mxu0 %vm350_vm0, %v9056_v52  ;;  %v2086_v52 = vld [vmem:[%s11740_s5 + $0x7e] sm:$0xff]  ;;  %v4226_v59 = vld [vmem:[%s11740_s5 + $0x10e] sm:$0xff] }
  0xf7   : > { %10616 = vmatpush3.msk.msra.mxu1 %vm350_vm0, %v9219_v53  ;;  %10360 = vmatprep.mubr.msk.f32.mxu0 %vm301_vm1, %v1847_v60  ;;  %v4224_v53 = vld [vmem:[%s11740_s5 + $0xfe] sm:$0xff]  ;;  %v2089_v60 = vld [vmem:[%s11740_s5 + $0x96] sm:$0xff] }
  0xf8   : > { %10594 = vmatprep.mubr.msk.f32.mxu1 %vm301_vm1, %v3986_v61  ;;  %10641 = vmatprep.subr.msk.mxu0 %vm350_vm0, %v12297_v62  ;;  %v4227_v61 = vld [vmem:[%s11740_s5 + $0x116] sm:$0xff] }
  0xf9   : > { %10875 = vmatprep.subr.msk.mxu1 %vm350_vm0, %v12302_v63  ;;  %10361 = vmatmul.mubr.msk.f32.gmra.mrb[2].mxu0 %vm301_vm1, %v1848_v0  ;;  %v4555_v0 = vld [vmem:[%s11740_s5 + $0x101] sm:$0xff] }
  0xfa   : > { %10595 = vmatmul.mubr.msk.f32.gmra.mrb[2].mxu1 %vm301_vm1, %v3987_v1  ;;  %10363 = vmatprep.mubr.msk.f32.mxu0 %vm301_vm1, %v1849_v2  ;;  %v6680_v1 = vld [vmem:[%s11740_s5 + $0x181] sm:$0xff]  ;;  %v4556_v2 = vld [vmem:[%s11740_s5 + $0x109] sm:$0xff] }
  0xfb   : > { %10597 = vmatprep.mubr.msk.f32.mxu1 %vm301_vm1, %v3988_v3  ;;  %v6681_v3 = vld [vmem:[%s11740_s5 + $0x189] sm:$0xff] }
  0xfd   : > { %10364 = vmatmul.mubr.msk.f32.gmra.mrb[4].mxu0 %vm301_vm1, %v1850_v4  ;;  %v4557_v4 = vld [vmem:[%s11740_s5 + $0x111] sm:$0xff] }
  0xfe   : > { %10598 = vmatmul.mubr.msk.f32.gmra.mrb[4].mxu1 %vm301_vm1, %v3989_v5  ;;  %10366 = vmatprep.mubr.msk.f32.mxu0 %vm301_vm1, %v1851_v6  ;;  %v6682_v5 = vld [vmem:[%s11740_s5 + $0x191] sm:$0xff]  ;;  %v12459_v6 = vld [vmem:[%s13451_s1 + $0x8] sm:$0xf] }
  0xff   : > { %10600 = vmatprep.mubr.msk.f32.mxu1 %vm301_vm1, %v3990_v7  ;;  %v12464_v7 = vld [vmem:[%s13451_s1 + $0x8] sm:$0xf] }
 0x101   : > { %10367 = vmatmul.mubr.msk.f32.gmra.mrb[6].mxu0 %vm301_vm1, %v1852_v8  ;;  %v4558_v8 = vld [vmem:[%s11740_s5 + $0x119] sm:$0xff] }
 0x102   : > { %10601 = vmatmul.mubr.msk.f32.gmra.mrb[6].mxu1 %vm301_vm1, %v3991_v9  ;;  %10369 = vmatprep.mubr.msk.f32.mxu0 %vm301_vm1, %v1853_v10  ;;  %v6683_v9 = vld [vmem:[%s11740_s5 + $0x199] sm:$0xff]  ;;  %v4559_v10 = vld [vmem:[%s11740_s5 + $0x121] sm:$0xff] }
 0x103   : > { %10603 = vmatprep.mubr.msk.f32.mxu1 %vm301_vm1, %v3992_v11  ;;  %v6684_v11 = vld [vmem:[%s11740_s5 + $0x1a1] sm:$0xff] }
 0x105   : > { %10370 = vmatmul.mubr.msk.f32.gmra.mrb[8].mxu0 %vm301_vm1, %v1854_v12  ;;  %v4560_v12 = vld [vmem:[%s11740_s5 + $0x129] sm:$0xff] }
 0x106   : > { %10604 = vmatmul.mubr.msk.f32.gmra.mrb[8].mxu1 %vm301_vm1, %v3993_v13  ;;  %10372 = vmatprep.mubr.msk.f32.mxu0 %vm301_vm1, %v1855_v14  ;;  %v6685_v13 = vld [vmem:[%s11740_s5 + $0x1a9] sm:$0xff]  ;;  %v4561_v14 = vld [vmem:[%s11740_s5 + $0x131] sm:$0xff] }
 0x107   : > { %10606 = vmatprep.mubr.msk.f32.mxu1 %vm301_vm1, %v3994_v15  ;;  %v6686_v15 = vld [vmem:[%s11740_s5 + $0x1b1] sm:$0xff] }
 0x109   : > { %10373 = vmatmul.mubr.msk.f32.gmra.mrb[10].mxu0 %vm301_vm1, %v1856_v16  ;;  %v4562_v16 = vld [vmem:[%s11740_s5 + $0x139] sm:$0xff] }
 0x10a   : > { %10607 = vmatmul.mubr.msk.f32.gmra.mrb[10].mxu1 %vm301_vm1, %v3995_v17  ;;  %10375 = vmatprep.mubr.msk.f32.mxu0 %vm301_vm1, %v1857_v18  ;;  %v6687_v17 = vld [vmem:[%s11740_s5 + $0x1b9] sm:$0xff]  ;;  %v4563_v18 = vld [vmem:[%s11740_s5 + $0x141] sm:$0xff] }
 0x10b   : > { %10609 = vmatprep.mubr.msk.f32.mxu1 %vm301_vm1, %v3996_v19  ;;  %v6688_v19 = vld [vmem:[%s11740_s5 + $0x1c1] sm:$0xff] }
 0x10d   : > { %10376 = vmatmul.mubr.msk.f32.gmra.mrb[12].mxu0 %vm301_vm1, %v1858_v20  ;;  %v4564_v20 = vld [vmem:[%s11740_s5 + $0x149] sm:$0xff] }
 0x10e   : > { %10610 = vmatmul.mubr.msk.f32.gmra.mrb[12].mxu1 %vm301_vm1, %v3997_v21  ;;  %10378 = vmatprep.mubr.msk.f32.mxu0 %vm301_vm1, %v1859_v22  ;;  %v6689_v21 = vld [vmem:[%s11740_s5 + $0x1c9] sm:$0xff]  ;;  %v4565_v22 = vld [vmem:[%s11740_s5 + $0x151] sm:$0xff] }
 0x10f   : > { %10612 = vmatprep.mubr.msk.f32.mxu1 %vm301_vm1, %v3998_v23  ;;  %v6690_v23 = vld [vmem:[%s11740_s5 + $0x1d1] sm:$0xff] }
 0x111   : > { %10379 = vmatmul.mubr.msk.f32.gmra.mrb[14].mxu0 %vm301_vm1, %v1860_v24  ;;  %v4566_v24 = vld [vmem:[%s11740_s5 + $0x159] sm:$0xff] }
 0x112   : > { %10613 = vmatmul.mubr.msk.f32.gmra.mrb[14].mxu1 %vm301_vm1, %v3999_v25  ;;  %10383 = vmatprep.mubr.msk.f32.mxu0 %vm301_vm1, %v2075_v26  ;;  %v6691_v25 = vld [vmem:[%s11740_s5 + $0x1d9] sm:$0xff]  ;;  %v4567_v26 = vld [vmem:[%s11740_s5 + $0x161] sm:$0xff] }
 0x113   : > { %10617 = vmatprep.mubr.msk.f32.mxu1 %vm301_vm1, %v4213_v27  ;;  %v6692_v27 = vld [vmem:[%s11740_s5 + $0x1e1] sm:$0xff] }
 0x115   : > { %10384 = vmatmul.mubr.msk.f32.vlgmr.msra.gmra.mrb[0].mxu0 %vm301_vm1, %v2076_v28  ;;  %v4568_v28 = vld [vmem:[%s11740_s5 + $0x169] sm:$0xff] }
 0x116   : > { %10618 = vmatmul.mubr.msk.f32.vlgmr.msra.gmra.mrb[0].mxu1 %vm301_vm1, %v4214_v29  ;;  %10642 = vmatpush3.msk.msra.mxu0 %vm350_vm0, %v12297_v62  ;;  %v2090_v62 = vld [vmem:[%s11740_s5 + $0x9e] sm:$0xff]  ;;  %v6693_v29 = vld [vmem:[%s11740_s5 + $0x1e9] sm:$0xff] }
 0x117   : > { %10876 = vmatpush3.msk.msra.mxu1 %vm350_vm0, %v12302_v63  ;;  %10386 = vmatprep.mubr.msk.f32.mxu0 %vm301_vm1, %v2077_v30  ;;  %v4228_v63 = vld [vmem:[%s11740_s5 + $0x11e] sm:$0xff]  ;;  %v4569_v30 = vld [vmem:[%s11740_s5 + $0x171] sm:$0xff] }
 0x118   : > { %10620 = vmatprep.mubr.msk.f32.mxu1 %vm301_vm1, %v4215_v31  ;;  %10667 = vmatprep.subr.msk.mxu0 %vm350_vm0, %v12377_v32  ;;  %v6694_v31 = vld [vmem:[%s11740_s5 + $0x1f1] sm:$0xff] }
 0x119   : > { %10901 = vmatprep.subr.msk.mxu1 %vm350_vm0, %v12382_v33  ;;  %10387 = vmatmul.mubr.msk.f32.gmra.mrb[2].mxu0 %vm301_vm1, %v2078_v34  ;;  %v4538_v34 = vld [vmem:[%s11740_s5 + $0x100] sm:$0xff] }
 0x11a   : > { %10621 = vmatmul.mubr.msk.f32.gmra.mrb[2].mxu1 %vm301_vm1, %v4216_v35  ;;  %10389 = vmatprep.mubr.msk.f32.mxu0 %vm301_vm1, %v2079_v36  ;;  %v6663_v35 = vld [vmem:[%s11740_s5 + $0x180] sm:$0xff]  ;;  %v4539_v36 = vld [vmem:[%s11740_s5 + $0x108] sm:$0xff] }
 0x11b   : > { %10623 = vmatprep.mubr.msk.f32.mxu1 %vm301_vm1, %v4217_v37  ;;  %v6664_v37 = vld [vmem:[%s11740_s5 + $0x188] sm:$0xff] }
 0x11d   : > { %10390 = vmatmul.mubr.msk.f32.gmra.mrb[4].mxu0 %vm301_vm1, %v2080_v38  ;;  %v4540_v38 = vld [vmem:[%s11740_s5 + $0x110] sm:$0xff] }
 0x11e   : > { %10624 = vmatmul.mubr.msk.f32.gmra.mrb[4].mxu1 %vm301_vm1, %v4218_v39  ;;  %10392 = vmatprep.mubr.msk.f32.mxu0 %vm301_vm1, %v2081_v40  ;;  %v6665_v39 = vld [vmem:[%s11740_s5 + $0x190] sm:$0xff]  ;;  %v12541_v40 = vld [vmem:[%s13451_s1 + $0xc] sm:$0xf] }
 0x11f   : > { %10626 = vmatprep.mubr.msk.f32.mxu1 %vm301_vm1, %v4219_v41  ;;  %v12546_v41 = vld [vmem:[%s13451_s1 + $0xc] sm:$0xf] }
 0x121   : > { %10393 = vmatmul.mubr.msk.f32.gmra.mrb[6].mxu0 %vm301_vm1, %v2082_v42  ;;  %v4541_v42 = vld [vmem:[%s11740_s5 + $0x118] sm:$0xff] }
 0x122   : > { %10627 = vmatmul.mubr.msk.f32.gmra.mrb[6].mxu1 %vm301_vm1, %v4220_v43  ;;  %10395 = vmatprep.mubr.msk.f32.mxu0 %vm301_vm1, %v2083_v46  ;;  %v6666_v43 = vld [vmem:[%s11740_s5 + $0x198] sm:$0xff]  ;;  %v4542_v46 = vld [vmem:[%s11740_s5 + $0x120] sm:$0xff] }
 0x123   : > { %10629 = vmatprep.mubr.msk.f32.mxu1 %vm301_vm1, %v4221_v47  ;;  %v6667_v47 = vld [vmem:[%s11740_s5 + $0x1a0] sm:$0xff] }
 0x125   : > { %10396 = vmatmul.mubr.msk.f32.gmra.mrb[8].mxu0 %vm301_vm1, %v2084_v48  ;;  %v4543_v48 = vld [vmem:[%s11740_s5 + $0x128] sm:$0xff] }
 0x126   : > { %10630 = vmatmul.mubr.msk.f32.gmra.mrb[8].mxu1 %vm301_vm1, %v4222_v49  ;;  %10398 = vmatprep.mubr.msk.f32.mxu0 %vm301_vm1, %v2085_v50  ;;  %v6668_v49 = vld [vmem:[%s11740_s5 + $0x1a8] sm:$0xff]  ;;  %v4544_v50 = vld [vmem:[%s11740_s5 + $0x130] sm:$0xff] }
 0x127   : > { %10632 = vmatprep.mubr.msk.f32.mxu1 %vm301_vm1, %v4223_v51  ;;  %v6669_v51 = vld [vmem:[%s11740_s5 + $0x1b0] sm:$0xff] }
 0x129   : > { %10399 = vmatmul.mubr.msk.f32.gmra.mrb[10].mxu0 %vm301_vm1, %v2086_v52  ;;  %v4545_v52 = vld [vmem:[%s11740_s5 + $0x138] sm:$0xff] }
 0x12a   : > { %10633 = vmatmul.mubr.msk.f32.gmra.mrb[10].mxu1 %vm301_vm1, %v4224_v53  ;;  %10401 = vmatprep.mubr.msk.f32.mxu0 %vm301_vm1, %v2087_v56  ;;  %v6670_v53 = vld [vmem:[%s11740_s5 + $0x1b8] sm:$0xff]  ;;  %v4546_v56 = vld [vmem:[%s11740_s5 + $0x140] sm:$0xff] }
 0x12b   : > { %10635 = vmatprep.mubr.msk.f32.mxu1 %vm301_vm1, %v4225_v57  ;;  %v6671_v57 = vld [vmem:[%s11740_s5 + $0x1c0] sm:$0xff] }
 0x12d   : > { %10402 = vmatmul.mubr.msk.f32.gmra.mrb[12].mxu0 %vm301_vm1, %v2088_v58  ;;  %v4547_v58 = vld [vmem:[%s11740_s5 + $0x148] sm:$0xff] }
 0x12e   : > { %10636 = vmatmul.mubr.msk.f32.gmra.mrb[12].mxu1 %vm301_vm1, %v4226_v59  ;;  %10404 = vmatprep.mubr.msk.f32.mxu0 %vm301_vm1, %v2089_v60  ;;  %v6672_v59 = vld [vmem:[%s11740_s5 + $0x1c8] sm:$0xff]  ;;  %v4548_v60 = vld [vmem:[%s11740_s5 + $0x150] sm:$0xff] }
 0x12f   : > { %10638 = vmatprep.mubr.msk.f32.mxu1 %vm301_vm1, %v4227_v61  ;;  %v6673_v61 = vld [vmem:[%s11740_s5 + $0x1d0] sm:$0xff] }
 0x131   : > { %10405 = vmatmul.mubr.msk.f32.gmra.mrb[14].mxu0 %vm301_vm1, %v2090_v62  ;;  %v4549_v62 = vld [vmem:[%s11740_s5 + $0x158] sm:$0xff] }
 0x132   : > { %10639 = vmatmul.mubr.msk.f32.gmra.mrb[14].mxu1 %vm301_vm1, %v4228_v63  ;;  %10643 = vmatprep.mubr.msk.f32.mxu0 %vm301_vm1, %v4555_v0  ;;  %v6674_v63 = vld [vmem:[%s11740_s5 + $0x1d8] sm:$0xff]  ;;  %v4550_v0 = vld [vmem:[%s11740_s5 + $0x160] sm:$0xff] }
 0x133   : > { %10877 = vmatprep.mubr.msk.f32.mxu1 %vm301_vm1, %v6680_v1  ;;  %v6675_v1 = vld [vmem:[%s11740_s5 + $0x1e0] sm:$0xff] }
 0x135   : > { %10644 = vmatmul.mubr.msk.f32.vlgmr.msra.gmra.mrb[16].mxu0 %vm301_vm1, %v4556_v2  ;;  %v4551_v2 = vld [vmem:[%s11740_s5 + $0x168] sm:$0xff] }
 0x136   : > { %10878 = vmatmul.mubr.msk.f32.vlgmr.msra.gmra.mrb[16].mxu1 %vm301_vm1, %v6681_v3  ;;  %10668 = vmatpush3.msk.msra.mxu0 %vm350_vm0, %v12377_v32  ;;  %v4570_v32 = vld [vmem:[%s11740_s5 + $0x179] sm:$0xff]  ;;  %v6676_v3 = vld [vmem:[%s11740_s5 + $0x1e8] sm:$0xff] }
 0x137   : > { %10902 = vmatpush3.msk.msra.mxu1 %vm350_vm0, %v12382_v33  ;;  %10646 = vmatprep.mubr.msk.f32.mxu0 %vm301_vm1, %v4557_v4  ;;  %v6695_v33 = vld [vmem:[%s11740_s5 + $0x1f9] sm:$0xff]  ;;  %v4552_v4 = vld [vmem:[%s11740_s5 + $0x170] sm:$0xff] }
 0x138   : > { %10880 = vmatprep.mubr.msk.f32.mxu1 %vm301_vm1, %v6682_v5  ;;  %10693 = vmatprep.subr.msk.mxu0 %vm350_vm0, %v12459_v6  ;;  %v6677_v5 = vld [vmem:[%s11740_s5 + $0x1f0] sm:$0xff] }
 0x139   : > { %10927 = vmatprep.subr.msk.mxu1 %vm350_vm0, %v12464_v7  ;;  %10647 = vmatmul.mubr.msk.f32.gmra.mrb[18].mxu0 %vm301_vm1, %v4558_v8  ;;  %v12609_v8 = vld [vmem:[%s11740_s5 + $0x182] sm:$0xff] }
 0x13a   : > { %10881 = vmatmul.mubr.msk.f32.gmra.mrb[18].mxu1 %vm301_vm1, %v6683_v9  ;;  %10649 = vmatprep.mubr.msk.f32.mxu0 %vm301_vm1, %v4559_v10  ;;  %v12618_v9 = vld [vmem:[%s11740_s5 + $0x18a] sm:$0xff]  ;;  %v12621_v10 = vld [vmem:[%s11740_s5 + $0x112] sm:$0xff] }
 0x13b   : > { %10883 = vmatprep.mubr.msk.f32.mxu1 %vm301_vm1, %v6684_v11  ;;  %v12624_v11 = vld [vmem:[%s11740_s5 + $0x192] sm:$0xff] }
 0x13d   : > { %10650 = vmatmul.mubr.msk.f32.gmra.mrb[20].mxu0 %vm301_vm1, %v4560_v12  ;;  %v12638_v12 = vld [vmem:[%s13451_s1 + $0x10] sm:$0xf] }
 0x13e   : > { %10884 = vmatmul.mubr.msk.f32.gmra.mrb[20].mxu1 %vm301_vm1, %v6685_v13  ;;  %10652 = vmatprep.mubr.msk.f32.mxu0 %vm301_vm1, %v4561_v14  ;;  %v7092_v13 = vld [vmem:[%s11740_s5 + $0x19a] sm:$0xff]  ;;  %v4968_v14 = vld [vmem:[%s11740_s5 + $0x122] sm:$0xff] }
 0x13f   : > { %10886 = vmatprep.mubr.msk.f32.mxu1 %vm301_vm1, %v6686_v15  ;;  %v7093_v15 = vld [vmem:[%s11740_s5 + $0x1a2] sm:$0xff] }
 0x141   : > { %10653 = vmatmul.mubr.msk.f32.gmra.mrb[22].mxu0 %vm301_vm1, %v4562_v16  ;;  %v4969_v16 = vld [vmem:[%s11740_s5 + $0x12a] sm:$0xff] }
 0x142   : > { %10887 = vmatmul.mubr.msk.f32.gmra.mrb[22].mxu1 %vm301_vm1, %v6687_v17  ;;  %10655 = vmatprep.mubr.msk.f32.mxu0 %vm301_vm1, %v4563_v18  ;;  %v7094_v17 = vld [vmem:[%s11740_s5 + $0x1aa] sm:$0xff]  ;;  %v4970_v18 = vld [vmem:[%s11740_s5 + $0x132] sm:$0xff] }
 0x143   : > { %10889 = vmatprep.mubr.msk.f32.mxu1 %vm301_vm1, %v6688_v19  ;;  %v7095_v19 = vld [vmem:[%s11740_s5 + $0x1b2] sm:$0xff] }
 0x145   : > { %10656 = vmatmul.mubr.msk.f32.gmra.mrb[24].mxu0 %vm301_vm1, %v4564_v20  ;;  %v4971_v20 = vld [vmem:[%s11740_s5 + $0x13a] sm:$0xff] }
 0x146   : > { %10890 = vmatmul.mubr.msk.f32.gmra.mrb[24].mxu1 %vm301_vm1, %v6689_v21  ;;  %10658 = vmatprep.mubr.msk.f32.mxu0 %vm301_vm1, %v4565_v22  ;;  %v7096_v21 = vld [vmem:[%s11740_s5 + $0x1ba] sm:$0xff]  ;;  %v4972_v22 = vld [vmem:[%s11740_s5 + $0x142] sm:$0xff] }
 0x147   : > { %10892 = vmatprep.mubr.msk.f32.mxu1 %vm301_vm1, %v6690_v23  ;;  %v7097_v23 = vld [vmem:[%s11740_s5 + $0x1c2] sm:$0xff] }
 0x149   : > { %10659 = vmatmul.mubr.msk.f32.gmra.mrb[26].mxu0 %vm301_vm1, %v4566_v24  ;;  %v4973_v24 = vld [vmem:[%s11740_s5 + $0x14a] sm:$0xff] }
 0x14a   : > { %10893 = vmatmul.mubr.msk.f32.gmra.mrb[26].mxu1 %vm301_vm1, %v6691_v25  ;;  %10661 = vmatprep.mubr.msk.f32.mxu0 %vm301_vm1, %v4567_v26  ;;  %v7098_v25 = vld [vmem:[%s11740_s5 + $0x1ca] sm:$0xff]  ;;  %v4974_v26 = vld [vmem:[%s11740_s5 + $0x152] sm:$0xff] }
 0x14b   : > { %10895 = vmatprep.mubr.msk.f32.mxu1 %vm301_vm1, %v6692_v27  ;;  %v7099_v27 = vld [vmem:[%s11740_s5 + $0x1d2] sm:$0xff] }
 0x14d   : > { %10662 = vmatmul.mubr.msk.f32.gmra.mrb[28].mxu0 %vm301_vm1, %v4568_v28  ;;  %v4975_v28 = vld [vmem:[%s11740_s5 + $0x15a] sm:$0xff] }
 0x14e   : > { %10896 = vmatmul.mubr.msk.f32.gmra.mrb[28].mxu1 %vm301_vm1, %v6693_v29  ;;  %10664 = vmatprep.mubr.msk.f32.mxu0 %vm301_vm1, %v4569_v30  ;;  %v7100_v29 = vld [vmem:[%s11740_s5 + $0x1da] sm:$0xff]  ;;  %v4976_v30 = vld [vmem:[%s11740_s5 + $0x162] sm:$0xff] }
 0x14f   : > { %10898 = vmatprep.mubr.msk.f32.mxu1 %vm301_vm1, %v6694_v31  ;;  %v7101_v31 = vld [vmem:[%s11740_s5 + $0x1e2] sm:$0xff] }
 0x151   : > { %10665 = vmatmul.mubr.msk.f32.gmra.mrb[30].mxu0 %vm301_vm1, %v4570_v32  ;;  %v4977_v32 = vld [vmem:[%s11740_s5 + $0x16a] sm:$0xff] }
 0x152   : > { %10899 = vmatmul.mubr.msk.f32.gmra.mrb[30].mxu1 %vm301_vm1, %v6695_v33  ;;  %10669 = vmatprep.mubr.msk.f32.mxu0 %vm301_vm1, %v4538_v34  ;;  %v7102_v33 = vld [vmem:[%s11740_s5 + $0x1ea] sm:$0xff]  ;;  %v4978_v34 = vld [vmem:[%s11740_s5 + $0x172] sm:$0xff] }
 0x153   : > { %10903 = vmatprep.mubr.msk.f32.mxu1 %vm301_vm1, %v6663_v35  ;;  %v7103_v35 = vld [vmem:[%s11740_s5 + $0x1f2] sm:$0xff] }
 0x155   : > { %10670 = vmatmul.mubr.msk.f32.vlgmr.msra.gmra.mrb[16].mxu0 %vm301_vm1, %v4539_v36  ;;  %v4979_v36 = vld [vmem:[%s11740_s5 + $0x17a] sm:$0xff] }
 0x156   : > { %10904 = vmatmul.mubr.msk.f32.vlgmr.msra.gmra.mrb[16].mxu1 %vm301_vm1, %v6664_v37  ;;  %10694 = vmatpush3.msk.msra.mxu0 %vm350_vm0, %v12459_v6  ;;  %v4553_v6 = vld [vmem:[%s11740_s5 + $0x178] sm:$0xff] }
 0x157   : > { %10928 = vmatpush3.msk.msra.mxu1 %vm350_vm0, %v12464_v7  ;;  %10672 = vmatprep.mubr.msk.f32.mxu0 %vm301_vm1, %v4540_v38  ;;  %v6678_v7 = vld [vmem:[%s11740_s5 + $0x1f8] sm:$0xff]  ;;  %v9326_v38 = vld [vmem:[%s13451_s1 + $0x14] sm:$0xf] }
 0x158   : > { %10906 = vmatprep.mubr.msk.f32.mxu1 %vm301_vm1, %v6665_v39  ;;  %10719 = vmatprep.subr.msk.mxu0 %vm350_vm0, %v12541_v40  ;;  %v7104_v37 = vld [vmem:[%s11740_s5 + $0x1fa] sm:$0xff]  ;;  %v9487_v39 = vld [vmem:[%s13451_s1 + $0x14] sm:$0xf] }
 0x159   : > { %10953 = vmatprep.subr.msk.mxu1 %vm350_vm0, %v12546_v41  ;;  %10673 = vmatmul.mubr.msk.f32.gmra.mrb[18].mxu0 %vm301_vm1, %v4541_v42  ;;  %v5422_v42 = vld [vmem:[%s11740_s5 + $0x113] sm:$0xff] }
 0x15a   : > { %10907 = vmatmul.mubr.msk.f32.gmra.mrb[18].mxu1 %vm301_vm1, %v6666_v43  ;;  %10675 = vmatprep.mubr.msk.f32.mxu0 %vm301_vm1, %v4542_v46  ;;  %v7547_v43 = vld [vmem:[%s11740_s5 + $0x193] sm:$0xff]  ;;  %v5423_v46 = vld [vmem:[%s11740_s5 + $0x11b] sm:$0xff] }
 0x15b   : > { %10909 = vmatprep.mubr.msk.f32.mxu1 %vm301_vm1, %v6667_v47  ;;  %v7548_v47 = vld [vmem:[%s11740_s5 + $0x19b] sm:$0xff] }
 0x15d   : > { %10676 = vmatmul.mubr.msk.f32.gmra.mrb[20].mxu0 %vm301_vm1, %v4543_v48  ;;  %v5424_v48 = vld [vmem:[%s11740_s5 + $0x123] sm:$0xff] }
 0x15e   : > { %10910 = vmatmul.mubr.msk.f32.gmra.mrb[20].mxu1 %vm301_vm1, %v6668_v49  ;;  %10678 = vmatprep.mubr.msk.f32.mxu0 %vm301_vm1, %v4544_v50  ;;  %v7549_v49 = vld [vmem:[%s11740_s5 + $0x1a3] sm:$0xff]  ;;  %v12767_v50 = vld [vmem:[%s13451_s1 + $0x18] sm:$0xf] }
 0x15f   : > { %10912 = vmatprep.mubr.msk.f32.mxu1 %vm301_vm1, %v6669_v51  ;;  %v12772_v51 = vld [vmem:[%s13451_s1 + $0x18] sm:$0xf] }
 0x161   : > { %10679 = vmatmul.mubr.msk.f32.gmra.mrb[22].mxu0 %vm301_vm1, %v4545_v52  ;;  %v5425_v52 = vld [vmem:[%s11740_s5 + $0x12b] sm:$0xff] }
 0x162   : > { %10913 = vmatmul.mubr.msk.f32.gmra.mrb[22].mxu1 %vm301_vm1, %v6670_v53  ;;  %10681 = vmatprep.mubr.msk.f32.mxu0 %vm301_vm1, %v4546_v56  ;;  %v7550_v53 = vld [vmem:[%s11740_s5 + $0x1ab] sm:$0xff]  ;;  %v5426_v56 = vld [vmem:[%s11740_s5 + $0x133] sm:$0xff] }
 0x163   : > { %10915 = vmatprep.mubr.msk.f32.mxu1 %vm301_vm1, %v6671_v57  ;;  %v7551_v57 = vld [vmem:[%s11740_s5 + $0x1b3] sm:$0xff] }
 0x165   : > { %10682 = vmatmul.mubr.msk.f32.gmra.mrb[24].mxu0 %vm301_vm1, %v4547_v58  ;;  %v5427_v58 = vld [vmem:[%s11740_s5 + $0x13b] sm:$0xff] }
 0x166   : > { %10916 = vmatmul.mubr.msk.f32.gmra.mrb[24].mxu1 %vm301_vm1, %v6672_v59  ;;  %10684 = vmatprep.mubr.msk.f32.mxu0 %vm301_vm1, %v4548_v60  ;;  %v7552_v59 = vld [vmem:[%s11740_s5 + $0x1bb] sm:$0xff]  ;;  %v5428_v60 = vld [vmem:[%s11740_s5 + $0x143] sm:$0xff] }
 0x167   : > { %10918 = vmatprep.mubr.msk.f32.mxu1 %vm301_vm1, %v6673_v61  ;;  %v7553_v61 = vld [vmem:[%s11740_s5 + $0x1c3] sm:$0xff] }
 0x169   : > { %10685 = vmatmul.mubr.msk.f32.gmra.mrb[26].mxu0 %vm301_vm1, %v4549_v62  ;;  %v5429_v62 = vld [vmem:[%s11740_s5 + $0x14b] sm:$0xff] }
 0x16a   : > { %10919 = vmatmul.mubr.msk.f32.gmra.mrb[26].mxu1 %vm301_vm1, %v6674_v63  ;;  %10687 = vmatprep.mubr.msk.f32.mxu0 %vm301_vm1, %v4550_v0  ;;  %v7554_v63 = vld [vmem:[%s11740_s5 + $0x1cb] sm:$0xff]  ;;  %v5430_v0 = vld [vmem:[%s11740_s5 + $0x153] sm:$0xff] }
 0x16b   : > { %10921 = vmatprep.mubr.msk.f32.mxu1 %vm301_vm1, %v6675_v1  ;;  %v7555_v1 = vld [vmem:[%s11740_s5 + $0x1d3] sm:$0xff] }
 0x16d   : > { %10688 = vmatmul.mubr.msk.f32.gmra.mrb[28].mxu0 %vm301_vm1, %v4551_v2  ;;  %v5431_v2 = vld [vmem:[%s11740_s5 + $0x15b] sm:$0xff] }
 0x16e   : > { %10922 = vmatmul.mubr.msk.f32.gmra.mrb[28].mxu1 %vm301_vm1, %v6676_v3  ;;  %10690 = vmatprep.mubr.msk.f32.mxu0 %vm301_vm1, %v4552_v4  ;;  %v7556_v3 = vld [vmem:[%s11740_s5 + $0x1db] sm:$0xff]  ;;  %v5432_v4 = vld [vmem:[%s11740_s5 + $0x163] sm:$0xff] }
 0x16f   : > { %10924 = vmatprep.mubr.msk.f32.mxu1 %vm301_vm1, %v6677_v5  ;;  %v7557_v5 = vld [vmem:[%s11740_s5 + $0x1e3] sm:$0xff] }
 0x171   : > { %10691 = vmatmul.mubr.msk.f32.gmra.mrb[30].mxu0 %vm301_vm1, %v4553_v6  ;;  %v5433_v6 = vld [vmem:[%s11740_s5 + $0x16b] sm:$0xff] }
 0x172   : > { %10925 = vmatmul.mubr.msk.f32.gmra.mrb[30].mxu1 %vm301_vm1, %v6678_v7  ;;  %10695 = vmatprep.mubr.msk.f32.mxu0 %vm301_vm1, %v12039_v44  ;;  %v12633_v44 = vld [vmem:[%s13451_s1 + $0x10] sm:$0xf] }
 0x173   : > { %10929 = vmatprep.mubr.msk.f32.mxu1 %vm301_vm1, %v12609_v8  ;;  %v7558_v7 = vld [vmem:[%s11740_s5 + $0x1eb] sm:$0xff] }
 0x175   : > { %10696 = vmatmul.mubr.msk.f32.vlgmr.msra.gmra.mrb[16].mxu0 %vm301_vm1, %v12048_v45  ;;  %v4967_v45 = vld [vmem:[%s11740_s5 + $0x11a] sm:$0xff] }
 0x176   : > { %10930 = vmatmul.mubr.msk.f32.vlgmr.msra.gmra.mrb[16].mxu1 %vm301_vm1, %v12618_v9  ;;  %10720 = vmatpush3.msk.msra.mxu0 %vm350_vm0, %v12541_v40  ;;  %v7332_v40 = vld [vmem:[%s11740_s5 + $0x202] sm:$0xff] }
 0x177   : > { %10954 = vmatpush3.msk.msra.mxu1 %vm350_vm0, %v12546_v41  ;;  %10698 = vmatprep.mubr.msk.f32.mxu0 %vm301_vm1, %v12621_v10  ;;  %v7333_v41 = vld [vmem:[%s11740_s5 + $0x20a] sm:$0xff] }
 0x178   : > { %10932 = vmatprep.mubr.msk.f32.mxu1 %vm301_vm1, %v12624_v11  ;;  %10745 = vmatprep.subr.msk.mxu0 %vm350_vm0, %v12633_v44 }
 0x179   : > { %10979 = vmatprep.subr.msk.mxu1 %vm350_vm0, %v12638_v12  ;;  %10699 = vmatmul.mubr.msk.f32.gmra.mrb[18].mxu0 %vm301_vm1, %v4967_v45 }
 0x17a   : > { %10933 = vmatmul.mubr.msk.f32.gmra.mrb[18].mxu1 %vm301_vm1, %v7092_v13  ;;  %10701 = vmatprep.mubr.msk.f32.mxu0 %vm301_vm1, %v4968_v14 }
 0x17b   : > { %10935 = vmatprep.mubr.msk.f32.mxu1 %vm301_vm1, %v7093_v15 }
 0x17d   : > { %10702 = vmatmul.mubr.msk.f32.gmra.mrb[20].mxu0 %vm301_vm1, %v4969_v16 }
 0x17e   : > { %10936 = vmatmul.mubr.msk.f32.gmra.mrb[20].mxu1 %vm301_vm1, %v7094_v17  ;;  %10704 = vmatprep.mubr.msk.f32.mxu0 %vm301_vm1, %v4970_v18 }
 0x17f   : > { %10938 = vmatprep.mubr.msk.f32.mxu1 %vm301_vm1, %v7095_v19 }
 0x181   : > { %10705 = vmatmul.mubr.msk.f32.gmra.mrb[22].mxu0 %vm301_vm1, %v4971_v20 }
 0x182   : > { %10939 = vmatmul.mubr.msk.f32.gmra.mrb[22].mxu1 %vm301_vm1, %v7096_v21  ;;  %10707 = vmatprep.mubr.msk.f32.mxu0 %vm301_vm1, %v4972_v22 }
 0x183   : > { %10941 = vmatprep.mubr.msk.f32.mxu1 %vm301_vm1, %v7097_v23 }
 0x185   : > { %10708 = vmatmul.mubr.msk.f32.gmra.mrb[24].mxu0 %vm301_vm1, %v4973_v24 }
 0x186   : > { %10942 = vmatmul.mubr.msk.f32.gmra.mrb[24].mxu1 %vm301_vm1, %v7098_v25  ;;  %10710 = vmatprep.mubr.msk.f32.mxu0 %vm301_vm1, %v4974_v26 }
 0x187   : > { %10944 = vmatprep.mubr.msk.f32.mxu1 %vm301_vm1, %v7099_v27 }
 0x189   : > { %10711 = vmatmul.mubr.msk.f32.gmra.mrb[26].mxu0 %vm301_vm1, %v4975_v28 }
 0x18a   : > { %10945 = vmatmul.mubr.msk.f32.gmra.mrb[26].mxu1 %vm301_vm1, %v7100_v29  ;;  %10713 = vmatprep.mubr.msk.f32.mxu0 %vm301_vm1, %v4976_v30 }
 0x18b   : > { %10947 = vmatprep.mubr.msk.f32.mxu1 %vm301_vm1, %v7101_v31 }
 0x18d   : > { %10714 = vmatmul.mubr.msk.f32.gmra.mrb[28].mxu0 %vm301_vm1, %v4977_v32 }
 0x18e   : > { %10948 = vmatmul.mubr.msk.f32.gmra.mrb[28].mxu1 %vm301_vm1, %v7102_v33  ;;  %10716 = vmatprep.mubr.msk.f32.mxu0 %vm301_vm1, %v4978_v34 }
 0x18f   : > { %10950 = vmatprep.mubr.msk.f32.mxu1 %vm301_vm1, %v7103_v35 }
 0x191   : > { %10717 = vmatmul.mubr.msk.f32.gmra.mrb[30].mxu0 %vm301_vm1, %v4979_v36 }
 0x192   : > { %10951 = vmatmul.mubr.msk.f32.gmra.mrb[30].mxu1 %vm301_vm1, %v7104_v37  ;;  %10721 = vmatprep.mubr.msk.f32.mxu0 %vm301_vm1, %v12621_v10  ;;  %v5435_v10 = vld [vmem:[%s11740_s5 + $0x17b] sm:$0xff] }
 0x193   : > { %10955 = vmatprep.mubr.msk.f32.mxu1 %vm301_vm1, %v12624_v11  ;;  %v7560_v11 = vld [vmem:[%s11740_s5 + $0x1fb] sm:$0xff] }
 0x195   : > { %10722 = vmatmul.mubr.msk.f32.vlgmr.msra.gmra.mrb[16].mxu0 %vm301_vm1, %v4967_v45  ;;  %v5437_v45 = vld [vmem:[%s11740_s5 + $0x18b] sm:$0xff] }
 0x196   : > { %10956 = vmatmul.mubr.msk.f32.vlgmr.msra.gmra.mrb[16].mxu1 %vm301_vm1, %v7092_v13  ;;  %10746 = vmatpush3.msk.msra.mxu0 %vm350_vm0, %v12633_v44  ;;  %v5436_v44 = vld [vmem:[%s11740_s5 + $0x183] sm:$0xff]  ;;  %v7562_v13 = vld [vmem:[%s11740_s5 + $0x20b] sm:$0xff] }
 0x197   : > { %10980 = vmatpush3.msk.msra.mxu1 %vm350_vm0, %v12638_v12  ;;  %10724 = vmatprep.mubr.msk.f32.mxu0 %vm301_vm1, %v4968_v14  ;;  %v7561_v12 = vld [vmem:[%s11740_s5 + $0x203] sm:$0xff]  ;;  %v12833_v14 = vld [vmem:[%s11740_s5 + $0x194] sm:$0xff] }
 0x198   : > { %10958 = vmatprep.mubr.msk.f32.mxu1 %vm301_vm1, %v7093_v15  ;;  %10771 = vmatprep.subr.msk.mxu0 %vm350_vm0, %v9326_v38  ;;  %v12842_v15 = vld [vmem:[%s11740_s5 + $0x19c] sm:$0xff] }
 0x199   : > { %11005 = vmatprep.subr.msk.mxu1 %vm350_vm0, %v9487_v39  ;;  %10725 = vmatmul.mubr.msk.f32.gmra.mrb[18].mxu0 %vm301_vm1, %v4969_v16  ;;  %v12845_v16 = vld [vmem:[%s11740_s5 + $0x124] sm:$0xff] }
 0x19a   : > { %10959 = vmatmul.mubr.msk.f32.gmra.mrb[18].mxu1 %vm301_vm1, %v7094_v17  ;;  %10727 = vmatprep.mubr.msk.f32.mxu0 %vm301_vm1, %v4970_v18  ;;  %v12848_v17 = vld [vmem:[%s11740_s5 + $0x1a4] sm:$0xff]  ;;  %v12862_v18 = vld [vmem:[%s13451_s1 + $0x1c] sm:$0xf] }
 0x19b   : > { %10961 = vmatprep.mubr.msk.f32.mxu1 %vm301_vm1, %v7095_v19  ;;  %v12872_v19 = vld [vmem:[%s11740_s5 + $0x1ac] sm:$0xff] }
 0x19d   : > { %10728 = vmatmul.mubr.msk.f32.gmra.mrb[20].mxu0 %vm301_vm1, %v4971_v20  ;;  %v12879_v20 = vld [vmem:[%s11740_s5 + $0x134] sm:$0xff] }
 0x19e   : > { %10962 = vmatmul.mubr.msk.f32.gmra.mrb[20].mxu1 %vm301_vm1, %v7096_v21  ;;  %10730 = vmatprep.mubr.msk.f32.mxu0 %vm301_vm1, %v4972_v22  ;;  %v12882_v21 = vld [vmem:[%s11740_s5 + $0x1b4] sm:$0xff]  ;;  %v12897_v22 = vld [vmem:[%s11740_s5 + $0x13c] sm:$0xff] }
 0x19f   : > { %10964 = vmatprep.mubr.msk.f32.mxu1 %vm301_vm1, %v7097_v23  ;;  %v12900_v23 = vld [vmem:[%s11740_s5 + $0x1bc] sm:$0xff] }
 0x1a1   : > { %10731 = vmatmul.mubr.msk.f32.gmra.mrb[22].mxu0 %vm301_vm1, %v4973_v24  ;;  %v12903_v24 = vld [vmem:[%s11740_s5 + $0x144] sm:$0xff] }
 0x1a2   : > { %10965 = vmatmul.mubr.msk.f32.gmra.mrb[22].mxu1 %vm301_vm1, %v7098_v25  ;;  %10733 = vmatprep.mubr.msk.f32.mxu0 %vm301_vm1, %v4974_v26  ;;  %v12906_v25 = vld [vmem:[%s11740_s5 + $0x1c4] sm:$0xff]  ;;  %v12917_v26 = vld [vmem:[%s11740_s5 + $0x14c] sm:$0xff] }
 0x1a3   : > { %10967 = vmatprep.mubr.msk.f32.mxu1 %vm301_vm1, %v7099_v27  ;;  %v12920_v27 = vld [vmem:[%s11740_s5 + $0x1cc] sm:$0xff] }
 0x1a5   : > { %10734 = vmatmul.mubr.msk.f32.gmra.mrb[24].mxu0 %vm301_vm1, %v4975_v28  ;;  %v12923_v28 = vld [vmem:[%s11740_s5 + $0x154] sm:$0xff] }
 0x1a6   : > { %10968 = vmatmul.mubr.msk.f32.gmra.mrb[24].mxu1 %vm301_vm1, %v7100_v29  ;;  %10736 = vmatprep.mubr.msk.f32.mxu0 %vm301_vm1, %v4976_v30  ;;  %v12926_v29 = vld [vmem:[%s11740_s5 + $0x1d4] sm:$0xff]  ;;  %v12938_v30 = vld [vmem:[%s11740_s5 + $0x15c] sm:$0xff] }
 0x1a7   : > { %10970 = vmatprep.mubr.msk.f32.mxu1 %vm301_vm1, %v7101_v31  ;;  %v12941_v31 = vld [vmem:[%s11740_s5 + $0x1dc] sm:$0xff] }
 0x1a9   : > { %10737 = vmatmul.mubr.msk.f32.gmra.mrb[26].mxu0 %vm301_vm1, %v4977_v32  ;;  %v12944_v32 = vld [vmem:[%s11740_s5 + $0x164] sm:$0xff] }
 0x1aa   : > { %10971 = vmatmul.mubr.msk.f32.gmra.mrb[26].mxu1 %vm301_vm1, %v7102_v33  ;;  %10739 = vmatprep.mubr.msk.f32.mxu0 %vm301_vm1, %v4978_v34  ;;  %v12947_v33 = vld [vmem:[%s11740_s5 + $0x1e4] sm:$0xff]  ;;  %v12958_v34 = vld [vmem:[%s13452_s2] ss:$0 sm:$0xff] }
 0x1ab   : > { %10973 = vmatprep.mubr.msk.f32.mxu1 %vm301_vm1, %v7103_v35  ;;  %v12965_v35 = vld [vmem:[%s11740_s5 + $0x16c] sm:$0xff] }
 0x1ad   : > { %10740 = vmatmul.mubr.msk.f32.gmra.mrb[28].mxu0 %vm301_vm1, %v4979_v36  ;;  %v12968_v36 = vld [vmem:[%s11740_s5 + $0x1ec] sm:$0xff] }
 0x1ae   : > { %10974 = vmatmul.mubr.msk.f32.gmra.mrb[28].mxu1 %vm301_vm1, %v7104_v37  ;;  %10742 = vmatprep.mubr.msk.f32.mxu0 %vm301_vm1, %v12609_v8  ;;  %v5434_v8 = vld [vmem:[%s11740_s5 + $0x173] sm:$0xff] }
 0x1af   : > { %10976 = vmatprep.mubr.msk.f32.mxu1 %vm301_vm1, %v7332_v40  ;;  %v12971_v37 = vld [vmem:[%s11740_s5 + $0x174] sm:$0xff] }
 0x1b1   : > { %10743 = vmatmul.mubr.msk.f32.gmra.mrb[30].mxu0 %vm301_vm1, %v12618_v9  ;;  %v7559_v9 = vld [vmem:[%s11740_s5 + $0x1f3] sm:$0xff] }
 0x1b2   : > { %10977 = vmatmul.mubr.msk.f32.gmra.mrb[30].mxu1 %vm301_vm1, %v7333_v41  ;;  %10747 = vmatprep.mubr.msk.f32.mxu0 %vm301_vm1, %v5422_v42 }
 0x1b3   : > { %10981 = vmatprep.mubr.msk.f32.mxu1 %vm301_vm1, %v7547_v43 }
 0x1b5   : > { %10748 = vmatmul.mubr.msk.f32.vlgmr.msra.gmra.mrb[16].mxu0 %vm301_vm1, %v5423_v46 }
 0x1b6   : > { %10982 = vmatmul.mubr.msk.f32.vlgmr.msra.gmra.mrb[16].mxu1 %vm301_vm1, %v7548_v47  ;;  %10772 = vmatpush3.msk.msra.mxu0 %vm350_vm0, %v9326_v38  ;;  %v12974_v38 = vld [vmem:[%s11740_s5 + $0x1f4] sm:$0xff] }
 0x1b7   : > { %11006 = vmatpush3.msk.msra.mxu1 %vm350_vm0, %v9487_v39  ;;  %10750 = vmatprep.mubr.msk.f32.mxu0 %vm301_vm1, %v5424_v48  ;;  %v12979_v39 = vld [vmem:[%s13453_s3] ss:$0 sm:$0xff] }
 0x1b8   : > { %10984 = vmatprep.mubr.msk.f32.mxu1 %vm301_vm1, %v7549_v49  ;;  %10797 = vmatprep.subr.msk.mxu0 %vm350_vm0, %v12767_v50 }
 0x1b9   : > { %11031 = vmatprep.subr.msk.mxu1 %vm350_vm0, %v12772_v51  ;;  %10751 = vmatmul.mubr.msk.f32.gmra.mrb[18].mxu0 %vm301_vm1, %v5425_v52 }
 0x1ba   : > { %10985 = vmatmul.mubr.msk.f32.gmra.mrb[18].mxu1 %vm301_vm1, %v7550_v53  ;;  %10753 = vmatprep.mubr.msk.f32.mxu0 %vm301_vm1, %v5426_v56  ;;  %v13003_v56 = vld [vmem:[%s11740_s5 + $0x184] sm:$0xff] }
 0x1bb   : > { %10987 = vmatprep.mubr.msk.f32.mxu1 %vm301_vm1, %v7551_v57  ;;  %v13006_v57 = vld [vmem:[%s11740_s5 + $0x204] sm:$0xff] }
 0x1bd   : > { %10754 = vmatmul.mubr.msk.f32.gmra.mrb[20].mxu0 %vm301_vm1, %v5427_v58 }
 0x1be   : > { %10988 = vmatmul.mubr.msk.f32.gmra.mrb[20].mxu1 %vm301_vm1, %v7552_v59  ;;  %10756 = vmatprep.mubr.msk.f32.mxu0 %vm301_vm1, %v5428_v60 }
 0x1bf   : > { %10990 = vmatprep.mubr.msk.f32.mxu1 %vm301_vm1, %v7553_v61 }
 0x1c1   : > { %10757 = vmatmul.mubr.msk.f32.gmra.mrb[22].mxu0 %vm301_vm1, %v5429_v62  ;;  %v13011_v62 = vld [vmem:[%s11740_s5 + $0x18c] sm:$0xff] }
 0x1c2   : > { %10991 = vmatmul.mubr.msk.f32.gmra.mrb[22].mxu1 %vm301_vm1, %v7554_v63  ;;  %10759 = vmatprep.mubr.msk.f32.mxu0 %vm301_vm1, %v5430_v0 }
 0x1c3   : > { %10993 = vmatprep.mubr.msk.f32.mxu1 %vm301_vm1, %v7555_v1 }
 0x1c5   : > { %10760 = vmatmul.mubr.msk.f32.gmra.mrb[24].mxu0 %vm301_vm1, %v5431_v2 }
 0x1c6   : > { %10994 = vmatmul.mubr.msk.f32.gmra.mrb[24].mxu1 %vm301_vm1, %v7556_v3  ;;  %10762 = vmatprep.mubr.msk.f32.mxu0 %vm301_vm1, %v5432_v4 }
 0x1c7   : > { %10996 = vmatprep.mubr.msk.f32.mxu1 %vm301_vm1, %v7557_v5 }
 0x1c9   : > { %10763 = vmatmul.mubr.msk.f32.gmra.mrb[26].mxu0 %vm301_vm1, %v5433_v6 }
 0x1ca   : > { %10997 = vmatmul.mubr.msk.f32.gmra.mrb[26].mxu1 %vm301_vm1, %v7558_v7  ;;  %10765 = vmatprep.mubr.msk.f32.mxu0 %vm301_vm1, %v5434_v8 }
 0x1cb   : > { %10999 = vmatprep.mubr.msk.f32.mxu1 %vm301_vm1, %v7559_v9  ;;  %v13029_v9 = vld [vmem:[%s11740_s5 + $0x20c] sm:$0xff] }
 0x1cd   : > { %10766 = vmatmul.mubr.msk.f32.gmra.mrb[28].mxu0 %vm301_vm1, %v5435_v10 }
 0x1ce   : > { %11000 = vmatmul.mubr.msk.f32.gmra.mrb[28].mxu1 %vm301_vm1, %v7560_v11  ;;  %10768 = vmatprep.mubr.msk.f32.mxu0 %vm301_vm1, %v5436_v44 }
 0x1cf   : > { %11002 = vmatprep.mubr.msk.f32.mxu1 %vm301_vm1, %v7561_v12 }
 0x1d1   : > { %10769 = vmatmul.mubr.msk.f32.gmra.mrb[30].mxu0 %vm301_vm1, %v5437_v45 }
 0x1d2   : > { %11003 = vmatmul.mubr.msk.f32.gmra.mrb[30].mxu1 %vm301_vm1, %v7562_v13  ;;  %10773 = vmatprep.mubr.msk.f32.mxu0 %vm301_vm1, %v12269_v54  ;;  %v12857_v54 = vld [vmem:[%s13451_s1 + $0x1c] sm:$0xf] }
 0x1d3   : > { %11007 = vmatprep.mubr.msk.f32.mxu1 %vm301_vm1, %v12833_v14 }
 0x1d5   : > { %10774 = vmatmul.mubr.msk.f32.vlgmr.msra.gmra.mrb[16].mxu0 %vm301_vm1, %v12278_v55  ;;  %v12869_v55 = vld [vmem:[%s11740_s5 + $0x12c] sm:$0xff] }
 0x1d6   : > { %11008 = vmatmul.mubr.msk.f32.vlgmr.msra.gmra.mrb[16].mxu1 %vm301_vm1, %v12842_v15  ;;  %10798 = vmatpush3.msk.msra.mxu0 %vm350_vm0, %v12767_v50  ;;  %v12995_v50 = vld [vmem:[%s11740_s5 + $0x17c] sm:$0xff] }
 0x1d7   : > { %11032 = vmatpush3.msk.msra.mxu1 %vm350_vm0, %v12772_v51  ;;  %10776 = vmatprep.mubr.msk.f32.mxu0 %vm301_vm1, %v12845_v16  ;;  %v12998_v51 = vld [vmem:[%s11740_s5 + $0x1fc] sm:$0xff] }
 0x1d8   : > { %11010 = vmatprep.mubr.msk.f32.mxu1 %vm301_vm1, %v12848_v17  ;;  %10823 = vmatprep.subr.msk.mxu0 %vm350_vm0, %v12857_v54 }
 0x1d9   : > { %11057 = vmatprep.subr.msk.mxu1 %vm350_vm0, %v12862_v18  ;;  %10777 = vmatmul.mubr.msk.f32.gmra.mrb[18].mxu0 %vm301_vm1, %v12869_v55 }
 0x1da   : > { %11011 = vmatmul.mubr.msk.f32.gmra.mrb[18].mxu1 %vm301_vm1, %v12872_v19  ;;  %10779 = vmatprep.mubr.msk.f32.mxu0 %vm301_vm1, %v12879_v20 }
 0x1db   : > { %11013 = vmatprep.mubr.msk.f32.mxu1 %vm301_vm1, %v12882_v21 }
 0x1dd   : > { %10780 = vmatmul.mubr.msk.f32.gmra.mrb[20].mxu0 %vm301_vm1, %v12897_v22 }
 0x1de   : > { %11014 = vmatmul.mubr.msk.f32.gmra.mrb[20].mxu1 %vm301_vm1, %v12900_v23  ;;  %10782 = vmatprep.mubr.msk.f32.mxu0 %vm301_vm1, %v12903_v24 }
 0x1df   : > { %11016 = vmatprep.mubr.msk.f32.mxu1 %vm301_vm1, %v12906_v25 }
 0x1e1   : > { %10783 = vmatmul.mubr.msk.f32.gmra.mrb[22].mxu0 %vm301_vm1, %v12917_v26 }
 0x1e2   : > { %11017 = vmatmul.mubr.msk.f32.gmra.mrb[22].mxu1 %vm301_vm1, %v12920_v27  ;;  %10785 = vmatprep.mubr.msk.f32.mxu0 %vm301_vm1, %v12923_v28 }
 0x1e3   : > { %11019 = vmatprep.mubr.msk.f32.mxu1 %vm301_vm1, %v12926_v29 }
 0x1e5   : > { %10786 = vmatmul.mubr.msk.f32.gmra.mrb[24].mxu0 %vm301_vm1, %v12938_v30 }
 0x1e6   : > { %11020 = vmatmul.mubr.msk.f32.gmra.mrb[24].mxu1 %vm301_vm1, %v12941_v31  ;;  %10788 = vmatprep.mubr.msk.f32.mxu0 %vm301_vm1, %v12944_v32 }
 0x1e7   : > { %11022 = vmatprep.mubr.msk.f32.mxu1 %vm301_vm1, %v12947_v33 }
 0x1e8   : > { %v10385_v40 = vpop.f32.mrb[0].mxu0 }
 0x1e9   : > { %v10619_v41 = vpop.f32.mrb[0].mxu1  ;;  %v2312_v42 = vmul.f32 %v10385_v40, %v12958_v34  ;;  %v2210_v46 = vpop.f32.mrb[1].mxu0  ;;  %10789 = vmatmul.mubr.msk.f32.gmra.mrb[26].mxu0 %vm301_vm1, %v12965_v35 }
 0x1ea   : > { %v4443_v43 = vmul.f32 %v10619_v41, %v12958_v34  ;;  %v4347_v47 = vpop.f32.mrb[1].mxu1  ;;  %11023 = vmatmul.mubr.msk.f32.gmra.mrb[26].mxu1 %vm301_vm1, %v12968_v36  ;;  %v2311_v48 = vmul.f32 %v12958_v34, %v2210_v46  ;;  %10791 = vmatprep.mubr.msk.f32.mxu0 %vm301_vm1, %v12971_v37 }
 0x1eb   : > { %v4442_v49 = vmul.f32 %v12958_v34, %v4347_v47  ;;  %11025 = vmatprep.mubr.msk.f32.mxu1 %vm301_vm1, %v12974_v38  ;;  %v2334_v52 = vadd.f32 %v12979_v39, %v2312_v42 }
 0x1ec   : > { %v4459_v53 = vadd.f32 %v12979_v39, %v4443_v43  ;;  %v2333_v58 = vadd.f32 %v12979_v39, %v2311_v48  ;;  %v10388_v60 = vpop.f32.mrb[2].mxu0 }
 0x1ed   : > { %v4458_v59 = vadd.f32 %v12979_v39, %v4442_v49  ;;  %v10622_v61 = vpop.f32.mrb[2].mxu1  ;;  %vm2350_vm2 = vcmp.ge.f32.partialorder %v2334_v52, 0.0  ;;  %v2366_v63 = vmul.f32 0.1, %v2334_v52  ;;  %10792 = vmatmul.mubr.msk.f32.gmra.mrb[28].mxu0 %vm301_vm1, %v12995_v50  ;;  %v2314_v5 = vmul.f32 %v10388_v60, %v12958_v34  ;;  %v2220_v7 = vpop.f32.mrb[3].mxu0 }
 0x1ee   : > { %vm4475_vm3 = vcmp.ge.f32.partialorder %v4459_v53, 0.0  ;;  %v4491_v0 = vmul.f32 0.1, %v4459_v53  ;;  %11026 = vmatmul.mubr.msk.f32.gmra.mrb[28].mxu1 %vm301_vm1, %v12998_v51  ;;  %vm2349_vm4 = vcmp.ge.f32.partialorder %v2333_v58, 0.0  ;;  %v2365_v1 = vmul.f32 0.1, %v2333_v58  ;;  %10794 = vmatprep.mubr.msk.f32.mxu0 %vm301_vm1, %v13003_v56 }
 0x1ef   : > { %vm4474_vm5 = vcmp.ge.f32.partialorder %v4458_v59, 0.0  ;;  %v4490_v2 = vmul.f32 0.1, %v4458_v59  ;;  %11028 = vmatprep.mubr.msk.f32.mxu1 %vm301_vm1, %v13006_v57  ;;  %v2382_v3 = vsel %vm2350_vm2, %v2334_v52, %v2366_v63  ;;  %v4445_v6 = vmul.f32 %v10622_v61, %v12958_v34  ;;  %v4357_v8 = vpop.f32.mrb[3].mxu1 }
 0x1f0   : > { %v4507_v4 = vsel %vm4475_vm3, %v4459_v53, %v4491_v0  ;;  %2398 = vst [vmem:[%s13016_s10 + $0x8] sm:$0xff] %v2382_v3  ;;  %v2381_v10 = vsel %vm2349_vm4, %v2333_v58, %v2365_v1  ;;  %v2313_v44 = vmul.f32 %v12958_v34, %v2220_v7  ;;  %v4444_v12 = vmul.f32 %v12958_v34, %v4357_v8  ;;  %v10391_v45 = vpop.f32.mrb[4].mxu0 }
 0x1f1   : > { %4523 = vst [vmem:[%s13016_s10 + $0x88] sm:$0xff] %v4507_v4  ;;  %v4506_v11 = vsel %vm4474_vm5, %v4458_v59, %v4490_v2  ;;  %v10625_v13 = vpop.f32.mrb[4].mxu1  ;;  %2397 = vst [vmem:[%s13016_s10] sm:$0xff] %v2381_v10  ;;  %v2336_v40 = vadd.f32 %v12979_v39, %v2314_v5  ;;  %v4461_v41 = vadd.f32 %v12979_v39, %v4445_v6  ;;  %v2230_v46 = vpop.f32.mrb[5].mxu0  ;;  %10795 = vmatmul.mubr.msk.f32.gmra.mrb[30].mxu0 %vm301_vm1, %v13011_v62 }
 0x1f2   : > { %4522 = vst [vmem:[%s13016_s10 + $0x80] sm:$0xff] %v4506_v11  ;;  %v2316_v42 = vmul.f32 %v10391_v45, %v12958_v34  ;;  %v4447_v43 = vmul.f32 %v10625_v13, %v12958_v34  ;;  %v4367_v47 = vpop.f32.mrb[5].mxu1  ;;  %v2335_v48 = vadd.f32 %v12979_v39, %v2313_v44  ;;  %v4460_v49 = vadd.f32 %v12979_v39, %v4444_v12 }
 0x1f3   : > { %v2315_v52 = vmul.f32 %v12958_v34, %v2230_v46  ;;  %v4446_v53 = vmul.f32 %v12958_v34, %v4367_v47  ;;  %11029 = vmatmul.mubr.msk.f32.gmra.mrb[30].mxu1 %vm301_vm1, %v13029_v9  ;;  %vm2352_vm6 = vcmp.ge.f32.partialorder %v2336_v40, 0.0  ;;  %v2368_v58 = vmul.f32 0.1, %v2336_v40  ;;  %10799 = vmatprep.mubr.msk.f32.mxu0 %vm301_vm1, %v12845_v16  ;;  %v13086_v46 = vld [vmem:[%s13451_s1 + $0x20] sm:$0xf] }
 0x1f4   : > { %vm4477_vm7 = vcmp.ge.f32.partialorder %v4461_v41, 0.0  ;;  %v4493_v59 = vmul.f32 0.1, %v4461_v41  ;;  %11033 = vmatprep.mubr.msk.f32.mxu1 %vm301_vm1, %v12848_v17  ;;  %vm2351_vm8 = vcmp.ge.f32.partialorder %v2335_v48, 0.0  ;;  %v2367_v60 = vmul.f32 0.1, %v2335_v48 }
 0x1f5   : > { %vm4476_vm9 = vcmp.ge.f32.partialorder %v4460_v49, 0.0  ;;  %v4492_v61 = vmul.f32 0.1, %v4460_v49  ;;  %v2384_v63 = vsel %vm2352_vm6, %v2336_v40, %v2368_v58  ;;  %v2338_v1 = vadd.f32 %v12979_v39, %v2316_v42  ;;  %v10394_v3 = vpop.f32.mrb[6].mxu0  ;;  %v10628_v4 = vpop.f32.mrb[6].mxu1  ;;  %10800 = vmatmul.mubr.msk.f32.vlgmr.msra.gmra.mrb[16].mxu0 %vm301_vm1, %v12869_v55 }
 0x1f6   : > { %v4509_v0 = vsel %vm4477_vm7, %v4461_v41, %v4493_v59  ;;  %v4463_v2 = vadd.f32 %v12979_v39, %v4447_v43  ;;  %2400 = vst [vmem:[%s13016_s10 + $0x18] sm:$0xff] %v2384_v63  ;;  %v2383_v16 = vsel %vm2351_vm8, %v2335_v48, %v2367_v60  ;;  %v2337_v5 = vadd.f32 %v12979_v39, %v2315_v52  ;;  %v2240_v7 = vpop.f32.mrb[7].mxu0  ;;  %v4377_v8 = vpop.f32.mrb[7].mxu1 }
 0x1f7   : > { %4525 = vst [vmem:[%s13016_s10 + $0x98] sm:$0xff] %v4509_v0  ;;  %v4508_v17 = vsel %vm4476_vm9, %v4460_v49, %v4492_v61  ;;  %v4462_v6 = vadd.f32 %v12979_v39, %v4446_v53  ;;  %10824 = vmatpush3.msk.msra.mxu0 %vm350_vm0, %v12857_v54  ;;  %2399 = vst [vmem:[%s13016_s10 + $0x10] sm:$0xff] %v2383_v16  ;;  %vm2354_vm10 = vcmp.ge.f32.partialorder %v2338_v1, 0.0  ;;  %v2370_v10 = vmul.f32 0.1, %v2338_v1 }
 0x1f8   : > { %4524 = vst [vmem:[%s13016_s10 + $0x90] sm:$0xff] %v4508_v17  ;;  %vm4479_vm11 = vcmp.ge.f32.partialorder %v4463_v2, 0.0  ;;  %v4495_v11 = vmul.f32 0.1, %v4463_v2  ;;  %11034 = vmatmul.mubr.msk.f32.vlgmr.msra.gmra.mrb[16].mxu1 %vm301_vm1, %v12872_v19  ;;  %10802 = vmatprep.mubr.msk.f32.mxu0 %vm301_vm1, %v12879_v20  ;;  %vm2353_vm12 = vcmp.ge.f32.partialorder %v2337_v5, 0.0  ;;  %v2318_v45 = vmul.f32 %v10394_v3, %v12958_v34  ;;  %v10397_v13 = vpop.f32.mrb[8].mxu0 }
 0x1f9   : > { %v2369_v55 = vmul.f32 0.1, %v2337_v5  ;;  %vm4478_vm13 = vcmp.ge.f32.partialorder %v4462_v6, 0.0  ;;  %v4494_v44 = vmul.f32 0.1, %v4462_v6  ;;  %11058 = vmatpush3.msk.msra.mxu1 %vm350_vm0, %v12862_v18  ;;  %11036 = vmatprep.mubr.msk.f32.mxu1 %vm301_vm1, %v12882_v21  ;;  %v2386_v54 = vsel %vm2354_vm10, %v2338_v1, %v2370_v10  ;;  %v10631_v20 = vpop.f32.mrb[8].mxu1 }
 0x1fa   : > { %v4511_v12 = vsel %vm4479_vm11, %v4463_v2, %v4495_v11  ;;  %v4449_v19 = vmul.f32 %v10628_v4, %v12958_v34  ;;  %10803 = vmatmul.mubr.msk.f32.gmra.mrb[18].mxu0 %vm301_vm1, %v12897_v22  ;;  %2402 = vst [vmem:[%s13016_s10 + $0x28] sm:$0xff] %v2386_v54  ;;  %v2317_v41 = vmul.f32 %v12958_v34, %v2240_v7  ;;  %v2250_v42 = vpop.f32.mrb[9].mxu0  ;;  %v4387_v43 = vpop.f32.mrb[9].mxu1 }
 0x1fb   : > { %4527 = vst [vmem:[%s13016_s10 + $0xa8] sm:$0xff] %v4511_v12  ;;  %v2385_v40 = vsel %vm2353_vm12, %v2337_v5, %v2369_v55  ;;  %v4510_v18 = vsel %vm4478_vm13, %v4462_v6, %v4494_v44  ;;  %v4448_v21 = vmul.f32 %v12958_v34, %v4377_v8  ;;  %10805 = vmatprep.mubr.msk.f32.mxu0 %vm301_vm1, %v12903_v24  ;;  %v13099_v24 = vld [vmem:[%s13451_s1 + $0x20] sm:$0xf] }
 0x1fc   : > { %2401 = vst [vmem:[%s13016_s10 + $0x20] sm:$0xff] %v2385_v40  ;;  %4526 = vst [vmem:[%s13016_s10 + $0xa0] sm:$0xff] %v4510_v18  ;;  %v2340_v22 = vadd.f32 %v12979_v39, %v2318_v45  ;;  %v4465_v47 = vadd.f32 %v12979_v39, %v4449_v19  ;;  %v2320_v48 = vmul.f32 %v10397_v13, %v12958_v34  ;;  %11037 = vmatmul.mubr.msk.f32.gmra.mrb[18].mxu1 %vm301_vm1, %v12900_v23  ;;  %v10400_v60 = vpop.f32.mrb[10].mxu0 }
 0x1fd   : > { %v4451_v49 = vmul.f32 %v10631_v20, %v12958_v34  ;;  %v2339_v52 = vadd.f32 %v12979_v39, %v2317_v41  ;;  %v4464_v53 = vadd.f32 %v12979_v39, %v4448_v21  ;;  %v2319_v58 = vmul.f32 %v12958_v34, %v2250_v42  ;;  %v10634_v61 = vpop.f32.mrb[10].mxu1  ;;  %11039 = vmatprep.mubr.msk.f32.mxu1 %vm301_vm1, %v12906_v25  ;;  %v2260_v4 = vpop.f32.mrb[11].mxu0 }
 0x1fe   : > { %v4450_v59 = vmul.f32 %v12958_v34, %v4387_v43  ;;  %vm2356_vm14 = vcmp.ge.f32.partialorder %v2340_v22, 0.0  ;;  %v2372_v23 = vmul.f32 0.1, %v2340_v22  ;;  %vm4481_vm15 = vcmp.ge.f32.partialorder %v4465_v47, 0.0  ;;  %10806 = vmatmul.mubr.msk.f32.gmra.mrb[20].mxu0 %vm301_vm1, %v12917_v26  ;;  %10849 = vmatprep.subr.msk.mxu0 %vm350_vm0, %v13086_v46  ;;  %v4397_v16 = vpop.f32.mrb[11].mxu1 }
 0x1ff   : > { %v4497_v63 = vmul.f32 0.1, %v4465_v47  ;;  %vm2355_vm2 = vcmp.ge.f32.partialorder %v2339_v52, 0.0  ;;  %v2371_v0 = vmul.f32 0.1, %v2339_v52  ;;  %vm4480_vm3 = vcmp.ge.f32.partialorder %v4464_v53, 0.0  ;;  %10808 = vmatprep.mubr.msk.f32.mxu0 %vm301_vm1, %v12923_v28  ;;  %11083 = vmatprep.subr.msk.mxu1 %vm350_vm0, %v13099_v24 }
 0x200   : > { %v4496_v1 = vmul.f32 0.1, %v4464_v53  ;;  %v2388_v25 = vsel %vm2356_vm14, %v2340_v22, %v2372_v23  ;;  %v2342_v26 = vadd.f32 %v12979_v39, %v2320_v48  ;;  %v4467_v3 = vadd.f32 %v12979_v39, %v4451_v49  ;;  %11040 = vmatmul.mubr.msk.f32.gmra.mrb[20].mxu1 %vm301_vm1, %v12920_v27  ;;  %v10403_v7 = vpop.f32.mrb[12].mxu0 }
 0x201   : > { %v4513_v2 = vsel %vm4481_vm15, %v4465_v47, %v4497_v63  ;;  %2404 = vst [vmem:[%s13016_s10 + $0x38] sm:$0xff] %v2388_v25  ;;  %v2387_v17 = vsel %vm2355_vm2, %v2339_v52, %v2371_v0  ;;  %v2341_v5 = vadd.f32 %v12979_v39, %v2319_v58  ;;  %v4466_v6 = vadd.f32 %v12979_v39, %v4450_v59  ;;  %v10637_v8 = vpop.f32.mrb[12].mxu1  ;;  %v2270_v45 = vpop.f32.mrb[13].mxu0 }
 0x202   : > { %4529 = vst [vmem:[%s13016_s10 + $0xb8] sm:$0xff] %v4513_v2  ;;  %v4512_v28 = vsel %vm4480_vm3, %v4464_v53, %v4496_v1  ;;  %11042 = vmatprep.mubr.msk.f32.mxu1 %vm301_vm1, %v12926_v29  ;;  %2403 = vst [vmem:[%s13016_s10 + $0x30] sm:$0xff] %v2387_v17  ;;  %vm2358_vm4 = vcmp.ge.f32.partialorder %v2342_v26, 0.0  ;;  %v2374_v10 = vmul.f32 0.1, %v2342_v26  ;;  %vm4483_vm5 = vcmp.ge.f32.partialorder %v4467_v3, 0.0  ;;  %10809 = vmatmul.mubr.msk.f32.gmra.mrb[22].mxu0 %vm301_vm1, %v12938_v30 }
 0x203   : > { %4528 = vst [vmem:[%s13016_s10 + $0xb0] sm:$0xff] %v4512_v28  ;;  %v4499_v27 = vmul.f32 0.1, %v4467_v3  ;;  %vm2357_vm6 = vcmp.ge.f32.partialorder %v2341_v5, 0.0  ;;  %v2373_v11 = vmul.f32 0.1, %v2341_v5  ;;  %10811 = vmatprep.mubr.msk.f32.mxu0 %vm301_vm1, %v12944_v32  ;;  %v2322_v54 = vmul.f32 %v10400_v60, %v12958_v34 }
 0x204   : > { %vm4482_vm7 = vcmp.ge.f32.partialorder %v4466_v6, 0.0  ;;  %v4498_v55 = vmul.f32 0.1, %v4466_v6  ;;  %v2390_v44 = vsel %vm2358_vm4, %v2342_v26, %v2374_v10  ;;  %v4453_v12 = vmul.f32 %v10634_v61, %v12958_v34  ;;  %v4407_v19 = vpop.f32.mrb[13].mxu1  ;;  %11043 = vmatmul.mubr.msk.f32.gmra.mrb[22].mxu1 %vm301_vm1, %v12941_v31  ;;  %v10406_v40 = vpop.f32.mrb[14].mxu0  ;;  %v8234_v10 = vld [vmem:[%s11740_s5 + $0x1a5] sm:$0xff] }
 0x205   : > { %v4515_v29 = vsel %vm4483_vm5, %v4467_v3, %v4499_v27  ;;  %2406 = vst [vmem:[%s13016_s10 + $0x48] sm:$0xff] %v2390_v44  ;;  %v2389_v30 = vsel %vm2357_vm6, %v2341_v5, %v2373_v11  ;;  %v2321_v20 = vmul.f32 %v12958_v34, %v2260_v4  ;;  %v4452_v32 = vmul.f32 %v12958_v34, %v4397_v16  ;;  %v10640_v18 = vpop.f32.mrb[14].mxu1  ;;  %v2280_v43 = vpop.f32.mrb[15].mxu0  ;;  %v6109_v5 = vld [vmem:[%s11740_s5 + $0x125] sm:$0xff] }
 0x206   : > { %4531 = vst [vmem:[%s13016_s10 + $0xc8] sm:$0xff] %v4515_v29  ;;  %v4514_v13 = vsel %vm4482_vm7, %v4466_v6, %v4498_v55  ;;  %11045 = vmatprep.mubr.msk.f32.mxu1 %vm301_vm1, %v12947_v33  ;;  %2405 = vst [vmem:[%s13016_s10 + $0x40] sm:$0xff] %v2389_v30  ;;  %v2344_v41 = vadd.f32 %v12979_v39, %v2322_v54  ;;  %v4469_v21 = vadd.f32 %v12979_v39, %v4453_v12  ;;  %v4417_v22 = vpop.f32.mrb[15].mxu1  ;;  %v6111_v54 = vld [vmem:[%s11740_s5 + $0x135] sm:$0xff]  ;;  %v6112_v30 = vld [vmem:[%s11740_s5 + $0x13d] sm:$0xff] }
 0x207   : > { %4530 = vst [vmem:[%s13016_s10 + $0xc0] sm:$0xff] %v4514_v13  ;;  %v2324_v31 = vmul.f32 %v10403_v7, %v12958_v34  ;;  %v4455_v42 = vmul.f32 %v10637_v8, %v12958_v34  ;;  %10812 = vmatmul.mubr.msk.f32.gmra.mrb[24].mxu0 %vm301_vm1, %v12965_v35  ;;  %v2343_v47 = vadd.f32 %v12979_v39, %v2321_v20  ;;  %v8020_v8 = vld [vmem:[%s11740_s5 + $0x21c] sm:$0xff]  ;;  %v6113_v13 = vld [vmem:[%s11740_s5 + $0x145] sm:$0xff] }
 0x208   : > { %v4468_v48 = vadd.f32 %v12979_v39, %v4452_v32  ;;  %v2323_v33 = vmul.f32 %v12958_v34, %v2270_v45  ;;  %v4454_v49 = vmul.f32 %v12958_v34, %v4407_v19  ;;  %10814 = vmatprep.mubr.msk.f32.mxu0 %vm301_vm1, %v12971_v37  ;;  %vm2360_vm8 = vcmp.ge.f32.partialorder %v2344_v41, 0.0  ;;  %11046 = vmatmul.mubr.msk.f32.gmra.mrb[24].mxu1 %vm301_vm1, %v12968_v36  ;;  %v8235_v45 = vld [vmem:[%s11740_s5 + $0x1ad] sm:$0xff]  ;;  %v8236_v19 = vld [vmem:[%s11740_s5 + $0x1b5] sm:$0xff]  ;;  %v8237_v20 = vld [vmem:[%s11740_s5 + $0x1bd] sm:$0xff] }
 0x209   : > { %v2376_v52 = vmul.f32 0.1, %v2344_v41  ;;  %vm4485_vm9 = vcmp.ge.f32.partialorder %v4469_v21, 0.0  ;;  %v4501_v53 = vmul.f32 0.1, %v4469_v21  ;;  %vm2359_vm10 = vcmp.ge.f32.partialorder %v2343_v47, 0.0  ;;  %11048 = vmatprep.mubr.msk.f32.mxu1 %vm301_vm1, %v12974_v38 }
 0x20a   : > { %v2375_v35 = vmul.f32 0.1, %v2343_v47  ;;  %vm4484_vm11 = vcmp.ge.f32.partialorder %v4468_v48, 0.0  ;;  %v4500_v58 = vmul.f32 0.1, %v4468_v48  ;;  %v2346_v60 = vadd.f32 %v12979_v39, %v2324_v31  ;;  %v8238_v32 = vld [vmem:[%s11740_s5 + $0x1c5] sm:$0xff] }
 0x20b   : > { %v2392_v59 = vsel %vm2360_vm8, %v2344_v41, %v2376_v52  ;;  %v4517_v37 = vsel %vm4485_vm9, %v4469_v21, %v4501_v53  ;;  %v4471_v61 = vadd.f32 %v12979_v39, %v4455_v42  ;;  %10815 = vmatmul.mubr.msk.f32.gmra.mrb[26].mxu0 %vm301_vm1, %v12995_v50  ;;  %v2345_v63 = vadd.f32 %v12979_v39, %v2323_v33  ;;  %v6116_v41 = vld [vmem:[%s11740_s5 + $0x15d] sm:$0xff]  ;;  %v6117_v21 = vld [vmem:[%s11740_s5 + $0x165] sm:$0xff] }
 0x20c   : > { %2408 = vst [vmem:[%s13016_s10 + $0x58] sm:$0xff] %v2392_v59  ;;  %4533 = vst [vmem:[%s13016_s10 + $0xd8] sm:$0xff] %v4517_v37  ;;  %v2391_v36 = vsel %vm2359_vm10, %v2343_v47, %v2375_v35  ;;  %v4516_v23 = vsel %vm4484_vm11, %v4468_v48, %v4500_v58  ;;  %v4470_v0 = vadd.f32 %v12979_v39, %v4454_v49  ;;  %10817 = vmatprep.mubr.msk.f32.mxu0 %vm301_vm1, %v13003_v56  ;;  %v8241_v31 = vld [vmem:[%s11740_s5 + $0x1dd] sm:$0xff]  ;;  %v8242_v42 = vld [vmem:[%s11740_s5 + $0x1e5] sm:$0xff] }
 0x20d   : > { %2407 = vst [vmem:[%s13016_s10 + $0x50] sm:$0xff] %v2391_v36  ;;  %4532 = vst [vmem:[%s13016_s10 + $0xd0] sm:$0xff] %v4516_v23  ;;  %vm2362_vm12 = vcmp.ge.f32.partialorder %v2346_v60, 0.0  ;;  %v2378_v38 = vmul.f32 0.1, %v2346_v60  ;;  %vm4487_vm13 = vcmp.ge.f32.partialorder %v4471_v61, 0.0  ;;  %11049 = vmatmul.mubr.msk.f32.gmra.mrb[26].mxu1 %vm301_vm1, %v12998_v51  ;;  %v2326_v26 = vmul.f32 %v10406_v40, %v12958_v34 }
 0x20e   : > { %v4503_v50 = vmul.f32 0.1, %v4471_v61  ;;  %vm2361_vm14 = vcmp.ge.f32.partialorder %v2345_v63, 0.0  ;;  %v2377_v1 = vmul.f32 0.1, %v2345_v63  ;;  %vm4486_vm15 = vcmp.ge.f32.partialorder %v4470_v0, 0.0  ;;  %11051 = vmatprep.mubr.msk.f32.mxu1 %vm301_vm1, %v13006_v57 }
 0x20f   : > { %v4502_v25 = vmul.f32 0.1, %v4470_v0  ;;  %v2394_v56 = vsel %vm2362_vm12, %v2346_v60, %v2378_v38  ;;  %v4457_v3 = vmul.f32 %v10640_v18, %v12958_v34  ;;  %10818 = vmatmul.mubr.msk.f32.gmra.mrb[28].mxu0 %vm301_vm1, %v13011_v62  ;;  %v8019_v51 = vld [vmem:[%s11740_s5 + $0x214] sm:$0xff]  ;;  %v2325_v57 = vmul.f32 %v12958_v34, %v2280_v43  ;;  %v6120_v33 = vld [vmem:[%s11740_s5 + $0x17d] sm:$0xff]  ;;  %v6121_v49 = vld [vmem:[%s11740_s5 + $0x185] sm:$0xff] }
 0x210   : > { %v4519_v2 = vsel %vm4487_vm13, %v4471_v61, %v4503_v50  ;;  %2410 = vst [vmem:[%s13016_s10 + $0x68] sm:$0xff] %v2394_v56  ;;  %v2393_v4 = vsel %vm2361_vm14, %v2345_v63, %v2377_v1  ;;  %v4456_v17 = vmul.f32 %v12958_v34, %v4417_v22  ;;  %10820 = vmatprep.mubr.msk.f32.mxu0 %vm301_vm1, %v12833_v14  ;;  %v6110_v14 = vld [vmem:[%s11740_s5 + $0x12d] sm:$0xff]  ;;  %v6115_v40 = vld [vmem:[%s11740_s5 + $0x155] sm:$0xff]  ;;  %v8245_v52 = vld [vmem:[%s11740_s5 + $0x1fd] sm:$0xff] }
 0x211   : > { %4535 = vst [vmem:[%s13016_s10 + $0xe8] sm:$0xff] %v4519_v2  ;;  %v4518_v16 = vsel %vm4486_vm15, %v4470_v0, %v4502_v25  ;;  %2409 = vst [vmem:[%s13016_s10 + $0x60] sm:$0xff] %v2393_v4  ;;  %v2348_v28 = vadd.f32 %v12979_v39, %v2326_v26  ;;  %v4473_v62 = vadd.f32 %v12979_v39, %v4457_v3  ;;  %11052 = vmatmul.mubr.msk.f32.gmra.mrb[28].mxu1 %vm301_vm1, %v13029_v9  ;;  %v8240_v18 = vld [vmem:[%s11740_s5 + $0x1d5] sm:$0xff]  ;;  %v6118_v43 = vld [vmem:[%s11740_s5 + $0x16d] sm:$0xff] }
 0x212   : > { %4534 = vst [vmem:[%s13016_s10 + $0xe0] sm:$0xff] %v4518_v16  ;;  %v2347_v6 = vadd.f32 %v12979_v39, %v2325_v57  ;;  %v4472_v7 = vadd.f32 %v12979_v39, %v4456_v17  ;;  %11054 = vmatprep.mubr.msk.f32.mxu1 %vm301_vm1, %v8019_v51  ;;  %v6119_v22 = vld [vmem:[%s11740_s5 + $0x175] sm:$0xff]  ;;  %v8243_v47 = vld [vmem:[%s11740_s5 + $0x1ed] sm:$0xff]  ;;  %v8246_v53 = vld [vmem:[%s11740_s5 + $0x205] sm:$0xff] }
 0x213   : > { %vm2364_vm2 = vcmp.ge.f32.partialorder %v2348_v28, 0.0  ;;  %v2380_v27 = vmul.f32 0.1, %v2348_v28  ;;  %vm4489_vm3 = vcmp.ge.f32.partialorder %v4473_v62, 0.0  ;;  %v4505_v11 = vmul.f32 0.1, %v4473_v62  ;;  %10821 = vmatmul.mubr.msk.f32.gmra.mrb[30].mxu0 %vm301_vm1, %v12842_v15 }
 0x214   : > { %vm2363_vm4 = vcmp.ge.f32.partialorder %v2347_v6, 0.0  ;;  %v2379_v9 = vmul.f32 0.1, %v2347_v6  ;;  %vm4488_vm5 = vcmp.ge.f32.partialorder %v4472_v7, 0.0  ;;  %v4504_v55 = vmul.f32 0.1, %v4472_v7  ;;  %10825 = vmatprep.mubr.msk.f32.mxu0 %vm301_vm1, %v6109_v5 }
 0x215   : > { %v2396_v44 = vsel %vm2364_vm2, %v2348_v28, %v2380_v27  ;;  %v4521_v29 = vsel %vm4489_vm3, %v4473_v62, %v4505_v11  ;;  %11055 = vmatmul.mubr.msk.f32.gmra.mrb[30].mxu1 %vm301_vm1, %v8020_v8  ;;  %v8244_v48 = vld [vmem:[%s11740_s5 + $0x1f5] sm:$0xff]  ;;  %v6122_v35 = vld [vmem:[%s11740_s5 + $0x18d] sm:$0xff]  ;;  %v6124_v60 = vld [vmem:[%s11740_s5 + $0x19d] sm:$0xff] }
 0x216   : > { %2412 = vst [vmem:[%s13016_s10 + $0x78] sm:$0xff] %v2396_v44  ;;  %4537 = vst [vmem:[%s13016_s10 + $0xf8] sm:$0xff] %v4521_v29  ;;  %v2395_v15 = vsel %vm2363_vm4, %v2347_v6, %v2379_v9  ;;  %v4520_v12 = vsel %vm4488_vm5, %v4472_v7, %v4504_v55  ;;  %11059 = vmatprep.mubr.msk.f32.mxu1 %vm301_vm1, %v8234_v10  ;;  %v6123_v58 = vld [vmem:[%s11740_s5 + $0x195] sm:$0xff]  ;;  %v8247_v59 = vld [vmem:[%s11740_s5 + $0x20d] sm:$0xff] }
 0x217   : > { %2411 = vst [vmem:[%s13016_s10 + $0x70] sm:$0xff] %v2395_v15  ;;  %4536 = vst [vmem:[%s13016_s10 + $0xf0] sm:$0xff] %v4520_v12  ;;  %10826 = vmatmul.mubr.msk.f32.vlgmr.msra.gmra.mrb[16].mxu0 %vm301_vm1, %v6110_v14  ;;  %v8248_v37 = vld [vmem:[%s11740_s5 + $0x215] sm:$0xff]  ;;  %v6338_v61 = vld [vmem:[%s11740_s5 + $0x126] sm:$0xff] }
 0x218   : > { %10850 = vmatpush3.msk.msra.mxu0 %vm350_vm0, %v13086_v46  ;;  %10828 = vmatprep.mubr.msk.f32.mxu0 %vm301_vm1, %v6111_v54  ;;  %v6114_v46 = vld [vmem:[%s11740_s5 + $0x14d] sm:$0xff]  ;;  %v8249_v36 = vld [vmem:[%s11740_s5 + $0x21d] sm:$0xff] }
 0x219   : > { %11060 = vmatmul.mubr.msk.f32.vlgmr.msra.gmra.mrb[16].mxu1 %vm301_vm1, %v8235_v45  ;;  %v8463_v23 = vld [vmem:[%s11740_s5 + $0x1a6] sm:$0xff]  ;;  %v6339_v63 = vld [vmem:[%s11740_s5 + $0x12e] sm:$0xff]  ;;  %v6340_v0 = vld [vmem:[%s11740_s5 + $0x136] sm:$0xff] }
 0x21a   : > { %11084 = vmatpush3.msk.msra.mxu1 %vm350_vm0, %v13099_v24  ;;  %11062 = vmatprep.mubr.msk.f32.mxu1 %vm301_vm1, %v8236_v19  ;;  %v8239_v24 = vld [vmem:[%s11740_s5 + $0x1cd] sm:$0xff]  ;;  %v8465_v50 = vld [vmem:[%s11740_s5 + $0x1b6] sm:$0xff]  ;;  %v6341_v1 = vld [vmem:[%s11740_s5 + $0x13e] sm:$0xff] }
 0x21b   : > { %10829 = vmatmul.mubr.msk.f32.gmra.mrb[18].mxu0 %vm301_vm1, %v6112_v30  ;;  %v8464_v38 = vld [vmem:[%s11740_s5 + $0x1ae] sm:$0xff]  ;;  %v6342_v25 = vld [vmem:[%s11740_s5 + $0x146] sm:$0xff]  ;;  %v8466_v56 = vld [vmem:[%s11740_s5 + $0x1be] sm:$0xff] }
 0x21c   : > { %10831 = vmatprep.mubr.msk.f32.mxu0 %vm301_vm1, %v6113_v13  ;;  %v8467_v2 = vld [vmem:[%s11740_s5 + $0x1c6] sm:$0xff]  ;;  %v6343_v26 = vld [vmem:[%s11740_s5 + $0x14e] sm:$0xff]  ;;  %v6344_v3 = vld [vmem:[%s11740_s5 + $0x156] sm:$0xff] }
 0x21d   : > { %11063 = vmatmul.mubr.msk.f32.gmra.mrb[18].mxu1 %vm301_vm1, %v8237_v20  ;;  %v8468_v51 = vld [vmem:[%s11740_s5 + $0x1ce] sm:$0xff]  ;;  %v8469_v4 = vld [vmem:[%s11740_s5 + $0x1d6] sm:$0xff]  ;;  %v6345_v16 = vld [vmem:[%s11740_s5 + $0x15e] sm:$0xff] }
 0x21e   : > { %11065 = vmatprep.mubr.msk.f32.mxu1 %vm301_vm1, %v8238_v32  ;;  %v6346_v57 = vld [vmem:[%s11740_s5 + $0x166] sm:$0xff]  ;;  %v8470_v17 = vld [vmem:[%s11740_s5 + $0x1de] sm:$0xff]  ;;  %v6347_v62 = vld [vmem:[%s11740_s5 + $0x16e] sm:$0xff] }
 0x21f   : > { %10832 = vmatmul.mubr.msk.f32.gmra.mrb[20].mxu0 %vm301_vm1, %v6114_v46  ;;  %v8471_v28 = vld [vmem:[%s11740_s5 + $0x1e6] sm:$0xff]  ;;  %v6348_v5 = vld [vmem:[%s11740_s5 + $0x176] sm:$0xff]  ;;  %v8472_v6 = vld [vmem:[%s11740_s5 + $0x1ee] sm:$0xff] }
 0x220   : > { %10834 = vmatprep.mubr.msk.f32.mxu0 %vm301_vm1, %v6115_v40  ;;  %v8473_v7 = vld [vmem:[%s11740_s5 + $0x1f6] sm:$0xff]  ;;  %v6349_v8 = vld [vmem:[%s11740_s5 + $0x17e] sm:$0xff]  ;;  %v6350_v10 = vld [vmem:[%s11740_s5 + $0x186] sm:$0xff] }
 0x221   : > { %11066 = vmatmul.mubr.msk.f32.gmra.mrb[20].mxu1 %vm301_vm1, %v8239_v24  ;;  %v8474_v14 = vld [vmem:[%s11740_s5 + $0x1fe] sm:$0xff]  ;;  %v8475_v27 = vld [vmem:[%s11740_s5 + $0x206] sm:$0xff]  ;;  %v6351_v11 = vld [vmem:[%s11740_s5 + $0x18e] sm:$0xff] }
 0x222   : > { %11068 = vmatprep.mubr.msk.f32.mxu1 %vm301_vm1, %v8240_v18  ;;  %v6352_v9 = vld [vmem:[%s11740_s5 + $0x196] sm:$0xff]  ;;  %v8476_v55 = vld [vmem:[%s11740_s5 + $0x20e] sm:$0xff]  ;;  %v6353_v29 = vld [vmem:[%s11740_s5 + $0x19e] sm:$0xff] }
 0x223   : > { %10835 = vmatmul.mubr.msk.f32.gmra.mrb[22].mxu0 %vm301_vm1, %v6116_v41  ;;  %v8477_v44 = vld [vmem:[%s11740_s5 + $0x216] sm:$0xff]  ;;  %v8478_v54 = vld [vmem:[%s11740_s5 + $0x21e] sm:$0xff] }
 0x224   : > { %10837 = vmatprep.mubr.msk.f32.mxu0 %vm301_vm1, %v6117_v21 }
 0x225   : > { %11069 = vmatmul.mubr.msk.f32.gmra.mrb[22].mxu1 %vm301_vm1, %v8241_v31 }
 0x226   : > { %11071 = vmatprep.mubr.msk.f32.mxu1 %vm301_vm1, %v8242_v42 }
 0x227   : > { %10838 = vmatmul.mubr.msk.f32.gmra.mrb[24].mxu0 %vm301_vm1, %v6118_v43 }
 0x228   : > { %10840 = vmatprep.mubr.msk.f32.mxu0 %vm301_vm1, %v6119_v22 }
 0x229   : > { %11072 = vmatmul.mubr.msk.f32.gmra.mrb[24].mxu1 %vm301_vm1, %v8243_v47 }
 0x22a   : > { %11074 = vmatprep.mubr.msk.f32.mxu1 %vm301_vm1, %v8244_v48 }
 0x22b   : > { %10841 = vmatmul.mubr.msk.f32.gmra.mrb[26].mxu0 %vm301_vm1, %v6120_v33 }
 0x22c   : > { %10843 = vmatprep.mubr.msk.f32.mxu0 %vm301_vm1, %v6121_v49 }
 0x22d   : > { %11075 = vmatmul.mubr.msk.f32.gmra.mrb[26].mxu1 %vm301_vm1, %v8245_v52 }
 0x22e   : > { %11077 = vmatprep.mubr.msk.f32.mxu1 %vm301_vm1, %v8246_v53 }
 0x22f   : > { %10844 = vmatmul.mubr.msk.f32.gmra.mrb[28].mxu0 %vm301_vm1, %v6122_v35 }
 0x230   : > { %10846 = vmatprep.mubr.msk.f32.mxu0 %vm301_vm1, %v6123_v58 }
 0x231   : > { %11078 = vmatmul.mubr.msk.f32.gmra.mrb[28].mxu1 %vm301_vm1, %v8247_v59 }
 0x232   : > { %11080 = vmatprep.mubr.msk.f32.mxu1 %vm301_vm1, %v8248_v37 }
 0x233   : > { %10847 = vmatmul.mubr.msk.f32.gmra.mrb[30].mxu0 %vm301_vm1, %v6124_v60 }
 0x234   : > { %10851 = vmatprep.mubr.msk.f32.mxu0 %vm301_vm1, %v6338_v61 }
 0x235   : > { %11081 = vmatmul.mubr.msk.f32.gmra.mrb[30].mxu1 %vm301_vm1, %v8249_v36 }
 0x236   : > { %11085 = vmatprep.mubr.msk.f32.mxu1 %vm301_vm1, %v8463_v23 }
 0x237   : > { %10852 = vmatmul.mubr.msk.f32.vlgmr.msra.gmra.mrb[16].mxu0 %vm301_vm1, %v6339_v63 }
 0x238   : > { %10854 = vmatprep.mubr.msk.f32.mxu0 %vm301_vm1, %v6340_v0 }
 0x239   : > { %11086 = vmatmul.mubr.msk.f32.vlgmr.msra.gmra.mrb[16].mxu1 %vm301_vm1, %v8464_v38 }
 0x23a   : > { %11088 = vmatprep.mubr.msk.f32.mxu1 %vm301_vm1, %v8465_v50 }
 0x23b   : > { %10855 = vmatmul.mubr.msk.f32.gmra.mrb[18].mxu0 %vm301_vm1, %v6341_v1 }
 0x23c   : > { %10857 = vmatprep.mubr.msk.f32.mxu0 %vm301_vm1, %v6342_v25 }
 0x23d   : > { %11089 = vmatmul.mubr.msk.f32.gmra.mrb[18].mxu1 %vm301_vm1, %v8466_v56 }
 0x23e   : > { %11091 = vmatprep.mubr.msk.f32.mxu1 %vm301_vm1, %v8467_v2 }
 0x23f   : > { %10858 = vmatmul.mubr.msk.f32.gmra.mrb[20].mxu0 %vm301_vm1, %v6343_v26 }
 0x240   : > { %10860 = vmatprep.mubr.msk.f32.mxu0 %vm301_vm1, %v6344_v3 }
 0x241   : > { %11092 = vmatmul.mubr.msk.f32.gmra.mrb[20].mxu1 %vm301_vm1, %v8468_v51 }
 0x242   : > { %11094 = vmatprep.mubr.msk.f32.mxu1 %vm301_vm1, %v8469_v4 }
 0x243   : > { %10861 = vmatmul.mubr.msk.f32.gmra.mrb[22].mxu0 %vm301_vm1, %v6345_v16 }
 0x244   : > { %10863 = vmatprep.mubr.msk.f32.mxu0 %vm301_vm1, %v6346_v57 }
 0x245   : > { %11095 = vmatmul.mubr.msk.f32.gmra.mrb[22].mxu1 %vm301_vm1, %v8470_v17 }
 0x246   : > { %11097 = vmatprep.mubr.msk.f32.mxu1 %vm301_vm1, %v8471_v28 }
 0x247   : > { %10864 = vmatmul.mubr.msk.f32.gmra.mrb[24].mxu0 %vm301_vm1, %v6347_v62 }
 0x248   : > { %10866 = vmatprep.mubr.msk.f32.mxu0 %vm301_vm1, %v6348_v5 }
 0x249   : > { %11098 = vmatmul.mubr.msk.f32.gmra.mrb[24].mxu1 %vm301_vm1, %v8472_v6 }
 0x24a   : > { %11100 = vmatprep.mubr.msk.f32.mxu1 %vm301_vm1, %v8473_v7 }
 0x24b   : > { %10867 = vmatmul.mubr.msk.f32.gmra.mrb[26].mxu0 %vm301_vm1, %v6349_v8 }
 0x24c   : > { %10869 = vmatprep.mubr.msk.f32.mxu0 %vm301_vm1, %v6350_v10 }
 0x24d   : > { %11101 = vmatmul.mubr.msk.f32.gmra.mrb[26].mxu1 %vm301_vm1, %v8474_v14 }
 0x24e   : > { %11103 = vmatprep.mubr.msk.f32.mxu1 %vm301_vm1, %v8475_v27 }
 0x24f   : > { %10870 = vmatmul.mubr.msk.f32.gmra.mrb[28].mxu0 %vm301_vm1, %v6351_v11 }
 0x250   : > { %10872 = vmatprep.mubr.msk.f32.mxu0 %vm301_vm1, %v6352_v9 }
 0x251   : > { %11104 = vmatmul.mubr.msk.f32.gmra.mrb[28].mxu1 %vm301_vm1, %v8476_v55 }
 0x252   : > { %11106 = vmatprep.mubr.msk.f32.mxu1 %vm301_vm1, %v8477_v44 }
 0x253   : > { %10873 = vmatmul.mubr.msk.f32.gmra.mrb[30].mxu0 %vm301_vm1, %v6353_v29 }
 0x255   : > { %11107 = vmatmul.mubr.msk.f32.gmra.mrb[30].mxu1 %vm301_vm1, %v8478_v54 }
 0x30a   : > { %v10853_v15 = vpop.f32.mrb[16].mxu0 }
 0x30b   : > { %v6568_v12 = vmul.f32 %v10853_v15, %v12958_v34  ;;  %v6472_v45 = vpop.f32.mrb[17].mxu0 }
 0x30c   : > { %v11087_v19 = vpop.f32.mrb[16].mxu1  ;;  %v6567_v30 = vmul.f32 %v12958_v34, %v6472_v45 }
 0x30d   : > { %v6584_v13 = vadd.f32 %v12979_v39, %v6568_v12  ;;  %v8693_v20 = vmul.f32 %v11087_v19, %v12958_v34  ;;  %v8597_v32 = vpop.f32.mrb[17].mxu1 }
 0x30e   : > { %v6583_v46 = vadd.f32 %v12979_v39, %v6567_v30  ;;  %v8692_v40 = vmul.f32 %v12958_v34, %v8597_v32  ;;  %v10856_v24 = vpop.f32.mrb[18].mxu0 }
 0x30f   : > { %vm6600_vm0 = vcmp.ge.f32.partialorder %v6584_v13, 0.0  ;;  %v6616_v18 = vmul.f32 0.1, %v6584_v13  ;;  %v8709_v41 = vadd.f32 %v12979_v39, %v8693_v20  ;;  %v6570_v21 = vmul.f32 %v10856_v24, %v12958_v34  ;;  %v6482_v31 = vpop.f32.mrb[19].mxu0 }
 0x310   : > { %vm6599_vm1 = vcmp.ge.f32.partialorder %v6583_v46, 0.0  ;;  %v6615_v42 = vmul.f32 0.1, %v6583_v46  ;;  %v8708_v43 = vadd.f32 %v12979_v39, %v8692_v40  ;;  %v11090_v22 = vpop.f32.mrb[18].mxu1  ;;  %v6569_v47 = vmul.f32 %v12958_v34, %v6482_v31 }
 0x311   : > { %v6632_v48 = vsel %vm6600_vm0, %v6584_v13, %v6616_v18  ;;  %vm8725_vm6 = vcmp.ge.f32.partialorder %v8709_v41, 0.0  ;;  %v8741_v33 = vmul.f32 0.1, %v8709_v41  ;;  %v6586_v49 = vadd.f32 %v12979_v39, %v6570_v21  ;;  %v8607_v52 = vpop.f32.mrb[19].mxu1 }
 0x312   : > { %6648 = vst [vmem:[%s13016_s10 + $0x108] sm:$0xff] %v6632_v48  ;;  %v6631_v53 = vsel %vm6599_vm1, %v6583_v46, %v6615_v42  ;;  %vm8724_vm7 = vcmp.ge.f32.partialorder %v8708_v43, 0.0  ;;  %v8740_v35 = vmul.f32 0.1, %v8708_v43  ;;  %v8695_v58 = vmul.f32 %v11090_v22, %v12958_v34  ;;  %v10859_v59 = vpop.f32.mrb[20].mxu0 }
 0x313   : > { %v8757_v37 = vsel %vm8725_vm6, %v8709_v41, %v8741_v33  ;;  %6647 = vst [vmem:[%s13016_s10 + $0x100] sm:$0xff] %v6631_v53  ;;  %vm6602_vm8 = vcmp.ge.f32.partialorder %v6586_v49, 0.0  ;;  %v6618_v60 = vmul.f32 0.1, %v6586_v49  ;;  %v6585_v61 = vadd.f32 %v12979_v39, %v6569_v47  ;;  %v6492_v36 = vpop.f32.mrb[21].mxu0 }
 0x314   : > { %8773 = vst [vmem:[%s13016_s10 + $0x188] sm:$0xff] %v8757_v37  ;;  %v8756_v23 = vsel %vm8724_vm7, %v8708_v43, %v8740_v35  ;;  %v8711_v63 = vadd.f32 %v12979_v39, %v8695_v58  ;;  %v8694_v0 = vmul.f32 %v12958_v34, %v8607_v52  ;;  %v6572_v38 = vmul.f32 %v10859_v59, %v12958_v34  ;;  %v11093_v50 = vpop.f32.mrb[20].mxu1  ;;  %v13386_v42 = vld [vmem:[%s13453_s3] ss:$0 sm:$0xff] }
 0x315   : > { %8772 = vst [vmem:[%s13016_s10 + $0x180] sm:$0xff] %v8756_v23  ;;  %v6634_v1 = vsel %vm6602_vm8, %v6586_v49, %v6618_v60  ;;  %vm6601_vm9 = vcmp.ge.f32.partialorder %v6585_v61, 0.0  ;;  %v6617_v25 = vmul.f32 0.1, %v6585_v61  ;;  %v8697_v56 = vmul.f32 %v11093_v50, %v12958_v34  ;;  %v8617_v2 = vpop.f32.mrb[21].mxu1 }
 0x316   : > { %6650 = vst [vmem:[%s13016_s10 + $0x118] sm:$0xff] %v6634_v1  ;;  %vm8727_vm10 = vcmp.ge.f32.partialorder %v8711_v63, 0.0  ;;  %v8743_v26 = vmul.f32 0.1, %v8711_v63  ;;  %v8710_v3 = vadd.f32 %v12979_v39, %v8694_v0  ;;  %v6588_v51 = vadd.f32 %v12979_v39, %v6572_v38  ;;  %v10862_v4 = vpop.f32.mrb[22].mxu0 }
 0x317   : > { %v6633_v16 = vsel %vm6601_vm9, %v6585_v61, %v6617_v25  ;;  %v8713_v57 = vadd.f32 %v12979_v39, %v8697_v56  ;;  %v6571_v17 = vmul.f32 %v12958_v34, %v6492_v36  ;;  %v8696_v28 = vmul.f32 %v12958_v34, %v8617_v2  ;;  %v6502_v62 = vpop.f32.mrb[23].mxu0 }
 0x318   : > { %v8759_v5 = vsel %vm8727_vm10, %v8711_v63, %v8743_v26  ;;  %6649 = vst [vmem:[%s13016_s10 + $0x110] sm:$0xff] %v6633_v16  ;;  %vm8726_vm11 = vcmp.ge.f32.partialorder %v8710_v3, 0.0  ;;  %v8742_v6 = vmul.f32 0.1, %v8710_v3  ;;  %vm6604_vm12 = vcmp.ge.f32.partialorder %v6588_v51, 0.0  ;;  %v11096_v7 = vpop.f32.mrb[22].mxu1 }
 0x319   : > { %8775 = vst [vmem:[%s13016_s10 + $0x198] sm:$0xff] %v8759_v5  ;;  %v6620_v8 = vmul.f32 0.1, %v6588_v51  ;;  %vm8729_vm13 = vcmp.ge.f32.partialorder %v8713_v57, 0.0  ;;  %v8745_v10 = vmul.f32 0.1, %v8713_v57  ;;  %v6587_v14 = vadd.f32 %v12979_v39, %v6571_v17 }
 0x31a   : > { %v8627_v27 = vpop.f32.mrb[23].mxu1  ;;  %v8758_v11 = vsel %vm8726_vm11, %v8710_v3, %v8742_v6  ;;  %v8712_v9 = vadd.f32 %v12979_v39, %v8696_v28  ;;  %v6574_v55 = vmul.f32 %v10862_v4, %v12958_v34  ;;  %v8699_v44 = vmul.f32 %v11096_v7, %v12958_v34  ;;  %v10865_v29 = vpop.f32.mrb[24].mxu0  ;;  %v13376_v34 = vld [vmem:[%s13452_s2] ss:$0 sm:$0xff] }
 0x31b   : > { %8774 = vst [vmem:[%s13016_s10 + $0x190] sm:$0xff] %v8758_v11  ;;  %v6636_v54 = vsel %vm6604_vm12, %v6588_v51, %v6620_v8  ;;  %v8761_v15 = vsel %vm8729_vm13, %v8713_v57, %v8745_v10  ;;  %vm6603_vm14 = vcmp.ge.f32.partialorder %v6587_v14, 0.0  ;;  %v6619_v12 = vmul.f32 0.1, %v6587_v14  ;;  %v6512_v45 = vpop.f32.mrb[25].mxu0 }
 0x31c   : > { %6652 = vst [vmem:[%s13016_s10 + $0x128] sm:$0xff] %v6636_v54  ;;  %8777 = vst [vmem:[%s13016_s10 + $0x1a8] sm:$0xff] %v8761_v15  ;;  %vm8728_vm15 = vcmp.ge.f32.partialorder %v8712_v9, 0.0  ;;  %v8744_v19 = vmul.f32 0.1, %v8712_v9  ;;  %v6590_v30 = vadd.f32 %v12979_v39, %v6574_v55  ;;  %v8715_v13 = vadd.f32 %v12979_v39, %v8699_v44  ;;  %v11099_v20 = vpop.f32.mrb[24].mxu1 }
 0x31d   : > { %v6635_v32 = vsel %vm6603_vm14, %v6587_v14, %v6619_v12  ;;  %v6573_v46 = vmul.f32 %v13376_v34, %v6502_v62  ;;  %v8698_v40 = vmul.f32 %v13376_v34, %v8627_v27  ;;  %v6576_v24 = vmul.f32 %v13376_v34, %v10865_v29  ;;  %v8637_v18 = vpop.f32.mrb[25].mxu1 }
 0x31e   : > { %6651 = vst [vmem:[%s13016_s10 + $0x120] sm:$0xff] %v6635_v32  ;;  %v8760_v41 = vsel %vm8728_vm15, %v8712_v9, %v8744_v19  ;;  %vm6606_vm2 = vcmp.ge.f32.partialorder %v6590_v30, 0.0  ;;  %v6622_v21 = vmul.f32 0.1, %v6590_v30  ;;  %vm8731_vm3 = vcmp.ge.f32.partialorder %v8715_v13, 0.0  ;;  %v10868_v39 = vpop.f32.mrb[26].mxu0 }
 0x31f   : > { %8776 = vst [vmem:[%s13016_s10 + $0x1a0] sm:$0xff] %v8760_v41  ;;  %v8747_v31 = vmul.f32 0.1, %v8715_v13  ;;  %v6589_v43 = vadd.f32 %v13386_v42, %v6573_v46  ;;  %v8714_v22 = vadd.f32 %v13386_v42, %v8698_v40  ;;  %v6592_v47 = vadd.f32 %v13386_v42, %v6576_v24  ;;  %v6522_v48 = vpop.f32.mrb[27].mxu0 }
 0x320   : > { %v6638_v33 = vsel %vm6606_vm2, %v6590_v30, %v6622_v21  ;;  %v8701_v49 = vmul.f32 %v13376_v34, %v11099_v20  ;;  %v6575_v52 = vmul.f32 %v13376_v34, %v6512_v45  ;;  %v8700_v53 = vmul.f32 %v13376_v34, %v8637_v18  ;;  %v11102_v35 = vpop.f32.mrb[26].mxu1 }
 0x321   : > { %6654 = vst [vmem:[%s13016_s10 + $0x138] sm:$0xff] %v6638_v33  ;;  %v8763_v58 = vsel %vm8731_vm3, %v8715_v13, %v8747_v31  ;;  %vm6605_vm4 = vcmp.ge.f32.partialorder %v6589_v43, 0.0  ;;  %v6621_v59 = vmul.f32 0.1, %v6589_v43  ;;  %vm8730_vm5 = vcmp.ge.f32.partialorder %v8714_v22, 0.0  ;;  %v8647_v37 = vpop.f32.mrb[27].mxu1 }
 0x322   : > { %8779 = vst [vmem:[%s13016_s10 + $0x1b8] sm:$0xff] %v8763_v58  ;;  %v8746_v60 = vmul.f32 0.1, %v8714_v22  ;;  %vm6608_vm0 = vcmp.ge.f32.partialorder %v6592_v47, 0.0  ;;  %v6624_v61 = vmul.f32 0.1, %v6592_v47  ;;  %v8717_v36 = vadd.f32 %v13386_v42, %v8701_v49 }
 0x323   : > { %v10871_v23 = vpop.f32.mrb[28].mxu0  ;;  %v6637_v63 = vsel %vm6605_vm4, %v6589_v43, %v6621_v59  ;;  %v6591_v0 = vadd.f32 %v13386_v42, %v6575_v52  ;;  %v8716_v38 = vadd.f32 %v13386_v42, %v8700_v53  ;;  %v6578_v50 = vmul.f32 %v13376_v34, %v10868_v39 }
 0x324   : > { %v6532_v1 = vpop.f32.mrb[29].mxu0  ;;  %6653 = vst [vmem:[%s13016_s10 + $0x130] sm:$0xff] %v6637_v63  ;;  %v8762_v25 = vsel %vm8730_vm5, %v8714_v22, %v8746_v60  ;;  %v6640_v56 = vsel %vm6608_vm0, %v6592_v47, %v6624_v61  ;;  %vm8733_vm1 = vcmp.ge.f32.partialorder %v8717_v36, 0.0  ;;  %v8749_v2 = vmul.f32 0.1, %v8717_v36  ;;  %v11105_v26 = vpop.f32.mrb[28].mxu1 }
 0x325   : > { %8778 = vst [vmem:[%s13016_s10 + $0x1b0] sm:$0xff] %v8762_v25  ;;  %6656 = vst [vmem:[%s13016_s10 + $0x148] sm:$0xff] %v6640_v56  ;;  %vm6607_vm6 = vcmp.ge.f32.partialorder %v6591_v0, 0.0  ;;  %v6623_v3 = vmul.f32 0.1, %v6591_v0  ;;  %vm8732_vm7 = vcmp.ge.f32.partialorder %v8716_v38, 0.0  ;;  %v6594_v16 = vadd.f32 %v13386_v42, %v6578_v50 }
 0x326   : > { %v8748_v51 = vmul.f32 0.1, %v8716_v38  ;;  %v8765_v4 = vsel %vm8733_vm1, %v8717_v36, %v8749_v2  ;;  %v8703_v57 = vmul.f32 %v13376_v34, %v11102_v35  ;;  %v6577_v17 = vmul.f32 %v13376_v34, %v6522_v48  ;;  %v8657_v28 = vpop.f32.mrb[29].mxu1  ;;  %v10874_v62 = vpop.f32.mrb[30].mxu0 }
 0x327   : > { %8781 = vst [vmem:[%s13016_s10 + $0x1c8] sm:$0xff] %v8765_v4  ;;  %v6639_v5 = vsel %vm6607_vm6, %v6591_v0, %v6623_v3  ;;  %v8702_v7 = vmul.f32 %v13376_v34, %v8647_v37  ;;  %v6580_v8 = vmul.f32 %v13376_v34, %v10871_v23  ;;  %v6542_v10 = vpop.f32.mrb[31].mxu0  ;;  %vm6610_vm8 = vcmp.ge.f32.partialorder %v6594_v16, 0.0 }
 0x328   : > { %v8764_v6 = vsel %vm8732_vm7, %v8716_v38, %v8748_v51  ;;  %6655 = vst [vmem:[%s13016_s10 + $0x140] sm:$0xff] %v6639_v5  ;;  %v6626_v14 = vmul.f32 0.1, %v6594_v16  ;;  %v8719_v27 = vadd.f32 %v13386_v42, %v8703_v57  ;;  %v6593_v11 = vadd.f32 %v13386_v42, %v6577_v17  ;;  %v11108_v9 = vpop.f32.mrb[30].mxu1 }
 0x329   : > { %8780 = vst [vmem:[%s13016_s10 + $0x1c0] sm:$0xff] %v8764_v6  ;;  %v8718_v55 = vadd.f32 %v13386_v42, %v8702_v7  ;;  %v6596_v44 = vadd.f32 %v13386_v42, %v6580_v8  ;;  %v8705_v29 = vmul.f32 %v13376_v34, %v11105_v26  ;;  %v6579_v54 = vmul.f32 %v13376_v34, %v6532_v1  ;;  %v8667_v15 = vpop.f32.mrb[31].mxu1 }
 0x32a   : > { %v6642_v12 = vsel %vm6610_vm8, %v6594_v16, %v6626_v14  ;;  %vm8735_vm9 = vcmp.ge.f32.partialorder %v8719_v27, 0.0  ;;  %v8751_v45 = vmul.f32 0.1, %v8719_v27  ;;  %vm6609_vm10 = vcmp.ge.f32.partialorder %v6593_v11, 0.0 }
 0x32b   : > { %6658 = vst [vmem:[%s13016_s10 + $0x158] sm:$0xff] %v6642_v12  ;;  %v6625_v19 = vmul.f32 0.1, %v6593_v11  ;;  %vm8734_vm11 = vcmp.ge.f32.partialorder %v8718_v55, 0.0  ;;  %v8750_v30 = vmul.f32 0.1, %v8718_v55  ;;  %v8721_v32 = vadd.f32 %v13386_v42, %v8705_v29 }
 0x32c   : > { %vm6612_vm12 = vcmp.ge.f32.partialorder %v6596_v44, 0.0  ;;  %v8767_v13 = vsel %vm8735_vm9, %v8719_v27, %v8751_v45  ;;  %v6628_v20 = vmul.f32 0.1, %v6596_v44  ;;  %v6595_v46 = vadd.f32 %v13386_v42, %v6579_v54 }
 0x32d   : > { %8783 = vst [vmem:[%s13016_s10 + $0x1d8] sm:$0xff] %v8767_v13  ;;  %v6641_v40 = vsel %vm6609_vm10, %v6593_v11, %v6625_v19  ;;  %v8766_v24 = vsel %vm8734_vm11, %v8718_v55, %v8750_v30  ;;  %v8704_v18 = vmul.f32 %v13376_v34, %v8657_v28  ;;  %v6582_v41 = vmul.f32 %v13376_v34, %v10874_v62 }
 0x32e   : > { %6657 = vst [vmem:[%s13016_s10 + $0x150] sm:$0xff] %v6641_v40  ;;  %8782 = vst [vmem:[%s13016_s10 + $0x1d0] sm:$0xff] %v8766_v24  ;;  %v6644_v21 = vsel %vm6612_vm12, %v6596_v44, %v6628_v20  ;;  %vm8737_vm13 = vcmp.ge.f32.partialorder %v8721_v32, 0.0  ;;  %v8753_v39 = vmul.f32 0.1, %v8721_v32  ;;  %vm6611_vm14 = vcmp.ge.f32.partialorder %v6595_v46, 0.0 }
 0x32f   : > { %6660 = vst [vmem:[%s13016_s10 + $0x168] sm:$0xff] %v6644_v21  ;;  %v6627_v31 = vmul.f32 0.1, %v6595_v46  ;;  %v8720_v43 = vadd.f32 %v13386_v42, %v8704_v18  ;;  %v6598_v22 = vadd.f32 %v13386_v42, %v6582_v41  ;;  %v8707_v47 = vmul.f32 %v13376_v34, %v11108_v9 }
 0x330   : > { %v8769_v48 = vsel %vm8737_vm13, %v8721_v32, %v8753_v39  ;;  %v6581_v33 = vmul.f32 %v13376_v34, %v6542_v10  ;;  %v8706_v49 = vmul.f32 %v13376_v34, %v8667_v15 }
 0x331   : > { %8785 = vst [vmem:[%s13016_s10 + $0x1e8] sm:$0xff] %v8769_v48  ;;  %v6643_v52 = vsel %vm6611_vm14, %v6595_v46, %v6627_v31  ;;  %vm8736_vm15 = vcmp.ge.f32.partialorder %v8720_v43, 0.0  ;;  %v8752_v53 = vmul.f32 0.1, %v8720_v43  ;;  %vm6614_vm2 = vcmp.ge.f32.partialorder %v6598_v22, 0.0 }
 0x332   : > { %6659 = vst [vmem:[%s13016_s10 + $0x160] sm:$0xff] %v6643_v52  ;;  %v6630_v35 = vmul.f32 0.1, %v6598_v22  ;;  %v8723_v58 = vadd.f32 %v13386_v42, %v8707_v47  ;;  %v6597_v59 = vadd.f32 %v13386_v42, %v6581_v33  ;;  %v8722_v37 = vadd.f32 %v13386_v42, %v8706_v49 }
 0x333   : > { %v8768_v60 = vsel %vm8736_vm15, %v8720_v43, %v8752_v53 }
 0x334   : > { %8784 = vst [vmem:[%s13016_s10 + $0x1e0] sm:$0xff] %v8768_v60  ;;  %v6646_v34 = vsel %vm6614_vm2, %v6598_v22, %v6630_v35  ;;  %vm8739_vm3 = vcmp.ge.f32.partialorder %v8723_v58, 0.0  ;;  %v8755_v61 = vmul.f32 0.1, %v8723_v58  ;;  %vm6613_vm4 = vcmp.ge.f32.partialorder %v6597_v59, 0.0 }
 0x335   : > { %6662 = vst [vmem:[%s13016_s10 + $0x178] sm:$0xff] %v6646_v34  ;;  %v6629_v36 = vmul.f32 0.1, %v6597_v59  ;;  %vm8738_vm5 = vcmp.ge.f32.partialorder %v8722_v37, 0.0  ;;  %v8754_v23 = vmul.f32 0.1, %v8722_v37 }
 0x336   : > { %v8771_v63 = vsel %vm8739_vm3, %v8723_v58, %v8755_v61 }
 0x337   : > { %8787 = vst [vmem:[%s13016_s10 + $0x1f8] sm:$0xff] %v8771_v63  ;;  %v6645_v0 = vsel %vm6613_vm4, %v6597_v59, %v6629_v36  ;;  %v8770_v38 = vsel %vm8738_vm5, %v8722_v37, %v8754_v23 }
 0x338   : > { %6661 = vst [vmem:[%s13016_s10 + $0x170] sm:$0xff] %v6645_v0  ;;  %8786 = vst [vmem:[%s13016_s10 + $0x1f0] sm:$0xff] %v8770_v38 }
 0x339 PF: > { %s14_s17 = sadd.s32 1, %s11670_s17   ;;  %s13455_s15 = smov %s11666_s16 }
 0x33a   : > { %p11_p6 = scmp.ge.s32.totalorder %s14_s17, 4   ;;  %s13456_s16 = smov %s13458_s18 }
 0x33c   :  { %13 = sbr.rel (!%p11_p6) target bundleno = 2 (0x2), region = 83 }

// kernel: cnn_forward.2
= control target key start
LH: loop header
LB: loop body
LE: loop exit
PB: predicated region body
PF: predicated region fallthrough
CT: control target
= control target key end

     0   :  { %10 = vsyncpa [#allocation3], 0  ;;  %s13949_s0 = inlined_call_operand.hbm [shape: f32[2,552,4], index: 0, kind: input, shape index: {}]   ;;  %s13950_s1 = inlined_call_operand.vmem [shape: f32[9,4,128], index: 1, kind: input, shape index: {}]   ;;  %s13951_s2 = inlined_call_operand.vmem [shape: f32[1024,1], index: 2, kind: input, shape index: {}]   ;;  %s13952_s3 = inlined_call_operand.vmem [shape: f32[16,128], index: 3, kind: output, shape index: {0}]   ;;  %s13953_s4 = inlined_call_operand.vmem [shape: f32[16,128], index: 4, kind: output, shape index: {1}]  }
   0x1   :  { %12 = vsyncpa [#allocation3 + $0x1], 0  ;;  %s12034_s15 = smov 0   ;;  %s12036_s16 = smov 0  }
   0x2   :  { %s12038_s17 = smov 0   ;;  %s12040_s18 = smov 0  }
   0x3   :  { %s12042_s19 = smov 0   ;;  %s12044_s20 = smov 0  }
   0x4 LB: > { %s9158_s21 = sadd.s32 4294967295, %s12003_s20   ;;  %s27_s22 = sadd.s32 1, %s11999_s19  ;;  %s12003_s20 = sphi %s12044_s20, %s18_s20   ;;  %s11999_s19 = sphi %s12042_s19, %s13990_s19   ;;  %s11995_s18 = sphi %s12040_s18, %s13989_s18   ;;  %s11991_s17 = sphi %s12038_s17, %s13988_s17   ;;  %s11987_s16 = sphi %s12036_s16, %s13987_s16   ;;  %s11983_s15 = sphi %s12034_s15, %s13986_s15  }
   0x5   : > { %p28_p0 = scmp.ge.s32.totalorder %s27_s22, 2  ;;  %s37_s23 = sadd.s32 1, %s11991_s17 }
   0x6   : > { %p44_p1 = scmp.ne.s32.totalorder %s11991_s17, %s11987_s16  ;;  %p45_p2 = scmp.eq.s32.totalorder %s12003_s20, 0 }
   0x7   : > { %s13992_s22 = smov (%p28_p0, %s27_s22), 0  ;;  %p50_p4 = scmp.ne.s32.totalorder %s11987_s16, %s11983_s15 }
   0x8   : > { %p46_p3 = por %p45_p2, %p44_p1  ;;  %s34_s24 = ssub.s32 %s11999_s19, %s13992_s22 }
   0x9   : > { %p51_p5 = scmp.eq.s32.totalorder %s9158_s21, 0  ;;  %p35_p6 = scmp.eq.s32.totalorder %s34_s24, 0 }
   0xa   : > { %p11860_p8 = scmp.lt.s32.totalorder %s12003_s20, 2  ;;  %s189_s27 = sand.u32 1, %s11991_s17  }
   0xb   : > { %p12073_p7 = por %p51_p5, %p50_p4  ;;  %s11852_s28 = smul.u32 8832, %s11999_s19 }
   0xc   : > { %s12079_s26 = scalar_select %p35_p6, %s11991_s17, %s37_s23  }
   0xd   : > { %s11851_s29 = smul.u32 552, %s189_s27  ;;  %s12086_s6 = scalar_lea.hbm %s13949_s0, %s11852_s28 }
   0xe   : > { %p12088_p9 = pnand %p11860_p8, %p46_p3  ;;  %s12094_s10 = scalar_lea.sflag [#allocation3], %s189_s27 }
   0xf   : > { %s193_s8 = scalar_lea.vmem [#allocation2], %s11851_s29  ;;  %s11923_s11 = scalar_lea.hbm %s12086_s6, 8832 }
  0x10   : > { %s200_s9 = sshll.u32 %s193_s8, 4  ;;  %p11924_p10 = scmp.ne.s32.totalorder %s12086_s6, %s11923_s11  ;;  %s12092_s9 = int_to_ptr.vmem [resolvable:$true] %s200_s9 }
  0x11   : > { %p11925_p11 = pneg %p12088_p9  ;;  %s11928_s14 = scalar_lea.hbm %s13949_s0, 17664 }
  0x12   : > { %p11929_p0 = scmp.lt.u32.totalorder %s12086_s6, %s13949_s0  ;;  %p11930_p1 = scmp.lt.u32.totalorder %s11928_s14, %s11923_s11 }
  0x13   : > { %p11926_p12 = pnand %p11925_p11, %p11924_p10  ;;  %p11932_p3 = scmp.lt.u32.totalorder %s11923_s11, %s12086_s6 }
  0x14   : > { %p11931_p2 = por %p11930_p1, %p11929_p0 }
  0x15   : > { %p11927_p13 = pneg %p11926_p12 }
  0x16   : > { %p11933_p4 = por %p11932_p3, %p11931_p2 }
  0x18   : > { %p11934_p5 = pnand %p11933_p4, %p11927_p13 }
  0x1a   : > { %11937 = shalt.err (!%p11934_p5)
}
  0x1b   : > { %s11938_s23 = scalar_lea.vmem %s12092_s9, 8832  ;;  %s12005_s24 = smov [#allocation2]  }
  0x1c   : > { %p11939_p6 = scmp.ne.s32.totalorder %s12092_s9, %s11938_s23  ;;  %s11943_s27 = sshll.u32 %s12005_s24, 4  ;;  %s11944_s27 = int_to_ptr.vmem [resolvable:$false] %s11943_s27 }
  0x1d   : > { %s11945_s28 = scalar_lea.vmem %s11944_s27, 17664  ;;  %p11946_p12 = scmp.lt.s32.totalorder %s12092_s9, %s11944_s27 }
  0x1e   : > { %p11941_p8 = pnand %p11939_p6, %p11925_p11  ;;  %p11947_p0 = scmp.lt.s32.totalorder %s11945_s28, %s11938_s23 }
  0x20   : > { %p11942_p10 = pneg %p11941_p8  ;;  %p11948_p1 = por %p11947_p0, %p11946_p12 }
  0x22   : > { %p11949_p2 = pnand %p11948_p1, %p11942_p10 }
  0x24   : > { %11952 = shalt.err (!%p11949_p2)
}
  0x25   : > { %s12006_s29 = smov 128   ;;  %s12007_s30 = smov 8  }
  0x26   : > { %11859 = dma.hbm_to_vmem [thread:$0]  (!%p12088_p9), %s12086_s6, 8832, %s12092_s9, %s12094_s10, %s12006_s29, %s12006_s29, %s12007_s30  }
  0x27   : > { %p9164_p11 = scmp.ge.s32.totalorder %s12003_s20, 1  ;;  %p217_p13 = scmp.lt.s32.totalorder %s12003_s20, 3 }
  0x29   : > { %p218_p3 = pnand %p9164_p11, %p217_p13 }
  0x2b   : > { %221 = sbr.rel (%p218_p3) target bundleno = 871 (0x367), region = 32 }
  0x32   : > { %s223_s5 = sand.u32 1, %s11987_s16  }
  0x33   : > { %s11853_s8 = smul.u32 552, %s223_s5  ;;  %s224_s11 = scalar_lea.sflag [#allocation3], %s223_s5 }
  0x35   : > { %s12125_s12 = scalar_lea.vmem [#allocation2], %s11853_s8 }
  0x36   : > { %11978 = dma.done.wait (%p12073_p7), %s224_s11, 8832  }
  0x37   : > { %11980 = vsyncadd (%p12073_p7), %s224_s11, 4294958464  ;;  %vm378_vm0 = vcmask 1043456   ;;  %vm329_vm1 = vcmask 31744   ;;  %v12134_v0 = vld [vmem:[%s13950_s1 + $0x4] sm:$0xf]  ;;  %v312_v3 = vld [vmem:[%s12125_s12 + $0x9] sm:$0xff] }
  0x38   : > { %v311_v1 = vld [vmem:[%s12125_s12 + $0x1] sm:$0xff]  ;;  %10403 = vmatprep.subr.msk.mxu0 %vm378_vm0, %v12134_v0  ;;  %10637 = vmatprep.subr.msk.mxu1 %vm378_vm0, %v12134_v0  ;;  %v2522_v5 = vld [vmem:[%s12125_s12 + $0x89] sm:$0xff]  ;;  %v313_v6 = vld [vmem:[%s12125_s12 + $0x11] sm:$0xff]  ;;  %s9165_s8 = sshll.u32 %s11995_s18, 6  ;;  %p280_p9 = scmp.lt.s32.totalorder %s11995_s18, 1 }
  0x39   : > { %v2521_v2 = vld [vmem:[%s12125_s12 + $0x81] sm:$0xff]  ;;  %10404 = vmatpush3.msk.msra.mxu0 %vm378_vm0, %v12134_v0  ;;  %10405 = vmatprep.mubr.msk.f32.mxu0 %vm329_vm1, %v311_v1  ;;  %v2523_v7 = vld [vmem:[%s12125_s12 + $0x91] sm:$0xff]  ;;  %v314_v8 = vld [vmem:[%s12125_s12 + $0x19] sm:$0xff]  ;;  %p275_p7 = scmp.lt.s32.totalorder %s9165_s8, 127 }
  0x3a   : > { %v310_v4 = vld [vmem:[%s13950_s1] sm:$0xf]  ;;  %10638 = vmatpush3.msk.msra.mxu1 %vm378_vm0, %v12134_v0  ;;  %10639 = vmatprep.mubr.msk.f32.mxu1 %vm329_vm1, %v2521_v2  ;;  %v316_v12 = vld [vmem:[%s12125_s12 + $0x29] sm:$0xff]  ;;  %s13996_s18 = smov (!%p280_p9, %s11995_s18), 1 }
  0x3b   : > { %10406 = vmatmul.mubr.msk.f32.vlgmr.msra.gmra.mrb[0].mxu0 %vm329_vm1, %v312_v3  ;;  %10429 = vmatprep.subr.msk.mxu0 %vm378_vm0, %v310_v4  ;;  %v2524_v9 = vld [vmem:[%s12125_s12 + $0x99] sm:$0xff]  ;;  %v315_v10 = vld [vmem:[%s12125_s12 + $0x21] sm:$0xff]  ;;  %v2526_v13 = vld [vmem:[%s12125_s12 + $0xa9] sm:$0xff]  ;;  %s13994_s8 = smov (!%p275_p7, %s9165_s8), 127 }
  0x3c   : > { %10640 = vmatmul.mubr.msk.f32.vlgmr.msra.gmra.mrb[0].mxu1 %vm329_vm1, %v2522_v5  ;;  %10430 = vmatpush3.msk.msra.mxu0 %vm378_vm0, %v310_v4  ;;  %v2525_v11 = vld [vmem:[%s12125_s12 + $0xa1] sm:$0xff]  ;;  %v317_v14 = vld [vmem:[%s12125_s12 + $0x31] sm:$0xff]  ;;  %v318_v17 = vld [vmem:[%s12125_s12 + $0x39] sm:$0xff]  ;;  %s9166_s11 = sshll.u32 %s13994_s8, 3 }
  0x3d   : > { %10663 = vmatprep.subr.msk.mxu1 %vm378_vm0, %v310_v4  ;;  %10408 = vmatprep.mubr.msk.f32.mxu0 %vm329_vm1, %v313_v6  ;;  %v2527_v15 = vld [vmem:[%s12125_s12 + $0xb1] sm:$0xff]  ;;  %v9204_v16 = vld [vmem:[%s13950_s1 + $0x8] sm:$0xf]  ;;  %v12232_v41 = vld [vmem:[%s13950_s1 + $0xc] sm:$0xf]  ;;  %s12639_s25 = scalar_lea.vmem %s13951_s2, %s9166_s11 }
  0x3e   : > { %10642 = vmatprep.mubr.msk.f32.mxu1 %vm329_vm1, %v2523_v7  ;;  %10664 = vmatpush3.msk.msra.mxu1 %vm378_vm0, %v310_v4  ;;  %v2528_v18 = vld [vmem:[%s12125_s12 + $0xb9] sm:$0xff]  ;;  %v319_v19 = vld [vmem:[%s12125_s12 + $0x41] sm:$0xff]  ;;  %v320_v21 = vld [vmem:[%s12125_s12 + $0x49] sm:$0xff] }
  0x3f   : > { %10409 = vmatmul.mubr.msk.f32.gmra.mrb[2].mxu0 %vm329_vm1, %v314_v8  ;;  %10455 = vmatprep.subr.msk.mxu0 %vm378_vm0, %v9204_v16  ;;  %v2529_v20 = vld [vmem:[%s12125_s12 + $0xc1] sm:$0xff]  ;;  %v2530_v22 = vld [vmem:[%s12125_s12 + $0xc9] sm:$0xff]  ;;  %v321_v23 = vld [vmem:[%s12125_s12 + $0x51] sm:$0xff] }
  0x40   : > { %10643 = vmatmul.mubr.msk.f32.gmra.mrb[2].mxu1 %vm329_vm1, %v2524_v9  ;;  %10411 = vmatprep.mubr.msk.f32.mxu0 %vm329_vm1, %v315_v10  ;;  %v2531_v24 = vld [vmem:[%s12125_s12 + $0xd1] sm:$0xff]  ;;  %v322_v25 = vld [vmem:[%s12125_s12 + $0x59] sm:$0xff]  ;;  %v323_v27 = vld [vmem:[%s12125_s12 + $0x61] sm:$0xff] }
  0x41   : > { %10645 = vmatprep.mubr.msk.f32.mxu1 %vm329_vm1, %v2525_v11  ;;  %10689 = vmatprep.subr.msk.mxu1 %vm378_vm0, %v9204_v16  ;;  %v2532_v26 = vld [vmem:[%s12125_s12 + $0xd9] sm:$0xff]  ;;  %v2533_v28 = vld [vmem:[%s12125_s12 + $0xe1] sm:$0xff]  ;;  %v324_v29 = vld [vmem:[%s12125_s12 + $0x69] sm:$0xff] }
  0x42   : > { %v2534_v30 = vld [vmem:[%s12125_s12 + $0xe9] sm:$0xff]  ;;  %v325_v31 = vld [vmem:[%s12125_s12 + $0x71] sm:$0xff]  ;;  %v326_v33 = vld [vmem:[%s12125_s12 + $0x79] sm:$0xff] }
  0x43   : > { %10412 = vmatmul.mubr.msk.f32.gmra.mrb[4].mxu0 %vm329_vm1, %v316_v12  ;;  %v2535_v32 = vld [vmem:[%s12125_s12 + $0xf1] sm:$0xff]  ;;  %v2536_v34 = vld [vmem:[%s12125_s12 + $0xf9] sm:$0xff]  ;;  %v295_v37 = vld [vmem:[%s12125_s12 + $0x8] sm:$0xff] }
  0x44   : > { %10646 = vmatmul.mubr.msk.f32.gmra.mrb[4].mxu1 %vm329_vm1, %v2526_v13  ;;  %10414 = vmatprep.mubr.msk.f32.mxu0 %vm329_vm1, %v317_v14  ;;  %v294_v35 = vld [vmem:[%s12125_s12] sm:$0xff]  ;;  %v2506_v38 = vld [vmem:[%s12125_s12 + $0x88] sm:$0xff]  ;;  %v296_v39 = vld [vmem:[%s12125_s12 + $0x10] sm:$0xff] }
  0x45   : > { %10648 = vmatprep.mubr.msk.f32.mxu1 %vm329_vm1, %v2527_v15  ;;  %v2505_v36 = vld [vmem:[%s12125_s12 + $0x80] sm:$0xff]  ;;  %v2507_v40 = vld [vmem:[%s12125_s12 + $0x90] sm:$0xff]  ;;  %v297_v42 = vld [vmem:[%s12125_s12 + $0x18] sm:$0xff] }
  0x46   : > { %v2508_v43 = vld [vmem:[%s12125_s12 + $0x98] sm:$0xff]  ;;  %v298_v44 = vld [vmem:[%s12125_s12 + $0x20] sm:$0xff]  ;;  %v299_v46 = vld [vmem:[%s12125_s12 + $0x28] sm:$0xff] }
  0x47   : > { %10415 = vmatmul.mubr.msk.f32.gmra.mrb[6].mxu0 %vm329_vm1, %v318_v17  ;;  %v2509_v45 = vld [vmem:[%s12125_s12 + $0xa0] sm:$0xff]  ;;  %v2510_v47 = vld [vmem:[%s12125_s12 + $0xa8] sm:$0xff]  ;;  %v300_v48 = vld [vmem:[%s12125_s12 + $0x30] sm:$0xff] }
  0x48   : > { %10649 = vmatmul.mubr.msk.f32.gmra.mrb[6].mxu1 %vm329_vm1, %v2528_v18  ;;  %10417 = vmatprep.mubr.msk.f32.mxu0 %vm329_vm1, %v319_v19  ;;  %v2511_v49 = vld [vmem:[%s12125_s12 + $0xb0] sm:$0xff]  ;;  %v301_v50 = vld [vmem:[%s12125_s12 + $0x38] sm:$0xff]  ;;  %v302_v52 = vld [vmem:[%s12125_s12 + $0x40] sm:$0xff] }
  0x49   : > { %10651 = vmatprep.mubr.msk.f32.mxu1 %vm329_vm1, %v2529_v20  ;;  %v2512_v51 = vld [vmem:[%s12125_s12 + $0xb8] sm:$0xff]  ;;  %v2513_v53 = vld [vmem:[%s12125_s12 + $0xc0] sm:$0xff]  ;;  %v303_v54 = vld [vmem:[%s12125_s12 + $0x48] sm:$0xff] }
  0x4a   : > { %v2514_v55 = vld [vmem:[%s12125_s12 + $0xc8] sm:$0xff]  ;;  %v304_v56 = vld [vmem:[%s12125_s12 + $0x50] sm:$0xff]  ;;  %v305_v58 = vld [vmem:[%s12125_s12 + $0x58] sm:$0xff] }
  0x4b   : > { %10418 = vmatmul.mubr.msk.f32.gmra.mrb[8].mxu0 %vm329_vm1, %v320_v21  ;;  %v2515_v57 = vld [vmem:[%s12125_s12 + $0xd0] sm:$0xff]  ;;  %v2516_v59 = vld [vmem:[%s12125_s12 + $0xd8] sm:$0xff]  ;;  %v306_v60 = vld [vmem:[%s12125_s12 + $0x60] sm:$0xff] }
  0x4c   : > { %10652 = vmatmul.mubr.msk.f32.gmra.mrb[8].mxu1 %vm329_vm1, %v2530_v22  ;;  %10420 = vmatprep.mubr.msk.f32.mxu0 %vm329_vm1, %v321_v23  ;;  %v2517_v61 = vld [vmem:[%s12125_s12 + $0xe0] sm:$0xff]  ;;  %v307_v62 = vld [vmem:[%s12125_s12 + $0x68] sm:$0xff]  ;;  %v308_v1 = vld [vmem:[%s12125_s12 + $0x70] sm:$0xff] }
  0x4d   : > { %10654 = vmatprep.mubr.msk.f32.mxu1 %vm329_vm1, %v2531_v24  ;;  %v2518_v63 = vld [vmem:[%s12125_s12 + $0xe8] sm:$0xff]  ;;  %v2519_v2 = vld [vmem:[%s12125_s12 + $0xf0] sm:$0xff]  ;;  %v309_v3 = vld [vmem:[%s12125_s12 + $0x78] sm:$0xff] }
  0x4e   : > { %v2520_v4 = vld [vmem:[%s12125_s12 + $0xf8] sm:$0xff]  ;;  %v723_v5 = vld [vmem:[%s12125_s12 + $0x2] sm:$0xff]  ;;  %v724_v7 = vld [vmem:[%s12125_s12 + $0xa] sm:$0xff] }
  0x4f   : > { %10421 = vmatmul.mubr.msk.f32.gmra.mrb[10].mxu0 %vm329_vm1, %v322_v25  ;;  %v12295_v6 = vld [vmem:[%s12125_s12 + $0x82] sm:$0xff]  ;;  %v12304_v8 = vld [vmem:[%s12125_s12 + $0x8a] sm:$0xff]  ;;  %v12307_v9 = vld [vmem:[%s12125_s12 + $0x12] sm:$0xff] }
  0x50   : > { %10655 = vmatmul.mubr.msk.f32.gmra.mrb[10].mxu1 %vm329_vm1, %v2532_v26  ;;  %10423 = vmatprep.mubr.msk.f32.mxu0 %vm329_vm1, %v323_v27  ;;  %v12310_v10 = vld [vmem:[%s12125_s12 + $0x92] sm:$0xff]  ;;  %v726_v12 = vld [vmem:[%s12125_s12 + $0x1a] sm:$0xff]  ;;  %v727_v14 = vld [vmem:[%s12125_s12 + $0x22] sm:$0xff] }
  0x51   : > { %10657 = vmatprep.mubr.msk.f32.mxu1 %vm329_vm1, %v2533_v28  ;;  %v12316_v11 = vld [vmem:[%s13950_s1 + $0x10] sm:$0xf]  ;;  %v2926_v13 = vld [vmem:[%s12125_s12 + $0x9a] sm:$0xff] }
  0x52   : > { %v2927_v15 = vld [vmem:[%s12125_s12 + $0xa2] sm:$0xff]  ;;  %v2928_v17 = vld [vmem:[%s12125_s12 + $0xaa] sm:$0xff]  ;;  %v729_v18 = vld [vmem:[%s12125_s12 + $0x32] sm:$0xff] }
  0x53   : > { %10424 = vmatmul.mubr.msk.f32.gmra.mrb[12].mxu0 %vm329_vm1, %v324_v29  ;;  %v2929_v19 = vld [vmem:[%s12125_s12 + $0xb2] sm:$0xff]  ;;  %v730_v20 = vld [vmem:[%s12125_s12 + $0x3a] sm:$0xff]  ;;  %v731_v22 = vld [vmem:[%s12125_s12 + $0x42] sm:$0xff] }
  0x54   : > { %10658 = vmatmul.mubr.msk.f32.gmra.mrb[12].mxu1 %vm329_vm1, %v2534_v30  ;;  %10426 = vmatprep.mubr.msk.f32.mxu0 %vm329_vm1, %v325_v31  ;;  %v2930_v21 = vld [vmem:[%s12125_s12 + $0xba] sm:$0xff]  ;;  %v2931_v23 = vld [vmem:[%s12125_s12 + $0xc2] sm:$0xff]  ;;  %v732_v24 = vld [vmem:[%s12125_s12 + $0x4a] sm:$0xff] }
  0x55   : > { %10660 = vmatprep.mubr.msk.f32.mxu1 %vm329_vm1, %v2535_v32  ;;  %v2932_v25 = vld [vmem:[%s12125_s12 + $0xca] sm:$0xff]  ;;  %v733_v26 = vld [vmem:[%s12125_s12 + $0x52] sm:$0xff]  ;;  %v734_v28 = vld [vmem:[%s12125_s12 + $0x5a] sm:$0xff] }
  0x56   : > { %v2933_v27 = vld [vmem:[%s12125_s12 + $0xd2] sm:$0xff]  ;;  %v2934_v29 = vld [vmem:[%s12125_s12 + $0xda] sm:$0xff]  ;;  %v735_v30 = vld [vmem:[%s12125_s12 + $0x62] sm:$0xff] }
  0x57   : > { %10427 = vmatmul.mubr.msk.f32.gmra.mrb[14].mxu0 %vm329_vm1, %v326_v33  ;;  %v2935_v31 = vld [vmem:[%s12125_s12 + $0xe2] sm:$0xff]  ;;  %v736_v32 = vld [vmem:[%s12125_s12 + $0x6a] sm:$0xff] }
  0x58   : > { %10661 = vmatmul.mubr.msk.f32.gmra.mrb[14].mxu1 %vm329_vm1, %v2536_v34  ;;  %10431 = vmatprep.mubr.msk.f32.mxu0 %vm329_vm1, %v294_v35  ;;  %v2936_v33 = vld [vmem:[%s12125_s12 + $0xea] sm:$0xff]  ;;  %v737_v34 = vld [vmem:[%s12125_s12 + $0x72] sm:$0xff] }
  0x59   : > { %10665 = vmatprep.mubr.msk.f32.mxu1 %vm329_vm1, %v2505_v36  ;;  %v2937_v35 = vld [vmem:[%s12125_s12 + $0xf2] sm:$0xff]  ;;  %v738_v36 = vld [vmem:[%s12125_s12 + $0x7a] sm:$0xff] }
  0x5b   : > { %10432 = vmatmul.mubr.msk.f32.vlgmr.msra.gmra.mrb[0].mxu0 %vm329_vm1, %v295_v37  ;;  %v2938_v37 = vld [vmem:[%s12125_s12 + $0xfa] sm:$0xff] }
  0x5c   : > { %10666 = vmatmul.mubr.msk.f32.vlgmr.msra.gmra.mrb[0].mxu1 %vm329_vm1, %v2506_v38  ;;  %10456 = vmatpush3.msk.msra.mxu0 %vm378_vm0, %v9204_v16  ;;  %v9258_v38 = vld [vmem:[%s13950_s1 + $0x14] sm:$0xf] }
  0x5d   : > { %10434 = vmatprep.mubr.msk.f32.mxu0 %vm329_vm1, %v296_v39  ;;  %10668 = vmatprep.mubr.msk.f32.mxu1 %vm329_vm1, %v2507_v40  ;;  %v3162_v39 = vld [vmem:[%s12125_s12 + $0x102] sm:$0xff]  ;;  %v3163_v40 = vld [vmem:[%s12125_s12 + $0x10a] sm:$0xff] }
  0x5e   : > { %10690 = vmatpush3.msk.msra.mxu1 %vm378_vm0, %v9204_v16  ;;  %10481 = vmatprep.subr.msk.mxu0 %vm378_vm0, %v12232_v41  ;;  %v728_v16 = vld [vmem:[%s12125_s12 + $0x2a] sm:$0xff] }
  0x5f   : > { %10435 = vmatmul.mubr.msk.f32.gmra.mrb[2].mxu0 %vm329_vm1, %v297_v42  ;;  %10715 = vmatprep.subr.msk.mxu1 %vm378_vm0, %v12232_v41  ;;  %v3373_v42 = vld [vmem:[%s12125_s12 + $0x93] sm:$0xff] }
  0x60   : > { %10669 = vmatmul.mubr.msk.f32.gmra.mrb[2].mxu1 %vm329_vm1, %v2508_v43  ;;  %10437 = vmatprep.mubr.msk.f32.mxu0 %vm329_vm1, %v298_v44  ;;  %v1184_v43 = vld [vmem:[%s12125_s12 + $0x1b] sm:$0xff] }
  0x61   : > { %10671 = vmatprep.mubr.msk.f32.mxu1 %vm329_vm1, %v2509_v45  ;;  %v3374_v44 = vld [vmem:[%s12125_s12 + $0x9b] sm:$0xff]  ;;  %v1185_v45 = vld [vmem:[%s12125_s12 + $0x23] sm:$0xff] }
  0x63   : > { %10438 = vmatmul.mubr.msk.f32.gmra.mrb[4].mxu0 %vm329_vm1, %v299_v46  ;;  %v3375_v46 = vld [vmem:[%s12125_s12 + $0xa3] sm:$0xff] }
  0x64   : > { %10672 = vmatmul.mubr.msk.f32.gmra.mrb[4].mxu1 %vm329_vm1, %v2510_v47  ;;  %10440 = vmatprep.mubr.msk.f32.mxu0 %vm329_vm1, %v300_v48  ;;  %v12443_v47 = vld [vmem:[%s13950_s1 + $0x18] sm:$0xf] }
  0x65   : > { %10674 = vmatprep.mubr.msk.f32.mxu1 %vm329_vm1, %v2511_v49  ;;  %v1186_v48 = vld [vmem:[%s12125_s12 + $0x2b] sm:$0xff] }
  0x66   : > { %v3376_v49 = vld [vmem:[%s12125_s12 + $0xab] sm:$0xff] }
  0x67   : > { %10441 = vmatmul.mubr.msk.f32.gmra.mrb[6].mxu0 %vm329_vm1, %v301_v50  ;;  %v1187_v50 = vld [vmem:[%s12125_s12 + $0x33] sm:$0xff] }
  0x68   : > { %10675 = vmatmul.mubr.msk.f32.gmra.mrb[6].mxu1 %vm329_vm1, %v2512_v51  ;;  %10443 = vmatprep.mubr.msk.f32.mxu0 %vm329_vm1, %v302_v52  ;;  %v3377_v51 = vld [vmem:[%s12125_s12 + $0xb3] sm:$0xff]  ;;  %v1188_v52 = vld [vmem:[%s12125_s12 + $0x3b] sm:$0xff] }
  0x69   : > { %10677 = vmatprep.mubr.msk.f32.mxu1 %vm329_vm1, %v2513_v53  ;;  %v3378_v53 = vld [vmem:[%s12125_s12 + $0xbb] sm:$0xff] }
  0x6b   : > { %10444 = vmatmul.mubr.msk.f32.gmra.mrb[8].mxu0 %vm329_vm1, %v303_v54  ;;  %v1189_v54 = vld [vmem:[%s12125_s12 + $0x43] sm:$0xff] }
  0x6c   : > { %10678 = vmatmul.mubr.msk.f32.gmra.mrb[8].mxu1 %vm329_vm1, %v2514_v55  ;;  %10446 = vmatprep.mubr.msk.f32.mxu0 %vm329_vm1, %v304_v56  ;;  %v3379_v55 = vld [vmem:[%s12125_s12 + $0xc3] sm:$0xff]  ;;  %v1190_v56 = vld [vmem:[%s12125_s12 + $0x4b] sm:$0xff] }
  0x6d   : > { %10680 = vmatprep.mubr.msk.f32.mxu1 %vm329_vm1, %v2515_v57  ;;  %v3380_v57 = vld [vmem:[%s12125_s12 + $0xcb] sm:$0xff] }
  0x6f   : > { %10447 = vmatmul.mubr.msk.f32.gmra.mrb[10].mxu0 %vm329_vm1, %v305_v58  ;;  %v1191_v58 = vld [vmem:[%s12125_s12 + $0x53] sm:$0xff] }
  0x70   : > { %10681 = vmatmul.mubr.msk.f32.gmra.mrb[10].mxu1 %vm329_vm1, %v2516_v59  ;;  %10449 = vmatprep.mubr.msk.f32.mxu0 %vm329_vm1, %v306_v60  ;;  %v3381_v59 = vld [vmem:[%s12125_s12 + $0xd3] sm:$0xff]  ;;  %v1192_v60 = vld [vmem:[%s12125_s12 + $0x5b] sm:$0xff] }
  0x71   : > { %10683 = vmatprep.mubr.msk.f32.mxu1 %vm329_vm1, %v2517_v61  ;;  %v3382_v61 = vld [vmem:[%s12125_s12 + $0xdb] sm:$0xff] }
  0x73   : > { %10450 = vmatmul.mubr.msk.f32.gmra.mrb[12].mxu0 %vm329_vm1, %v307_v62  ;;  %v1193_v62 = vld [vmem:[%s12125_s12 + $0x63] sm:$0xff] }
  0x74   : > { %10684 = vmatmul.mubr.msk.f32.gmra.mrb[12].mxu1 %vm329_vm1, %v2518_v63  ;;  %10452 = vmatprep.mubr.msk.f32.mxu0 %vm329_vm1, %v308_v1  ;;  %v3383_v63 = vld [vmem:[%s12125_s12 + $0xe3] sm:$0xff]  ;;  %v1194_v1 = vld [vmem:[%s12125_s12 + $0x6b] sm:$0xff] }
  0x75   : > { %10686 = vmatprep.mubr.msk.f32.mxu1 %vm329_vm1, %v2519_v2  ;;  %v3384_v2 = vld [vmem:[%s12125_s12 + $0xeb] sm:$0xff] }
  0x77   : > { %10453 = vmatmul.mubr.msk.f32.gmra.mrb[14].mxu0 %vm329_vm1, %v309_v3  ;;  %v1195_v3 = vld [vmem:[%s12125_s12 + $0x73] sm:$0xff] }
  0x78   : > { %10687 = vmatmul.mubr.msk.f32.gmra.mrb[14].mxu1 %vm329_vm1, %v2520_v4  ;;  %10457 = vmatprep.mubr.msk.f32.mxu0 %vm329_vm1, %v723_v5  ;;  %v3385_v4 = vld [vmem:[%s12125_s12 + $0xf3] sm:$0xff]  ;;  %v1196_v5 = vld [vmem:[%s12125_s12 + $0x7b] sm:$0xff] }
  0x79   : > { %10691 = vmatprep.mubr.msk.f32.mxu1 %vm329_vm1, %v12295_v6 }
  0x7b   : > { %10458 = vmatmul.mubr.msk.f32.vlgmr.msra.gmra.mrb[0].mxu0 %vm329_vm1, %v724_v7  ;;  %v1197_v7 = vld [vmem:[%s12125_s12 + $0x83] sm:$0xff] }
  0x7c   : > { %10692 = vmatmul.mubr.msk.f32.vlgmr.msra.gmra.mrb[0].mxu1 %vm329_vm1, %v12304_v8  ;;  %10482 = vmatpush3.msk.msra.mxu0 %vm378_vm0, %v12232_v41 }
  0x7d   : > { %10460 = vmatprep.mubr.msk.f32.mxu0 %vm329_vm1, %v12307_v9  ;;  %10694 = vmatprep.mubr.msk.f32.mxu1 %vm329_vm1, %v12310_v10 }
  0x7e   : > { %10716 = vmatpush3.msk.msra.mxu1 %vm378_vm0, %v12232_v41  ;;  %10507 = vmatprep.subr.msk.mxu0 %vm378_vm0, %v12316_v11  ;;  %v1183_v41 = vld [vmem:[%s12125_s12 + $0x13] sm:$0xff] }
  0x7f   : > { %10461 = vmatmul.mubr.msk.f32.gmra.mrb[2].mxu0 %vm329_vm1, %v726_v12  ;;  %10741 = vmatprep.subr.msk.mxu1 %vm378_vm0, %v12316_v11 }
  0x80   : > { %10695 = vmatmul.mubr.msk.f32.gmra.mrb[2].mxu1 %vm329_vm1, %v2926_v13  ;;  %10463 = vmatprep.mubr.msk.f32.mxu0 %vm329_vm1, %v727_v14 }
  0x81   : > { %10697 = vmatprep.mubr.msk.f32.mxu1 %vm329_vm1, %v2927_v15 }
  0x83   : > { %10464 = vmatmul.mubr.msk.f32.gmra.mrb[4].mxu0 %vm329_vm1, %v728_v16 }
  0x84   : > { %10698 = vmatmul.mubr.msk.f32.gmra.mrb[4].mxu1 %vm329_vm1, %v2928_v17  ;;  %10466 = vmatprep.mubr.msk.f32.mxu0 %vm329_vm1, %v729_v18 }
  0x85   : > { %10700 = vmatprep.mubr.msk.f32.mxu1 %vm329_vm1, %v2929_v19 }
  0x87   : > { %10467 = vmatmul.mubr.msk.f32.gmra.mrb[6].mxu0 %vm329_vm1, %v730_v20 }
  0x88   : > { %10701 = vmatmul.mubr.msk.f32.gmra.mrb[6].mxu1 %vm329_vm1, %v2930_v21  ;;  %10469 = vmatprep.mubr.msk.f32.mxu0 %vm329_vm1, %v731_v22 }
  0x89   : > { %10703 = vmatprep.mubr.msk.f32.mxu1 %vm329_vm1, %v2931_v23 }
  0x8b   : > { %10470 = vmatmul.mubr.msk.f32.gmra.mrb[8].mxu0 %vm329_vm1, %v732_v24 }
  0x8c   : > { %10704 = vmatmul.mubr.msk.f32.gmra.mrb[8].mxu1 %vm329_vm1, %v2932_v25  ;;  %10472 = vmatprep.mubr.msk.f32.mxu0 %vm329_vm1, %v733_v26 }
  0x8d   : > { %10706 = vmatprep.mubr.msk.f32.mxu1 %vm329_vm1, %v2933_v27 }
  0x8f   : > { %10473 = vmatmul.mubr.msk.f32.gmra.mrb[10].mxu0 %vm329_vm1, %v734_v28 }
  0x90   : > { %10707 = vmatmul.mubr.msk.f32.gmra.mrb[10].mxu1 %vm329_vm1, %v2934_v29  ;;  %10475 = vmatprep.mubr.msk.f32.mxu0 %vm329_vm1, %v735_v30 }
  0x91   : > { %10709 = vmatprep.mubr.msk.f32.mxu1 %vm329_vm1, %v2935_v31 }
  0x93   : > { %10476 = vmatmul.mubr.msk.f32.gmra.mrb[12].mxu0 %vm329_vm1, %v736_v32 }
  0x94   : > { %10710 = vmatmul.mubr.msk.f32.gmra.mrb[12].mxu1 %vm329_vm1, %v2936_v33  ;;  %10478 = vmatprep.mubr.msk.f32.mxu0 %vm329_vm1, %v737_v34 }
  0x95   : > { %10712 = vmatprep.mubr.msk.f32.mxu1 %vm329_vm1, %v2937_v35 }
  0x97   : > { %10479 = vmatmul.mubr.msk.f32.gmra.mrb[14].mxu0 %vm329_vm1, %v738_v36 }
  0x98   : > { %10713 = vmatmul.mubr.msk.f32.gmra.mrb[14].mxu1 %vm329_vm1, %v2938_v37  ;;  %10483 = vmatprep.mubr.msk.f32.mxu0 %vm329_vm1, %v12307_v9  ;;  %v1198_v9 = vld [vmem:[%s12125_s12 + $0x8b] sm:$0xff] }
  0x99   : > { %10717 = vmatprep.mubr.msk.f32.mxu1 %vm329_vm1, %v12310_v10  ;;  %v3388_v10 = vld [vmem:[%s12125_s12 + $0x10b] sm:$0xff] }
  0x9b   : > { %10484 = vmatmul.mubr.msk.f32.vlgmr.msra.gmra.mrb[0].mxu0 %vm329_vm1, %v726_v12  ;;  %v12506_v12 = vld [vmem:[%s12125_s12 + $0x94] sm:$0xff] }
  0x9c   : > { %10718 = vmatmul.mubr.msk.f32.vlgmr.msra.gmra.mrb[0].mxu1 %vm329_vm1, %v2926_v13  ;;  %10508 = vmatpush3.msk.msra.mxu0 %vm378_vm0, %v12316_v11  ;;  %v1414_v13 = vld [vmem:[%s12125_s12 + $0x1c] sm:$0xff] }
  0x9d   : > { %10486 = vmatprep.mubr.msk.f32.mxu0 %vm329_vm1, %v727_v14  ;;  %10720 = vmatprep.mubr.msk.f32.mxu1 %vm329_vm1, %v2927_v15  ;;  %v12515_v14 = vld [vmem:[%s12125_s12 + $0x9c] sm:$0xff]  ;;  %v12518_v15 = vld [vmem:[%s12125_s12 + $0x24] sm:$0xff] }
  0x9e   : > { %10742 = vmatpush3.msk.msra.mxu1 %vm378_vm0, %v12316_v11  ;;  %10533 = vmatprep.subr.msk.mxu0 %vm378_vm0, %v9258_v38  ;;  %v1413_v11 = vld [vmem:[%s12125_s12 + $0x14] sm:$0xff] }
  0x9f   : > { %10487 = vmatmul.mubr.msk.f32.gmra.mrb[2].mxu0 %vm329_vm1, %v728_v16  ;;  %10767 = vmatprep.subr.msk.mxu1 %vm378_vm0, %v9258_v38  ;;  %v12521_v16 = vld [vmem:[%s12125_s12 + $0xa4] sm:$0xff] }
  0xa0   : > { %10721 = vmatmul.mubr.msk.f32.gmra.mrb[2].mxu1 %vm329_vm1, %v2928_v17  ;;  %10489 = vmatprep.mubr.msk.f32.mxu0 %vm329_vm1, %v729_v18  ;;  %v12527_v17 = vld [vmem:[%s13950_s1 + $0x1c] sm:$0xf]  ;;  %v12534_v18 = vld [vmem:[%s12125_s12 + $0x2c] sm:$0xff] }
  0xa1   : > { %10723 = vmatprep.mubr.msk.f32.mxu1 %vm329_vm1, %v2929_v19  ;;  %v12541_v19 = vld [vmem:[%s12125_s12 + $0xac] sm:$0xff] }
  0xa3   : > { %10490 = vmatmul.mubr.msk.f32.gmra.mrb[4].mxu0 %vm329_vm1, %v730_v20  ;;  %v12544_v20 = vld [vmem:[%s12125_s12 + $0x34] sm:$0xff] }
  0xa4   : > { %10724 = vmatmul.mubr.msk.f32.gmra.mrb[4].mxu1 %vm329_vm1, %v2930_v21  ;;  %10492 = vmatprep.mubr.msk.f32.mxu0 %vm329_vm1, %v731_v22  ;;  %v12549_v21 = vld [vmem:[%s12125_s12 + $0xb4] sm:$0xff]  ;;  %v12562_v22 = vld [vmem:[%s12125_s12 + $0x3c] sm:$0xff] }
  0xa5   : > { %10726 = vmatprep.mubr.msk.f32.mxu1 %vm329_vm1, %v2931_v23  ;;  %v12567_v23 = vld [vmem:[%s12125_s12 + $0xbc] sm:$0xff] }
  0xa7   : > { %10493 = vmatmul.mubr.msk.f32.gmra.mrb[6].mxu0 %vm329_vm1, %v732_v24  ;;  %v12570_v24 = vld [vmem:[%s12125_s12 + $0x44] sm:$0xff] }
  0xa8   : > { %10727 = vmatmul.mubr.msk.f32.gmra.mrb[6].mxu1 %vm329_vm1, %v2932_v25  ;;  %10495 = vmatprep.mubr.msk.f32.mxu0 %vm329_vm1, %v733_v26  ;;  %v12573_v25 = vld [vmem:[%s12125_s12 + $0xc4] sm:$0xff]  ;;  %v12582_v26 = vld [vmem:[%s12125_s12 + $0x4c] sm:$0xff] }
  0xa9   : > { %10729 = vmatprep.mubr.msk.f32.mxu1 %vm329_vm1, %v2933_v27  ;;  %v12587_v27 = vld [vmem:[%s12125_s12 + $0xcc] sm:$0xff] }
  0xab   : > { %10496 = vmatmul.mubr.msk.f32.gmra.mrb[8].mxu0 %vm329_vm1, %v734_v28  ;;  %v12590_v28 = vld [vmem:[%s12125_s12 + $0x54] sm:$0xff] }
  0xac   : > { %10730 = vmatmul.mubr.msk.f32.gmra.mrb[8].mxu1 %vm329_vm1, %v2934_v29  ;;  %10498 = vmatprep.mubr.msk.f32.mxu0 %vm329_vm1, %v735_v30  ;;  %v12593_v29 = vld [vmem:[%s12125_s12 + $0xd4] sm:$0xff]  ;;  %v12602_v30 = vld [vmem:[%s12125_s12 + $0x5c] sm:$0xff] }
  0xad   : > { %10732 = vmatprep.mubr.msk.f32.mxu1 %vm329_vm1, %v2935_v31  ;;  %v12608_v31 = vld [vmem:[%s12125_s12 + $0xdc] sm:$0xff] }
  0xaf   : > { %10499 = vmatmul.mubr.msk.f32.gmra.mrb[10].mxu0 %vm329_vm1, %v736_v32  ;;  %v12611_v32 = vld [vmem:[%s12125_s12 + $0x64] sm:$0xff] }
  0xb0   : > { %10733 = vmatmul.mubr.msk.f32.gmra.mrb[10].mxu1 %vm329_vm1, %v2936_v33  ;;  %10501 = vmatprep.mubr.msk.f32.mxu0 %vm329_vm1, %v737_v34  ;;  %v12614_v33 = vld [vmem:[%s12125_s12 + $0xe4] sm:$0xff]  ;;  %v12623_v34 = vld [vmem:[%s12125_s12 + $0x6c] sm:$0xff] }
  0xb1   : > { %10735 = vmatprep.mubr.msk.f32.mxu1 %vm329_vm1, %v2937_v35  ;;  %v12628_v35 = vld [vmem:[%s12125_s12 + $0xec] sm:$0xff] }
  0xb3   : > { %10502 = vmatmul.mubr.msk.f32.gmra.mrb[12].mxu0 %vm329_vm1, %v738_v36  ;;  %v12631_v36 = vld [vmem:[%s12125_s12 + $0x74] sm:$0xff] }
  0xb4   : > { %10736 = vmatmul.mubr.msk.f32.gmra.mrb[12].mxu1 %vm329_vm1, %v2938_v37  ;;  %10504 = vmatprep.mubr.msk.f32.mxu0 %vm329_vm1, %v12295_v6  ;;  %v3386_v6 = vld [vmem:[%s12125_s12 + $0xfb] sm:$0xff]  ;;  %v12008_v37 = vmov 0  }
  0xb5   : > { %10738 = vmatprep.mubr.msk.f32.mxu1 %vm329_vm1, %v3162_v39  ;;  %11913 = vset.pattern.permute.xlu1 %v12008_v37  ;;  %v2335_v39 = vld [vmem:[%s12639_s25 + $0x10] sm:$0xff] }
  0xb6   : > { %11912 = vset.pattern.permute.xlu0 %v12008_v37  ;;  %2361 = vperm.xlu1 %11913, %v2335_v39   ;;  %v4060_v37 = vld [vmem:[%s12125_s12 + $0x105] sm:$0xff] }
  0xb7   : > { %10505 = vmatmul.mubr.msk.f32.gmra.mrb[14].mxu0 %vm329_vm1, %v12304_v8  ;;  %v3387_v8 = vld [vmem:[%s12125_s12 + $0x103] sm:$0xff] }
  0xb8   : > { %10739 = vmatmul.mubr.msk.f32.gmra.mrb[14].mxu1 %vm329_vm1, %v3163_v40  ;;  %10509 = vmatprep.mubr.msk.f32.mxu0 %vm329_vm1, %v1183_v41  ;;  %v12649_v40 = vld [vmem:[%s12125_s12 + $0x7c] sm:$0xff] }
  0xb9   : > { %10743 = vmatprep.mubr.msk.f32.mxu1 %vm329_vm1, %v3373_v42  ;;  %v2333_v41 = vld [vmem:[%s12639_s25] sm:$0xff] }
  0xba   : > { %v12655_v42 = vld [vmem:[%s12125_s12 + $0xfc] sm:$0xff]  ;;  %2351 = vperm.xlu0 %11912, %v2333_v41   ;;  %v4061_v41 = vld [vmem:[%s12125_s12 + $0x10d] sm:$0xff] }
  0xbb   : > { %10510 = vmatmul.mubr.msk.f32.vlgmr.msra.gmra.mrb[0].mxu0 %vm329_vm1, %v1184_v43  ;;  %v12658_v43 = vld [vmem:[%s12125_s12 + $0x84] sm:$0xff] }
  0xbc   : > { %10744 = vmatmul.mubr.msk.f32.vlgmr.msra.gmra.mrb[0].mxu1 %vm329_vm1, %v3374_v44  ;;  %10534 = vmatpush3.msk.msra.mxu0 %vm378_vm0, %v9258_v38  ;;  %v12661_v44 = vld [vmem:[%s12125_s12 + $0x104] sm:$0xff] }
  0xbd   : > { %10512 = vmatprep.mubr.msk.f32.mxu0 %vm329_vm1, %v1185_v45  ;;  %10746 = vmatprep.mubr.msk.f32.mxu1 %vm329_vm1, %v3375_v46  ;;  %v2336_v45 = vld [vmem:[%s12639_s25 + $0x18] sm:$0xff]  ;;  %v4510_v39 = vld [vmem:[%s12639_s25 + $0xe0] sm:$0xff] }
  0xbe   : > { %10768 = vmatpush3.msk.msra.mxu1 %vm378_vm0, %v9258_v38  ;;  %10559 = vmatprep.subr.msk.mxu0 %vm378_vm0, %v12443_v47  ;;  %v12634_v38 = vld [vmem:[%s12125_s12 + $0xf4] sm:$0xff]  ;;  %v12671_v46 = vld [vmem:[%s12125_s12 + $0x8c] sm:$0xff] }
  0xbf   : > { %10513 = vmatmul.mubr.msk.f32.gmra.mrb[2].mxu0 %vm329_vm1, %v1186_v48  ;;  %10793 = vmatprep.subr.msk.mxu1 %vm378_vm0, %v12443_v47  ;;  %v12677_v48 = vld [vmem:[%s12125_s12 + $0x10c] sm:$0xff] }
  0xc0   : > { %10747 = vmatmul.mubr.msk.f32.gmra.mrb[2].mxu1 %vm329_vm1, %v3376_v49  ;;  %10515 = vmatprep.mubr.msk.f32.mxu0 %vm329_vm1, %v1187_v50  ;;  %v2338_v49 = vld [vmem:[%s12639_s25 + $0x28] sm:$0xff]  ;;  %v2337_v50 = vld [vmem:[%s12639_s25 + $0x20] sm:$0xff] }
  0xc1   : > { %10749 = vmatprep.mubr.msk.f32.mxu1 %vm329_vm1, %v3377_v51  ;;  %2366 = vperm.xlu1 %11913, %v2336_v45   ;;  %v12694_v51 = vld [vmem:[%s13950_s1 + $0x20] sm:$0xf]  ;;  %v4512_v45 = vld [vmem:[%s12639_s25 + $0xf0] sm:$0xff] }
  0xc3   : > { %10516 = vmatmul.mubr.msk.f32.gmra.mrb[4].mxu0 %vm329_vm1, %v1188_v52  ;;  %v2340_v52 = vld [vmem:[%s12639_s25 + $0x38] sm:$0xff] }
  0xc4   : > { %10750 = vmatmul.mubr.msk.f32.gmra.mrb[4].mxu1 %vm329_vm1, %v3378_v53  ;;  %10518 = vmatprep.mubr.msk.f32.mxu0 %vm329_vm1, %v1189_v54  ;;  %v2339_v53 = vld [vmem:[%s12639_s25 + $0x30] sm:$0xff]  ;;  %v2342_v54 = vld [vmem:[%s12639_s25 + $0x48] sm:$0xff] }
  0xc5   : > { %10752 = vmatprep.mubr.msk.f32.mxu1 %vm329_vm1, %v3379_v55  ;;  %2376 = vperm.xlu1 %11913, %v2338_v49   ;;  %v2341_v55 = vld [vmem:[%s12639_s25 + $0x40] sm:$0xff] }
  0xc6   : > { %v4273_v49 = vld [vmem:[%s12125_s12 + $0xa6] sm:$0xff] }
  0xc7   : > { %10519 = vmatmul.mubr.msk.f32.gmra.mrb[6].mxu0 %vm329_vm1, %v1190_v56  ;;  %v2344_v56 = vld [vmem:[%s12639_s25 + $0x58] sm:$0xff] }
  0xc8   : > { %10753 = vmatmul.mubr.msk.f32.gmra.mrb[6].mxu1 %vm329_vm1, %v3380_v57  ;;  %10521 = vmatprep.mubr.msk.f32.mxu0 %vm329_vm1, %v1191_v58  ;;  %v2343_v57 = vld [vmem:[%s12639_s25 + $0x50] sm:$0xff]  ;;  %v2346_v58 = vld [vmem:[%s12639_s25 + $0x68] sm:$0xff] }
  0xc9   : > { %10755 = vmatprep.mubr.msk.f32.mxu1 %vm329_vm1, %v3381_v59  ;;  %2386 = vperm.xlu1 %11913, %v2340_v52   ;;  %v2345_v59 = vld [vmem:[%s12639_s25 + $0x60] sm:$0xff] }
  0xca   : > { %v2105_v52 = vld [vmem:[%s12125_s12 + $0x36] sm:$0xff] }
  0xcb   : > { %10522 = vmatmul.mubr.msk.f32.gmra.mrb[8].mxu0 %vm329_vm1, %v1192_v60  ;;  %v2348_v60 = vld [vmem:[%s12639_s25 + $0x78] sm:$0xff] }
  0xcc   : > { %10756 = vmatmul.mubr.msk.f32.gmra.mrb[8].mxu1 %vm329_vm1, %v3382_v61  ;;  %10524 = vmatprep.mubr.msk.f32.mxu0 %vm329_vm1, %v1193_v62  ;;  %v2347_v61 = vld [vmem:[%s12639_s25 + $0x70] sm:$0xff] }
  0xcd   : > { %10758 = vmatprep.mubr.msk.f32.mxu1 %vm329_vm1, %v3383_v63  ;;  %2396 = vperm.xlu1 %11913, %v2342_v54   ;;  %v3837_v62 = vld [vmem:[%s12125_s12 + $0x114] sm:$0xff]  ;;  %v4499_v63 = vld [vmem:[%s12639_s25 + $0x88] sm:$0xff]  ;;  %v11914_v54 = vld [vmem:[%s13950_s1 + $0x4] sm:$0xf] }
  0xcf   : > { %10525 = vmatmul.mubr.msk.f32.gmra.mrb[10].mxu0 %vm329_vm1, %v1194_v1  ;;  %v4498_v1 = vld [vmem:[%s12639_s25 + $0x80] sm:$0xff] }
  0xd0   : > { %10759 = vmatmul.mubr.msk.f32.gmra.mrb[10].mxu1 %vm329_vm1, %v3384_v2  ;;  %10527 = vmatprep.mubr.msk.f32.mxu0 %vm329_vm1, %v1195_v3  ;;  %v3838_v2 = vld [vmem:[%s12125_s12 + $0x11c] sm:$0xff]  ;;  %v1873_v3 = vld [vmem:[%s12125_s12 + $0x25] sm:$0xff] }
  0xd1   : > { %10761 = vmatprep.mubr.msk.f32.mxu1 %vm329_vm1, %v3385_v4  ;;  %2406 = vperm.xlu1 %11913, %v2344_v56   ;;  %v4048_v4 = vld [vmem:[%s12125_s12 + $0xa5] sm:$0xff] }
  0xd2   : > { %v4276_v56 = vld [vmem:[%s12125_s12 + $0xbe] sm:$0xff] }
  0xd3   : > { %10528 = vmatmul.mubr.msk.f32.gmra.mrb[12].mxu0 %vm329_vm1, %v1196_v5  ;;  %v4501_v5 = vld [vmem:[%s12639_s25 + $0x98] sm:$0xff] }
  0xd4   : > { %10762 = vmatmul.mubr.msk.f32.gmra.mrb[12].mxu1 %vm329_vm1, %v3386_v6  ;;  %10530 = vmatprep.mubr.msk.f32.mxu0 %vm329_vm1, %v1197_v7  ;;  %v4500_v6 = vld [vmem:[%s12639_s25 + $0x90] sm:$0xff] }
  0xd5   : > { %10764 = vmatprep.mubr.msk.f32.mxu1 %vm329_vm1, %v3387_v8  ;;  %2416 = vperm.xlu1 %11913, %v2346_v58   ;;  %v1874_v7 = vld [vmem:[%s12125_s12 + $0x2d] sm:$0xff] }
  0xd6   : > { %v4049_v8 = vld [vmem:[%s12125_s12 + $0xad] sm:$0xff] }
  0xd7   : > { %10531 = vmatmul.mubr.msk.f32.gmra.mrb[14].mxu0 %vm329_vm1, %v1198_v9  ;;  %v1875_v9 = vld [vmem:[%s12125_s12 + $0x35] sm:$0xff]  ;;  %v4277_v58 = vld [vmem:[%s12125_s12 + $0xc6] sm:$0xff] }
  0xd8   : > { %10765 = vmatmul.mubr.msk.f32.gmra.mrb[14].mxu1 %vm329_vm1, %v3388_v10  ;;  %10535 = vmatprep.mubr.msk.f32.mxu0 %vm329_vm1, %v1413_v11  ;;  %v4050_v10 = vld [vmem:[%s12125_s12 + $0xb5] sm:$0xff]  ;;  %v1876_v11 = vld [vmem:[%s12125_s12 + $0x3d] sm:$0xff] }
  0xd9   : > { %10769 = vmatprep.mubr.msk.f32.mxu1 %vm329_vm1, %v12506_v12  ;;  %2426 = vperm.xlu1 %11913, %v2348_v60   ;;  %v2108_v60 = vld [vmem:[%s12125_s12 + $0x4e] sm:$0xff] }
  0xdb   : > { %10536 = vmatmul.mubr.msk.f32.vlgmr.msra.gmra.mrb[0].mxu0 %vm329_vm1, %v1414_v13  ;;  %v1877_v13 = vld [vmem:[%s12125_s12 + $0x45] sm:$0xff] }
  0xdc   : > { %10770 = vmatmul.mubr.msk.f32.vlgmr.msra.gmra.mrb[0].mxu1 %vm329_vm1, %v12515_v14  ;;  %10560 = vmatpush3.msk.msra.mxu0 %vm378_vm0, %v12443_v47 }
  0xdd   : > { %10538 = vmatprep.mubr.msk.f32.mxu0 %vm329_vm1, %v12518_v15  ;;  %10772 = vmatprep.mubr.msk.f32.mxu1 %vm329_vm1, %v12521_v16 }
  0xde   : > { %10794 = vmatpush3.msk.msra.mxu1 %vm378_vm0, %v12443_v47  ;;  %10585 = vmatprep.subr.msk.mxu0 %vm378_vm0, %v12527_v17  ;;  %v2334_v47 = vld [vmem:[%s12639_s25 + $0x8] sm:$0xff] }
  0xdf   : > { %10539 = vmatmul.mubr.msk.f32.gmra.mrb[2].mxu0 %vm329_vm1, %v12534_v18  ;;  %10819 = vmatprep.subr.msk.mxu1 %vm378_vm0, %v12527_v17 }
  0xe0   : > { %10773 = vmatmul.mubr.msk.f32.gmra.mrb[2].mxu1 %vm329_vm1, %v12541_v19  ;;  %10541 = vmatprep.mubr.msk.f32.mxu0 %vm329_vm1, %v12544_v20 }
  0xe1   : > { %10775 = vmatprep.mubr.msk.f32.mxu1 %vm329_vm1, %v12549_v21  ;;  %2356 = vperm.xlu0 %11912, %v2334_v47   ;;  %v4063_v47 = vld [vmem:[%s12125_s12 + $0x11d] sm:$0xff] }
  0xe2   : > { %4521 = vperm.xlu1 %11913, %v4499_v63   ;;  %v4279_v63 = vld [vmem:[%s12125_s12 + $0xd6] sm:$0xff] }
  0xe3   : > { %10542 = vmatmul.mubr.msk.f32.gmra.mrb[4].mxu0 %vm329_vm1, %v12562_v22 }
  0xe4   : > { %10776 = vmatmul.mubr.msk.f32.gmra.mrb[4].mxu1 %vm329_vm1, %v12567_v23  ;;  %10544 = vmatprep.mubr.msk.f32.mxu0 %vm329_vm1, %v12570_v24 }
  0xe5   : > { %10778 = vmatprep.mubr.msk.f32.mxu1 %vm329_vm1, %v12573_v25  ;;  %2371 = vperm.xlu0 %11912, %v2337_v50   ;;  %v2104_v50 = vld [vmem:[%s12125_s12 + $0x2e] sm:$0xff] }
  0xe6   : > { %4531 = vperm.xlu1 %11913, %v4501_v5   ;;  %v2112_v5 = vld [vmem:[%s12125_s12 + $0x6e] sm:$0xff] }
  0xe7   : > { %10545 = vmatmul.mubr.msk.f32.gmra.mrb[6].mxu0 %vm329_vm1, %v12582_v26 }
  0xe8   : > { %10779 = vmatmul.mubr.msk.f32.gmra.mrb[6].mxu1 %vm329_vm1, %v12587_v27  ;;  %10547 = vmatprep.mubr.msk.f32.mxu0 %vm329_vm1, %v12590_v28 }
  0xe9   : > { %10781 = vmatprep.mubr.msk.f32.mxu1 %vm329_vm1, %v12593_v29  ;;  %2381 = vperm.xlu0 %11912, %v2339_v53   ;;  %v4275_v53 = vld [vmem:[%s12125_s12 + $0xb6] sm:$0xff] }
  0xeb   : > { %10548 = vmatmul.mubr.msk.f32.gmra.mrb[8].mxu0 %vm329_vm1, %v12602_v30 }
  0xec   : > { %10782 = vmatmul.mubr.msk.f32.gmra.mrb[8].mxu1 %vm329_vm1, %v12608_v31  ;;  %10550 = vmatprep.mubr.msk.f32.mxu0 %vm329_vm1, %v12611_v32 }
  0xed   : > { %10784 = vmatprep.mubr.msk.f32.mxu1 %vm329_vm1, %v12614_v33  ;;  %2391 = vperm.xlu0 %11912, %v2341_v55   ;;  %v2106_v55 = vld [vmem:[%s12125_s12 + $0x3e] sm:$0xff] }
  0xef   : > { %10551 = vmatmul.mubr.msk.f32.gmra.mrb[10].mxu0 %vm329_vm1, %v12623_v34 }
  0xf0   : > { %10785 = vmatmul.mubr.msk.f32.gmra.mrb[10].mxu1 %vm329_vm1, %v12628_v35  ;;  %10553 = vmatprep.mubr.msk.f32.mxu0 %vm329_vm1, %v12631_v36 }
  0xf1   : > { %10787 = vmatprep.mubr.msk.f32.mxu1 %vm329_vm1, %v12634_v38  ;;  %2401 = vperm.xlu0 %11912, %v2343_v57   ;;  %v2107_v57 = vld [vmem:[%s12125_s12 + $0x46] sm:$0xff] }
  0xf3   : > { %10554 = vmatmul.mubr.msk.f32.gmra.mrb[12].mxu0 %vm329_vm1, %v12649_v40 }
  0xf4   : > { %10788 = vmatmul.mubr.msk.f32.gmra.mrb[12].mxu1 %vm329_vm1, %v12655_v42  ;;  %10556 = vmatprep.mubr.msk.f32.mxu0 %vm329_vm1, %v12658_v43 }
  0xf5   : > { %10790 = vmatprep.mubr.msk.f32.mxu1 %vm329_vm1, %v12661_v44  ;;  %2411 = vperm.xlu0 %11912, %v2345_v59   ;;  %v12884_v59 = vld [vmem:[%s13950_s1] sm:$0xf] }
  0xf7   : > { %10557 = vmatmul.mubr.msk.f32.gmra.mrb[14].mxu0 %vm329_vm1, %v12671_v46 }
  0xf8   : > { %10791 = vmatmul.mubr.msk.f32.gmra.mrb[14].mxu1 %vm329_vm1, %v12677_v48  ;;  %10561 = vmatprep.mubr.msk.f32.mxu0 %vm329_vm1, %v12518_v15  ;;  %v4503_v15 = vld [vmem:[%s12639_s25 + $0xa8] sm:$0xff] }
  0xf9   : > { %10795 = vmatprep.mubr.msk.f32.mxu1 %vm329_vm1, %v12521_v16  ;;  %2421 = vperm.xlu0 %11912, %v2347_v61   ;;  %v4502_v16 = vld [vmem:[%s12639_s25 + $0xa0] sm:$0xff]  ;;  %v4278_v61 = vld [vmem:[%s12125_s12 + $0xce] sm:$0xff] }
  0xfa   : > { %4541 = vperm.xlu1 %11913, %v4503_v15   ;;  %v2117_v15 = vld [vmem:[%s12125_s12 + $0x96] sm:$0xff] }
  0xfb   : > { %10562 = vmatmul.mubr.msk.f32.vlgmr.msra.gmra.mrb[0].mxu0 %vm329_vm1, %v12534_v18  ;;  %v4053_v18 = vld [vmem:[%s12125_s12 + $0xcd] sm:$0xff] }
  0xfc   : > { %10796 = vmatmul.mubr.msk.f32.vlgmr.msra.gmra.mrb[0].mxu1 %vm329_vm1, %v12541_v19  ;;  %10586 = vmatpush3.msk.msra.mxu0 %vm378_vm0, %v12527_v17  ;;  %v1879_v19 = vld [vmem:[%s12125_s12 + $0x55] sm:$0xff] }
  0xfd   : > { %10564 = vmatprep.mubr.msk.f32.mxu0 %vm329_vm1, %v12544_v20  ;;  %10798 = vmatprep.mubr.msk.f32.mxu1 %vm329_vm1, %v12549_v21  ;;  %v4054_v20 = vld [vmem:[%s12125_s12 + $0xd5] sm:$0xff] }
  0xfe   : > { %10820 = vmatpush3.msk.msra.mxu1 %vm378_vm0, %v12527_v17  ;;  %10611 = vmatprep.subr.msk.mxu0 %vm378_vm0, %v12694_v51  ;;  %v1878_v17 = vld [vmem:[%s12125_s12 + $0x4d] sm:$0xff] }
  0xff   : > { %10565 = vmatmul.mubr.msk.f32.gmra.mrb[2].mxu0 %vm329_vm1, %v12562_v22  ;;  %10845 = vmatprep.subr.msk.mxu1 %vm378_vm0, %v12694_v51  ;;  %v4504_v21 = vld [vmem:[%s12639_s25 + $0xb0] sm:$0xff]  ;;  %v1880_v22 = vld [vmem:[%s12125_s12 + $0x5d] sm:$0xff] }
 0x100   : > { %10799 = vmatmul.mubr.msk.f32.gmra.mrb[2].mxu1 %vm329_vm1, %v12567_v23  ;;  %10567 = vmatprep.mubr.msk.f32.mxu0 %vm329_vm1, %v12570_v24  ;;  %v4055_v23 = vld [vmem:[%s12125_s12 + $0xdd] sm:$0xff]  ;;  %v1881_v24 = vld [vmem:[%s12125_s12 + $0x65] sm:$0xff] }
 0x101   : > { %10801 = vmatprep.mubr.msk.f32.mxu1 %vm329_vm1, %v12573_v25  ;;  %4516 = vperm.xlu0 %11912, %v4498_v1   ;;  %v4056_v25 = vld [vmem:[%s12125_s12 + $0xe5] sm:$0xff] }
 0x102   : > { %v2110_v1 = vld [vmem:[%s12125_s12 + $0x5e] sm:$0xff] }
 0x103   : > { %10568 = vmatmul.mubr.msk.f32.gmra.mrb[4].mxu0 %vm329_vm1, %v12582_v26  ;;  %v4507_v26 = vld [vmem:[%s12639_s25 + $0xc8] sm:$0xff] }
 0x104   : > { %10802 = vmatmul.mubr.msk.f32.gmra.mrb[4].mxu1 %vm329_vm1, %v12587_v27  ;;  %10570 = vmatprep.mubr.msk.f32.mxu0 %vm329_vm1, %v12590_v28  ;;  %v4506_v27 = vld [vmem:[%s12639_s25 + $0xc0] sm:$0xff]  ;;  %v1882_v28 = vld [vmem:[%s12125_s12 + $0x6d] sm:$0xff] }
 0x105   : > { %10804 = vmatprep.mubr.msk.f32.mxu1 %vm329_vm1, %v12593_v29  ;;  %4526 = vperm.xlu0 %11912, %v4500_v6   ;;  %v4057_v29 = vld [vmem:[%s12125_s12 + $0xed] sm:$0xff] }
 0x106   : > { %v4282_v6 = vld [vmem:[%s12125_s12 + $0xee] sm:$0xff] }
 0x107   : > { %10571 = vmatmul.mubr.msk.f32.gmra.mrb[6].mxu0 %vm329_vm1, %v12602_v30  ;;  %v1883_v30 = vld [vmem:[%s12125_s12 + $0x75] sm:$0xff] }
 0x108   : > { %10805 = vmatmul.mubr.msk.f32.gmra.mrb[6].mxu1 %vm329_vm1, %v12608_v31  ;;  %10573 = vmatprep.mubr.msk.f32.mxu0 %vm329_vm1, %v12611_v32  ;;  %v4058_v31 = vld [vmem:[%s12125_s12 + $0xf5] sm:$0xff] }
 0x109   : > { %10807 = vmatprep.mubr.msk.f32.mxu1 %vm329_vm1, %v12614_v33  ;;  %4536 = vperm.xlu0 %11912, %v4502_v16   ;;  %v4509_v32 = vld [vmem:[%s12639_s25 + $0xd8] sm:$0xff]  ;;  %v4508_v33 = vld [vmem:[%s12639_s25 + $0xd0] sm:$0xff] }
 0x10a   : > { %v4287_v16 = vld [vmem:[%s12125_s12 + $0x116] sm:$0xff] }
 0x10b   : > { %10574 = vmatmul.mubr.msk.f32.gmra.mrb[8].mxu0 %vm329_vm1, %v12623_v34  ;;  %v1884_v34 = vld [vmem:[%s12125_s12 + $0x7d] sm:$0xff] }
 0x10c   : > { %10808 = vmatmul.mubr.msk.f32.gmra.mrb[8].mxu1 %vm329_vm1, %v12628_v35  ;;  %10576 = vmatprep.mubr.msk.f32.mxu0 %vm329_vm1, %v12631_v36  ;;  %v4059_v35 = vld [vmem:[%s12125_s12 + $0xfd] sm:$0xff]  ;;  %v1885_v36 = vld [vmem:[%s12125_s12 + $0x85] sm:$0xff] }
 0x10d   : > { %10810 = vmatprep.mubr.msk.f32.mxu1 %vm329_vm1, %v12634_v38  ;;  %4546 = vperm.xlu0 %11912, %v4504_v21   ;;  %v4511_v38 = vld [vmem:[%s12639_s25 + $0xe8] sm:$0xff] }
 0x10e   : > { %v6852_v21 = vld [vmem:[%s12125_s12 + $0x189] sm:$0xff] }
 0x10f   : > { %10577 = vmatmul.mubr.msk.f32.gmra.mrb[10].mxu0 %vm329_vm1, %v12649_v40  ;;  %v1886_v40 = vld [vmem:[%s12125_s12 + $0x8d] sm:$0xff] }
 0x110   : > { %10811 = vmatmul.mubr.msk.f32.gmra.mrb[10].mxu1 %vm329_vm1, %v12655_v42  ;;  %10579 = vmatprep.mubr.msk.f32.mxu0 %vm329_vm1, %v12658_v43  ;;  %v1887_v42 = vld [vmem:[%s12125_s12 + $0x95] sm:$0xff] }
 0x111   : > { %10813 = vmatprep.mubr.msk.f32.mxu1 %vm329_vm1, %v12661_v44  ;;  %4556 = vperm.xlu0 %11912, %v4506_v27   ;;  %v4062_v43 = vld [vmem:[%s12125_s12 + $0x115] sm:$0xff]  ;;  %v6855_v27 = vld [vmem:[%s12125_s12 + $0x1a1] sm:$0xff] }
 0x112   : > { %v4513_v44 = vld [vmem:[%s12639_s25 + $0xf8] sm:$0xff] }
 0x113   : > { %10580 = vmatmul.mubr.msk.f32.gmra.mrb[12].mxu0 %vm329_vm1, %v12671_v46  ;;  %v1888_v46 = vld [vmem:[%s12125_s12 + $0x9d] sm:$0xff] }
 0x114   : > { %10814 = vmatmul.mubr.msk.f32.gmra.mrb[12].mxu1 %vm329_vm1, %v12677_v48  ;;  %10582 = vmatprep.mubr.msk.f32.mxu0 %vm329_vm1, %v12506_v12  ;;  %v4051_v12 = vld [vmem:[%s12125_s12 + $0xbd] sm:$0xff]  ;;  %v2103_v48 = vld [vmem:[%s12125_s12 + $0x26] sm:$0xff] }
 0x115   : > { %10816 = vmatprep.mubr.msk.f32.mxu1 %vm329_vm1, %v3837_v62  ;;  %4566 = vperm.xlu0 %11912, %v4508_v33   ;;  %v2109_v62 = vld [vmem:[%s12125_s12 + $0x56] sm:$0xff] }
 0x116   : > { %v4693_v33 = vld [vmem:[%s12125_s12 + $0x139] sm:$0xff] }
 0x117   : > { %10583 = vmatmul.mubr.msk.f32.gmra.mrb[14].mxu0 %vm329_vm1, %v12515_v14  ;;  %v4052_v14 = vld [vmem:[%s12125_s12 + $0xc5] sm:$0xff] }
 0x118   : > { %10817 = vmatmul.mubr.msk.f32.gmra.mrb[14].mxu1 %vm329_vm1, %v3838_v2  ;;  %10587 = vmatprep.mubr.msk.f32.mxu0 %vm329_vm1, %v1873_v3  ;;  %v4280_v2 = vld [vmem:[%s12125_s12 + $0xde] sm:$0xff]  ;;  %v2111_v3 = vld [vmem:[%s12125_s12 + $0x66] sm:$0xff] }
 0x119   : > { %10821 = vmatprep.mubr.msk.f32.mxu1 %vm329_vm1, %v4048_v4  ;;  %4576 = vperm.xlu0 %11912, %v4510_v39   ;;  %v4281_v4 = vld [vmem:[%s12125_s12 + $0xe6] sm:$0xff]  ;;  %v4696_v39 = vld [vmem:[%s12125_s12 + $0x151] sm:$0xff] }
 0x11b   : > { %10588 = vmatmul.mubr.msk.f32.vlgmr.msra.gmra.mrb[0].mxu0 %vm329_vm1, %v1874_v7  ;;  %v2113_v7 = vld [vmem:[%s12125_s12 + $0x76] sm:$0xff] }
 0x11c   : > { %10822 = vmatmul.mubr.msk.f32.vlgmr.msra.gmra.mrb[0].mxu1 %vm329_vm1, %v4049_v8  ;;  %10612 = vmatpush3.msk.msra.mxu0 %vm378_vm0, %v12694_v51  ;;  %v4283_v8 = vld [vmem:[%s12125_s12 + $0xf6] sm:$0xff] }
 0x11d   : > { %10590 = vmatprep.mubr.msk.f32.mxu0 %vm329_vm1, %v1875_v9  ;;  %10824 = vmatprep.mubr.msk.f32.mxu1 %vm329_vm1, %v4050_v10  ;;  %v2114_v9 = vld [vmem:[%s12125_s12 + $0x7e] sm:$0xff] }
 0x11e   : > { %10846 = vmatpush3.msk.msra.mxu1 %vm378_vm0, %v12694_v51  ;;  %10871 = vmatprep.subr.msk.mxu0 %vm378_vm0, %v12134_v0  ;;  %v4274_v51 = vld [vmem:[%s12125_s12 + $0xae] sm:$0xff]  ;;  %v4284_v10 = vld [vmem:[%s12125_s12 + $0xfe] sm:$0xff] }
 0x11f   : > { %10591 = vmatmul.mubr.msk.f32.gmra.mrb[2].mxu0 %vm329_vm1, %v1876_v11  ;;  %11105 = vmatprep.subr.msk.mxu1 %vm378_vm0, %v12134_v0  ;;  %v4505_v0 = vld [vmem:[%s12639_s25 + $0xb8] sm:$0xff]  ;;  %v2115_v11 = vld [vmem:[%s12125_s12 + $0x86] sm:$0xff] }
 0x120   : > { %10825 = vmatmul.mubr.msk.f32.gmra.mrb[2].mxu1 %vm329_vm1, %v4051_v12  ;;  %10593 = vmatprep.mubr.msk.f32.mxu0 %vm329_vm1, %v1877_v13  ;;  %v4285_v12 = vld [vmem:[%s12125_s12 + $0x106] sm:$0xff]  ;;  %v2116_v13 = vld [vmem:[%s12125_s12 + $0x8e] sm:$0xff] }
 0x121   : > { %10827 = vmatprep.mubr.msk.f32.mxu1 %vm329_vm1, %v4052_v14  ;;  %4551 = vperm.xlu1 %11913, %v4505_v0   ;;  %v4286_v14 = vld [vmem:[%s12125_s12 + $0x10e] sm:$0xff] }
 0x122   : > { %4586 = vperm.xlu0 %11912, %v4512_v45   ;;  %v4687_v0 = vld [vmem:[%s12125_s12 + $0x109] sm:$0xff] }
 0x123   : > { %10594 = vmatmul.mubr.msk.f32.gmra.mrb[4].mxu0 %vm329_vm1, %v1878_v17  ;;  %v2118_v17 = vld [vmem:[%s12125_s12 + $0x9e] sm:$0xff]  ;;  %v4699_v45 = vld [vmem:[%s12125_s12 + $0x169] sm:$0xff] }
 0x124   : > { %10828 = vmatmul.mubr.msk.f32.gmra.mrb[4].mxu1 %vm329_vm1, %v4053_v18  ;;  %10596 = vmatprep.mubr.msk.f32.mxu0 %vm329_vm1, %v1879_v19  ;;  %v4288_v18 = vld [vmem:[%s12125_s12 + $0x11e] sm:$0xff] }
 0x125   : > { %10830 = vmatprep.mubr.msk.f32.mxu1 %vm329_vm1, %v4054_v20  ;;  %4561 = vperm.xlu1 %11913, %v4507_v26   ;;  %v4686_v19 = vld [vmem:[%s12125_s12 + $0x101] sm:$0xff] }
 0x126   : > { %v6851_v20 = vld [vmem:[%s12125_s12 + $0x181] sm:$0xff] }
 0x127   : > { %10597 = vmatmul.mubr.msk.f32.gmra.mrb[6].mxu0 %vm329_vm1, %v1880_v22  ;;  %v4688_v22 = vld [vmem:[%s12125_s12 + $0x111] sm:$0xff]  ;;  %v4690_v26 = vld [vmem:[%s12125_s12 + $0x121] sm:$0xff] }
 0x128   : > { %10831 = vmatmul.mubr.msk.f32.gmra.mrb[6].mxu1 %vm329_vm1, %v4055_v23  ;;  %10599 = vmatprep.mubr.msk.f32.mxu0 %vm329_vm1, %v1881_v24  ;;  %v6853_v23 = vld [vmem:[%s12125_s12 + $0x191] sm:$0xff]  ;;  %v4689_v24 = vld [vmem:[%s12125_s12 + $0x119] sm:$0xff] }
 0x129   : > { %10833 = vmatprep.mubr.msk.f32.mxu1 %vm329_vm1, %v4056_v25  ;;  %4571 = vperm.xlu1 %11913, %v4509_v32   ;;  %v6854_v25 = vld [vmem:[%s12125_s12 + $0x199] sm:$0xff]  ;;  %v6857_v32 = vld [vmem:[%s12125_s12 + $0x1b1] sm:$0xff] }
 0x12b   : > { %10600 = vmatmul.mubr.msk.f32.gmra.mrb[8].mxu0 %vm329_vm1, %v1882_v28  ;;  %v12961_v28 = vld [vmem:[%s13950_s1 + $0x8] sm:$0xf] }
 0x12c   : > { %10834 = vmatmul.mubr.msk.f32.gmra.mrb[8].mxu1 %vm329_vm1, %v4057_v29  ;;  %10602 = vmatprep.mubr.msk.f32.mxu0 %vm329_vm1, %v1883_v30  ;;  %v4691_v29 = vld [vmem:[%s12125_s12 + $0x129] sm:$0xff] }
 0x12d   : > { %10836 = vmatprep.mubr.msk.f32.mxu1 %vm329_vm1, %v4058_v31  ;;  %4581 = vperm.xlu1 %11913, %v4511_v38   ;;  %v6856_v30 = vld [vmem:[%s12125_s12 + $0x1a9] sm:$0xff]  ;;  %v4692_v31 = vld [vmem:[%s12125_s12 + $0x131] sm:$0xff] }
 0x12e   : > { %v6860_v38 = vld [vmem:[%s12125_s12 + $0x1c9] sm:$0xff] }
 0x12f   : > { %10603 = vmatmul.mubr.msk.f32.gmra.mrb[10].mxu0 %vm329_vm1, %v1884_v34  ;;  %v6858_v34 = vld [vmem:[%s12125_s12 + $0x1b9] sm:$0xff] }
 0x130   : > { %10837 = vmatmul.mubr.msk.f32.gmra.mrb[10].mxu1 %vm329_vm1, %v4059_v35  ;;  %10605 = vmatprep.mubr.msk.f32.mxu0 %vm329_vm1, %v1885_v36  ;;  %v4694_v35 = vld [vmem:[%s12125_s12 + $0x141] sm:$0xff] }
 0x131   : > { %10839 = vmatprep.mubr.msk.f32.mxu1 %vm329_vm1, %v4060_v37  ;;  %4591 = vperm.xlu1 %11913, %v4513_v44   ;;  %v6859_v36 = vld [vmem:[%s12125_s12 + $0x1c1] sm:$0xff]  ;;  %v4695_v37 = vld [vmem:[%s12125_s12 + $0x149] sm:$0xff] }
 0x132   : > { %v6863_v44 = vld [vmem:[%s12125_s12 + $0x1e1] sm:$0xff] }
 0x133   : > { %10606 = vmatmul.mubr.msk.f32.gmra.mrb[12].mxu0 %vm329_vm1, %v1886_v40  ;;  %v6861_v40 = vld [vmem:[%s12125_s12 + $0x1d1] sm:$0xff] }
 0x134   : > { %10840 = vmatmul.mubr.msk.f32.gmra.mrb[12].mxu1 %vm329_vm1, %v4061_v41  ;;  %10608 = vmatprep.mubr.msk.f32.mxu0 %vm329_vm1, %v1887_v42  ;;  %v4697_v41 = vld [vmem:[%s12125_s12 + $0x159] sm:$0xff] }
 0x135   : > { %10842 = vmatprep.mubr.msk.f32.mxu1 %vm329_vm1, %v4062_v43  ;;  %v6862_v42 = vld [vmem:[%s12125_s12 + $0x1d9] sm:$0xff]  ;;  %v4698_v43 = vld [vmem:[%s12125_s12 + $0x161] sm:$0xff] }
 0x137   : > { %10609 = vmatmul.mubr.msk.f32.gmra.mrb[14].mxu0 %vm329_vm1, %v1888_v46  ;;  %v6864_v46 = vld [vmem:[%s12125_s12 + $0x1e9] sm:$0xff] }
 0x138   : > { %10843 = vmatmul.mubr.msk.f32.gmra.mrb[14].mxu1 %vm329_vm1, %v4063_v47  ;;  %10613 = vmatprep.mubr.msk.f32.mxu0 %vm329_vm1, %v2103_v48  ;;  %v4700_v47 = vld [vmem:[%s12125_s12 + $0x171] sm:$0xff] }
 0x139   : > { %10847 = vmatprep.mubr.msk.f32.mxu1 %vm329_vm1, %v4273_v49  ;;  %v6865_v48 = vld [vmem:[%s12125_s12 + $0x1f1] sm:$0xff]  ;;  %v4701_v49 = vld [vmem:[%s12125_s12 + $0x179] sm:$0xff] }
 0x13b   : > { %10614 = vmatmul.mubr.msk.f32.vlgmr.msra.gmra.mrb[0].mxu0 %vm329_vm1, %v2104_v50  ;;  %v6866_v50 = vld [vmem:[%s12125_s12 + $0x1f9] sm:$0xff] }
 0x13c   : > { %10848 = vmatmul.mubr.msk.f32.vlgmr.msra.gmra.mrb[0].mxu1 %vm329_vm1, %v4274_v51  ;;  %10872 = vmatpush3.msk.msra.mxu0 %vm378_vm0, %v11914_v54  ;;  %v4670_v51 = vld [vmem:[%s12125_s12 + $0x100] sm:$0xff] }
 0x13d   : > { %10616 = vmatprep.mubr.msk.f32.mxu0 %vm329_vm1, %v2105_v52  ;;  %10850 = vmatprep.mubr.msk.f32.mxu1 %vm329_vm1, %v4275_v53  ;;  %v6835_v52 = vld [vmem:[%s12125_s12 + $0x180] sm:$0xff]  ;;  %v4671_v53 = vld [vmem:[%s12125_s12 + $0x108] sm:$0xff] }
 0x13e   : > { %11106 = vmatpush3.msk.msra.mxu1 %vm378_vm0, %v11914_v54  ;;  %10897 = vmatprep.subr.msk.mxu0 %vm378_vm0, %v12884_v59  ;;  %v6836_v54 = vld [vmem:[%s12125_s12 + $0x188] sm:$0xff] }
 0x13f   : > { %10617 = vmatmul.mubr.msk.f32.gmra.mrb[2].mxu0 %vm329_vm1, %v2106_v55  ;;  %11131 = vmatprep.subr.msk.mxu1 %vm378_vm0, %v12884_v59  ;;  %v4672_v55 = vld [vmem:[%s12125_s12 + $0x110] sm:$0xff] }
 0x140   : > { %10851 = vmatmul.mubr.msk.f32.gmra.mrb[2].mxu1 %vm329_vm1, %v4276_v56  ;;  %10619 = vmatprep.mubr.msk.f32.mxu0 %vm329_vm1, %v2107_v57  ;;  %v6837_v56 = vld [vmem:[%s12125_s12 + $0x190] sm:$0xff]  ;;  %v4673_v57 = vld [vmem:[%s12125_s12 + $0x118] sm:$0xff] }
 0x141   : > { %10853 = vmatprep.mubr.msk.f32.mxu1 %vm329_vm1, %v4277_v58  ;;  %v6838_v58 = vld [vmem:[%s12125_s12 + $0x198] sm:$0xff] }
 0x143   : > { %10620 = vmatmul.mubr.msk.f32.gmra.mrb[4].mxu0 %vm329_vm1, %v2108_v60  ;;  %v6839_v60 = vld [vmem:[%s12125_s12 + $0x1a0] sm:$0xff] }
 0x144   : > { %10854 = vmatmul.mubr.msk.f32.gmra.mrb[4].mxu1 %vm329_vm1, %v4278_v61  ;;  %10622 = vmatprep.mubr.msk.f32.mxu0 %vm329_vm1, %v2109_v62  ;;  %v13038_v61 = vld [vmem:[%s13950_s1 + $0xc] sm:$0xf] }
 0x145   : > { %10856 = vmatprep.mubr.msk.f32.mxu1 %vm329_vm1, %v4279_v63  ;;  %v4675_v62 = vld [vmem:[%s12125_s12 + $0x128] sm:$0xff] }
 0x146   : > { %v6840_v63 = vld [vmem:[%s12125_s12 + $0x1a8] sm:$0xff] }
 0x147   : > { %10623 = vmatmul.mubr.msk.f32.gmra.mrb[6].mxu0 %vm329_vm1, %v2110_v1  ;;  %v4676_v1 = vld [vmem:[%s12125_s12 + $0x130] sm:$0xff] }
 0x148   : > { %10857 = vmatmul.mubr.msk.f32.gmra.mrb[6].mxu1 %vm329_vm1, %v4280_v2  ;;  %10625 = vmatprep.mubr.msk.f32.mxu0 %vm329_vm1, %v2111_v3  ;;  %v6841_v2 = vld [vmem:[%s12125_s12 + $0x1b0] sm:$0xff]  ;;  %v4677_v3 = vld [vmem:[%s12125_s12 + $0x138] sm:$0xff] }
 0x149   : > { %10859 = vmatprep.mubr.msk.f32.mxu1 %vm329_vm1, %v4281_v4  ;;  %v6842_v4 = vld [vmem:[%s12125_s12 + $0x1b8] sm:$0xff] }
 0x14b   : > { %10626 = vmatmul.mubr.msk.f32.gmra.mrb[8].mxu0 %vm329_vm1, %v2112_v5  ;;  %v4678_v5 = vld [vmem:[%s12125_s12 + $0x140] sm:$0xff] }
 0x14c   : > { %10860 = vmatmul.mubr.msk.f32.gmra.mrb[8].mxu1 %vm329_vm1, %v4282_v6  ;;  %10628 = vmatprep.mubr.msk.f32.mxu0 %vm329_vm1, %v2113_v7  ;;  %v6843_v6 = vld [vmem:[%s12125_s12 + $0x1c0] sm:$0xff]  ;;  %v4679_v7 = vld [vmem:[%s12125_s12 + $0x148] sm:$0xff] }
 0x14d   : > { %10862 = vmatprep.mubr.msk.f32.mxu1 %vm329_vm1, %v4283_v8  ;;  %v6844_v8 = vld [vmem:[%s12125_s12 + $0x1c8] sm:$0xff] }
 0x14f   : > { %10629 = vmatmul.mubr.msk.f32.gmra.mrb[10].mxu0 %vm329_vm1, %v2114_v9  ;;  %v4680_v9 = vld [vmem:[%s12125_s12 + $0x150] sm:$0xff] }
 0x150   : > { %10863 = vmatmul.mubr.msk.f32.gmra.mrb[10].mxu1 %vm329_vm1, %v4284_v10  ;;  %10631 = vmatprep.mubr.msk.f32.mxu0 %vm329_vm1, %v2115_v11  ;;  %v6845_v10 = vld [vmem:[%s12125_s12 + $0x1d0] sm:$0xff]  ;;  %v4681_v11 = vld [vmem:[%s12125_s12 + $0x158] sm:$0xff] }
 0x151   : > { %10865 = vmatprep.mubr.msk.f32.mxu1 %vm329_vm1, %v4285_v12  ;;  %v6846_v12 = vld [vmem:[%s12125_s12 + $0x1d8] sm:$0xff] }
 0x153   : > { %10632 = vmatmul.mubr.msk.f32.gmra.mrb[12].mxu0 %vm329_vm1, %v2116_v13  ;;  %v4682_v13 = vld [vmem:[%s12125_s12 + $0x160] sm:$0xff] }
 0x154   : > { %10866 = vmatmul.mubr.msk.f32.gmra.mrb[12].mxu1 %vm329_vm1, %v4286_v14  ;;  %10634 = vmatprep.mubr.msk.f32.mxu0 %vm329_vm1, %v2117_v15  ;;  %v6847_v14 = vld [vmem:[%s12125_s12 + $0x1e0] sm:$0xff]  ;;  %v4683_v15 = vld [vmem:[%s12125_s12 + $0x168] sm:$0xff] }
 0x155   : > { %10868 = vmatprep.mubr.msk.f32.mxu1 %vm329_vm1, %v4287_v16  ;;  %v6848_v16 = vld [vmem:[%s12125_s12 + $0x1e8] sm:$0xff] }
 0x157   : > { %10635 = vmatmul.mubr.msk.f32.gmra.mrb[14].mxu0 %vm329_vm1, %v2118_v17  ;;  %v4684_v17 = vld [vmem:[%s12125_s12 + $0x170] sm:$0xff] }
 0x158   : > { %10869 = vmatmul.mubr.msk.f32.gmra.mrb[14].mxu1 %vm329_vm1, %v4288_v18  ;;  %10873 = vmatprep.mubr.msk.f32.mxu0 %vm329_vm1, %v4686_v19  ;;  %v6849_v18 = vld [vmem:[%s12125_s12 + $0x1f0] sm:$0xff]  ;;  %v4685_v19 = vld [vmem:[%s12125_s12 + $0x178] sm:$0xff] }
 0x159   : > { %11107 = vmatprep.mubr.msk.f32.mxu1 %vm329_vm1, %v6851_v20  ;;  %v6850_v20 = vld [vmem:[%s12125_s12 + $0x1f8] sm:$0xff] }
 0x15b   : > { %10874 = vmatmul.mubr.msk.f32.vlgmr.msra.gmra.mrb[16].mxu0 %vm329_vm1, %v4687_v0  ;;  %v5088_v0 = vld [vmem:[%s12125_s12 + $0x102] sm:$0xff] }
 0x15c   : > { %11108 = vmatmul.mubr.msk.f32.vlgmr.msra.gmra.mrb[16].mxu1 %vm329_vm1, %v6852_v21  ;;  %10898 = vmatpush3.msk.msra.mxu0 %vm378_vm0, %v12884_v59  ;;  %v13092_v21 = vld [vmem:[%s12125_s12 + $0x182] sm:$0xff] }
 0x15d   : > { %10876 = vmatprep.mubr.msk.f32.mxu0 %vm329_vm1, %v4688_v22  ;;  %11110 = vmatprep.mubr.msk.f32.mxu1 %vm329_vm1, %v6853_v23  ;;  %v6663_v22 = vld [vmem:[%s12639_s25 + $0x100] sm:$0xff]  ;;  %v5089_v23 = vld [vmem:[%s12125_s12 + $0x10a] sm:$0xff] }
 0x15e   : > { %11132 = vmatpush3.msk.msra.mxu1 %vm378_vm0, %v12884_v59  ;;  %10923 = vmatprep.subr.msk.mxu0 %vm378_vm0, %v12961_v28  ;;  %v4674_v59 = vld [vmem:[%s12125_s12 + $0x120] sm:$0xff] }
 0x15f   : > { %10877 = vmatmul.mubr.msk.f32.gmra.mrb[18].mxu0 %vm329_vm1, %v4689_v24  ;;  %11157 = vmatprep.subr.msk.mxu1 %vm378_vm0, %v12961_v28  ;;  %v6664_v24 = vld [vmem:[%s12639_s25 + $0x108] sm:$0xff] }
 0x160   : > { %11111 = vmatmul.mubr.msk.f32.gmra.mrb[18].mxu1 %vm329_vm1, %v6854_v25  ;;  %10879 = vmatprep.mubr.msk.f32.mxu0 %vm329_vm1, %v4690_v26  ;;  %v13103_v25 = vld [vmem:[%s12125_s12 + $0x18a] sm:$0xff]  ;;  %v13106_v26 = vld [vmem:[%s12125_s12 + $0x112] sm:$0xff] }
 0x161   : > { %11113 = vmatprep.mubr.msk.f32.mxu1 %vm329_vm1, %v6855_v27  ;;  %6681 = vperm.xlu0 %11912, %v6663_v22   ;;  %v13109_v27 = vld [vmem:[%s12125_s12 + $0x192] sm:$0xff]  ;;  %v8841_v22 = vld [vmem:[%s12639_s25 + $0x1e8] sm:$0xff] }
 0x162   : > { %6686 = vperm.xlu1 %11913, %v6664_v24   ;;  %v7493_v24 = vld [vmem:[%s12125_s12 + $0x20a] sm:$0xff] }
 0x163   : > { %10880 = vmatmul.mubr.msk.f32.gmra.mrb[20].mxu0 %vm329_vm1, %v4691_v29  ;;  %v13118_v29 = vld [vmem:[%s12125_s12 + $0x11a] sm:$0xff] }
 0x164   : > { %11114 = vmatmul.mubr.msk.f32.gmra.mrb[20].mxu1 %vm329_vm1, %v6856_v30  ;;  %10882 = vmatprep.mubr.msk.f32.mxu0 %vm329_vm1, %v4692_v31  ;;  %v13125_v30 = vld [vmem:[%s12125_s12 + $0x19a] sm:$0xff]  ;;  %v13128_v31 = vld [vmem:[%s12125_s12 + $0x122] sm:$0xff] }
 0x165   : > { %11116 = vmatprep.mubr.msk.f32.mxu1 %vm329_vm1, %v6857_v32  ;;  %v13133_v32 = vld [vmem:[%s12125_s12 + $0x1a2] sm:$0xff] }
 0x167   : > { %10883 = vmatmul.mubr.msk.f32.gmra.mrb[22].mxu0 %vm329_vm1, %v4693_v33  ;;  %v13138_v33 = vld [vmem:[%s13950_s1 + $0x10] sm:$0xf] }
 0x168   : > { %11117 = vmatmul.mubr.msk.f32.gmra.mrb[22].mxu1 %vm329_vm1, %v6858_v34  ;;  %10885 = vmatprep.mubr.msk.f32.mxu0 %vm329_vm1, %v4694_v35  ;;  %v6666_v34 = vld [vmem:[%s12639_s25 + $0x118] sm:$0xff]  ;;  %v8828_v35 = vld [vmem:[%s12639_s25 + $0x180] sm:$0xff] }
 0x169   : > { %11119 = vmatprep.mubr.msk.f32.mxu1 %vm329_vm1, %v6859_v36  ;;  %v13153_v36 = vld [vmem:[%s12125_s12 + $0x12a] sm:$0xff]  ;;  %6696 = vperm.xlu1 %11913, %v6666_v34  }
 0x16b   : > { %10886 = vmatmul.mubr.msk.f32.gmra.mrb[24].mxu0 %vm329_vm1, %v4695_v37  ;;  %v13158_v37 = vld [vmem:[%s12125_s12 + $0x1aa] sm:$0xff] }
 0x16c   : > { %11120 = vmatmul.mubr.msk.f32.gmra.mrb[24].mxu1 %vm329_vm1, %v6860_v38  ;;  %10888 = vmatprep.mubr.msk.f32.mxu0 %vm329_vm1, %v4696_v39  ;;  %v13161_v38 = vld [vmem:[%s12125_s12 + $0x132] sm:$0xff] }
 0x16d   : > { %11122 = vmatprep.mubr.msk.f32.mxu1 %vm329_vm1, %v6861_v40  ;;  %v13164_v39 = vld [vmem:[%s12125_s12 + $0x1b2] sm:$0xff]  ;;  %v8829_v40 = vld [vmem:[%s12639_s25 + $0x188] sm:$0xff] }
 0x16e   : > { %8851 = vperm.xlu1 %11913, %v8829_v40   ;;  %v8843_v40 = vld [vmem:[%s12639_s25 + $0x1f8] sm:$0xff] }
 0x16f   : > { %10889 = vmatmul.mubr.msk.f32.gmra.mrb[26].mxu0 %vm329_vm1, %v4697_v41  ;;  %v13174_v41 = vld [vmem:[%s12125_s12 + $0x13a] sm:$0xff] }
 0x170   : > { %11123 = vmatmul.mubr.msk.f32.gmra.mrb[26].mxu1 %vm329_vm1, %v6862_v42  ;;  %10891 = vmatprep.mubr.msk.f32.mxu0 %vm329_vm1, %v4698_v43  ;;  %v8830_v42 = vld [vmem:[%s12639_s25 + $0x190] sm:$0xff]  ;;  %v13180_v43 = vld [vmem:[%s12125_s12 + $0x1ba] sm:$0xff] }
 0x171   : > { %11125 = vmatprep.mubr.msk.f32.mxu1 %vm329_vm1, %v6863_v44  ;;  %v13183_v44 = vld [vmem:[%s12125_s12 + $0x142] sm:$0xff] }
 0x173   : > { %10892 = vmatmul.mubr.msk.f32.gmra.mrb[28].mxu0 %vm329_vm1, %v4699_v45  ;;  %v13186_v45 = vld [vmem:[%s12125_s12 + $0x1c2] sm:$0xff] }
 0x174   : > { %11126 = vmatmul.mubr.msk.f32.gmra.mrb[28].mxu1 %vm329_vm1, %v6864_v46  ;;  %10894 = vmatprep.mubr.msk.f32.mxu0 %vm329_vm1, %v4700_v47  ;;  %v6667_v46 = vld [vmem:[%s12639_s25 + $0x120] sm:$0xff]  ;;  %v13196_v47 = vld [vmem:[%s12125_s12 + $0x14a] sm:$0xff] }
 0x175   : > { %11128 = vmatprep.mubr.msk.f32.mxu1 %vm329_vm1, %v6865_v48  ;;  %v8831_v48 = vld [vmem:[%s12639_s25 + $0x198] sm:$0xff]  ;;  %6701 = vperm.xlu1 %11913, %v6667_v46  }
 0x177   : > { %10895 = vmatmul.mubr.msk.f32.gmra.mrb[30].mxu0 %vm329_vm1, %v4701_v49  ;;  %v13202_v49 = vld [vmem:[%s12125_s12 + $0x1ca] sm:$0xff] }
 0x178   : > { %11129 = vmatmul.mubr.msk.f32.gmra.mrb[30].mxu1 %vm329_vm1, %v6866_v50  ;;  %10899 = vmatprep.mubr.msk.f32.mxu0 %vm329_vm1, %v4670_v51  ;;  %v13205_v50 = vld [vmem:[%s12125_s12 + $0x152] sm:$0xff] }
 0x179   : > { %11133 = vmatprep.mubr.msk.f32.mxu1 %vm329_vm1, %v6835_v52  ;;  %v13208_v51 = vld [vmem:[%s12125_s12 + $0x1d2] sm:$0xff]  ;;  %v6668_v52 = vld [vmem:[%s12639_s25 + $0x128] sm:$0xff] }
 0x17a   : > { %6706 = vperm.xlu1 %11913, %v6668_v52   ;;  %v5547_v52 = vld [vmem:[%s12125_s12 + $0x15b] sm:$0xff] }
 0x17b   : > { %10900 = vmatmul.mubr.msk.f32.vlgmr.msra.gmra.mrb[16].mxu0 %vm329_vm1, %v4671_v53  ;;  %v13218_v53 = vld [vmem:[%s12125_s12 + $0x15a] sm:$0xff] }
 0x17c   : > { %11134 = vmatmul.mubr.msk.f32.vlgmr.msra.gmra.mrb[16].mxu1 %vm329_vm1, %v6836_v54  ;;  %10924 = vmatpush3.msk.msra.mxu0 %vm378_vm0, %v12961_v28  ;;  %v8832_v54 = vld [vmem:[%s12639_s25 + $0x1a0] sm:$0xff] }
 0x17d   : > { %10902 = vmatprep.mubr.msk.f32.mxu0 %vm329_vm1, %v4672_v55  ;;  %11136 = vmatprep.mubr.msk.f32.mxu1 %vm329_vm1, %v6837_v56  ;;  %v13224_v55 = vld [vmem:[%s12125_s12 + $0x1da] sm:$0xff]  ;;  %v13227_v56 = vld [vmem:[%s12125_s12 + $0x162] sm:$0xff] }
 0x17e   : > { %11158 = vmatpush3.msk.msra.mxu1 %vm378_vm0, %v12961_v28  ;;  %10949 = vmatprep.subr.msk.mxu0 %vm378_vm0, %v13038_v61  ;;  %v6665_v28 = vld [vmem:[%s12639_s25 + $0x110] sm:$0xff] }
 0x17f   : > { %10903 = vmatmul.mubr.msk.f32.gmra.mrb[18].mxu0 %vm329_vm1, %v4673_v57  ;;  %11183 = vmatprep.subr.msk.mxu1 %vm378_vm0, %v13038_v61  ;;  %v13230_v57 = vld [vmem:[%s12125_s12 + $0x1e2] sm:$0xff] }
 0x180   : > { %11137 = vmatmul.mubr.msk.f32.gmra.mrb[18].mxu1 %vm329_vm1, %v6838_v58  ;;  %10905 = vmatprep.mubr.msk.f32.mxu0 %vm329_vm1, %v4674_v59  ;;  %v6669_v58 = vld [vmem:[%s12639_s25 + $0x130] sm:$0xff] }
 0x181   : > { %11139 = vmatprep.mubr.msk.f32.mxu1 %vm329_vm1, %v6839_v60  ;;  %6691 = vperm.xlu0 %11912, %v6665_v28   ;;  %v13240_v59 = vld [vmem:[%s12125_s12 + $0x16a] sm:$0xff] }
 0x182   : > { %v8833_v60 = vld [vmem:[%s12639_s25 + $0x1a8] sm:$0xff]  ;;  %6711 = vperm.xlu1 %11913, %v6669_v58  }
 0x183   : > { %10906 = vmatmul.mubr.msk.f32.gmra.mrb[20].mxu0 %vm329_vm1, %v4675_v62  ;;  %v13249_v62 = vld [vmem:[%s12125_s12 + $0x172] sm:$0xff] }
 0x184   : > { %11140 = vmatmul.mubr.msk.f32.gmra.mrb[20].mxu1 %vm329_vm1, %v6840_v63  ;;  %10908 = vmatprep.mubr.msk.f32.mxu0 %vm329_vm1, %v4676_v1  ;;  %v13252_v63 = vld [vmem:[%s12125_s12 + $0x1f2] sm:$0xff] }
 0x185   : > { %11142 = vmatprep.mubr.msk.f32.mxu1 %vm329_vm1, %v6841_v2  ;;  %8846 = vperm.xlu0 %11912, %v8828_v35   ;;  %v6670_v1 = vld [vmem:[%s12639_s25 + $0x138] sm:$0xff] }
 0x186   : > { %v13262_v2 = vld [vmem:[%s12125_s12 + $0x17a] sm:$0xff]  ;;  %6716 = vperm.xlu1 %11913, %v6670_v1  }
 0x187   : > { %10909 = vmatmul.mubr.msk.f32.gmra.mrb[22].mxu0 %vm329_vm1, %v4677_v3  ;;  %v8834_v3 = vld [vmem:[%s12639_s25 + $0x1b0] sm:$0xff]  ;;  %v7716_v1 = vld [vmem:[%s12125_s12 + $0x1fb] sm:$0xff] }
 0x188   : > { %11143 = vmatmul.mubr.msk.f32.gmra.mrb[22].mxu1 %vm329_vm1, %v6842_v4  ;;  %10911 = vmatprep.mubr.msk.f32.mxu0 %vm329_vm1, %v4678_v5  ;;  %v13268_v4 = vld [vmem:[%s12125_s12 + $0x1fa] sm:$0xff] }
 0x189   : > { %11145 = vmatprep.mubr.msk.f32.mxu1 %vm329_vm1, %v6843_v6  ;;  %8856 = vperm.xlu0 %11912, %v8830_v42   ;;  %v6671_v5 = vld [vmem:[%s12639_s25 + $0x140] sm:$0xff]  ;;  %v8835_v6 = vld [vmem:[%s12639_s25 + $0x1b8] sm:$0xff] }
 0x18a   : > { %6721 = vperm.xlu1 %11913, %v6671_v5   ;;  %v5553_v5 = vld [vmem:[%s12125_s12 + $0x18b] sm:$0xff] }
 0x18b   : > { %10912 = vmatmul.mubr.msk.f32.gmra.mrb[24].mxu0 %vm329_vm1, %v4679_v7  ;;  %v13295_v7 = vld [vmem:[%s13950_s1 + $0x14] sm:$0xf] }
 0x18c   : > { %11146 = vmatmul.mubr.msk.f32.gmra.mrb[24].mxu1 %vm329_vm1, %v6844_v8  ;;  %10914 = vmatprep.mubr.msk.f32.mxu0 %vm329_vm1, %v4680_v9  ;;  %v6672_v8 = vld [vmem:[%s12639_s25 + $0x148] sm:$0xff]  ;;  %v8836_v9 = vld [vmem:[%s12639_s25 + $0x1c0] sm:$0xff] }
 0x18d   : > { %11148 = vmatprep.mubr.msk.f32.mxu1 %vm329_vm1, %v6845_v10  ;;  %8861 = vperm.xlu0 %11912, %v8831_v48   ;;  %v6673_v10 = vld [vmem:[%s12639_s25 + $0x150] sm:$0xff] }
 0x18e   : > { %6726 = vperm.xlu1 %11913, %v6672_v8   ;;  %v7710_v48 = vld [vmem:[%s12125_s12 + $0x1cb] sm:$0xff]  ;;  %v5763_v8 = vld [vmem:[%s12125_s12 + $0x114] sm:$0xff] }
 0x18f   : > { %10915 = vmatmul.mubr.msk.f32.gmra.mrb[26].mxu0 %vm329_vm1, %v4681_v11  ;;  %v8837_v11 = vld [vmem:[%s12639_s25 + $0x1c8] sm:$0xff] }
 0x190   : > { %11149 = vmatmul.mubr.msk.f32.gmra.mrb[26].mxu1 %vm329_vm1, %v6846_v12  ;;  %10917 = vmatprep.mubr.msk.f32.mxu0 %vm329_vm1, %v4682_v13  ;;  %v6674_v12 = vld [vmem:[%s12639_s25 + $0x158] sm:$0xff]  ;;  %v8838_v13 = vld [vmem:[%s12639_s25 + $0x1d0] sm:$0xff] }
 0x191   : > { %11151 = vmatprep.mubr.msk.f32.mxu1 %vm329_vm1, %v6847_v14  ;;  %8866 = vperm.xlu0 %11912, %v8832_v54   ;;  %v6675_v14 = vld [vmem:[%s12639_s25 + $0x160] sm:$0xff] }
 0x192   : > { %6731 = vperm.xlu1 %11913, %v6673_v10   ;;  %v7712_v54 = vld [vmem:[%s12125_s12 + $0x1db] sm:$0xff] }
 0x193   : > { %10918 = vmatmul.mubr.msk.f32.gmra.mrb[28].mxu0 %vm329_vm1, %v4683_v15  ;;  %v8839_v15 = vld [vmem:[%s12639_s25 + $0x1d8] sm:$0xff] }
 0x194   : > { %11152 = vmatmul.mubr.msk.f32.gmra.mrb[28].mxu1 %vm329_vm1, %v6848_v16  ;;  %10920 = vmatprep.mubr.msk.f32.mxu0 %vm329_vm1, %v4684_v17  ;;  %v13341_v16 = vpop.permute.xlu1 %2361  ;;  %v6676_v17 = vld [vmem:[%s12639_s25 + $0x168] sm:$0xff] }
 0x195   : > { %11154 = vmatprep.mubr.msk.f32.mxu1 %vm329_vm1, %v6849_v18  ;;  %8871 = vperm.xlu0 %11912, %v8833_v60   ;;  %v8840_v18 = vld [vmem:[%s12639_s25 + $0x1e0] sm:$0xff] }
 0x196   : > { %6736 = vperm.xlu1 %11913, %v6674_v12   ;;  %v5550_v60 = vld [vmem:[%s12125_s12 + $0x173] sm:$0xff]  ;;  %v5764_v10 = vld [vmem:[%s12125_s12 + $0x11c] sm:$0xff] }
 0x197   : > { %10921 = vmatmul.mubr.msk.f32.gmra.mrb[30].mxu0 %vm329_vm1, %v4685_v19  ;;  %v13351_v19 = vpop.permute.xlu0 %2351  ;;  %v13484_v12 = vld [vmem:[%s12125_s12 + $0x19c] sm:$0xff] }
 0x198   : > { %11155 = vmatmul.mubr.msk.f32.gmra.mrb[30].mxu1 %vm329_vm1, %v6850_v20  ;;  %10925 = vmatprep.mubr.msk.f32.mxu0 %vm329_vm1, %v5088_v0  ;;  %v7492_v20 = vld [vmem:[%s12125_s12 + $0x202] sm:$0xff]  ;;  %13967 = vst [vmem:[#allocation6_spill] sm:$0xff] %v13484_v12 }
 0x199   : > { %11159 = vmatprep.mubr.msk.f32.mxu1 %vm329_vm1, %v13092_v21  ;;  %8876 = vperm.xlu0 %11912, %v8834_v3   ;;  %v6677_v0 = vld [vmem:[%s12639_s25 + $0x170] sm:$0xff] }
 0x19a   : > { %6741 = vperm.xlu1 %11913, %v6675_v14   ;;  %v7717_v3 = vld [vmem:[%s12125_s12 + $0x203] sm:$0xff] }
 0x19b   : > { %10926 = vmatmul.mubr.msk.f32.vlgmr.msra.gmra.mrb[16].mxu0 %vm329_vm1, %v5089_v23  ;;  %v13364_v23 = vpop.permute.xlu1 %2366  ;;  %v13370_v28 = vpop.permute.xlu0 %2356  ;;  %v13490_v14 = vld [vmem:[%s12125_s12 + $0x1a4] sm:$0xff] }
 0x19c   : > { %11160 = vmatmul.mubr.msk.f32.vlgmr.msra.gmra.mrb[16].mxu1 %vm329_vm1, %v13103_v25  ;;  %10950 = vmatpush3.msk.msra.mxu0 %vm378_vm0, %v13038_v61 }
 0x19d   : > { %10928 = vmatprep.mubr.msk.f32.mxu0 %vm329_vm1, %v13106_v26  ;;  %11162 = vmatprep.mubr.msk.f32.mxu1 %vm329_vm1, %v13109_v27 }
 0x19e   : > { %11184 = vmatpush3.msk.msra.mxu1 %vm378_vm0, %v13038_v61  ;;  %10975 = vmatprep.subr.msk.mxu0 %vm378_vm0, %v13138_v33  ;;  %v13246_v61 = vld [vmem:[%s12125_s12 + $0x1ea] sm:$0xff] }
 0x19f   : > { %10929 = vmatmul.mubr.msk.f32.gmra.mrb[18].mxu0 %vm329_vm1, %v13118_v29  ;;  %11209 = vmatprep.subr.msk.mxu1 %vm378_vm0, %v13138_v33  ;;  %v13383_v34 = vpop.permute.xlu1 %2376  ;;  %v13390_v35 = vpop.permute.xlu0 %2371 }
 0x1a0   : > { %11163 = vmatmul.mubr.msk.f32.gmra.mrb[18].mxu1 %vm329_vm1, %v13125_v30  ;;  %10931 = vmatprep.mubr.msk.f32.mxu0 %vm329_vm1, %v13128_v31 }
 0x1a1   : > { %11165 = vmatprep.mubr.msk.f32.mxu1 %vm329_vm1, %v13133_v32  ;;  %8881 = vperm.xlu0 %11912, %v8835_v6  }
 0x1a2   : > { %6746 = vperm.xlu1 %11913, %v6676_v17   ;;  %v13500_v17 = vld [vmem:[%s12125_s12 + $0x12c] sm:$0xff] }
 0x1a3   : > { %10932 = vmatmul.mubr.msk.f32.gmra.mrb[20].mxu0 %vm329_vm1, %v13153_v36  ;;  %v13413_v42 = vpop.permute.xlu1 %2386  ;;  %v13419_v46 = vpop.permute.xlu0 %2381 }
 0x1a4   : > { %11166 = vmatmul.mubr.msk.f32.gmra.mrb[20].mxu1 %vm329_vm1, %v13158_v37  ;;  %10934 = vmatprep.mubr.msk.f32.mxu0 %vm329_vm1, %v13161_v38 }
 0x1a5   : > { %11168 = vmatprep.mubr.msk.f32.mxu1 %vm329_vm1, %v13164_v39  ;;  %8886 = vperm.xlu0 %11912, %v8836_v9   ;;  %v13473_v9 = vld [vmem:[%s12125_s12 + $0x194] sm:$0xff] }
 0x1a6   : > { %6751 = vperm.xlu1 %11913, %v6677_v0   ;;  %13966 = vst [vmem:[#allocation5_spill] sm:$0xff] %v13473_v9  ;;  %v13515_v0 = vld [vmem:[%s12125_s12 + $0x1b4] sm:$0xff] }
 0x1a7   : > { %10935 = vmatmul.mubr.msk.f32.gmra.mrb[22].mxu0 %vm329_vm1, %v13174_v41 }
 0x1a8   : > { %11169 = vmatmul.mubr.msk.f32.gmra.mrb[22].mxu1 %vm329_vm1, %v13180_v43  ;;  %10937 = vmatprep.mubr.msk.f32.mxu0 %vm329_vm1, %v13183_v44 }
 0x1a9   : > { %11171 = vmatprep.mubr.msk.f32.mxu1 %vm329_vm1, %v13186_v45  ;;  %8891 = vperm.xlu0 %11912, %v8837_v11  }
 0x1ab   : > { %10938 = vmatmul.mubr.msk.f32.gmra.mrb[24].mxu0 %vm329_vm1, %v13196_v47 }
 0x1ac   : > { %11172 = vmatmul.mubr.msk.f32.gmra.mrb[24].mxu1 %vm329_vm1, %v13202_v49  ;;  %10940 = vmatprep.mubr.msk.f32.mxu0 %vm329_vm1, %v13205_v50 }
 0x1ad   : > { %11174 = vmatprep.mubr.msk.f32.mxu1 %vm329_vm1, %v13208_v51  ;;  %8896 = vperm.xlu0 %11912, %v8838_v13   ;;  %v13487_v13 = vld [vmem:[%s12125_s12 + $0x124] sm:$0xff] }
 0x1af   : > { %10941 = vmatmul.mubr.msk.f32.gmra.mrb[26].mxu0 %vm329_vm1, %v13218_v53 }
 0x1b0   : > { %11175 = vmatmul.mubr.msk.f32.gmra.mrb[26].mxu1 %vm329_vm1, %v13224_v55  ;;  %10943 = vmatprep.mubr.msk.f32.mxu0 %vm329_vm1, %v13227_v56 }
 0x1b1   : > { %11177 = vmatprep.mubr.msk.f32.mxu1 %vm329_vm1, %v13230_v57  ;;  %8901 = vperm.xlu0 %11912, %v8839_v15  }
 0x1b3   : > { %10944 = vmatmul.mubr.msk.f32.gmra.mrb[28].mxu0 %vm329_vm1, %v13240_v59 }
 0x1b4   : > { %11178 = vmatmul.mubr.msk.f32.gmra.mrb[28].mxu1 %vm329_vm1, %v13246_v61  ;;  %10946 = vmatprep.mubr.msk.f32.mxu0 %vm329_vm1, %v13249_v62 }
 0x1b5   : > { %11180 = vmatprep.mubr.msk.f32.mxu1 %vm329_vm1, %v13252_v63  ;;  %8906 = vperm.xlu0 %11912, %v8840_v18   ;;  %v13507_v18 = vld [vmem:[%s12125_s12 + $0x1ac] sm:$0xff] }
 0x1b7   : > { %10947 = vmatmul.mubr.msk.f32.gmra.mrb[30].mxu0 %vm329_vm1, %v13262_v2 }
 0x1b8   : > { %11181 = vmatmul.mubr.msk.f32.gmra.mrb[30].mxu1 %vm329_vm1, %v13268_v4  ;;  %10951 = vmatprep.mubr.msk.f32.mxu0 %vm329_vm1, %v13106_v26  ;;  %v5538_v26 = vld [vmem:[%s12125_s12 + $0x113] sm:$0xff] }
 0x1b9   : > { %11185 = vmatprep.mubr.msk.f32.mxu1 %vm329_vm1, %v13109_v27  ;;  %v7703_v27 = vld [vmem:[%s12125_s12 + $0x193] sm:$0xff]  ;;  %8911 = vperm.xlu0 %11912, %v8841_v22  }
 0x1bb   : > { %10952 = vmatmul.mubr.msk.f32.vlgmr.msra.gmra.mrb[16].mxu0 %vm329_vm1, %v13118_v29  ;;  %v6678_v29 = vld [vmem:[%s12639_s25 + $0x178] sm:$0xff] }
 0x1bc   : > { %11186 = vmatmul.mubr.msk.f32.vlgmr.msra.gmra.mrb[16].mxu1 %vm329_vm1, %v13125_v30  ;;  %10976 = vmatpush3.msk.msra.mxu0 %vm378_vm0, %v13138_v33  ;;  %v5539_v30 = vld [vmem:[%s12125_s12 + $0x11b] sm:$0xff] }
 0x1bd   : > { %10954 = vmatprep.mubr.msk.f32.mxu0 %vm329_vm1, %v13128_v31  ;;  %11188 = vmatprep.mubr.msk.f32.mxu1 %vm329_vm1, %v13133_v32  ;;  %v7704_v31 = vld [vmem:[%s12125_s12 + $0x19b] sm:$0xff]  ;;  %v5540_v32 = vld [vmem:[%s12125_s12 + $0x123] sm:$0xff] }
 0x1be   : > { %11210 = vmatpush3.msk.msra.mxu1 %vm378_vm0, %v13138_v33  ;;  %11001 = vmatprep.subr.msk.mxu0 %vm378_vm0, %v13295_v7  ;;  %v7705_v33 = vld [vmem:[%s12125_s12 + $0x1a3] sm:$0xff] }
 0x1bf   : > { %10955 = vmatmul.mubr.msk.f32.gmra.mrb[18].mxu0 %vm329_vm1, %v13153_v36  ;;  %11235 = vmatprep.subr.msk.mxu1 %vm378_vm0, %v13295_v7  ;;  %v7706_v36 = vld [vmem:[%s12125_s12 + $0x1ab] sm:$0xff] }
 0x1c0   : > { %11189 = vmatmul.mubr.msk.f32.gmra.mrb[18].mxu1 %vm329_vm1, %v13158_v37  ;;  %10957 = vmatprep.mubr.msk.f32.mxu0 %vm329_vm1, %v13161_v38  ;;  %v5542_v37 = vld [vmem:[%s12125_s12 + $0x133] sm:$0xff] }
 0x1c1   : > { %11191 = vmatprep.mubr.msk.f32.mxu1 %vm329_vm1, %v13164_v39  ;;  %6756 = vperm.xlu1 %11913, %v6678_v29   ;;  %v7707_v38 = vld [vmem:[%s12125_s12 + $0x1b3] sm:$0xff]  ;;  %v13538_v29 = vld [vmem:[%s12125_s12 + $0x1bc] sm:$0xff] }
 0x1c2   : > { %v13402_v39 = vld [vmem:[%s13950_s1 + $0x18] sm:$0xf] }
 0x1c3   : > { %10958 = vmatmul.mubr.msk.f32.gmra.mrb[20].mxu0 %vm329_vm1, %v13174_v41  ;;  %v5543_v41 = vld [vmem:[%s12125_s12 + $0x13b] sm:$0xff] }
 0x1c4   : > { %11192 = vmatmul.mubr.msk.f32.gmra.mrb[20].mxu1 %vm329_vm1, %v13180_v43  ;;  %10960 = vmatprep.mubr.msk.f32.mxu0 %vm329_vm1, %v13183_v44  ;;  %v7708_v43 = vld [vmem:[%s12125_s12 + $0x1bb] sm:$0xff]  ;;  %v5544_v44 = vld [vmem:[%s12125_s12 + $0x143] sm:$0xff] }
 0x1c5   : > { %11194 = vmatprep.mubr.msk.f32.mxu1 %vm329_vm1, %v13186_v45  ;;  %8921 = vperm.xlu1 %11913, %v8843_v40   ;;  %v7709_v45 = vld [vmem:[%s12125_s12 + $0x1c3] sm:$0xff] }
 0x1c6   : > { %v13581_v40 = vld [vmem:[%s12125_s12 + $0x164] sm:$0xff] }
 0x1c7   : > { %10961 = vmatmul.mubr.msk.f32.gmra.mrb[22].mxu0 %vm329_vm1, %v13196_v47  ;;  %v5545_v47 = vld [vmem:[%s12125_s12 + $0x14b] sm:$0xff] }
 0x1c8   : > { %11195 = vmatmul.mubr.msk.f32.gmra.mrb[22].mxu1 %vm329_vm1, %v13202_v49  ;;  %10963 = vmatprep.mubr.msk.f32.mxu0 %vm329_vm1, %v13205_v50  ;;  %v5546_v49 = vld [vmem:[%s12125_s12 + $0x153] sm:$0xff] }
 0x1c9   : > { %11197 = vmatprep.mubr.msk.f32.mxu1 %vm329_vm1, %v13208_v51  ;;  %v7711_v50 = vld [vmem:[%s12125_s12 + $0x1d3] sm:$0xff]  ;;  %v13429_v51 = vpop.permute.xlu1 %2396 }
 0x1cb   : > { %10964 = vmatmul.mubr.msk.f32.gmra.mrb[24].mxu0 %vm329_vm1, %v13218_v53  ;;  %v13435_v53 = vpop.permute.xlu0 %2391 }
 0x1cc   : > { %11198 = vmatmul.mubr.msk.f32.gmra.mrb[24].mxu1 %vm329_vm1, %v13224_v55  ;;  %10966 = vmatprep.mubr.msk.f32.mxu0 %vm329_vm1, %v13227_v56  ;;  %v5548_v55 = vld [vmem:[%s12125_s12 + $0x163] sm:$0xff] }
 0x1cd   : > { %11200 = vmatprep.mubr.msk.f32.mxu1 %vm329_vm1, %v13230_v57  ;;  %v7713_v56 = vld [vmem:[%s12125_s12 + $0x1e3] sm:$0xff]  ;;  %v5549_v57 = vld [vmem:[%s12125_s12 + $0x16b] sm:$0xff]  ;;  %v13445_v58 = vpop.permute.xlu1 %2406 }
 0x1cf   : > { %10967 = vmatmul.mubr.msk.f32.gmra.mrb[26].mxu0 %vm329_vm1, %v13240_v59  ;;  %v7714_v59 = vld [vmem:[%s12125_s12 + $0x1eb] sm:$0xff] }
 0x1d0   : > { %11201 = vmatmul.mubr.msk.f32.gmra.mrb[26].mxu1 %vm329_vm1, %v13246_v61  ;;  %10969 = vmatprep.mubr.msk.f32.mxu0 %vm329_vm1, %v13249_v62  ;;  %v7715_v61 = vld [vmem:[%s12125_s12 + $0x1f3] sm:$0xff]  ;;  %v13451_v62 = vpop.permute.xlu0 %2401 }
 0x1d1   : > { %11203 = vmatprep.mubr.msk.f32.mxu1 %vm329_vm1, %v13252_v63  ;;  %v5551_v63 = vld [vmem:[%s12125_s12 + $0x17b] sm:$0xff] }
 0x1d3   : > { %10970 = vmatmul.mubr.msk.f32.gmra.mrb[28].mxu0 %vm329_vm1, %v13262_v2  ;;  %v5552_v2 = vld [vmem:[%s12125_s12 + $0x183] sm:$0xff] }
 0x1d4   : > { %11204 = vmatmul.mubr.msk.f32.gmra.mrb[28].mxu1 %vm329_vm1, %v13268_v4  ;;  %10972 = vmatprep.mubr.msk.f32.mxu0 %vm329_vm1, %v13092_v21  ;;  %v8842_v21 = vld [vmem:[%s12639_s25 + $0x1f0] sm:$0xff]  ;;  %v13461_v4 = vpop.permute.xlu1 %2416  ;;  %v13467_v6 = vpop.permute.xlu0 %2411 }
 0x1d5   : > { %11206 = vmatprep.mubr.msk.f32.mxu1 %vm329_vm1, %v7492_v20  ;;  %8916 = vperm.xlu0 %11912, %v8842_v21   ;;  %v13510_v20 = vld [vmem:[%s12125_s12 + $0x134] sm:$0xff]  ;;  %v13541_v21 = vld [vmem:[%s12125_s12 + $0x144] sm:$0xff] }
 0x1d7   : > { %10973 = vmatmul.mubr.msk.f32.gmra.mrb[30].mxu0 %vm329_vm1, %v13103_v25  ;;  %v5541_v25 = vld [vmem:[%s12125_s12 + $0x12b] sm:$0xff] }
 0x1d8   : > { %11207 = vmatmul.mubr.msk.f32.gmra.mrb[30].mxu1 %vm329_vm1, %v7493_v24  ;;  %10977 = vmatprep.mubr.msk.f32.mxu0 %vm329_vm1, %v5538_v26  ;;  %v13479_v11 = vpop.permute.xlu1 %2426  ;;  %v13492_v15 = vpop.permute.xlu0 %2421  ;;  %v13520_v24 = vld [vmem:[%s13950_s1 + $0x1c] sm:$0xf] }
 0x1d9   : > { %11211 = vmatprep.mubr.msk.f32.mxu1 %vm329_vm1, %v7703_v27  ;;  %v13533_v26 = vld [vmem:[%s12125_s12 + $0x13c] sm:$0xff] }
 0x1db   : > { %10978 = vmatmul.mubr.msk.f32.vlgmr.msra.gmra.mrb[16].mxu0 %vm329_vm1, %v5539_v30  ;;  %v13544_v30 = vld [vmem:[%s12125_s12 + $0x1c4] sm:$0xff] }
 0x1dc   : > { %11212 = vmatmul.mubr.msk.f32.vlgmr.msra.gmra.mrb[16].mxu1 %vm329_vm1, %v7704_v31  ;;  %11002 = vmatpush3.msk.msra.mxu0 %vm378_vm0, %v13295_v7  ;;  %v4522_v22 = vpop.permute.xlu1 %4521  ;;  %v4517_v27 = vpop.permute.xlu0 %4516  ;;  %v13553_v31 = vld [vmem:[%s12125_s12 + $0x14c] sm:$0xff] }
 0x1dd   : > { %10980 = vmatprep.mubr.msk.f32.mxu0 %vm329_vm1, %v5540_v32  ;;  %11214 = vmatprep.mubr.msk.f32.mxu1 %vm329_vm1, %v7705_v33  ;;  %v13558_v33 = vld [vmem:[%s12125_s12 + $0x1cc] sm:$0xff] }
 0x1de   : > { %11236 = vmatpush3.msk.msra.mxu1 %vm378_vm0, %v13295_v7  ;;  %11027 = vmatprep.subr.msk.mxu0 %vm378_vm0, %v13402_v39  ;;  %v7718_v7 = vld [vmem:[%s12125_s12 + $0x20b] sm:$0xff] }
 0x1df   : > { %10981 = vmatmul.mubr.msk.f32.gmra.mrb[18].mxu0 %vm329_vm1, %v5541_v25  ;;  %11261 = vmatprep.subr.msk.mxu1 %vm378_vm0, %v13402_v39  ;;  %v13561_v25 = vld [vmem:[%s12125_s12 + $0x154] sm:$0xff] }
 0x1e0   : > { %11215 = vmatmul.mubr.msk.f32.gmra.mrb[18].mxu1 %vm329_vm1, %v7706_v36  ;;  %10983 = vmatprep.mubr.msk.f32.mxu0 %vm329_vm1, %v5542_v37  ;;  %v4532_v32 = vpop.permute.xlu1 %4531  ;;  %v13564_v36 = vld [vmem:[%s12125_s12 + $0x1d4] sm:$0xff]  ;;  %v4527_v37 = vpop.permute.xlu0 %4526 }
 0x1e1   : > { %11217 = vmatprep.mubr.msk.f32.mxu1 %vm329_vm1, %v7707_v38  ;;  %v13573_v38 = vld [vmem:[%s12125_s12 + $0x15c] sm:$0xff] }
 0x1e3   : > { %10984 = vmatmul.mubr.msk.f32.gmra.mrb[20].mxu0 %vm329_vm1, %v5543_v41  ;;  %v13584_v41 = vld [vmem:[%s12125_s12 + $0x1e4] sm:$0xff] }
 0x1e4   : > { %11218 = vmatmul.mubr.msk.f32.gmra.mrb[20].mxu1 %vm329_vm1, %v7708_v43  ;;  %10986 = vmatprep.mubr.msk.f32.mxu0 %vm329_vm1, %v5544_v44  ;;  %v4542_v43 = vpop.permute.xlu1 %4541  ;;  %v13593_v44 = vld [vmem:[%s12125_s12 + $0x16c] sm:$0xff] }
 0x1e5   : > { %11220 = vmatprep.mubr.msk.f32.mxu1 %vm329_vm1, %v7709_v45  ;;  %13968 = vst [vmem:[#allocation7_spill] sm:$0xff] %v13593_v44  ;;  %v13595_v45 = vpop.permute.xlu0 %4536 }
 0x1e7   : > { %10987 = vmatmul.mubr.msk.f32.gmra.mrb[22].mxu0 %vm329_vm1, %v5545_v47  ;;  %v13600_v47 = vld [vmem:[%s12125_s12 + $0x1ec] sm:$0xff] }
 0x1e8   : > { %11221 = vmatmul.mubr.msk.f32.gmra.mrb[22].mxu1 %vm329_vm1, %v7710_v48  ;;  %10989 = vmatprep.mubr.msk.f32.mxu0 %vm329_vm1, %v5546_v49  ;;  %13969 = vst [vmem:[#allocation8_spill] sm:$0xff] %v13600_v47  ;;  %v13603_v48 = vld [vmem:[%s12125_s12 + $0x174] sm:$0xff] }
 0x1e9   : > { %11223 = vmatprep.mubr.msk.f32.mxu1 %vm329_vm1, %v7711_v50  ;;  %13970 = vst [vmem:[#allocation9_spill] sm:$0xff] %v13603_v48  ;;  %v13606_v50 = vld [vmem:[%s12125_s12 + $0x1f4] sm:$0xff] }
 0x1ea   : > { %13971 = vst [vmem:[#allocation10_spill] sm:$0xff] %v13606_v50 }
 0x1eb   : > { %10990 = vmatmul.mubr.msk.f32.gmra.mrb[24].mxu0 %vm329_vm1, %v5547_v52 }
 0x1ec   : > { %11224 = vmatmul.mubr.msk.f32.gmra.mrb[24].mxu1 %vm329_vm1, %v7712_v54  ;;  %10992 = vmatprep.mubr.msk.f32.mxu0 %vm329_vm1, %v5548_v55 }
 0x1ed   : > { %11226 = vmatprep.mubr.msk.f32.mxu1 %vm329_vm1, %v7713_v56 }
 0x1ef   : > { %10993 = vmatmul.mubr.msk.f32.gmra.mrb[26].mxu0 %vm329_vm1, %v5549_v57 }
 0x1f0   : > { %11227 = vmatmul.mubr.msk.f32.gmra.mrb[26].mxu1 %vm329_vm1, %v7714_v59  ;;  %10995 = vmatprep.mubr.msk.f32.mxu0 %vm329_vm1, %v5550_v60  ;;  %v13617_v60 = vld [vmem:[%s12125_s12 + $0x17c] sm:$0xff] }
 0x1f1   : > { %11229 = vmatprep.mubr.msk.f32.mxu1 %vm329_vm1, %v7715_v61  ;;  %13972 = vst [vmem:[#allocation11_spill] sm:$0xff] %v13617_v60  ;;  %v13619_v61 = vpop.permute.xlu1 %4551 }
 0x1f3   : > { %10996 = vmatmul.mubr.msk.f32.gmra.mrb[28].mxu0 %vm329_vm1, %v5551_v63 }
 0x1f4   : > { %11230 = vmatmul.mubr.msk.f32.gmra.mrb[28].mxu1 %vm329_vm1, %v7716_v1  ;;  %10998 = vmatprep.mubr.msk.f32.mxu0 %vm329_vm1, %v5552_v2  ;;  %v13624_v1 = vld [vmem:[%s12125_s12 + $0x1fc] sm:$0xff]  ;;  %v13627_v2 = vld [vmem:[%s12125_s12 + $0x184] sm:$0xff] }
 0x1f5   : > { %11232 = vmatprep.mubr.msk.f32.mxu1 %vm329_vm1, %v7717_v3  ;;  %13973 = vst [vmem:[#allocation12_spill] sm:$0xff] %v13624_v1  ;;  %13974 = vst [vmem:[#allocation13_spill] sm:$0xff] %v13627_v2 }
 0x1f7   : > { %10999 = vmatmul.mubr.msk.f32.gmra.mrb[30].mxu0 %vm329_vm1, %v5553_v5 }
 0x1f8   : > { %11233 = vmatmul.mubr.msk.f32.gmra.mrb[30].mxu1 %vm329_vm1, %v7718_v7  ;;  %11003 = vmatprep.mubr.msk.f32.mxu0 %vm329_vm1, %v5763_v8  ;;  %v13630_v8 = vld [vmem:[%s12125_s12 + $0x204] sm:$0xff] }
 0x1f9   : > { %11237 = vmatprep.mubr.msk.f32.mxu1 %vm329_vm1, %v13473_v9  ;;  %13975 = vst [vmem:[#allocation14_spill] sm:$0xff] %v13630_v8 }
 0x1fb   : > { %11004 = vmatmul.mubr.msk.f32.vlgmr.msra.gmra.mrb[16].mxu0 %vm329_vm1, %v5764_v10  ;;  %v13632_v10 = vpop.permute.xlu0 %4546 }
 0x1fc   : > { %11238 = vmatmul.mubr.msk.f32.vlgmr.msra.gmra.mrb[16].mxu1 %vm329_vm1, %v13484_v12  ;;  %11028 = vmatpush3.msk.msra.mxu0 %vm378_vm0, %v13402_v39 }
 0x1fd   : > { %11006 = vmatprep.mubr.msk.f32.mxu0 %vm329_vm1, %v13487_v13  ;;  %11240 = vmatprep.mubr.msk.f32.mxu1 %vm329_vm1, %v13490_v14 }
 0x1fe   : > { %11262 = vmatpush3.msk.msra.mxu1 %vm378_vm0, %v13402_v39  ;;  %11053 = vmatprep.subr.msk.mxu0 %vm378_vm0, %v13520_v24  ;;  %v13578_v39 = vld [vmem:[%s12125_s12 + $0x1dc] sm:$0xff] }
 0x1ff   : > { %11007 = vmatmul.mubr.msk.f32.gmra.mrb[18].mxu0 %vm329_vm1, %v13500_v17  ;;  %11287 = vmatprep.subr.msk.mxu1 %vm378_vm0, %v13520_v24 }
 0x200   : > { %11241 = vmatmul.mubr.msk.f32.gmra.mrb[18].mxu1 %vm329_vm1, %v13507_v18  ;;  %11009 = vmatprep.mubr.msk.f32.mxu0 %vm329_vm1, %v13510_v20 }
 0x201   : > { %11243 = vmatprep.mubr.msk.f32.mxu1 %vm329_vm1, %v13515_v0 }
 0x203   : > { %11010 = vmatmul.mubr.msk.f32.gmra.mrb[20].mxu0 %vm329_vm1, %v13533_v26 }
 0x204   : > { %11244 = vmatmul.mubr.msk.f32.gmra.mrb[20].mxu1 %vm329_vm1, %v13538_v29  ;;  %11012 = vmatprep.mubr.msk.f32.mxu0 %vm329_vm1, %v13541_v21 }
 0x205   : > { %11246 = vmatprep.mubr.msk.f32.mxu1 %vm329_vm1, %v13544_v30 }
 0x207   : > { %11013 = vmatmul.mubr.msk.f32.gmra.mrb[22].mxu0 %vm329_vm1, %v13553_v31 }
 0x208   : > { %11247 = vmatmul.mubr.msk.f32.gmra.mrb[22].mxu1 %vm329_vm1, %v13558_v33  ;;  %11015 = vmatprep.mubr.msk.f32.mxu0 %vm329_vm1, %v13561_v25 }
 0x209   : > { %11249 = vmatprep.mubr.msk.f32.mxu1 %vm329_vm1, %v13564_v36 }
 0x20b   : > { %11016 = vmatmul.mubr.msk.f32.gmra.mrb[24].mxu0 %vm329_vm1, %v13573_v38 }
 0x20c   : > { %11250 = vmatmul.mubr.msk.f32.gmra.mrb[24].mxu1 %vm329_vm1, %v13578_v39  ;;  %11018 = vmatprep.mubr.msk.f32.mxu0 %vm329_vm1, %v13581_v40 }
 0x20d   : > { %11252 = vmatprep.mubr.msk.f32.mxu1 %vm329_vm1, %v13584_v41 }
 0x20e   : > { %v10615_v49 = vpop.f32.mrb[0].mxu0 }
 0x20f   : > { %v2430_v52 = vmul.f32 %v10615_v49, %v13370_v28  ;;  %v10849_v54 = vpop.f32.mrb[0].mxu1  ;;  %v2238_v55 = vpop.f32.mrb[1].mxu0  ;;  %11019 = vmatmul.mubr.msk.f32.gmra.mrb[26].mxu0 %vm329_vm1, %v13593_v44 }
 0x210   : > { %v4595_v56 = vmul.f32 %v10849_v54, %v4522_v22  ;;  %v2429_v57 = vmul.f32 %v13351_v19, %v2238_v55  ;;  %v4403_v59 = vpop.f32.mrb[1].mxu1  ;;  %11253 = vmatmul.mubr.msk.f32.gmra.mrb[26].mxu1 %vm329_vm1, %v13600_v47  ;;  %11021 = vmatprep.mubr.msk.f32.mxu0 %vm329_vm1, %v13603_v48 }
 0x211   : > { %v2468_v28 = vmul.f32 %v10615_v49, %v2430_v52  ;;  %v4594_v63 = vmul.f32 %v4517_v27, %v4403_v59  ;;  %11255 = vmatprep.mubr.msk.f32.mxu1 %vm329_vm1, %v13606_v50 }
 0x212   : > { %v4633_v19 = vmul.f32 %v10849_v54, %v4595_v56  ;;  %v2445_v3 = vadd.f32 %v2430_v52, %v2429_v57  ;;  %v2467_v5 = vmul.f32 %v2429_v57, %v2238_v55  ;;  %v10618_v7 = vpop.f32.mrb[2].mxu0  ;;  %v13643_v55 = vld [vmem:[%s12125_s12 + $0x18c] sm:$0xff] }
 0x213   : > { %v4610_v22 = vadd.f32 %v4595_v56, %v4594_v63  ;;  %v4632_v49 = vmul.f32 %v4594_v63, %v4403_v59  ;;  %v2432_v27 = vmul.f32 %v10618_v7, %v13364_v23  ;;  %v10852_v12 = vpop.f32.mrb[2].mxu1  ;;  %v2248_v9 = vpop.f32.mrb[3].mxu0  ;;  %11022 = vmatmul.mubr.msk.f32.gmra.mrb[28].mxu0 %vm329_vm1, %v13617_v60  ;;  %v13648_v59 = vld [vmem:[%s12125_s12 + $0x20c] sm:$0xff] }
 0x214   : > { %v2483_v50 = vadd.f32 %v2468_v28, %v2467_v5  ;;  %v2431_v52 = vmul.f32 %v13341_v16, %v2248_v9  ;;  %v4413_v54 = vpop.f32.mrb[3].mxu1  ;;  %11256 = vmatmul.mubr.msk.f32.gmra.mrb[28].mxu1 %vm329_vm1, %v13624_v1  ;;  %11024 = vmatprep.mubr.msk.f32.mxu0 %vm329_vm1, %v13627_v2  ;;  %v4597_v57 = vmul.f32 %v10852_v12, %v4532_v32  ;;  %v4562_v5 = vpop.permute.xlu1 %4561 }
 0x215   : > { %v4648_v56 = vadd.f32 %v4633_v19, %v4632_v49  ;;  %v4596_v23 = vmul.f32 %v4527_v37, %v4413_v54  ;;  %11258 = vmatprep.mubr.msk.f32.mxu1 %vm329_vm1, %v13630_v8  ;;  %v2470_v60 = vmul.f32 %v10618_v7, %v2432_v27 }
 0x216   : > { %v2446_v28 = vadd.f32 %v2445_v3, %v2431_v52  ;;  %v2469_v63 = vmul.f32 %v2431_v52, %v2248_v9  ;;  %v10621_v16 = vpop.f32.mrb[4].mxu0  ;;  %v4557_v9 = vpop.permute.xlu0 %4556  ;;  %v4635_v3 = vmul.f32 %v10852_v12, %v4597_v57 }
 0x217   : > { %v4611_v48 = vadd.f32 %v4610_v22, %v4596_v23  ;;  %v4634_v1 = vmul.f32 %v4596_v23, %v4413_v54  ;;  %v2434_v47 = vmul.f32 %v10621_v16, %v13383_v34  ;;  %v10855_v2 = vpop.f32.mrb[4].mxu1  ;;  %v2258_v44 = vpop.f32.mrb[5].mxu0  ;;  %11025 = vmatmul.mubr.msk.f32.gmra.mrb[30].mxu0 %vm329_vm1, %v13643_v55 }
 0x218   : > { %v2484_v32 = vadd.f32 %v2483_v50, %v2469_v63  ;;  %v4599_v37 = vmul.f32 %v10855_v2, %v4542_v43  ;;  %v2433_v19 = vmul.f32 %v13390_v35, %v2258_v44  ;;  %v2447_v49 = vadd.f32 %v2446_v28, %v2432_v27  ;;  %v4423_v8 = vpop.f32.mrb[5].mxu1  ;;  %11259 = vmatmul.mubr.msk.f32.gmra.mrb[30].mxu1 %vm329_vm1, %v13648_v59 }
 0x219   : > { %v4649_v7 = vadd.f32 %v4648_v56, %v4634_v1  ;;  %v4598_v22 = vmul.f32 %v13595_v45, %v4423_v8  ;;  %v4612_v34 = vadd.f32 %v4611_v48, %v4597_v57  ;;  %11029 = vmatprep.mubr.msk.f32.mxu0 %vm329_vm1, %v13487_v13  ;;  %v2472_v52 = vmul.f32 %v10621_v16, %v2434_v47 }
 0x21a   : > { %v2448_v54 = vadd.f32 %v2447_v49, %v2433_v19  ;;  %v2471_v50 = vmul.f32 %v2433_v19, %v2258_v44  ;;  %v2485_v43 = vadd.f32 %v2484_v32, %v2470_v60  ;;  %v10624_v23 = vpop.f32.mrb[6].mxu0  ;;  %11263 = vmatprep.mubr.msk.f32.mxu1 %vm329_vm1, %v13490_v14  ;;  %v4637_v45 = vmul.f32 %v10855_v2, %v4599_v37  ;;  %v4572_v14 = vpop.permute.xlu1 %4571 }
 0x21b   : > { %v4613_v35 = vadd.f32 %v4612_v34, %v4598_v22  ;;  %v4636_v27 = vmul.f32 %v4598_v22, %v4423_v8  ;;  %v4650_v28 = vadd.f32 %v4649_v7, %v4635_v3  ;;  %v2436_v12 = vmul.f32 %v10624_v23, %v13413_v42  ;;  %v10858_v1 = vpop.f32.mrb[6].mxu1  ;;  %v2268_v56 = vpop.f32.mrb[7].mxu0  ;;  %11030 = vmatmul.mubr.msk.f32.vlgmr.msra.gmra.mrb[16].mxu0 %vm329_vm1, %v13500_v17 }
 0x21c   : > { %v2486_v13 = vadd.f32 %v2485_v43, %v2471_v50  ;;  %v2435_v48 = vmul.f32 %v13419_v46, %v2268_v56  ;;  %v2449_v44 = vadd.f32 %v2448_v54, %v2434_v47  ;;  %v4433_v60 = vpop.f32.mrb[7].mxu1  ;;  %11264 = vmatmul.mubr.msk.f32.vlgmr.msra.gmra.mrb[16].mxu1 %vm329_vm1, %v13507_v18  ;;  %v4601_v8 = vmul.f32 %v10858_v1, %v13619_v61  ;;  %v4567_v47 = vpop.permute.xlu0 %4566 }
 0x21d   : > { %v4651_v57 = vadd.f32 %v4650_v28, %v4636_v27  ;;  %v4600_v42 = vmul.f32 %v13632_v10, %v4433_v60  ;;  %v4614_v63 = vadd.f32 %v4613_v35, %v4599_v37  ;;  %11054 = vmatpush3.msk.msra.mxu0 %vm378_vm0, %v13520_v24  ;;  %v2474_v17 = vmul.f32 %v10624_v23, %v2436_v12 }
 0x21e   : > { %v2450_v2 = vadd.f32 %v2449_v44, %v2435_v48  ;;  %v2473_v16 = vmul.f32 %v2435_v48, %v2268_v56  ;;  %v2487_v32 = vadd.f32 %v2486_v13, %v2472_v52  ;;  %v10627_v46 = vpop.f32.mrb[8].mxu0  ;;  %11032 = vmatprep.mubr.msk.f32.mxu0 %vm329_vm1, %v13510_v20  ;;  %11266 = vmatprep.mubr.msk.f32.mxu1 %vm329_vm1, %v13515_v0 }
 0x21f   : > { %v4615_v18 = vadd.f32 %v4614_v63, %v4600_v42  ;;  %v4638_v19 = vmul.f32 %v4600_v42, %v4433_v60  ;;  %v4652_v49 = vadd.f32 %v4651_v57, %v4637_v45  ;;  %v2438_v61 = vmul.f32 %v10627_v46, %v13429_v51  ;;  %v10861_v3 = vpop.f32.mrb[8].mxu1  ;;  %v2278_v10 = vpop.f32.mrb[9].mxu0  ;;  %11288 = vmatpush3.msk.msra.mxu1 %vm378_vm0, %v13520_v24 }
 0x220   : > { %v2488_v37 = vadd.f32 %v2487_v32, %v2473_v16  ;;  %v4603_v7 = vmul.f32 %v10861_v3, %v4562_v5  ;;  %v2437_v22 = vmul.f32 %v13435_v53, %v2278_v10  ;;  %v2451_v34 = vadd.f32 %v2450_v2, %v2436_v12  ;;  %v4443_v20 = vpop.f32.mrb[9].mxu1  ;;  %11033 = vmatmul.mubr.msk.f32.gmra.mrb[18].mxu0 %vm329_vm1, %v13533_v26  ;;  %v4582_v24 = vpop.permute.xlu1 %4581 }
 0x221   : > { %v4639_v52 = vmul.f32 %v10858_v1, %v4601_v8  ;;  %v4653_v54 = vadd.f32 %v4652_v49, %v4638_v19  ;;  %v4602_v50 = vmul.f32 %v4557_v9, %v4443_v20  ;;  %v4616_v43 = vadd.f32 %v4615_v18, %v4601_v8  ;;  %11267 = vmatmul.mubr.msk.f32.gmra.mrb[18].mxu1 %vm329_vm1, %v13538_v29  ;;  %v4577_v48 = vpop.permute.xlu0 %4576 }
 0x222   : > { %v2476_v51 = vmul.f32 %v10627_v46, %v2438_v61  ;;  %v2452_v23 = vadd.f32 %v2451_v34, %v2437_v22  ;;  %v2475_v0 = vmul.f32 %v2437_v22, %v2278_v10  ;;  %v2489_v35 = vadd.f32 %v2488_v37, %v2474_v17  ;;  %v10630_v5 = vpop.f32.mrb[10].mxu0  ;;  %11035 = vmatprep.mubr.msk.f32.mxu0 %vm329_vm1, %v13541_v21 }
 0x223   : > { %v4617_v27 = vadd.f32 %v4616_v43, %v4602_v50  ;;  %v4640_v53 = vmul.f32 %v4602_v50, %v4443_v20  ;;  %v4654_v28 = vadd.f32 %v4653_v54, %v4639_v52  ;;  %v2440_v12 = vmul.f32 %v10630_v5, %v13445_v58  ;;  %v10864_v1 = vpop.f32.mrb[10].mxu1  ;;  %v2288_v9 = vpop.f32.mrb[11].mxu0  ;;  %11269 = vmatprep.mubr.msk.f32.mxu1 %vm329_vm1, %v13544_v30 }
 0x224   : > { %v4641_v26 = vmul.f32 %v10861_v3, %v4603_v7  ;;  %v2490_v56 = vadd.f32 %v2489_v35, %v2475_v0  ;;  %v2439_v45 = vmul.f32 %v13451_v62, %v2288_v9  ;;  %v2453_v29 = vadd.f32 %v2452_v23, %v2438_v61  ;;  %v4453_v13 = vpop.f32.mrb[11].mxu1  ;;  %11036 = vmatmul.mubr.msk.f32.gmra.mrb[20].mxu0 %vm329_vm1, %v13553_v31 }
 0x225   : > { %v4655_v44 = vadd.f32 %v4654_v28, %v4640_v53  ;;  %v4605_v60 = vmul.f32 %v10864_v1, %v4572_v14  ;;  %v4604_v57 = vmul.f32 %v4567_v47, %v4453_v13  ;;  %v4618_v8 = vadd.f32 %v4617_v27, %v4603_v7  ;;  %11270 = vmatmul.mubr.msk.f32.gmra.mrb[20].mxu1 %vm329_vm1, %v13558_v33  ;;  %v4587_v22 = vpop.permute.xlu0 %4586  ;;  %v13976_v27 = vld [vmem:[#allocation7_spill] sm:$0xff] }
 0x226   : > { %v2478_v58 = vmul.f32 %v10630_v5, %v2440_v12  ;;  %v2454_v21 = vadd.f32 %v2453_v29, %v2439_v45  ;;  %v2477_v42 = vmul.f32 %v2439_v45, %v2288_v9  ;;  %v2491_v63 = vadd.f32 %v2490_v56, %v2476_v51  ;;  %v10633_v30 = vpop.f32.mrb[12].mxu0  ;;  %11038 = vmatprep.mubr.msk.f32.mxu0 %vm329_vm1, %v13561_v25  ;;  %v13978_v9 = vld [vmem:[#allocation9_spill] sm:$0xff]  ;;  %v11922_v29 = vld [vmem:[%s13950_s1 + $0x20] sm:$0xf] }
 0x227   : > { %v4619_v17 = vadd.f32 %v4618_v8, %v4604_v57  ;;  %v4642_v62 = vmul.f32 %v4604_v57, %v4453_v13  ;;  %v4656_v2 = vadd.f32 %v4655_v44, %v4641_v26  ;;  %v2442_v16 = vmul.f32 %v10633_v30, %v13461_v4  ;;  %v10867_v32 = vpop.f32.mrb[12].mxu1  ;;  %v2298_v14 = vpop.f32.mrb[13].mxu0  ;;  %11272 = vmatprep.mubr.msk.f32.mxu1 %vm329_vm1, %v13564_v36 }
 0x228   : > { %v2492_v46 = vadd.f32 %v2491_v63, %v2477_v42  ;;  %v4607_v31 = vmul.f32 %v10867_v32, %v4582_v24  ;;  %v2441_v47 = vmul.f32 %v13467_v6, %v2298_v14  ;;  %v2455_v18 = vadd.f32 %v2454_v21, %v2440_v12  ;;  %v4463_v33 = vpop.f32.mrb[13].mxu1  ;;  %11039 = vmatmul.mubr.msk.f32.gmra.mrb[22].mxu0 %vm329_vm1, %v13573_v38  ;;  %v4592_v4 = vpop.permute.xlu1 %4591  ;;  %v13977_v12 = vld [vmem:[#allocation8_spill] sm:$0xff]  ;;  %v13982_v21 = vld [vmem:[#allocation13_spill] sm:$0xff] }
 0x229   : > { %v4643_v19 = vmul.f32 %v10864_v1, %v4605_v60  ;;  %v4657_v49 = vadd.f32 %v4656_v2, %v4642_v62  ;;  %v4606_v61 = vmul.f32 %v4577_v48, %v4463_v33  ;;  %v4620_v3 = vadd.f32 %v4619_v17, %v4605_v60  ;;  %11273 = vmatmul.mubr.msk.f32.gmra.mrb[22].mxu1 %vm329_vm1, %v13578_v39  ;;  %v13980_v60 = vld [vmem:[#allocation11_spill] sm:$0xff] }
 0x22a   : > { %v2480_v10 = vmul.f32 %v10633_v30, %v2442_v16  ;;  %v2456_v25 = vadd.f32 %v2455_v18, %v2441_v47  ;;  %v2479_v37 = vmul.f32 %v2441_v47, %v2298_v14  ;;  %v2493_v7 = vadd.f32 %v2492_v46, %v2478_v58  ;;  %v10636_v36 = vpop.f32.mrb[14].mxu0  ;;  %11041 = vmatprep.mubr.msk.f32.mxu0 %vm329_vm1, %v13581_v40  ;;  %v13981_v58 = vld [vmem:[#allocation12_spill] sm:$0xff]  ;;  %v13983_v30 = vld [vmem:[#allocation14_spill] sm:$0xff] }
 0x22b   : > { %v4645_v6 = vmul.f32 %v10867_v32, %v4607_v31  ;;  %v4621_v34 = vadd.f32 %v4620_v3, %v4606_v61  ;;  %v4644_v20 = vmul.f32 %v4606_v61, %v4463_v33  ;;  %v4658_v52 = vadd.f32 %v4657_v49, %v4643_v19  ;;  %v10870_v54 = vpop.f32.mrb[14].mxu1  ;;  %v2308_v50 = vpop.f32.mrb[15].mxu0  ;;  %11275 = vmatprep.mubr.msk.f32.mxu1 %vm329_vm1, %v13584_v41  ;;  %v8167_v2 = vld [vmem:[%s12125_s12 + $0x214] sm:$0xff]  ;;  %v8168_v33 = vld [vmem:[%s12125_s12 + $0x21c] sm:$0xff]  ;;  %v6213_v19 = vld [vmem:[%s12125_s12 + $0x125] sm:$0xff] }
 0x22c   : > { %v2494_v38 = vadd.f32 %v2493_v7, %v2479_v37  ;;  %v2444_v43 = vmul.f32 %v10636_v36, %v13479_v11  ;;  %v2443_v51 = vmul.f32 %v13492_v15, %v2308_v50  ;;  %v2457_v39 = vadd.f32 %v2456_v25, %v2442_v16  ;;  %v4473_v23 = vpop.f32.mrb[15].mxu1  ;;  %11042 = vmatmul.mubr.msk.f32.gmra.mrb[24].mxu0 %vm329_vm1, %v13976_v27  ;;  %v13979_v15 = vld [vmem:[#allocation10_spill] sm:$0xff] }
 0x22d   : > { %v4659_v0 = vadd.f32 %v4658_v52, %v4644_v20  ;;  %v4609_v35 = vmul.f32 %v10870_v54, %v4592_v4  ;;  %v4608_v5 = vmul.f32 %v4587_v22, %v4473_v23  ;;  %v4622_v24 = vadd.f32 %v4621_v34, %v4607_v31  ;;  %11276 = vmatmul.mubr.msk.f32.gmra.mrb[24].mxu1 %vm329_vm1, %v13977_v12  ;;  %v13984_v31 = vld [vmem:[#allocation5_spill] sm:$0xff]  ;;  %v8385_v12 = vld [vmem:[%s12125_s12 + $0x1dd] sm:$0xff] }
 0x22e   : > { %v2458_v53 = vadd.f32 %v2457_v39, %v2443_v51  ;;  %v2481_v40 = vmul.f32 %v2443_v51, %v2308_v50  ;;  %v2495_v28 = vadd.f32 %v2494_v38, %v2480_v10  ;;  %11044 = vmatprep.mubr.msk.f32.mxu0 %vm329_vm1, %v13978_v9  ;;  %11278 = vmatprep.mubr.msk.f32.mxu1 %vm329_vm1, %v13979_v15  ;;  %v13985_v10 = vld [vmem:[#allocation6_spill] sm:$0xff] }
 0x22f   : > { %v4623_v11 = vadd.f32 %v4622_v24, %v4608_v5  ;;  %v4646_v1 = vmul.f32 %v4608_v5, %v4473_v23  ;;  %v4660_v41 = vadd.f32 %v4659_v0, %v4645_v6  ;;  %v2482_v26 = vmul.f32 %v10636_v36, %v2444_v43  ;;  %11079 = vmatprep.subr.msk.mxu0 %vm378_vm0, %v11922_v29  ;;  %v6214_v37 = vld [vmem:[%s12125_s12 + $0x12d] sm:$0xff]  ;;  %v6215_v20 = vld [vmem:[%s12125_s12 + $0x135] sm:$0xff]  ;;  %v8381_v23 = vld [vmem:[%s12125_s12 + $0x1bd] sm:$0xff] }
 0x230   : > { %v2459_v56 = vadd.f32 %v2458_v53, %v2444_v43  ;;  %v2496_v45 = vadd.f32 %v2495_v28, %v2481_v40  ;;  %11313 = vmatprep.subr.msk.mxu1 %vm378_vm0, %v11922_v29  ;;  %v4647_v13 = vmul.f32 %v10870_v54, %v4609_v35  ;;  %11045 = vmatmul.mubr.msk.f32.gmra.mrb[26].mxu0 %vm329_vm1, %v13980_v60  ;;  %v8379_v22 = vld [vmem:[%s12125_s12 + $0x1ad] sm:$0xff]  ;;  %v8380_v52 = vld [vmem:[%s12125_s12 + $0x1b5] sm:$0xff]  ;;  %v6216_v43 = vld [vmem:[%s12125_s12 + $0x13d] sm:$0xff] }
 0x231   : > { %v4624_v48 = vadd.f32 %v4623_v11, %v4609_v35  ;;  %v4661_v44 = vadd.f32 %v4660_v41, %v4646_v1  ;;  %11279 = vmatmul.mubr.msk.f32.gmra.mrb[26].mxu1 %vm329_vm1, %v13981_v58  ;;  %11047 = vmatprep.mubr.msk.f32.mxu0 %vm329_vm1, %v13982_v21  ;;  %v6217_v0 = vld [vmem:[%s12125_s12 + $0x145] sm:$0xff]  ;;  %v6218_v24 = vld [vmem:[%s12125_s12 + $0x14d] sm:$0xff]  ;;  %v6219_v53 = vld [vmem:[%s12125_s12 + $0x155] sm:$0xff] }
 0x232   : > { %v2460_v57 = vrot.slane %v2459_v56, 4  ;;  %v2497_v8 = vadd.f32 %v2496_v45, %v2482_v26  ;;  %11281 = vmatprep.mubr.msk.f32.mxu1 %vm329_vm1, %v13983_v30  ;;  %v8382_v35 = vld [vmem:[%s12125_s12 + $0x1c5] sm:$0xff]  ;;  %v8383_v27 = vld [vmem:[%s12125_s12 + $0x1cd] sm:$0xff]  ;;  %v8384_v40 = vld [vmem:[%s12125_s12 + $0x1d5] sm:$0xff] }
 0x233   : > { %v4625_v42 = vrot.slane %v4624_v48, 4  ;;  %v4662_v63 = vadd.f32 %v4661_v44, %v4647_v13  ;;  %v6220_v28 = vld [vmem:[%s12125_s12 + $0x15d] sm:$0xff]  ;;  %v6221_v11 = vld [vmem:[%s12125_s12 + $0x165] sm:$0xff]  ;;  %v6222_v41 = vld [vmem:[%s12125_s12 + $0x16d] sm:$0xff] }
 0x234   : > { %v2461_v17 = vadd.f32 %v2460_v57, %v2459_v56  ;;  %v2498_v62 = vrot.slane %v2497_v8, 4  ;;  %11048 = vmatmul.mubr.msk.f32.gmra.mrb[28].mxu0 %vm329_vm1, %v13643_v55  ;;  %v8378_v55 = vld [vmem:[%s12125_s12 + $0x1a5] sm:$0xff]  ;;  %v8387_v9 = vld [vmem:[%s12125_s12 + $0x1ed] sm:$0xff]  ;;  %v6223_v15 = vld [vmem:[%s12125_s12 + $0x175] sm:$0xff] }
 0x235   : > { %v4626_v16 = vadd.f32 %v4625_v42, %v4624_v48  ;;  %v4663_v32 = vrot.slane %v4662_v63, 4  ;;  %11282 = vmatmul.mubr.msk.f32.gmra.mrb[28].mxu1 %vm329_vm1, %v13648_v59  ;;  %11050 = vmatprep.mubr.msk.f32.mxu0 %vm329_vm1, %v13984_v31  ;;  %v8386_v1 = vld [vmem:[%s12125_s12 + $0x1e5] sm:$0xff]  ;;  %v8388_v26 = vld [vmem:[%s12125_s12 + $0x1f5] sm:$0xff]  ;;  %v6224_v56 = vld [vmem:[%s12125_s12 + $0x17d] sm:$0xff] }
 0x236   : > { %v2462_v14 = vrot.slane %v2461_v17, 2  ;;  %v2499_v46 = vadd.f32 %v2498_v62, %v2497_v8  ;;  %11284 = vmatprep.mubr.msk.f32.mxu1 %vm329_vm1, %v8167_v2  ;;  %v8389_v45 = vld [vmem:[%s12125_s12 + $0x1fd] sm:$0xff]  ;;  %v8390_v13 = vld [vmem:[%s12125_s12 + $0x205] sm:$0xff]  ;;  %v6226_v48 = vld [vmem:[%s12125_s12 + $0x18d] sm:$0xff] }
 0x237   : > { %v4627_v47 = vrot.slane %v4626_v16, 2  ;;  %v4664_v18 = vadd.f32 %v4663_v32, %v4662_v63  ;;  %v8391_v44 = vld [vmem:[%s12125_s12 + $0x20d] sm:$0xff]  ;;  %v6227_v60 = vld [vmem:[%s12125_s12 + $0x195] sm:$0xff]  ;;  %v6228_v8 = vld [vmem:[%s12125_s12 + $0x19d] sm:$0xff] }
 0x238   : > { %v2463_v49 = vadd.f32 %v2462_v14, %v2461_v17  ;;  %v2500_v61 = vrot.slane %v2499_v46, 2  ;;  %11051 = vmatmul.mubr.msk.f32.gmra.mrb[30].mxu0 %vm329_vm1, %v13985_v10  ;;  %v8392_v57 = vld [vmem:[%s12125_s12 + $0x215] sm:$0xff]  ;;  %v8393_v58 = vld [vmem:[%s12125_s12 + $0x21d] sm:$0xff]  ;;  %v6438_v21 = vld [vmem:[%s12125_s12 + $0x126] sm:$0xff] }
 0x239   : > { %v4628_v3 = vadd.f32 %v4627_v47, %v4626_v16  ;;  %v4665_v4 = vrot.slane %v4664_v18, 2  ;;  %11285 = vmatmul.mubr.msk.f32.gmra.mrb[30].mxu1 %vm329_vm1, %v8168_v33  ;;  %11055 = vmatprep.mubr.msk.f32.mxu0 %vm329_vm1, %v6213_v19  ;;  %v8603_v42 = vld [vmem:[%s12125_s12 + $0x1a6] sm:$0xff]  ;;  %v6439_v63 = vld [vmem:[%s12125_s12 + $0x12e] sm:$0xff]  ;;  %v6440_v17 = vld [vmem:[%s12125_s12 + $0x136] sm:$0xff] }
 0x23a   : > { %v2464_v59 = vrot.slane %v2463_v49, 1  ;;  %v2501_v25 = vadd.f32 %v2500_v61, %v2499_v46  ;;  %11289 = vmatprep.mubr.msk.f32.mxu1 %vm329_vm1, %v8378_v55  ;;  %v8604_v30 = vld [vmem:[%s12125_s12 + $0x1ae] sm:$0xff]  ;;  %v8605_v62 = vld [vmem:[%s12125_s12 + $0x1b6] sm:$0xff]  ;;  %v6441_v2 = vld [vmem:[%s12125_s12 + $0x13e] sm:$0xff] }
 0x23b   : > { %v4629_v7 = vrot.slane %v4628_v3, 1  ;;  %v4666_v36 = vadd.f32 %v4665_v4, %v4664_v18  ;;  %v8606_v16 = vld [vmem:[%s12125_s12 + $0x1be] sm:$0xff]  ;;  %v6442_v32 = vld [vmem:[%s12125_s12 + $0x146] sm:$0xff]  ;;  %v6443_v46 = vld [vmem:[%s12125_s12 + $0x14e] sm:$0xff] }
 0x23c   : > { %v2465_v6 = vadd.f32 %v2464_v59, %v2463_v49  ;;  %v2502_v34 = vrot.slane %v2501_v25, 1  ;;  %11056 = vmatmul.mubr.msk.f32.vlgmr.msra.gmra.mrb[16].mxu0 %vm329_vm1, %v6214_v37  ;;  %v8607_v14 = vld [vmem:[%s12125_s12 + $0x1c6] sm:$0xff]  ;;  %v8608_v31 = vld [vmem:[%s12125_s12 + $0x1ce] sm:$0xff]  ;;  %v6444_v47 = vld [vmem:[%s12125_s12 + $0x156] sm:$0xff] }
 0x23d   : > { %v4630_v54 = vadd.f32 %v4629_v7, %v4628_v3  ;;  %v4667_v50 = vrot.slane %v4666_v36, 1  ;;  %11290 = vmatmul.mubr.msk.f32.vlgmr.msra.gmra.mrb[16].mxu1 %vm329_vm1, %v8379_v22  ;;  %11080 = vmatpush3.msk.msra.mxu0 %vm378_vm0, %v11922_v29  ;;  %v8609_v18 = vld [vmem:[%s12125_s12 + $0x1d6] sm:$0xff]  ;;  %v6445_v33 = vld [vmem:[%s12125_s12 + $0x15e] sm:$0xff]  ;;  %v6446_v49 = vld [vmem:[%s12125_s12 + $0x166] sm:$0xff] }
 0x23e   : > { %v2503_v38 = vadd.f32 %v2502_v34, %v2501_v25  ;;  %11058 = vmatprep.mubr.msk.f32.mxu0 %vm329_vm1, %v6215_v20  ;;  %11292 = vmatprep.mubr.msk.f32.mxu1 %vm329_vm1, %v8380_v52  ;;  %v8610_v19 = vld [vmem:[%s12125_s12 + $0x1de] sm:$0xff]  ;;  %v8611_v61 = vld [vmem:[%s12125_s12 + $0x1e6] sm:$0xff]  ;;  %v6447_v55 = vld [vmem:[%s12125_s12 + $0x16e] sm:$0xff] }
 0x23f   : > { %v13754_v51 = vadd.f32 %v4630_v54, %v2465_v6  ;;  %v4668_v39 = vadd.f32 %v4667_v50, %v4666_v36  ;;  %11314 = vmatpush3.msk.msra.mxu1 %vm378_vm0, %v11922_v29  ;;  %v6225_v29 = vld [vmem:[%s12125_s12 + $0x185] sm:$0xff]  ;;  %v8612_v3 = vld [vmem:[%s12125_s12 + $0x1ee] sm:$0xff]  ;;  %v6448_v4 = vld [vmem:[%s12125_s12 + $0x176] sm:$0xff]  ;;  %v6682_v54 = vpop.permute.xlu0 %6681  ;;  %v6687_v50 = vpop.permute.xlu1 %6686 }
 0x240   : > { %11059 = vmatmul.mubr.msk.f32.gmra.mrb[18].mxu0 %vm329_vm1, %v6216_v43  ;;  %v8613_v10 = vld [vmem:[%s12125_s12 + $0x1f6] sm:$0xff]  ;;  %v6449_v59 = vld [vmem:[%s12125_s12 + $0x17e] sm:$0xff]  ;;  %v6450_v37 = vld [vmem:[%s12125_s12 + $0x186] sm:$0xff] }
 0x241   : > { %v13762_v5 = vadd.f32 %v4668_v39, %v2503_v38  ;;  %11293 = vmatmul.mubr.msk.f32.gmra.mrb[18].mxu1 %vm329_vm1, %v8381_v23  ;;  %11061 = vmatprep.mubr.msk.f32.mxu0 %vm329_vm1, %v6217_v0  ;;  %v8614_v25 = vld [vmem:[%s12125_s12 + $0x1fe] sm:$0xff]  ;;  %v8615_v7 = vld [vmem:[%s12125_s12 + $0x206] sm:$0xff]  ;;  %v6451_v36 = vld [vmem:[%s12125_s12 + $0x18e] sm:$0xff] }
 0x242   : > { %11295 = vmatprep.mubr.msk.f32.mxu1 %vm329_vm1, %v8382_v35  ;;  %v8616_v22 = vld [vmem:[%s12125_s12 + $0x20e] sm:$0xff]  ;;  %v6452_v6 = vld [vmem:[%s12125_s12 + $0x196] sm:$0xff]  ;;  %v6453_v20 = vld [vmem:[%s12125_s12 + $0x19e] sm:$0xff] }
 0x243   : > { %v8617_v34 = vld [vmem:[%s12125_s12 + $0x216] sm:$0xff]  ;;  %v8618_v52 = vld [vmem:[%s12125_s12 + $0x21e] sm:$0xff]  ;;  %v6692_v38 = vpop.permute.xlu0 %6691  ;;  %v6697_v43 = vpop.permute.xlu1 %6696  ;;  %s9167_s12 = sshll.u32 %s13996_s18, 3 }
 0x244   : > { %11062 = vmatmul.mubr.msk.f32.gmra.mrb[20].mxu0 %vm329_vm1, %v6218_v24  ;;  %s286_s15 = scalar_lea.vmem %s13952_s3, %s9167_s12  ;;  %s293_s24 = scalar_lea.vmem %s13953_s4, %s9167_s12 }
 0x245   : > { %11296 = vmatmul.mubr.msk.f32.gmra.mrb[20].mxu1 %vm329_vm1, %v8383_v27  ;;  %11064 = vmatprep.mubr.msk.f32.mxu0 %vm329_vm1, %v6219_v53 }
 0x246   : > { %11298 = vmatprep.mubr.msk.f32.mxu1 %vm329_vm1, %v8384_v40 }
 0x247   : > { %v8847_v39 = vpop.permute.xlu0 %8846  ;;  %v8852_v23 = vpop.permute.xlu1 %8851 }
 0x248   : > { %11065 = vmatmul.mubr.msk.f32.gmra.mrb[22].mxu0 %vm329_vm1, %v6220_v28 }
 0x249   : > { %11299 = vmatmul.mubr.msk.f32.gmra.mrb[22].mxu1 %vm329_vm1, %v8385_v12  ;;  %11067 = vmatprep.mubr.msk.f32.mxu0 %vm329_vm1, %v6221_v11 }
 0x24a   : > { %11301 = vmatprep.mubr.msk.f32.mxu1 %vm329_vm1, %v8386_v1 }
 0x24b   : > { %v8857_v0 = vpop.permute.xlu0 %8856  ;;  %v6702_v35 = vpop.permute.xlu1 %6701 }
 0x24c   : > { %11068 = vmatmul.mubr.msk.f32.gmra.mrb[24].mxu0 %vm329_vm1, %v6222_v41 }
 0x24d   : > { %11302 = vmatmul.mubr.msk.f32.gmra.mrb[24].mxu1 %vm329_vm1, %v8387_v9  ;;  %11070 = vmatprep.mubr.msk.f32.mxu0 %vm329_vm1, %v6223_v15 }
 0x24e   : > { %11304 = vmatprep.mubr.msk.f32.mxu1 %vm329_vm1, %v8388_v26 }
 0x24f   : > { %v8862_v24 = vpop.permute.xlu0 %8861  ;;  %v6707_v27 = vpop.permute.xlu1 %6706 }
 0x250   : > { %11071 = vmatmul.mubr.msk.f32.gmra.mrb[26].mxu0 %vm329_vm1, %v6224_v56 }
 0x251   : > { %11305 = vmatmul.mubr.msk.f32.gmra.mrb[26].mxu1 %vm329_vm1, %v8389_v45  ;;  %11073 = vmatprep.mubr.msk.f32.mxu0 %vm329_vm1, %v6225_v29 }
 0x252   : > { %11307 = vmatprep.mubr.msk.f32.mxu1 %vm329_vm1, %v8390_v13 }
 0x253   : > { %v8867_v53 = vpop.permute.xlu0 %8866  ;;  %v13876_v40 = vpop.permute.xlu1 %6711 }
 0x254   : > { %11074 = vmatmul.mubr.msk.f32.gmra.mrb[28].mxu0 %vm329_vm1, %v6226_v48 }
 0x255   : > { %11308 = vmatmul.mubr.msk.f32.gmra.mrb[28].mxu1 %vm329_vm1, %v8391_v44  ;;  %11076 = vmatprep.mubr.msk.f32.mxu0 %vm329_vm1, %v6227_v60 }
 0x256   : > { %11310 = vmatprep.mubr.msk.f32.mxu1 %vm329_vm1, %v8392_v57 }
 0x257   : > { %v8872_v28 = vpop.permute.xlu0 %8871  ;;  %v13878_v12 = vpop.permute.xlu1 %6716 }
 0x258   : > { %11077 = vmatmul.mubr.msk.f32.gmra.mrb[30].mxu0 %vm329_vm1, %v6228_v8 }
 0x259   : > { %11311 = vmatmul.mubr.msk.f32.gmra.mrb[30].mxu1 %vm329_vm1, %v8393_v58  ;;  %11081 = vmatprep.mubr.msk.f32.mxu0 %vm329_vm1, %v6438_v21 }
 0x25a   : > { %11315 = vmatprep.mubr.msk.f32.mxu1 %vm329_vm1, %v8603_v42 }
 0x25b   : > { %v13880_v11 = vpop.permute.xlu0 %8876  ;;  %v13882_v1 = vpop.permute.xlu1 %6721 }
 0x25c   : > { %11082 = vmatmul.mubr.msk.f32.vlgmr.msra.gmra.mrb[16].mxu0 %vm329_vm1, %v6439_v63 }
 0x25d   : > { %11316 = vmatmul.mubr.msk.f32.vlgmr.msra.gmra.mrb[16].mxu1 %vm329_vm1, %v8604_v30  ;;  %11084 = vmatprep.mubr.msk.f32.mxu0 %vm329_vm1, %v6440_v17 }
 0x25e   : > { %11318 = vmatprep.mubr.msk.f32.mxu1 %vm329_vm1, %v8605_v62 }
 0x25f   : > { %v13884_v41 = vpop.permute.xlu0 %8881  ;;  %v13886_v9 = vpop.permute.xlu1 %6726 }
 0x260   : > { %11085 = vmatmul.mubr.msk.f32.gmra.mrb[18].mxu0 %vm329_vm1, %v6441_v2 }
 0x261   : > { %11319 = vmatmul.mubr.msk.f32.gmra.mrb[18].mxu1 %vm329_vm1, %v8606_v16  ;;  %11087 = vmatprep.mubr.msk.f32.mxu0 %vm329_vm1, %v6442_v32 }
 0x262   : > { %11321 = vmatprep.mubr.msk.f32.mxu1 %vm329_vm1, %v8607_v14 }
 0x263   : > { %v13888_v15 = vpop.permute.xlu0 %8886  ;;  %v13890_v26 = vpop.permute.xlu1 %6731 }
 0x264   : > { %11088 = vmatmul.mubr.msk.f32.gmra.mrb[20].mxu0 %vm329_vm1, %v6443_v46 }
 0x265   : > { %11322 = vmatmul.mubr.msk.f32.gmra.mrb[20].mxu1 %vm329_vm1, %v8608_v31  ;;  %11090 = vmatprep.mubr.msk.f32.mxu0 %vm329_vm1, %v6444_v47 }
 0x266   : > { %11324 = vmatprep.mubr.msk.f32.mxu1 %vm329_vm1, %v8609_v18 }
 0x267   : > { %v13892_v56 = vpop.permute.xlu0 %8891  ;;  %v13894_v45 = vpop.permute.xlu1 %6736 }
 0x268   : > { %11091 = vmatmul.mubr.msk.f32.gmra.mrb[22].mxu0 %vm329_vm1, %v6445_v33 }
 0x269   : > { %11325 = vmatmul.mubr.msk.f32.gmra.mrb[22].mxu1 %vm329_vm1, %v8610_v19  ;;  %11093 = vmatprep.mubr.msk.f32.mxu0 %vm329_vm1, %v6446_v49 }
 0x26a   : > { %11327 = vmatprep.mubr.msk.f32.mxu1 %vm329_vm1, %v8611_v61 }
 0x26b   : > { %v13896_v42 = vpop.permute.xlu0 %8896  ;;  %v13898_v31 = vpop.permute.xlu1 %6741 }
 0x26c   : > { %11094 = vmatmul.mubr.msk.f32.gmra.mrb[24].mxu0 %vm329_vm1, %v6447_v55 }
 0x26d   : > { %11328 = vmatmul.mubr.msk.f32.gmra.mrb[24].mxu1 %vm329_vm1, %v8612_v3  ;;  %11096 = vmatprep.mubr.msk.f32.mxu0 %vm329_vm1, %v6448_v4 }
 0x26e   : > { %11330 = vmatprep.mubr.msk.f32.mxu1 %vm329_vm1, %v8613_v10 }
 0x270   : > { %11097 = vmatmul.mubr.msk.f32.gmra.mrb[26].mxu0 %vm329_vm1, %v6449_v59 }
 0x271   : > { %11331 = vmatmul.mubr.msk.f32.gmra.mrb[26].mxu1 %vm329_vm1, %v8614_v25  ;;  %11099 = vmatprep.mubr.msk.f32.mxu0 %vm329_vm1, %v6450_v37 }
 0x272   : > { %11333 = vmatprep.mubr.msk.f32.mxu1 %vm329_vm1, %v8615_v7 }
 0x274   : > { %11100 = vmatmul.mubr.msk.f32.gmra.mrb[28].mxu0 %vm329_vm1, %v6451_v36 }
 0x275   : > { %11334 = vmatmul.mubr.msk.f32.gmra.mrb[28].mxu1 %vm329_vm1, %v8616_v22  ;;  %11102 = vmatprep.mubr.msk.f32.mxu0 %vm329_vm1, %v6452_v6  ;;  %v13900_v22 = vpop.permute.xlu0 %8901 }
 0x276   : > { %11336 = vmatprep.mubr.msk.f32.mxu1 %vm329_vm1, %v8617_v34 }
 0x278   : > { %11103 = vmatmul.mubr.msk.f32.gmra.mrb[30].mxu0 %vm329_vm1, %v6453_v20 }
 0x279   : > { %11337 = vmatmul.mubr.msk.f32.gmra.mrb[30].mxu1 %vm329_vm1, %v8618_v52 }
 0x32f   : > { %v11083_v29 = vpop.f32.mrb[16].mxu0 }
 0x330   : > { %v6760_v13 = vmul.f32 %v11083_v29, %v6687_v50  ;;  %v11317_v48 = vpop.f32.mrb[16].mxu1  ;;  %v6568_v44 = vpop.f32.mrb[17].mxu0 }
 0x331   : > { %v8925_v60 = vmul.f32 %v11317_v48, %v8852_v23  ;;  %v6759_v57 = vmul.f32 %v6682_v54, %v6568_v44  ;;  %v8733_v8 = vpop.f32.mrb[17].mxu1  ;;  %v13902_v23 = vpop.permute.xlu1 %6746 }
 0x332   : > { %v6798_v58 = vmul.f32 %v11083_v29, %v6760_v13  ;;  %v8924_v21 = vmul.f32 %v8847_v39, %v8733_v8 }
 0x333   : > { %v8963_v63 = vmul.f32 %v11317_v48, %v8925_v60  ;;  %v6775_v30 = vadd.f32 %v6760_v13, %v6759_v57  ;;  %v6797_v17 = vmul.f32 %v6759_v57, %v6568_v44  ;;  %v11086_v62 = vpop.f32.mrb[18].mxu0 }
 0x334   : > { %v8940_v2 = vadd.f32 %v8925_v60, %v8924_v21  ;;  %v8962_v16 = vmul.f32 %v8924_v21, %v8733_v8  ;;  %v6762_v32 = vmul.f32 %v11086_v62, %v6697_v43  ;;  %v11320_v14 = vpop.f32.mrb[18].mxu1  ;;  %v6578_v46 = vpop.f32.mrb[19].mxu0 }
 0x335   : > { %v6813_v47 = vadd.f32 %v6798_v58, %v6797_v17  ;;  %v6761_v18 = vmul.f32 %v6692_v38, %v6578_v46  ;;  %v8743_v33 = vpop.f32.mrb[19].mxu1  ;;  %v8927_v49 = vmul.f32 %v11320_v14, %v8862_v24 }
 0x336   : > { %v8978_v19 = vadd.f32 %v8963_v63, %v8962_v16  ;;  %v8926_v61 = vmul.f32 %v8857_v0, %v8743_v33  ;;  %v6800_v10 = vmul.f32 %v11086_v62, %v6762_v32  ;;  %v8907_v16 = vpop.permute.xlu0 %8906 }
 0x337   : > { %v6776_v55 = vadd.f32 %v6775_v30, %v6761_v18  ;;  %v6799_v3 = vmul.f32 %v6761_v18, %v6578_v46  ;;  %v11089_v4 = vpop.f32.mrb[20].mxu0  ;;  %v8965_v50 = vmul.f32 %v11320_v14, %v8927_v49 }
 0x338   : > { %v8941_v59 = vadd.f32 %v8940_v2, %v8926_v61  ;;  %v8964_v25 = vmul.f32 %v8926_v61, %v8743_v33  ;;  %v6764_v37 = vmul.f32 %v11089_v4, %v6707_v27  ;;  %v11323_v7 = vpop.f32.mrb[20].mxu1  ;;  %v6588_v36 = vpop.f32.mrb[21].mxu0 }
 0x339   : > { %v6814_v6 = vadd.f32 %v6813_v47, %v6799_v3  ;;  %v8929_v34 = vmul.f32 %v11323_v7, %v8872_v28  ;;  %v6763_v20 = vmul.f32 %v6702_v35, %v6588_v36  ;;  %v6777_v52 = vadd.f32 %v6776_v55, %v6762_v32  ;;  %v8753_v54 = vpop.f32.mrb[21].mxu1  ;;  %v13909_v55 = vpop.permute.xlu1 %6751 }
 0x33a   : > { %v8979_v38 = vadd.f32 %v8978_v19, %v8964_v25  ;;  %v8928_v43 = vmul.f32 %v8867_v53, %v8753_v54  ;;  %v8942_v39 = vadd.f32 %v8941_v59, %v8927_v49  ;;  %v6802_v0 = vmul.f32 %v11089_v4, %v6764_v37 }
 0x33b   : > { %v6778_v24 = vadd.f32 %v6777_v52, %v6763_v20  ;;  %v6801_v29 = vmul.f32 %v6763_v20, %v6588_v36  ;;  %v6815_v13 = vadd.f32 %v6814_v6, %v6800_v10  ;;  %v11092_v27 = vpop.f32.mrb[22].mxu0  ;;  %v8967_v8 = vmul.f32 %v11323_v7, %v8929_v34 }
 0x33c   : > { %v8943_v48 = vadd.f32 %v8942_v39, %v8928_v43  ;;  %v8966_v44 = vmul.f32 %v8928_v43, %v8753_v54  ;;  %v8980_v60 = vadd.f32 %v8979_v38, %v8965_v50  ;;  %v6766_v57 = vmul.f32 %v11092_v27, %v13878_v12  ;;  %v11326_v28 = vpop.f32.mrb[22].mxu1  ;;  %v6598_v35 = vpop.f32.mrb[23].mxu0 }
 0x33d   : > { %v6816_v58 = vadd.f32 %v6815_v13, %v6801_v29  ;;  %v6765_v21 = vmul.f32 %v13876_v40, %v6598_v35  ;;  %v6779_v53 = vadd.f32 %v6778_v24, %v6764_v37  ;;  %v8763_v63 = vpop.f32.mrb[23].mxu1  ;;  %v8931_v17 = vmul.f32 %v11326_v28, %v13884_v41 }
 0x33e   : > { %v8981_v30 = vadd.f32 %v8980_v60, %v8966_v44  ;;  %v8930_v62 = vmul.f32 %v13880_v11, %v8763_v63  ;;  %v8944_v2 = vadd.f32 %v8943_v48, %v8929_v34  ;;  %v6804_v32 = vmul.f32 %v11092_v27, %v6766_v57  ;;  %v6757_v60 = vpop.permute.xlu1 %6756 }
 0x33f   : > { %v6780_v14 = vadd.f32 %v6779_v53, %v6765_v21  ;;  %v6803_v46 = vmul.f32 %v6765_v21, %v6598_v35  ;;  %v6817_v47 = vadd.f32 %v6816_v58, %v6802_v0  ;;  %v11095_v12 = vpop.f32.mrb[24].mxu0  ;;  %v8969_v59 = vmul.f32 %v11326_v28, %v8931_v17 }
 0x340   : > { %v8945_v18 = vadd.f32 %v8944_v2, %v8930_v62  ;;  %v8968_v33 = vmul.f32 %v8930_v62, %v8763_v63  ;;  %v8982_v19 = vadd.f32 %v8981_v30, %v8967_v8  ;;  %v6768_v49 = vmul.f32 %v11095_v12, %v13886_v9  ;;  %v11329_v40 = vpop.f32.mrb[24].mxu1  ;;  %v6608_v61 = vpop.f32.mrb[25].mxu0 }
 0x341   : > { %v6818_v3 = vadd.f32 %v6817_v47, %v6803_v46  ;;  %v8933_v41 = vmul.f32 %v11329_v40, %v13892_v56  ;;  %v6767_v11 = vmul.f32 %v13882_v1, %v6608_v61  ;;  %v6781_v4 = vadd.f32 %v6780_v14, %v6766_v57  ;;  %v8773_v10 = vpop.f32.mrb[25].mxu1  ;;  %v8912_v1 = vpop.permute.xlu0 %8911 }
 0x342   : > { %v8983_v25 = vadd.f32 %v8982_v19, %v8968_v33  ;;  %v8932_v37 = vmul.f32 %v13888_v15, %v8773_v10  ;;  %v8946_v7 = vadd.f32 %v8945_v18, %v8931_v17  ;;  %v6806_v36 = vmul.f32 %v11095_v12, %v6768_v49 }
 0x343   : > { %v6782_v6 = vadd.f32 %v6781_v4, %v6767_v11  ;;  %v6805_v34 = vmul.f32 %v6767_v11, %v6608_v61  ;;  %v6819_v9 = vadd.f32 %v6818_v3, %v6804_v32  ;;  %v11098_v20 = vpop.f32.mrb[26].mxu0  ;;  %v8971_v39 = vmul.f32 %v11329_v40, %v8933_v41 }
 0x344   : > { %v8947_v52 = vadd.f32 %v8946_v7, %v8932_v37  ;;  %v8970_v54 = vmul.f32 %v8932_v37, %v8773_v10  ;;  %v8984_v50 = vadd.f32 %v8983_v25, %v8969_v59  ;;  %v6770_v38 = vmul.f32 %v11098_v20, %v13894_v45  ;;  %v11332_v56 = vpop.f32.mrb[26].mxu1  ;;  %v6618_v43 = vpop.f32.mrb[27].mxu0 }
 0x345   : > { %v6820_v0 = vadd.f32 %v6819_v9, %v6805_v34  ;;  %v6769_v24 = vmul.f32 %v13890_v26, %v6618_v43  ;;  %v6783_v29 = vadd.f32 %v6782_v6, %v6768_v49  ;;  %v8783_v15 = vpop.f32.mrb[27].mxu1  ;;  %v8935_v27 = vmul.f32 %v11332_v56, %v13900_v22  ;;  %v8917_v12 = vpop.permute.xlu0 %8916 }
 0x346   : > { %v8985_v13 = vadd.f32 %v8984_v50, %v8970_v54  ;;  %v8934_v48 = vmul.f32 %v13896_v42, %v8783_v15  ;;  %v8948_v44 = vadd.f32 %v8947_v52, %v8933_v41  ;;  %v6808_v57 = vmul.f32 %v11098_v20, %v6770_v38  ;;  %v8922_v10 = vpop.permute.xlu1 %8921 }
 0x347   : > { %v6784_v28 = vadd.f32 %v6783_v29, %v6769_v24  ;;  %v6807_v35 = vmul.f32 %v6769_v24, %v6618_v43  ;;  %v6821_v45 = vadd.f32 %v6820_v0, %v6806_v36  ;;  %v11101_v8 = vpop.f32.mrb[28].mxu0  ;;  %v8973_v32 = vmul.f32 %v11332_v56, %v8935_v27 }
 0x348   : > { %v8949_v58 = vadd.f32 %v8948_v44, %v8934_v48  ;;  %v8972_v21 = vmul.f32 %v8934_v48, %v8783_v15  ;;  %v8986_v53 = vadd.f32 %v8985_v13, %v8971_v39  ;;  %v6772_v63 = vmul.f32 %v11101_v8, %v13902_v23  ;;  %v11335_v26 = vpop.f32.mrb[28].mxu1  ;;  %v6628_v30 = vpop.f32.mrb[29].mxu0 }
 0x349   : > { %v6822_v17 = vadd.f32 %v6821_v45, %v6807_v35  ;;  %v8937_v62 = vmul.f32 %v11335_v26, %v8912_v1  ;;  %v6771_v22 = vmul.f32 %v13898_v31, %v6628_v30  ;;  %v6785_v2 = vadd.f32 %v6784_v28, %v6770_v38  ;;  %v8793_v42 = vpop.f32.mrb[29].mxu1 }
 0x34a   : > { %v8987_v14 = vadd.f32 %v8986_v53, %v8972_v21  ;;  %v8936_v46 = vmul.f32 %v8907_v16, %v8793_v42  ;;  %v8950_v47 = vadd.f32 %v8949_v58, %v8935_v27  ;;  %v6810_v18 = vmul.f32 %v11101_v8, %v6772_v63 }
 0x34b   : > { %v6786_v33 = vadd.f32 %v6785_v2, %v6771_v22  ;;  %v6809_v19 = vmul.f32 %v6771_v22, %v6628_v30  ;;  %v6823_v49 = vadd.f32 %v6822_v17, %v6808_v57  ;;  %v11104_v40 = vpop.f32.mrb[30].mxu0  ;;  %v8975_v61 = vmul.f32 %v11335_v26, %v8937_v62 }
 0x34c   : > { %v8951_v23 = vadd.f32 %v8950_v47, %v8936_v46  ;;  %v8974_v3 = vmul.f32 %v8936_v46, %v8793_v42  ;;  %v8988_v41 = vadd.f32 %v8987_v14, %v8973_v32  ;;  %v11338_v11 = vpop.f32.mrb[30].mxu1  ;;  %v6638_v4 = vpop.f32.mrb[31].mxu0  ;;  %v6774_v59 = vmul.f32 %v11104_v40, %v6757_v60 }
 0x34d   : > { %v6824_v31 = vadd.f32 %v6823_v49, %v6809_v19  ;;  %v6773_v25 = vmul.f32 %v13909_v55, %v6638_v4  ;;  %v6787_v37 = vadd.f32 %v6786_v33, %v6772_v63  ;;  %v8803_v16 = vpop.f32.mrb[31].mxu1  ;;  %v8939_v36 = vmul.f32 %v11338_v11, %v8922_v10 }
 0x34e   : > { %v8989_v7 = vadd.f32 %v8988_v41, %v8974_v3  ;;  %v8938_v6 = vmul.f32 %v8917_v12, %v8803_v16  ;;  %v8952_v34 = vadd.f32 %v8951_v23, %v8937_v62  ;;  %v6812_v56 = vmul.f32 %v11104_v40, %v6774_v59 }
 0x34f   : > { %v6788_v9 = vadd.f32 %v6787_v37, %v6773_v25  ;;  %v6811_v20 = vmul.f32 %v6773_v25, %v6638_v4  ;;  %v6825_v52 = vadd.f32 %v6824_v31, %v6810_v18  ;;  %v8977_v39 = vmul.f32 %v11338_v11, %v8939_v36 }
 0x350   : > { %v8953_v54 = vadd.f32 %v8952_v34, %v8938_v6  ;;  %v8976_v50 = vmul.f32 %v8938_v6, %v8803_v16  ;;  %v8990_v38 = vadd.f32 %v8989_v7, %v8975_v61  ;;  %v9000_v8 = vlaneseq }
 0x351   : > { %v6789_v43 = vadd.f32 %v6788_v9, %v6774_v59  ;;  %v6826_v1 = vadd.f32 %v6825_v52, %v6811_v20 }
 0x352   : > { %v8954_v0 = vadd.f32 %v8953_v54, %v8939_v36  ;;  %v8991_v24 = vadd.f32 %v8990_v38, %v8976_v50  ;;  %v9001_v22 = vshrl.u32 %v9000_v8, 7 }
 0x353   : > { %v6790_v55 = vrot.slane %v6789_v43, 4  ;;  %v6827_v29 = vadd.f32 %v6826_v1, %v6812_v56 }
 0x354   : > { %v8955_v15 = vrot.slane %v8954_v0, 4  ;;  %v8992_v13 = vadd.f32 %v8991_v24, %v8977_v39  ;;  %vm9002_vm2 = vcmp.eq.s32.totalorder %v9001_v22, 0 }
 0x355   : > { %v6791_v27 = vadd.f32 %v6790_v55, %v6789_v43  ;;  %v6828_v48 = vrot.slane %v6827_v29, 4 }
 0x356   : > { %v8956_v44 = vadd.f32 %v8955_v15, %v8954_v0  ;;  %v8993_v60 = vrot.slane %v8992_v13, 4 }
 0x357   : > { %v6792_v57 = vrot.slane %v6791_v27, 2  ;;  %v6829_v28 = vadd.f32 %v6828_v48, %v6827_v29 }
 0x358   : > { %v8957_v35 = vrot.slane %v8956_v44, 2  ;;  %v8994_v45 = vadd.f32 %v8993_v60, %v8992_v13 }
 0x359   : > { %v6793_v58 = vadd.f32 %v6792_v57, %v6791_v27  ;;  %v6830_v21 = vrot.slane %v6829_v28, 2 }
 0x35a   : > { %v8958_v53 = vadd.f32 %v8957_v35, %v8956_v44  ;;  %v8995_v63 = vrot.slane %v8994_v45, 2 }
 0x35b   : > { %v6794_v26 = vrot.slane %v6793_v58, 1  ;;  %v6831_v30 = vadd.f32 %v6830_v21, %v6829_v28 }
 0x35c   : > { %v8959_v17 = vrot.slane %v8958_v53, 1  ;;  %v8996_v62 = vadd.f32 %v8995_v63, %v8994_v45 }
 0x35d   : > { %v6795_v2 = vadd.f32 %v6794_v26, %v6793_v58  ;;  %v6832_v42 = vrot.slane %v6831_v30, 1 }
 0x35e   : > { %v8997_v32 = vrot.slane %v8996_v62, 1  ;;  %v8960_v47 = vadd.f32 %v8959_v17, %v8958_v53 }
 0x35f   : > { %v6796_v14 = vadd.f32 %v6795_v2, %v13754_v51  ;;  %v6833_v46 = vadd.f32 %v6832_v42, %v6831_v30 }
 0x360   : > { %v8998_v33 = vadd.f32 %v8997_v32, %v8996_v62 }
 0x361   : > { %v6834_v12 = vadd.f32 %v6833_v46, %v13762_v5  ;;  %v8961_v18 = vadd.f32 %v8960_v47, %v6796_v14 }
 0x363   : > { %v8999_v19 = vadd.f32 %v8998_v33, %v6834_v12  ;;  %v9003_v49 = vsel %vm9002_vm2, %v8961_v18, 0.0 }
 0x364   : > { %9004 = vst [vmem:[%s286_s15] sm:$0xff] %v9003_v49 }
 0x365   : > { %v9005_v40 = vsel %vm9002_vm2, %v8999_v19, 0.0 }
 0x366   : > { %9006 = vst [vmem:[%s293_s24] sm:$0xff] %v9005_v40 }
 0x367 PF: > { %s18_s20 = sadd.s32 1, %s12003_s20   ;;  %s13986_s15 = smov %s11987_s16 }
 0x368   : > { %p15_p4 = scmp.ge.s32.totalorder %s18_s20, 4   ;;  %s13987_s16 = smov %s11991_s17 }
 0x369   : > { %s13988_s17 = smov %s12079_s26  ;;  %s13989_s18 = smov %s11999_s19 }
 0x36a   : > { %s13990_s19 = smov %s13992_s22  ;;  %17 = sbr.rel (!%p15_p4) target bundleno = 4 (0x4), region = 98 }
 0x371   :  { %9052 = vsyncpa [#allocation3], 1 }
 0x372   :  { %9054 = vsyncpa [#allocation3 + $0x1], 1 }

</bundles_post_ra>
